<compile_context>
chip_gen: v7x
topology: tpu7x:2x2x1
jax: 0.10.0
libtpu: 0.0.40
codegen_flags: <defaults>
</compile_context>

<pallas_src>
import functools
import math

import jax
import jax.numpy as jnp
from jax.experimental import pallas as pl
from jax.experimental.pallas import tpu as pltpu

_LANES = 1024        # lane-dense last dim (multiple of 128 -> wide unmasked vst)
_TILE_R_MAX = 64     # 64 x 1024 x 4B = 256 KiB per f32 state block
_TC_MAX = 8          # cycles fused per grid step (static unroll)


def _cdiv(a, b):
    return -(-a // b)


def _tile_r(rows):
    """Row-tile size: multiple of 32 (int8 (32,128) tiling), divides rows,
    prefers >= 2 tiles so the 'parallel' axis can use both v7x TensorCores."""
    cands = [t for t in range(_TILE_R_MAX, 31, -32) if rows % t == 0]
    for t in cands:
        if rows // t >= 2:
            return t
    return cands[0] if cands else rows     # fallback: single full-extent tile


def _plan(n_elems):
    """Padded (rows, tile_r) for a flat element count, lane width _LANES."""
    rows = _cdiv(n_elems, _LANES)
    rows = _cdiv(rows, 32) * 32            # int8 sublane tiling alignment
    return rows, _tile_r(rows)


def _pick_tc(T):
    """Largest divisor of T that is <= _TC_MAX (cycles fused per grid step)."""
    for tc in range(min(_TC_MAX, T), 0, -1):
        if T % tc == 0:
            return tc
    return 1


# --------------------------------------------------------------------------- #
# Kernel.
#   inputs  = (x[int8], emit, add_diff, sr0, sr1, b2u_diff)
#   outputs = (out[int8], emit, add_diff, sr0, sr1, b2u_diff)
# State outputs are VMEM-resident across the cycle axis (accumulator pattern);
# each grid step runs Tc cycles (statically unrolled).
# --------------------------------------------------------------------------- #
def _fsu_sqrt_kernel(Tc,
                     x_ref, emit_in, adiff_in, sr0_in, sr1_in, bdiff_in,
                     out_ref, emit_o, adiff_o, sr0_o, sr1_o, bdiff_o):
    c = pl.program_id(1)          # cycle-block index (innermost, "arbitrary")

    @pl.when(c == 0)
    def _init():
        # Load previous-call state into the VMEM-resident output blocks.
        emit_o[...] = emit_in[...]
        adiff_o[...] = adiff_in[...]
        sr0_o[...] = sr0_in[...]
        sr1_o[...] = sr1_in[...]
        bdiff_o[...] = bdiff_in[...]

    for t in range(Tc):           # static unroll, Tc <= 8
        x = x_ref[t].astype(jnp.float32)

        # ---- FSUAdd(mode='unipolar', scaled=False) over stack([x, emit]) ----
        #   acc += x + emit ; out = (acc > out_acc) ; out_acc += out
        # carried as the single exact integer counter adiff = acc - out_acc.
        adiff = adiff_o[...] + x + emit_o[...]
        out = (adiff > 0.0).astype(jnp.float32)
        adiff_o[...] = adiff - out

        # ---- bipolar_emit: ShiftReg(depth=2, read index fixed at 0) -------
        inv = 1.0 - out
        if Tc % 2 == 0:
            # Parity ping-pong: read plane (t & 1) then overwrite it in place
            # (1 vld + 1 vst instead of the 2+2 shift-copy).  Valid because
            # with even Tc the within-call cycle index c*Tc + t has the same
            # parity as t, and an even call length leaves the planes canonical
            # (plane0 = next read, plane1 = read-after-next) for the next call.
            sr_ref = sr0_o if (t % 2 == 0) else sr1_o
            scrambled = sr_ref[...]
            sr_ref[...] = inv
        else:
            # Exact shift-copy form (keeps planes canonical every cycle).
            scrambled = sr0_o[...]
            sr0_o[...] = sr1_o[...]
            sr1_o[...] = inv

        # ---- Bi2Uni: bacc += 2*out - 1 ; ouni = (bacc > boacc) ; boacc += ouni
        # carried as bdiff = bacc - boacc.
        bdiff = bdiff_o[...] + (2.0 * out - 1.0)
        ouni = (bdiff > 0.0).astype(jnp.float32)
        bdiff_o[...] = bdiff - ouni

        emit_o[...] = scrambled * ouni       # AND of {0,1} bits == product
        out_ref[t] = out.astype(jnp.int8)


# --------------------------------------------------------------------------- #
# Host-side packing / state helpers
# --------------------------------------------------------------------------- #
def fsu_sqrt_pack(x_stream):
    """Pack a (T, *shape) 0/1 bit-stream into the lane-dense int8 (T, rows, 1024) slab."""
    T = x_stream.shape[0]
    n = math.prod(x_stream.shape[1:])
    rows, _ = _plan(n)
    flat = x_stream.reshape(T, n).astype(jnp.int8)
    flat = jnp.pad(flat, ((0, 0), (0, rows * _LANES - n)))
    return flat.reshape(T, rows, _LANES)


def fsu_sqrt_unpack(out_packed, full_shape):
    """Inverse of fsu_sqrt_pack; full_shape = (T, *x_shape).  Returns float32
    (module stype=torch.float)."""
    T = full_shape[0]
    n = math.prod(full_shape[1:])
    return (out_packed.reshape(T, -1)[:, :n]
            .reshape(full_shape).astype(jnp.float32))


def fsu_sqrt_init_state(x_shape):
    """State matching the PyTorch module's __init__ (zeros; ShiftReg = [0, 1]).
    Every leaf is a distinct buffer (required: the state pytree is donated)."""
    n = math.prod(x_shape)
    rows, _ = _plan(n)
    shp = (rows, _LANES)
    return dict(
        emit_out=jnp.zeros(shp, jnp.float32),
        add_diff=jnp.zeros(shp, jnp.float32),    # FSUAdd acc - out_acc
        sr0=jnp.zeros(shp, jnp.float32),         # ShiftReg plane read next
        sr1=jnp.ones(shp, jnp.float32),          # ShiftReg plane read after next
        b2u_diff=jnp.zeros(shp, jnp.float32),    # Bi2Uni acc - out_acc
    )


# --------------------------------------------------------------------------- #
# Fused multi-cycle forward (packed layout)
# --------------------------------------------------------------------------- #
def _fsu_sqrt_forward_packed(x_packed, state):
    T, rows, lanes = x_packed.shape
    assert lanes == _LANES
    if x_packed.dtype != jnp.int8:
        x_packed = x_packed.astype(jnp.int8)

    tile_r = _tile_r(rows)
    Tc = _pick_tc(T)
    assert rows % tile_r == 0 and T % Tc == 0
    grid = (rows // tile_r, T // Tc)

    stream_spec = pl.BlockSpec((Tc, tile_r, _LANES), lambda i, c: (c, i, 0))
    state_spec = pl.BlockSpec((tile_r, _LANES), lambda i, c: (i, 0))
    s2d = jax.ShapeDtypeStruct((rows, _LANES), jnp.float32)
    s3d = jax.ShapeDtypeStruct((T, rows, _LANES), jnp.int8)

    outs = pl.pallas_call(
        functools.partial(_fsu_sqrt_kernel, Tc),
        grid=grid,
        in_specs=[stream_spec] + [state_spec] * 5,
        out_specs=[stream_spec] + [state_spec] * 5,
        out_shape=(s3d,) + (s2d,) * 5,
        input_output_aliases={i: i for i in range(1, 6)},   # state in place
        compiler_params=pltpu.CompilerParams(
            dimension_semantics=("parallel", "arbitrary")),
    )(x_packed, state["emit_out"], state["add_diff"], state["sr0"],
      state["sr1"], state["b2u_diff"])

    out_p, emit, adiff, sr0, sr1, bdiff = outs
    new_state = dict(emit_out=emit, add_diff=adiff, sr0=sr0, sr1=sr1,
                     b2u_diff=bdiff)
    return out_p, new_state


fsu_sqrt_forward_packed = jax.jit(_fsu_sqrt_forward_packed, donate_argnums=(1,))


def fsu_sqrt_forward(x, state):
    """Single-cycle convenience API matching the PyTorch module forward."""
    out_p, new_state = fsu_sqrt_forward_packed(fsu_sqrt_pack(x[None]), state)
    return fsu_sqrt_unpack(out_p, (1,) + x.shape)[0], new_state


# --------------------------------------------------------------------------- #
# Pure-JAX reference (unfused acc/out_acc form, no Pallas) for correctness
# --------------------------------------------------------------------------- #
def fsu_sqrt_reference(x_stream):
    T = x_stream.shape[0]
    shp = x_stream.shape[1:]
    x = x_stream.reshape(T, -1).astype(jnp.float32)
    emit = jnp.zeros(x.shape[1:], jnp.float32)
    acc = jnp.zeros_like(emit)
    oacc = jnp.zeros_like(emit)
    sr0 = jnp.zeros_like(emit)
    sr1 = jnp.ones_like(emit)
    bacc = jnp.zeros_like(emit)
    boacc = jnp.zeros_like(emit)
    outs = []
    for t in range(T):
        acc = acc + x[t] + emit
        out = (acc > oacc).astype(jnp.float32)
        oacc = oacc + out
        inv = 1.0 - out
        scrambled = sr0
        sr0, sr1 = sr1, inv
        bacc = bacc + 2.0 * out - 1.0
        ouni = (bacc > boacc).astype(jnp.float32)
        boacc = boacc + ouni
        emit = scrambled * ouni
        outs.append(out)
    return jnp.stack(outs).reshape((T,) + shp)


if __name__ == "__main__":
    key = jax.random.PRNGKey(0)

    # ---- primary demo: module-sized NCHW input, 8-cycle bit-stream ----------
    shape = (2, 4, 16, 16)
    T = 8
    x_stream = jax.random.bernoulli(key, 0.5, (T,) + shape).astype(jnp.float32)
    ref_out = fsu_sqrt_reference(x_stream)

    state = fsu_sqrt_init_state(shape)

    # Fused multi-cycle call: 6 cycles in one pallas_call (even Tc -> ping-pong).
    out_p, state = fsu_sqrt_forward_packed(fsu_sqrt_pack(x_stream[:6]), state)
    jax.block_until_ready((out_p, state))
    out_head = fsu_sqrt_unpack(out_p, (6,) + shape)

    # Single-cycle API (PyTorch-forward parity; odd Tc -> shift-copy path).
    out6, state = fsu_sqrt_forward(x_stream[6], state)
    out7, state = fsu_sqrt_forward(x_stream[7], state)
    jax.block_until_ready((out6, out7, state))

    out_all = jnp.concatenate([out_head, out6[None], out7[None]], axis=0)

    assert out_all.shape == (T,) + shape and out_all.dtype == jnp.float32
    # Cycle-1 sanity: with zero-initialized state, FSUAdd output == input bits.
    assert bool(jnp.array_equal(out_all[0], x_stream[0]))
    # Full stateful check against the pure-JAX reference over all 8 cycles.
    assert bool(jnp.array_equal(out_all, ref_out))

    # ---- secondary check: big enough for >= 2 row tiles (parallel axis) -----
    shape2 = (8, 8, 32, 32)
    T2 = 4
    x2 = jax.random.bernoulli(jax.random.PRNGKey(1), 0.5,
                              (T2,) + shape2).astype(jnp.float32)
    st2 = fsu_sqrt_init_state(shape2)
    out2_p, st2 = fsu_sqrt_forward_packed(fsu_sqrt_pack(x2), st2)
    jax.block_until_ready((out2_p, st2))
    out2 = fsu_sqrt_unpack(out2_p, (T2,) + shape2)
    assert bool(jnp.array_equal(out2, fsu_sqrt_reference(x2)))

    print("KERNEL_OK")
</pallas_src>

<mosaic_0001>
module attributes {stable_mosaic.version = 11 : i64} {
  func.func @_fsu_sqrt_kernel(%arg0: i32, %arg1: i32, %arg2: memref<6x32x1024xi8, #tpu.memory_space<vmem>>, %arg3: memref<32x1024xf32, #tpu.memory_space<vmem>>, %arg4: memref<32x1024xf32, #tpu.memory_space<vmem>>, %arg5: memref<32x1024xf32, #tpu.memory_space<vmem>>, %arg6: memref<32x1024xf32, #tpu.memory_space<vmem>>, %arg7: memref<32x1024xf32, #tpu.memory_space<vmem>>, %arg8: memref<6x32x1024xi8, #tpu.memory_space<vmem>>, %arg9: memref<32x1024xf32, #tpu.memory_space<vmem>>, %arg10: memref<32x1024xf32, #tpu.memory_space<vmem>>, %arg11: memref<32x1024xf32, #tpu.memory_space<vmem>>, %arg12: memref<32x1024xf32, #tpu.memory_space<vmem>>, %arg13: memref<32x1024xf32, #tpu.memory_space<vmem>>) attributes {dimension_semantics = [#tpu.dimension_semantics<parallel>, #tpu.dimension_semantics<arbitrary>], iteration_bounds = array<i64: 1, 1>, scalar_prefetch = 0 : i64, scratch_operands = 0 : i64, tpu.core_type = #tpu.core_type<tc>, window_params = [{transform_indices = @transform_0, window_bounds = array<i64: 6, 32, 1024>}, {transform_indices = @transform_1, window_bounds = array<i64: 32, 1024>}, {transform_indices = @transform_2, window_bounds = array<i64: 32, 1024>}, {transform_indices = @transform_3, window_bounds = array<i64: 32, 1024>}, {transform_indices = @transform_4, window_bounds = array<i64: 32, 1024>}, {transform_indices = @transform_5, window_bounds = array<i64: 32, 1024>}, {transform_indices = @transform_6, window_bounds = array<i64: 6, 32, 1024>}, {transform_indices = @transform_7, window_bounds = array<i64: 32, 1024>}, {transform_indices = @transform_8, window_bounds = array<i64: 32, 1024>}, {transform_indices = @transform_9, window_bounds = array<i64: 32, 1024>}, {transform_indices = @transform_10, window_bounds = array<i64: 32, 1024>}, {transform_indices = @transform_11, window_bounds = array<i64: 32, 1024>}]} {
    %c0_i32 = arith.constant 0 : i32
    %0 = arith.cmpi eq, %arg1, %c0_i32 : i32
    %1 = arith.extui %0 : i1 to i32
    %c0_i32_0 = arith.constant 0 : i32
    %2 = arith.cmpi ne, %1, %c0_i32_0 : i32
    scf.if %2 {
      %c0_156 = arith.constant 0 : index
      %c0_157 = arith.constant 0 : index
      %213 = vector.load %arg3[%c0_156, %c0_157] : memref<32x1024xf32, #tpu.memory_space<vmem>>, vector<32x1024xf32>
      %c0_158 = arith.constant 0 : index
      %c0_159 = arith.constant 0 : index
      %214 = vector.load %arg9[%c0_158, %c0_159] : memref<32x1024xf32, #tpu.memory_space<vmem>>, vector<32x1024xf32>
      tpu.vector_store %arg9[%c0_158, %c0_159], %213 {strides = array<i32>} : memref<32x1024xf32, #tpu.memory_space<vmem>>, vector<32x1024xf32>,
      %c0_160 = arith.constant 0 : index
      %c0_161 = arith.constant 0 : index
      %215 = vector.load %arg4[%c0_160, %c0_161] : memref<32x1024xf32, #tpu.memory_space<vmem>>, vector<32x1024xf32>
      %c0_162 = arith.constant 0 : index
      %c0_163 = arith.constant 0 : index
      %216 = vector.load %arg10[%c0_162, %c0_163] : memref<32x1024xf32, #tpu.memory_space<vmem>>, vector<32x1024xf32>
      tpu.vector_store %arg10[%c0_162, %c0_163], %215 {strides = array<i32>} : memref<32x1024xf32, #tpu.memory_space<vmem>>, vector<32x1024xf32>,
      %c0_164 = arith.constant 0 : index
      %c0_165 = arith.constant 0 : index
      %217 = vector.load %arg5[%c0_164, %c0_165] : memref<32x1024xf32, #tpu.memory_space<vmem>>, vector<32x1024xf32>
      %c0_166 = arith.constant 0 : index
      %c0_167 = arith.constant 0 : index
      %218 = vector.load %arg11[%c0_166, %c0_167] : memref<32x1024xf32, #tpu.memory_space<vmem>>, vector<32x1024xf32>
      tpu.vector_store %arg11[%c0_166, %c0_167], %217 {strides = array<i32>} : memref<32x1024xf32, #tpu.memory_space<vmem>>, vector<32x1024xf32>,
      %c0_168 = arith.constant 0 : index
      %c0_169 = arith.constant 0 : index
      %219 = vector.load %arg6[%c0_168, %c0_169] : memref<32x1024xf32, #tpu.memory_space<vmem>>, vector<32x1024xf32>
      %c0_170 = arith.constant 0 : index
      %c0_171 = arith.constant 0 : index
      %220 = vector.load %arg12[%c0_170, %c0_171] : memref<32x1024xf32, #tpu.memory_space<vmem>>, vector<32x1024xf32>
      tpu.vector_store %arg12[%c0_170, %c0_171], %219 {strides = array<i32>} : memref<32x1024xf32, #tpu.memory_space<vmem>>, vector<32x1024xf32>,
      %c0_172 = arith.constant 0 : index
      %c0_173 = arith.constant 0 : index
      %221 = vector.load %arg7[%c0_172, %c0_173] : memref<32x1024xf32, #tpu.memory_space<vmem>>, vector<32x1024xf32>
      %c0_174 = arith.constant 0 : index
      %c0_175 = arith.constant 0 : index
      %222 = vector.load %arg13[%c0_174, %c0_175] : memref<32x1024xf32, #tpu.memory_space<vmem>>, vector<32x1024xf32>
      tpu.vector_store %arg13[%c0_174, %c0_175], %221 {strides = array<i32>} : memref<32x1024xf32, #tpu.memory_space<vmem>>, vector<32x1024xf32>,
    } else {
    }
    %c0 = arith.constant 0 : index
    %c0_1 = arith.constant 0 : index
    %c0_2 = arith.constant 0 : index
    %3 = vector.load %arg2[%c0, %c0_1, %c0_2] : memref<6x32x1024xi8, #tpu.memory_space<vmem>>, vector<1x32x1024xi8>
    %4 = vector.shape_cast %3 : vector<1x32x1024xi8> to vector<32x1024xi8>
    %5 = arith.sitofp %4 : vector<32x1024xi8> to vector<32x1024xf32>
    %c0_3 = arith.constant 0 : index
    %c0_4 = arith.constant 0 : index
    %6 = vector.load %arg10[%c0_3, %c0_4] : memref<32x1024xf32, #tpu.memory_space<vmem>>, vector<32x1024xf32>
    %7 = arith.addf %6, %5 : vector<32x1024xf32>
    %c0_5 = arith.constant 0 : index
    %c0_6 = arith.constant 0 : index
    %8 = vector.load %arg9[%c0_5, %c0_6] : memref<32x1024xf32, #tpu.memory_space<vmem>>, vector<32x1024xf32>
    %9 = arith.addf %7, %8 : vector<32x1024xf32>
    %cst = arith.constant 0.000000e+00 : f32
    %10 = vector.broadcast %cst : f32 to vector<32x1024xf32>
    %11 = arith.cmpf ogt, %9, %10 : vector<32x1024xf32>
    %12 = arith.extui %11 : vector<32x1024xi1> to vector<32x1024xi32>
    %13 = arith.sitofp %12 : vector<32x1024xi32> to vector<32x1024xf32>
    %14 = arith.subf %9, %13 : vector<32x1024xf32>
    %c0_7 = arith.constant 0 : index
    %c0_8 = arith.constant 0 : index
    %15 = vector.load %arg10[%c0_7, %c0_8] : memref<32x1024xf32, #tpu.memory_space<vmem>>, vector<32x1024xf32>
    tpu.vector_store %arg10[%c0_7, %c0_8], %14 {strides = array<i32>} : memref<32x1024xf32, #tpu.memory_space<vmem>>, vector<32x1024xf32>,
    %cst_9 = arith.constant 1.000000e+00 : f32
    %16 = vector.broadcast %cst_9 : f32 to vector<32x1024xf32>
    %17 = arith.subf %16, %13 : vector<32x1024xf32>
    %c0_10 = arith.constant 0 : index
    %c0_11 = arith.constant 0 : index
    %18 = vector.load %arg11[%c0_10, %c0_11] : memref<32x1024xf32, #tpu.memory_space<vmem>>, vector<32x1024xf32>
    %c0_12 = arith.constant 0 : index
    %c0_13 = arith.constant 0 : index
    %19 = vector.load %arg11[%c0_12, %c0_13] : memref<32x1024xf32, #tpu.memory_space<vmem>>, vector<32x1024xf32>
    tpu.vector_store %arg11[%c0_12, %c0_13], %17 {strides = array<i32>} : memref<32x1024xf32, #tpu.memory_space<vmem>>, vector<32x1024xf32>,
    %c0_14 = arith.constant 0 : index
    %c0_15 = arith.constant 0 : index
    %20 = vector.load %arg13[%c0_14, %c0_15] : memref<32x1024xf32, #tpu.memory_space<vmem>>, vector<32x1024xf32>
    %cst_16 = arith.constant 2.000000e+00 : f32
    %21 = vector.broadcast %cst_16 : f32 to vector<32x1024xf32>
    %22 = arith.mulf %21, %13 : vector<32x1024xf32>
    %cst_17 = arith.constant 1.000000e+00 : f32
    %23 = vector.broadcast %cst_17 : f32 to vector<32x1024xf32>
    %24 = arith.subf %22, %23 : vector<32x1024xf32>
    %25 = arith.addf %20, %24 : vector<32x1024xf32>
    %cst_18 = arith.constant 0.000000e+00 : f32
    %26 = vector.broadcast %cst_18 : f32 to vector<32x1024xf32>
    %27 = arith.cmpf ogt, %25, %26 : vector<32x1024xf32>
    %28 = arith.extui %27 : vector<32x1024xi1> to vector<32x1024xi32>
    %29 = arith.sitofp %28 : vector<32x1024xi32> to vector<32x1024xf32>
    %30 = arith.subf %25, %29 : vector<32x1024xf32>
    %c0_19 = arith.constant 0 : index
    %c0_20 = arith.constant 0 : index
    %31 = vector.load %arg13[%c0_19, %c0_20] : memref<32x1024xf32, #tpu.memory_space<vmem>>, vector<32x1024xf32>
    tpu.vector_store %arg13[%c0_19, %c0_20], %30 {strides = array<i32>} : memref<32x1024xf32, #tpu.memory_space<vmem>>, vector<32x1024xf32>,
    %32 = arith.mulf %18, %29 : vector<32x1024xf32>
    %c0_21 = arith.constant 0 : index
    %c0_22 = arith.constant 0 : index
    %33 = vector.load %arg9[%c0_21, %c0_22] : memref<32x1024xf32, #tpu.memory_space<vmem>>, vector<32x1024xf32>
    tpu.vector_store %arg9[%c0_21, %c0_22], %32 {strides = array<i32>} : memref<32x1024xf32, #tpu.memory_space<vmem>>, vector<32x1024xf32>,
    %34 = arith.fptosi %13 : vector<32x1024xf32> to vector<32x1024xi8>
    %c0_23 = arith.constant 0 : index
    %c0_24 = arith.constant 0 : index
    %c0_25 = arith.constant 0 : index
    %35 = vector.load %arg8[%c0_23, %c0_24, %c0_25] : memref<6x32x1024xi8, #tpu.memory_space<vmem>>, vector<1x32x1024xi8>
    %36 = vector.shape_cast %35 : vector<1x32x1024xi8> to vector<32x1024xi8>
    %37 = vector.shape_cast %34 : vector<32x1024xi8> to vector<1x32x1024xi8>
    tpu.vector_store %arg8[%c0_23, %c0_24, %c0_25], %37 {strides = array<i32>} : memref<6x32x1024xi8, #tpu.memory_space<vmem>>, vector<1x32x1024xi8>,
    %c1 = arith.constant 1 : index
    %c0_26 = arith.constant 0 : index
    %c0_27 = arith.constant 0 : index
    %38 = vector.load %arg2[%c1, %c0_26, %c0_27] : memref<6x32x1024xi8, #tpu.memory_space<vmem>>, vector<1x32x1024xi8>
    %39 = vector.shape_cast %38 : vector<1x32x1024xi8> to vector<32x1024xi8>
    %40 = arith.sitofp %39 : vector<32x1024xi8> to vector<32x1024xf32>
    %c0_28 = arith.constant 0 : index
    %c0_29 = arith.constant 0 : index
    %41 = vector.load %arg10[%c0_28, %c0_29] : memref<32x1024xf32, #tpu.memory_space<vmem>>, vector<32x1024xf32>
    %42 = arith.addf %41, %40 : vector<32x1024xf32>
    %c0_30 = arith.constant 0 : index
    %c0_31 = arith.constant 0 : index
    %43 = vector.load %arg9[%c0_30, %c0_31] : memref<32x1024xf32, #tpu.memory_space<vmem>>, vector<32x1024xf32>
    %44 = arith.addf %42, %43 : vector<32x1024xf32>
    %cst_32 = arith.constant 0.000000e+00 : f32
    %45 = vector.broadcast %cst_32 : f32 to vector<32x1024xf32>
    %46 = arith.cmpf ogt, %44, %45 : vector<32x1024xf32>
    %47 = arith.extui %46 : vector<32x1024xi1> to vector<32x1024xi32>
    %48 = arith.sitofp %47 : vector<32x1024xi32> to vector<32x1024xf32>
    %49 = arith.subf %44, %48 : vector<32x1024xf32>
    %c0_33 = arith.constant 0 : index
    %c0_34 = arith.constant 0 : index
    %50 = vector.load %arg10[%c0_33, %c0_34] : memref<32x1024xf32, #tpu.memory_space<vmem>>, vector<32x1024xf32>
    tpu.vector_store %arg10[%c0_33, %c0_34], %49 {strides = array<i32>} : memref<32x1024xf32, #tpu.memory_space<vmem>>, vector<32x1024xf32>,
    %cst_35 = arith.constant 1.000000e+00 : f32
    %51 = vector.broadcast %cst_35 : f32 to vector<32x1024xf32>
    %52 = arith.subf %51, %48 : vector<32x1024xf32>
    %c0_36 = arith.constant 0 : index
    %c0_37 = arith.constant 0 : index
    %53 = vector.load %arg12[%c0_36, %c0_37] : memref<32x1024xf32, #tpu.memory_space<vmem>>, vector<32x1024xf32>
    %c0_38 = arith.constant 0 : index
    %c0_39 = arith.constant 0 : index
    %54 = vector.load %arg12[%c0_38, %c0_39] : memref<32x1024xf32, #tpu.memory_space<vmem>>, vector<32x1024xf32>
    tpu.vector_store %arg12[%c0_38, %c0_39], %52 {strides = array<i32>} : memref<32x1024xf32, #tpu.memory_space<vmem>>, vector<32x1024xf32>,
    %c0_40 = arith.constant 0 : index
    %c0_41 = arith.constant 0 : index
    %55 = vector.load %arg13[%c0_40, %c0_41] : memref<32x1024xf32, #tpu.memory_space<vmem>>, vector<32x1024xf32>
    %cst_42 = arith.constant 2.000000e+00 : f32
    %56 = vector.broadcast %cst_42 : f32 to vector<32x1024xf32>
    %57 = arith.mulf %56, %48 : vector<32x1024xf32>
    %cst_43 = arith.constant 1.000000e+00 : f32
    %58 = vector.broadcast %cst_43 : f32 to vector<32x1024xf32>
    %59 = arith.subf %57, %58 : vector<32x1024xf32>
    %60 = arith.addf %55, %59 : vector<32x1024xf32>
    %cst_44 = arith.constant 0.000000e+00 : f32
    %61 = vector.broadcast %cst_44 : f32 to vector<32x1024xf32>
    %62 = arith.cmpf ogt, %60, %61 : vector<32x1024xf32>
    %63 = arith.extui %62 : vector<32x1024xi1> to vector<32x1024xi32>
    %64 = arith.sitofp %63 : vector<32x1024xi32> to vector<32x1024xf32>
    %65 = arith.subf %60, %64 : vector<32x1024xf32>
    %c0_45 = arith.constant 0 : index
    %c0_46 = arith.constant 0 : index
    %66 = vector.load %arg13[%c0_45, %c0_46] : memref<32x1024xf32, #tpu.memory_space<vmem>>, vector<32x1024xf32>
    tpu.vector_store %arg13[%c0_45, %c0_46], %65 {strides = array<i32>} : memref<32x1024xf32, #tpu.memory_space<vmem>>, vector<32x1024xf32>,
    %67 = arith.mulf %53, %64 : vector<32x1024xf32>
    %c0_47 = arith.constant 0 : index
    %c0_48 = arith.constant 0 : index
    %68 = vector.load %arg9[%c0_47, %c0_48] : memref<32x1024xf32, #tpu.memory_space<vmem>>, vector<32x1024xf32>
    tpu.vector_store %arg9[%c0_47, %c0_48], %67 {strides = array<i32>} : memref<32x1024xf32, #tpu.memory_space<vmem>>, vector<32x1024xf32>,
    %69 = arith.fptosi %48 : vector<32x1024xf32> to vector<32x1024xi8>
    %c1_49 = arith.constant 1 : index
    %c0_50 = arith.constant 0 : index
    %c0_51 = arith.constant 0 : index
    %70 = vector.load %arg8[%c1_49, %c0_50, %c0_51] : memref<6x32x1024xi8, #tpu.memory_space<vmem>>, vector<1x32x1024xi8>
    %71 = vector.shape_cast %70 : vector<1x32x1024xi8> to vector<32x1024xi8>
    %72 = vector.shape_cast %69 : vector<32x1024xi8> to vector<1x32x1024xi8>
    tpu.vector_store %arg8[%c1_49, %c0_50, %c0_51], %72 {strides = array<i32>} : memref<6x32x1024xi8, #tpu.memory_space<vmem>>, vector<1x32x1024xi8>,
    %c2 = arith.constant 2 : index
    %c0_52 = arith.constant 0 : index
    %c0_53 = arith.constant 0 : index
    %73 = vector.load %arg2[%c2, %c0_52, %c0_53] : memref<6x32x1024xi8, #tpu.memory_space<vmem>>, vector<1x32x1024xi8>
    %74 = vector.shape_cast %73 : vector<1x32x1024xi8> to vector<32x1024xi8>
    %75 = arith.sitofp %74 : vector<32x1024xi8> to vector<32x1024xf32>
    %c0_54 = arith.constant 0 : index
    %c0_55 = arith.constant 0 : index
    %76 = vector.load %arg10[%c0_54, %c0_55] : memref<32x1024xf32, #tpu.memory_space<vmem>>, vector<32x1024xf32>
    %77 = arith.addf %76, %75 : vector<32x1024xf32>
    %c0_56 = arith.constant 0 : index
    %c0_57 = arith.constant 0 : index
    %78 = vector.load %arg9[%c0_56, %c0_57] : memref<32x1024xf32, #tpu.memory_space<vmem>>, vector<32x1024xf32>
    %79 = arith.addf %77, %78 : vector<32x1024xf32>
    %cst_58 = arith.constant 0.000000e+00 : f32
    %80 = vector.broadcast %cst_58 : f32 to vector<32x1024xf32>
    %81 = arith.cmpf ogt, %79, %80 : vector<32x1024xf32>
    %82 = arith.extui %81 : vector<32x1024xi1> to vector<32x1024xi32>
    %83 = arith.sitofp %82 : vector<32x1024xi32> to vector<32x1024xf32>
    %84 = arith.subf %79, %83 : vector<32x1024xf32>
    %c0_59 = arith.constant 0 : index
    %c0_60 = arith.constant 0 : index
    %85 = vector.load %arg10[%c0_59, %c0_60] : memref<32x1024xf32, #tpu.memory_space<vmem>>, vector<32x1024xf32>
    tpu.vector_store %arg10[%c0_59, %c0_60], %84 {strides = array<i32>} : memref<32x1024xf32, #tpu.memory_space<vmem>>, vector<32x1024xf32>,
    %cst_61 = arith.constant 1.000000e+00 : f32
    %86 = vector.broadcast %cst_61 : f32 to vector<32x1024xf32>
    %87 = arith.subf %86, %83 : vector<32x1024xf32>
    %c0_62 = arith.constant 0 : index
    %c0_63 = arith.constant 0 : index
    %88 = vector.load %arg11[%c0_62, %c0_63] : memref<32x1024xf32, #tpu.memory_space<vmem>>, vector<32x1024xf32>
    %c0_64 = arith.constant 0 : index
    %c0_65 = arith.constant 0 : index
    %89 = vector.load %arg11[%c0_64, %c0_65] : memref<32x1024xf32, #tpu.memory_space<vmem>>, vector<32x1024xf32>
    tpu.vector_store %arg11[%c0_64, %c0_65], %87 {strides = array<i32>} : memref<32x1024xf32, #tpu.memory_space<vmem>>, vector<32x1024xf32>,
    %c0_66 = arith.constant 0 : index
    %c0_67 = arith.constant 0 : index
    %90 = vector.load %arg13[%c0_66, %c0_67] : memref<32x1024xf32, #tpu.memory_space<vmem>>, vector<32x1024xf32>
    %cst_68 = arith.constant 2.000000e+00 : f32
    %91 = vector.broadcast %cst_68 : f32 to vector<32x1024xf32>
    %92 = arith.mulf %91, %83 : vector<32x1024xf32>
    %cst_69 = arith.constant 1.000000e+00 : f32
    %93 = vector.broadcast %cst_69 : f32 to vector<32x1024xf32>
    %94 = arith.subf %92, %93 : vector<32x1024xf32>
    %95 = arith.addf %90, %94 : vector<32x1024xf32>
    %cst_70 = arith.constant 0.000000e+00 : f32
    %96 = vector.broadcast %cst_70 : f32 to vector<32x1024xf32>
    %97 = arith.cmpf ogt, %95, %96 : vector<32x1024xf32>
    %98 = arith.extui %97 : vector<32x1024xi1> to vector<32x1024xi32>
    %99 = arith.sitofp %98 : vector<32x1024xi32> to vector<32x1024xf32>
    %100 = arith.subf %95, %99 : vector<32x1024xf32>
    %c0_71 = arith.constant 0 : index
    %c0_72 = arith.constant 0 : index
    %101 = vector.load %arg13[%c0_71, %c0_72] : memref<32x1024xf32, #tpu.memory_space<vmem>>, vector<32x1024xf32>
    tpu.vector_store %arg13[%c0_71, %c0_72], %100 {strides = array<i32>} : memref<32x1024xf32, #tpu.memory_space<vmem>>, vector<32x1024xf32>,
    %102 = arith.mulf %88, %99 : vector<32x1024xf32>
    %c0_73 = arith.constant 0 : index
    %c0_74 = arith.constant 0 : index
    %103 = vector.load %arg9[%c0_73, %c0_74] : memref<32x1024xf32, #tpu.memory_space<vmem>>, vector<32x1024xf32>
    tpu.vector_store %arg9[%c0_73, %c0_74], %102 {strides = array<i32>} : memref<32x1024xf32, #tpu.memory_space<vmem>>, vector<32x1024xf32>,
    %104 = arith.fptosi %83 : vector<32x1024xf32> to vector<32x1024xi8>
    %c2_75 = arith.constant 2 : index
    %c0_76 = arith.constant 0 : index
    %c0_77 = arith.constant 0 : index
    %105 = vector.load %arg8[%c2_75, %c0_76, %c0_77] : memref<6x32x1024xi8, #tpu.memory_space<vmem>>, vector<1x32x1024xi8>
    %106 = vector.shape_cast %105 : vector<1x32x1024xi8> to vector<32x1024xi8>
    %107 = vector.shape_cast %104 : vector<32x1024xi8> to vector<1x32x1024xi8>
    tpu.vector_store %arg8[%c2_75, %c0_76, %c0_77], %107 {strides = array<i32>} : memref<6x32x1024xi8, #tpu.memory_space<vmem>>, vector<1x32x1024xi8>,
    %c3 = arith.constant 3 : index
    %c0_78 = arith.constant 0 : index
    %c0_79 = arith.constant 0 : index
    %108 = vector.load %arg2[%c3, %c0_78, %c0_79] : memref<6x32x1024xi8, #tpu.memory_space<vmem>>, vector<1x32x1024xi8>
    %109 = vector.shape_cast %108 : vector<1x32x1024xi8> to vector<32x1024xi8>
    %110 = arith.sitofp %109 : vector<32x1024xi8> to vector<32x1024xf32>
    %c0_80 = arith.constant 0 : index
    %c0_81 = arith.constant 0 : index
    %111 = vector.load %arg10[%c0_80, %c0_81] : memref<32x1024xf32, #tpu.memory_space<vmem>>, vector<32x1024xf32>
    %112 = arith.addf %111, %110 : vector<32x1024xf32>
    %c0_82 = arith.constant 0 : index
    %c0_83 = arith.constant 0 : index
    %113 = vector.load %arg9[%c0_82, %c0_83] : memref<32x1024xf32, #tpu.memory_space<vmem>>, vector<32x1024xf32>
    %114 = arith.addf %112, %113 : vector<32x1024xf32>
    %cst_84 = arith.constant 0.000000e+00 : f32
    %115 = vector.broadcast %cst_84 : f32 to vector<32x1024xf32>
    %116 = arith.cmpf ogt, %114, %115 : vector<32x1024xf32>
    %117 = arith.extui %116 : vector<32x1024xi1> to vector<32x1024xi32>
    %118 = arith.sitofp %117 : vector<32x1024xi32> to vector<32x1024xf32>
    %119 = arith.subf %114, %118 : vector<32x1024xf32>
    %c0_85 = arith.constant 0 : index
    %c0_86 = arith.constant 0 : index
    %120 = vector.load %arg10[%c0_85, %c0_86] : memref<32x1024xf32, #tpu.memory_space<vmem>>, vector<32x1024xf32>
    tpu.vector_store %arg10[%c0_85, %c0_86], %119 {strides = array<i32>} : memref<32x1024xf32, #tpu.memory_space<vmem>>, vector<32x1024xf32>,
    %cst_87 = arith.constant 1.000000e+00 : f32
    %121 = vector.broadcast %cst_87 : f32 to vector<32x1024xf32>
    %122 = arith.subf %121, %118 : vector<32x1024xf32>
    %c0_88 = arith.constant 0 : index
    %c0_89 = arith.constant 0 : index
    %123 = vector.load %arg12[%c0_88, %c0_89] : memref<32x1024xf32, #tpu.memory_space<vmem>>, vector<32x1024xf32>
    %c0_90 = arith.constant 0 : index
    %c0_91 = arith.constant 0 : index
    %124 = vector.load %arg12[%c0_90, %c0_91] : memref<32x1024xf32, #tpu.memory_space<vmem>>, vector<32x1024xf32>
    tpu.vector_store %arg12[%c0_90, %c0_91], %122 {strides = array<i32>} : memref<32x1024xf32, #tpu.memory_space<vmem>>, vector<32x1024xf32>,
    %c0_92 = arith.constant 0 : index
    %c0_93 = arith.constant 0 : index
    %125 = vector.load %arg13[%c0_92, %c0_93] : memref<32x1024xf32, #tpu.memory_space<vmem>>, vector<32x1024xf32>
    %cst_94 = arith.constant 2.000000e+00 : f32
    %126 = vector.broadcast %cst_94 : f32 to vector<32x1024xf32>
    %127 = arith.mulf %126, %118 : vector<32x1024xf32>
    %cst_95 = arith.constant 1.000000e+00 : f32
    %128 = vector.broadcast %cst_95 : f32 to vector<32x1024xf32>
    %129 = arith.subf %127, %128 : vector<32x1024xf32>
    %130 = arith.addf %125, %129 : vector<32x1024xf32>
    %cst_96 = arith.constant 0.000000e+00 : f32
    %131 = vector.broadcast %cst_96 : f32 to vector<32x1024xf32>
    %132 = arith.cmpf ogt, %130, %131 : vector<32x1024xf32>
    %133 = arith.extui %132 : vector<32x1024xi1> to vector<32x1024xi32>
    %134 = arith.sitofp %133 : vector<32x1024xi32> to vector<32x1024xf32>
    %135 = arith.subf %130, %134 : vector<32x1024xf32>
    %c0_97 = arith.constant 0 : index
    %c0_98 = arith.constant 0 : index
    %136 = vector.load %arg13[%c0_97, %c0_98] : memref<32x1024xf32, #tpu.memory_space<vmem>>, vector<32x1024xf32>
    tpu.vector_store %arg13[%c0_97, %c0_98], %135 {strides = array<i32>} : memref<32x1024xf32, #tpu.memory_space<vmem>>, vector<32x1024xf32>,
    %137 = arith.mulf %123, %134 : vector<32x1024xf32>
    %c0_99 = arith.constant 0 : index
    %c0_100 = arith.constant 0 : index
    %138 = vector.load %arg9[%c0_99, %c0_100] : memref<32x1024xf32, #tpu.memory_space<vmem>>, vector<32x1024xf32>
    tpu.vector_store %arg9[%c0_99, %c0_100], %137 {strides = array<i32>} : memref<32x1024xf32, #tpu.memory_space<vmem>>, vector<32x1024xf32>,
    %139 = arith.fptosi %118 : vector<32x1024xf32> to vector<32x1024xi8>
    %c3_101 = arith.constant 3 : index
    %c0_102 = arith.constant 0 : index
    %c0_103 = arith.constant 0 : index
    %140 = vector.load %arg8[%c3_101, %c0_102, %c0_103] : memref<6x32x1024xi8, #tpu.memory_space<vmem>>, vector<1x32x1024xi8>
    %141 = vector.shape_cast %140 : vector<1x32x1024xi8> to vector<32x1024xi8>
    %142 = vector.shape_cast %139 : vector<32x1024xi8> to vector<1x32x1024xi8>
    tpu.vector_store %arg8[%c3_101, %c0_102, %c0_103], %142 {strides = array<i32>} : memref<6x32x1024xi8, #tpu.memory_space<vmem>>, vector<1x32x1024xi8>,
    %c4 = arith.constant 4 : index
    %c0_104 = arith.constant 0 : index
    %c0_105 = arith.constant 0 : index
    %143 = vector.load %arg2[%c4, %c0_104, %c0_105] : memref<6x32x1024xi8, #tpu.memory_space<vmem>>, vector<1x32x1024xi8>
    %144 = vector.shape_cast %143 : vector<1x32x1024xi8> to vector<32x1024xi8>
    %145 = arith.sitofp %144 : vector<32x1024xi8> to vector<32x1024xf32>
    %c0_106 = arith.constant 0 : index
    %c0_107 = arith.constant 0 : index
    %146 = vector.load %arg10[%c0_106, %c0_107] : memref<32x1024xf32, #tpu.memory_space<vmem>>, vector<32x1024xf32>
    %147 = arith.addf %146, %145 : vector<32x1024xf32>
    %c0_108 = arith.constant 0 : index
    %c0_109 = arith.constant 0 : index
    %148 = vector.load %arg9[%c0_108, %c0_109] : memref<32x1024xf32, #tpu.memory_space<vmem>>, vector<32x1024xf32>
    %149 = arith.addf %147, %148 : vector<32x1024xf32>
    %cst_110 = arith.constant 0.000000e+00 : f32
    %150 = vector.broadcast %cst_110 : f32 to vector<32x1024xf32>
    %151 = arith.cmpf ogt, %149, %150 : vector<32x1024xf32>
    %152 = arith.extui %151 : vector<32x1024xi1> to vector<32x1024xi32>
    %153 = arith.sitofp %152 : vector<32x1024xi32> to vector<32x1024xf32>
    %154 = arith.subf %149, %153 : vector<32x1024xf32>
    %c0_111 = arith.constant 0 : index
    %c0_112 = arith.constant 0 : index
    %155 = vector.load %arg10[%c0_111, %c0_112] : memref<32x1024xf32, #tpu.memory_space<vmem>>, vector<32x1024xf32>
    tpu.vector_store %arg10[%c0_111, %c0_112], %154 {strides = array<i32>} : memref<32x1024xf32, #tpu.memory_space<vmem>>, vector<32x1024xf32>,
    %cst_113 = arith.constant 1.000000e+00 : f32
    %156 = vector.broadcast %cst_113 : f32 to vector<32x1024xf32>
    %157 = arith.subf %156, %153 : vector<32x1024xf32>
    %c0_114 = arith.constant 0 : index
    %c0_115 = arith.constant 0 : index
    %158 = vector.load %arg11[%c0_114, %c0_115] : memref<32x1024xf32, #tpu.memory_space<vmem>>, vector<32x1024xf32>
    %c0_116 = arith.constant 0 : index
    %c0_117 = arith.constant 0 : index
    %159 = vector.load %arg11[%c0_116, %c0_117] : memref<32x1024xf32, #tpu.memory_space<vmem>>, vector<32x1024xf32>
    tpu.vector_store %arg11[%c0_116, %c0_117], %157 {strides = array<i32>} : memref<32x1024xf32, #tpu.memory_space<vmem>>, vector<32x1024xf32>,
    %c0_118 = arith.constant 0 : index
    %c0_119 = arith.constant 0 : index
    %160 = vector.load %arg13[%c0_118, %c0_119] : memref<32x1024xf32, #tpu.memory_space<vmem>>, vector<32x1024xf32>
    %cst_120 = arith.constant 2.000000e+00 : f32
    %161 = vector.broadcast %cst_120 : f32 to vector<32x1024xf32>
    %162 = arith.mulf %161, %153 : vector<32x1024xf32>
    %cst_121 = arith.constant 1.000000e+00 : f32
    %163 = vector.broadcast %cst_121 : f32 to vector<32x1024xf32>
    %164 = arith.subf %162, %163 : vector<32x1024xf32>
    %165 = arith.addf %160, %164 : vector<32x1024xf32>
    %cst_122 = arith.constant 0.000000e+00 : f32
    %166 = vector.broadcast %cst_122 : f32 to vector<32x1024xf32>
    %167 = arith.cmpf ogt, %165, %166 : vector<32x1024xf32>
    %168 = arith.extui %167 : vector<32x1024xi1> to vector<32x1024xi32>
    %169 = arith.sitofp %168 : vector<32x1024xi32> to vector<32x1024xf32>
    %170 = arith.subf %165, %169 : vector<32x1024xf32>
    %c0_123 = arith.constant 0 : index
    %c0_124 = arith.constant 0 : index
    %171 = vector.load %arg13[%c0_123, %c0_124] : memref<32x1024xf32, #tpu.memory_space<vmem>>, vector<32x1024xf32>
    tpu.vector_store %arg13[%c0_123, %c0_124], %170 {strides = array<i32>} : memref<32x1024xf32, #tpu.memory_space<vmem>>, vector<32x1024xf32>,
    %172 = arith.mulf %158, %169 : vector<32x1024xf32>
    %c0_125 = arith.constant 0 : index
    %c0_126 = arith.constant 0 : index
    %173 = vector.load %arg9[%c0_125, %c0_126] : memref<32x1024xf32, #tpu.memory_space<vmem>>, vector<32x1024xf32>
    tpu.vector_store %arg9[%c0_125, %c0_126], %172 {strides = array<i32>} : memref<32x1024xf32, #tpu.memory_space<vmem>>, vector<32x1024xf32>,
    %174 = arith.fptosi %153 : vector<32x1024xf32> to vector<32x1024xi8>
    %c4_127 = arith.constant 4 : index
    %c0_128 = arith.constant 0 : index
    %c0_129 = arith.constant 0 : index
    %175 = vector.load %arg8[%c4_127, %c0_128, %c0_129] : memref<6x32x1024xi8, #tpu.memory_space<vmem>>, vector<1x32x1024xi8>
    %176 = vector.shape_cast %175 : vector<1x32x1024xi8> to vector<32x1024xi8>
    %177 = vector.shape_cast %174 : vector<32x1024xi8> to vector<1x32x1024xi8>
    tpu.vector_store %arg8[%c4_127, %c0_128, %c0_129], %177 {strides = array<i32>} : memref<6x32x1024xi8, #tpu.memory_space<vmem>>, vector<1x32x1024xi8>,
    %c5 = arith.constant 5 : index
    %c0_130 = arith.constant 0 : index
    %c0_131 = arith.constant 0 : index
    %178 = vector.load %arg2[%c5, %c0_130, %c0_131] : memref<6x32x1024xi8, #tpu.memory_space<vmem>>, vector<1x32x1024xi8>
    %179 = vector.shape_cast %178 : vector<1x32x1024xi8> to vector<32x1024xi8>
    %180 = arith.sitofp %179 : vector<32x1024xi8> to vector<32x1024xf32>
    %c0_132 = arith.constant 0 : index
    %c0_133 = arith.constant 0 : index
    %181 = vector.load %arg10[%c0_132, %c0_133] : memref<32x1024xf32, #tpu.memory_space<vmem>>, vector<32x1024xf32>
    %182 = arith.addf %181, %180 : vector<32x1024xf32>
    %c0_134 = arith.constant 0 : index
    %c0_135 = arith.constant 0 : index
    %183 = vector.load %arg9[%c0_134, %c0_135] : memref<32x1024xf32, #tpu.memory_space<vmem>>, vector<32x1024xf32>
    %184 = arith.addf %182, %183 : vector<32x1024xf32>
    %cst_136 = arith.constant 0.000000e+00 : f32
    %185 = vector.broadcast %cst_136 : f32 to vector<32x1024xf32>
    %186 = arith.cmpf ogt, %184, %185 : vector<32x1024xf32>
    %187 = arith.extui %186 : vector<32x1024xi1> to vector<32x1024xi32>
    %188 = arith.sitofp %187 : vector<32x1024xi32> to vector<32x1024xf32>
    %189 = arith.subf %184, %188 : vector<32x1024xf32>
    %c0_137 = arith.constant 0 : index
    %c0_138 = arith.constant 0 : index
    %190 = vector.load %arg10[%c0_137, %c0_138] : memref<32x1024xf32, #tpu.memory_space<vmem>>, vector<32x1024xf32>
    tpu.vector_store %arg10[%c0_137, %c0_138], %189 {strides = array<i32>} : memref<32x1024xf32, #tpu.memory_space<vmem>>, vector<32x1024xf32>,
    %cst_139 = arith.constant 1.000000e+00 : f32
    %191 = vector.broadcast %cst_139 : f32 to vector<32x1024xf32>
    %192 = arith.subf %191, %188 : vector<32x1024xf32>
    %c0_140 = arith.constant 0 : index
    %c0_141 = arith.constant 0 : index
    %193 = vector.load %arg12[%c0_140, %c0_141] : memref<32x1024xf32, #tpu.memory_space<vmem>>, vector<32x1024xf32>
    %c0_142 = arith.constant 0 : index
    %c0_143 = arith.constant 0 : index
    %194 = vector.load %arg12[%c0_142, %c0_143] : memref<32x1024xf32, #tpu.memory_space<vmem>>, vector<32x1024xf32>
    tpu.vector_store %arg12[%c0_142, %c0_143], %192 {strides = array<i32>} : memref<32x1024xf32, #tpu.memory_space<vmem>>, vector<32x1024xf32>,
    %c0_144 = arith.constant 0 : index
    %c0_145 = arith.constant 0 : index
    %195 = vector.load %arg13[%c0_144, %c0_145] : memref<32x1024xf32, #tpu.memory_space<vmem>>, vector<32x1024xf32>
    %cst_146 = arith.constant 2.000000e+00 : f32
    %196 = vector.broadcast %cst_146 : f32 to vector<32x1024xf32>
    %197 = arith.mulf %196, %188 : vector<32x1024xf32>
    %cst_147 = arith.constant 1.000000e+00 : f32
    %198 = vector.broadcast %cst_147 : f32 to vector<32x1024xf32>
    %199 = arith.subf %197, %198 : vector<32x1024xf32>
    %200 = arith.addf %195, %199 : vector<32x1024xf32>
    %cst_148 = arith.constant 0.000000e+00 : f32
    %201 = vector.broadcast %cst_148 : f32 to vector<32x1024xf32>
    %202 = arith.cmpf ogt, %200, %201 : vector<32x1024xf32>
    %203 = arith.extui %202 : vector<32x1024xi1> to vector<32x1024xi32>
    %204 = arith.sitofp %203 : vector<32x1024xi32> to vector<32x1024xf32>
    %205 = arith.subf %200, %204 : vector<32x1024xf32>
    %c0_149 = arith.constant 0 : index
    %c0_150 = arith.constant 0 : index
    %206 = vector.load %arg13[%c0_149, %c0_150] : memref<32x1024xf32, #tpu.memory_space<vmem>>, vector<32x1024xf32>
    tpu.vector_store %arg13[%c0_149, %c0_150], %205 {strides = array<i32>} : memref<32x1024xf32, #tpu.memory_space<vmem>>, vector<32x1024xf32>,
    %207 = arith.mulf %193, %204 : vector<32x1024xf32>
    %c0_151 = arith.constant 0 : index
    %c0_152 = arith.constant 0 : index
    %208 = vector.load %arg9[%c0_151, %c0_152] : memref<32x1024xf32, #tpu.memory_space<vmem>>, vector<32x1024xf32>
    tpu.vector_store %arg9[%c0_151, %c0_152], %207 {strides = array<i32>} : memref<32x1024xf32, #tpu.memory_space<vmem>>, vector<32x1024xf32>,
    %209 = arith.fptosi %188 : vector<32x1024xf32> to vector<32x1024xi8>
    %c5_153 = arith.constant 5 : index
    %c0_154 = arith.constant 0 : index
    %c0_155 = arith.constant 0 : index
    %210 = vector.load %arg8[%c5_153, %c0_154, %c0_155] : memref<6x32x1024xi8, #tpu.memory_space<vmem>>, vector<1x32x1024xi8>
    %211 = vector.shape_cast %210 : vector<1x32x1024xi8> to vector<32x1024xi8>
    %212 = vector.shape_cast %209 : vector<32x1024xi8> to vector<1x32x1024xi8>
    tpu.vector_store %arg8[%c5_153, %c0_154, %c0_155], %212 {strides = array<i32>} : memref<6x32x1024xi8, #tpu.memory_space<vmem>>, vector<1x32x1024xi8>,
    return
  }
  func.func @transform_0(%arg0: i32, %arg1: i32) -> (i32, i32, i32) {
    %c0_i32 = arith.constant 0 : i32
    %c0_i32_0 = arith.constant 0 : i32
    return %arg1, %arg0, %c0_i32 : i32, i32, i32
  }
  func.func @transform_1(%arg0: i32, %arg1: i32) -> (i32, i32) {
    %c0_i32 = arith.constant 0 : i32
    %c0_i32_0 = arith.constant 0 : i32
    return %arg0, %c0_i32 : i32, i32
  }
  func.func @transform_2(%arg0: i32, %arg1: i32) -> (i32, i32) {
    %c0_i32 = arith.constant 0 : i32
    %c0_i32_0 = arith.constant 0 : i32
    return %arg0, %c0_i32 : i32, i32
  }
  func.func @transform_3(%arg0: i32, %arg1: i32) -> (i32, i32) {
    %c0_i32 = arith.constant 0 : i32
    %c0_i32_0 = arith.constant 0 : i32
    return %arg0, %c0_i32 : i32, i32
  }
  func.func @transform_4(%arg0: i32, %arg1: i32) -> (i32, i32) {
    %c0_i32 = arith.constant 0 : i32
    %c0_i32_0 = arith.constant 0 : i32
    return %arg0, %c0_i32 : i32, i32
  }
  func.func @transform_5(%arg0: i32, %arg1: i32) -> (i32, i32) {
    %c0_i32 = arith.constant 0 : i32
    %c0_i32_0 = arith.constant 0 : i32
    return %arg0, %c0_i32 : i32, i32
  }
  func.func @transform_6(%arg0: i32, %arg1: i32) -> (i32, i32, i32) {
    %c0_i32 = arith.constant 0 : i32
    %c0_i32_0 = arith.constant 0 : i32
    return %arg1, %arg0, %c0_i32 : i32, i32, i32
  }
  func.func @transform_7(%arg0: i32, %arg1: i32) -> (i32, i32) {
    %c0_i32 = arith.constant 0 : i32
    %c0_i32_0 = arith.constant 0 : i32
    return %arg0, %c0_i32 : i32, i32
  }
  func.func @transform_8(%arg0: i32, %arg1: i32) -> (i32, i32) {
    %c0_i32 = arith.constant 0 : i32
    %c0_i32_0 = arith.constant 0 : i32
    return %arg0, %c0_i32 : i32, i32
  }
  func.func @transform_9(%arg0: i32, %arg1: i32) -> (i32, i32) {
    %c0_i32 = arith.constant 0 : i32
    %c0_i32_0 = arith.constant 0 : i32
    return %arg0, %c0_i32 : i32, i32
  }
  func.func @transform_10(%arg0: i32, %arg1: i32) -> (i32, i32) {
    %c0_i32 = arith.constant 0 : i32
    %c0_i32_0 = arith.constant 0 : i32
    return %arg0, %c0_i32 : i32, i32
  }
  func.func @transform_11(%arg0: i32, %arg1: i32) -> (i32, i32) {
    %c0_i32 = arith.constant 0 : i32
    %c0_i32_0 = arith.constant 0 : i32
    return %arg0, %c0_i32 : i32, i32
  }
}

</mosaic_0001>

<bundles_post_ra>
// kernel: _fsu_sqrt_forward_packed.1
= control target key start
LH: loop header
LB: loop body
LE: loop exit
PB: predicated region body
PF: predicated region fallthrough
CT: control target
= control target key end

     0   :  { %17 = vsyncpa [#allocation3], 0  ;;  %s10690_s0 = inlined_call_operand.hbm [shape: s8[6,32,1024], index: 0, kind: input, shape index: {}]   ;;  %s10691_s1 = inlined_call_operand.hbm [shape: f32[32,1024], index: 1, kind: input, shape index: {}, may-alias: {1,7}]   ;;  %s10692_s2 = inlined_call_operand.hbm [shape: f32[32,1024], index: 2, kind: input, shape index: {}, may-alias: {2,8}]   ;;  %s10693_s3 = inlined_call_operand.hbm [shape: f32[32,1024], index: 3, kind: input, shape index: {}, may-alias: {3,9}]   ;;  %s10694_s4 = inlined_call_operand.hbm [shape: f32[32,1024], index: 4, kind: input, shape index: {}, may-alias: {4,10}]   ;;  %s10695_s5 = inlined_call_operand.hbm [shape: f32[32,1024], index: 5, kind: input, shape index: {}, may-alias: {5,11}]   ;;  %s10696_s6 = inlined_call_operand.hbm [shape: s8[6,32,1024], index: 6, kind: output, shape index: {0}]   ;;  %s10697_s7 = inlined_call_operand.hbm [shape: f32[32,1024], index: 7, kind: output, shape index: {1}, may-alias: {1,7}]   ;;  %s10698_s8 = inlined_call_operand.hbm [shape: f32[32,1024], index: 8, kind: output, shape index: {2}, may-alias: {2,8}]   ;;  %s10699_s9 = inlined_call_operand.hbm [shape: f32[32,1024], index: 9, kind: output, shape index: {3}, may-alias: {3,9}]   ;;  %s10700_s10 = inlined_call_operand.hbm [shape: f32[32,1024], index: 10, kind: output, shape index: {4}, may-alias: {4,10}]   ;;  %s10701_s11 = inlined_call_operand.hbm [shape: f32[32,1024], index: 11, kind: output, shape index: {5}, may-alias: {5,11}]  }
   0x1   :  { %18 = vsyncpa [#allocation6], 0 }
   0x2   :  { %19 = vsyncpa [#allocation9], 0 }
   0x3   :  { %20 = vsyncpa [#allocation12], 0 }
   0x4   :  { %21 = vsyncpa [#allocation4], 0 }
   0x5   :  { %22 = vsyncpa [#allocation15], 0 }
   0x6   :  { %23 = vsyncpa [#allocation18], 0 }
   0x7   :  { %24 = vsyncpa [#allocation21], 0  ;;  %s6986_s17 = smov [#allocation5]   ;;  %s6987_s19 = smov [#allocation8]  }
   0x8   :  { %s42_s18 = sshll.u32 %s6986_s17, 4  ;;  %s66_s20 = sshll.u32 %s6987_s19, 4  ;;  %s43_s18 = int_to_ptr.vmem [resolvable:$true] %s42_s18  ;;  %s7061_s20 = int_to_ptr.vmem [resolvable:$true] %s66_s20 }
   0x9   :  { %s6706_s23 = scalar_lea.hbm %s10691_s1, 4096 }
   0xa   :  { %p6707_p0 = scmp.ne.s32.totalorder %s10691_s1, %s6706_s23  ;;  %p6710_p1 = scmp.lt.u32.totalorder %s6706_s23, %s10691_s1 }
   0xc   :  { %p6712_p2 = pnand %p6710_p1, %p6707_p0 }
   0xe   :  { %6715 = shalt.err (!%p6712_p2)
}
   0xf   :  { %s6716_s28 = scalar_lea.vmem %s43_s18, 4096  ;;  %p6721_p4 = scmp.lt.s32.totalorder %s43_s18, %s43_s18 }
  0x10   :  { %p6717_p3 = scmp.ne.s32.totalorder %s43_s18, %s6716_s28  ;;  %p6722_p5 = scmp.lt.s32.totalorder %s6716_s28, %s6716_s28 }
  0x12   :  { %p6723_p6 = por %p6722_p5, %p6721_p4 }
  0x14   :  { %p6724_p7 = pnand %p6723_p6, %p6717_p3 }
  0x16   :  { %6727 = shalt.err (!%p6724_p7)
}
  0x17   :  { %s6988_s29 = smov 1024   ;;  %s6989_s30 = smov 64  }
  0x18   :  { %48 = dma.hbm_to_vmem [thread:$0]  %s10691_s1, 4096, %s43_s18, [#allocation6], %s6988_s29, %s6988_s29, %s6989_s30  }
  0x19   :  { %s6728_s16 = scalar_lea.hbm %s10693_s3, 4096 }
  0x1a   :  { %p6729_p8 = scmp.ne.s32.totalorder %s10693_s3, %s6728_s16  ;;  %p6732_p9 = scmp.lt.u32.totalorder %s6728_s16, %s10693_s3 }
  0x1c   :  { %p6734_p10 = pnand %p6732_p9, %p6729_p8 }
  0x1e   :  { %6737 = shalt.err (!%p6734_p10)
}
  0x1f   :  { %s6738_s23 = scalar_lea.vmem %s7061_s20, 4096  ;;  %p6743_p12 = scmp.lt.s32.totalorder %s7061_s20, %s7061_s20 }
  0x20   :  { %p6739_p11 = scmp.ne.s32.totalorder %s7061_s20, %s6738_s23  ;;  %p6744_p13 = scmp.lt.s32.totalorder %s6738_s23, %s6738_s23 }
  0x22   :  { %p6745_p0 = por %p6744_p13, %p6743_p12 }
  0x24   :  { %p6746_p1 = pnand %p6745_p0, %p6739_p11 }
  0x26   :  { %6749 = shalt.err (!%p6746_p1)
}
  0x27   :  { %72 = dma.hbm_to_vmem [thread:$0]  %s10693_s3, 4096, %s7061_s20, [#allocation9], %s6988_s29, %s6988_s29, %s6989_s30  }
  0x28   :  { %s6990_s24 = smov [#allocation2]   ;;  %s6991_s26 = smov [#allocation7]  }
  0x29   :  { %s30_s25 = sshll.u32 %s6990_s24, 4  ;;  %s54_s27 = sshll.u32 %s6991_s26, 4  ;;  %s31_s25 = int_to_ptr.vmem [resolvable:$true] %s30_s25  ;;  %s7098_s27 = int_to_ptr.vmem [resolvable:$true] %s54_s27 }
  0x2a   :  { %s6750_s13 = scalar_lea.hbm %s10690_s0, 6144 }
  0x2b   :  { %p6751_p2 = scmp.ne.s32.totalorder %s10690_s0, %s6750_s13  ;;  %p6754_p3 = scmp.lt.u32.totalorder %s6750_s13, %s10690_s0 }
  0x2d   :  { %p6756_p4 = pnand %p6754_p3, %p6751_p2 }
  0x2f   :  { %6759 = shalt.err (!%p6756_p4)
}
  0x30   :  { %s6760_s3 = scalar_lea.vmem %s31_s25, 6144  ;;  %p6765_p6 = scmp.lt.s32.totalorder %s31_s25, %s31_s25 }
  0x31   :  { %p6761_p5 = scmp.ne.s32.totalorder %s31_s25, %s6760_s3  ;;  %p6766_p7 = scmp.lt.s32.totalorder %s6760_s3, %s6760_s3 }
  0x33   :  { %p6767_p8 = por %p6766_p7, %p6765_p6 }
  0x35   :  { %p6768_p9 = pnand %p6767_p8, %p6761_p5 }
  0x37   :  { %6771 = shalt.err (!%p6768_p9)
}
  0x38   :  { %36 = dma.hbm_to_vmem [thread:$0]  %s10690_s0, 6144, %s31_s25, [#allocation3], %s6988_s29, %s6988_s29, %s6989_s30  }
  0x39   :  { %s6772_s23 = scalar_lea.hbm %s10692_s2, 4096 }
  0x3a   :  { %p6773_p10 = scmp.ne.s32.totalorder %s10692_s2, %s6772_s23  ;;  %p6776_p11 = scmp.lt.u32.totalorder %s6772_s23, %s10692_s2 }
  0x3c   :  { %p6778_p12 = pnand %p6776_p11, %p6773_p10 }
  0x3e   :  { %6781 = shalt.err (!%p6778_p12)
}
  0x3f   :  { %s6782_s28 = scalar_lea.vmem %s7098_s27, 4096  ;;  %p6787_p0 = scmp.lt.s32.totalorder %s7098_s27, %s7098_s27 }
  0x40   :  { %p6783_p13 = scmp.ne.s32.totalorder %s7098_s27, %s6782_s28  ;;  %p6788_p1 = scmp.lt.s32.totalorder %s6782_s28, %s6782_s28 }
  0x42   :  { %p6789_p2 = por %p6788_p1, %p6787_p0 }
  0x44   :  { %p6790_p3 = pnand %p6789_p2, %p6783_p13 }
  0x46   :  { %6793 = shalt.err (!%p6790_p3)
}
  0x47   :  { %60 = dma.hbm_to_vmem [thread:$0]  %s10692_s2, 4096, %s7098_s27, [#allocation6], %s6988_s29, %s6988_s29, %s6989_s30  }
  0x48   :  { %s6992_s12 = smov [#allocation10]   ;;  %s6993_s14 = smov [#allocation11]  }
  0x49   :  { %s78_s13 = sshll.u32 %s6992_s12, 4  ;;  %s90_s15 = sshll.u32 %s6993_s14, 4  ;;  %s79_s13 = int_to_ptr.vmem [resolvable:$true] %s78_s13  ;;  %s7135_s15 = int_to_ptr.vmem [resolvable:$true] %s90_s15 }
  0x4a   :  { %s6794_s3 = scalar_lea.hbm %s10694_s4, 4096 }
  0x4b   :  { %p6795_p4 = scmp.ne.s32.totalorder %s10694_s4, %s6794_s3  ;;  %p6798_p5 = scmp.lt.u32.totalorder %s6794_s3, %s10694_s4 }
  0x4d   :  { %p6800_p6 = pnand %p6798_p5, %p6795_p4 }
  0x4f   :  { %6803 = shalt.err (!%p6800_p6)
}
  0x50   :  { %s6804_s2 = scalar_lea.vmem %s79_s13, 4096  ;;  %p6809_p8 = scmp.lt.s32.totalorder %s79_s13, %s79_s13 }
  0x51   :  { %p6805_p7 = scmp.ne.s32.totalorder %s79_s13, %s6804_s2  ;;  %p6810_p9 = scmp.lt.s32.totalorder %s6804_s2, %s6804_s2 }
  0x53   :  { %p6811_p10 = por %p6810_p9, %p6809_p8 }
  0x55   :  { %p6812_p11 = pnand %p6811_p10, %p6805_p7 }
  0x57   :  { %6815 = shalt.err (!%p6812_p11)
}
  0x58   :  { %84 = dma.hbm_to_vmem [thread:$0]  %s10694_s4, 4096, %s79_s13, [#allocation9], %s6988_s29, %s6988_s29, %s6989_s30  }
  0x59   :  { %s6816_s24 = scalar_lea.hbm %s10695_s5, 4096 }
  0x5a   :  { %p6817_p12 = scmp.ne.s32.totalorder %s10695_s5, %s6816_s24  ;;  %p6820_p13 = scmp.lt.u32.totalorder %s6816_s24, %s10695_s5 }
  0x5c   :  { %p6822_p0 = pnand %p6820_p13, %p6817_p12 }
  0x5e   :  { %6825 = shalt.err (!%p6822_p0)
}
  0x5f   :  { %s6826_s12 = scalar_lea.vmem %s7135_s15, 4096  ;;  %p6831_p2 = scmp.lt.s32.totalorder %s7135_s15, %s7135_s15 }
  0x60   :  { %p6827_p1 = scmp.ne.s32.totalorder %s7135_s15, %s6826_s12  ;;  %p6832_p3 = scmp.lt.s32.totalorder %s6826_s12, %s6826_s12 }
  0x62   :  { %p6833_p4 = por %p6832_p3, %p6831_p2 }
  0x64   :  { %p6834_p5 = pnand %p6833_p4, %p6827_p1 }
  0x66   :  { %6837 = shalt.err (!%p6834_p5)
}
  0x67   :  { %96 = dma.hbm_to_vmem [thread:$0]  %s10695_s5, 4096, %s7135_s15, [#allocation12], %s6988_s29, %s6988_s29, %s6989_s30  }
  0x68   :  { %6970 = dma.done.wait [#allocation3], 6144  }
  0x69   :  { %6971 = vsyncadd [#allocation3], 4294961152 }
  0x6a   :  { %6972 = dma.done.wait [#allocation6], 8192  }
  0x6b   :  { %6973 = vsyncadd [#allocation6], 4294959104 }
  0x6c   :  { %6974 = dma.done.wait [#allocation9], 8192  }
  0x6d   :  { %6975 = vsyncadd [#allocation9], 4294959104 }
  0x6e   :  { %6976 = dma.done.wait [#allocation12], 4096  }
  0x6f   :  { %6977 = vsyncadd [#allocation12], 4294963200  ;;  %v214_v0 = vld [vmem:[#allocation7 + $0xf8] sm:$0xff]  ;;  %v375_v1 = vld [vmem:[#allocation11] sm:$0xff]  ;;  %s6995_s5 = smov [#allocation17]  }
  0x70   :  { %246 = vst [vmem:[#allocation16 + $0xf8] sm:$0xff] %v214_v0  ;;  %v376_v2 = vld [vmem:[#allocation11 + $0x8] sm:$0xff]  ;;  %v377_v3 = vld [vmem:[#allocation11 + $0x10] sm:$0xff]  ;;  %407 = vst [vmem:[#allocation20] sm:$0xff] %v375_v1  ;;  %s6058_s14 = sshll.u32 %s6995_s5, 4  ;;  %s6059_s14 = int_to_ptr.vmem [resolvable:$true] %s6058_s14 }
  0x71   :  { %408 = vst [vmem:[#allocation20 + $0x8] sm:$0xff] %v376_v2  ;;  %409 = vst [vmem:[#allocation20 + $0x10] sm:$0xff] %v377_v3  ;;  %v378_v4 = vld [vmem:[#allocation11 + $0x18] sm:$0xff]  ;;  %v379_v5 = vld [vmem:[#allocation11 + $0x20] sm:$0xff]  ;;  %s6838_s15 = scalar_lea.vmem %s6059_s14, 4096  ;;  %p6843_p7 = scmp.lt.s32.totalorder %s6059_s14, %s6059_s14 }
  0x72   :  { %v380_v6 = vld [vmem:[#allocation11 + $0x28] sm:$0xff]  ;;  %410 = vst [vmem:[#allocation20 + $0x18] sm:$0xff] %v378_v4  ;;  %411 = vst [vmem:[#allocation20 + $0x20] sm:$0xff] %v379_v5  ;;  %v381_v7 = vld [vmem:[#allocation11 + $0x30] sm:$0xff]  ;;  %p6839_p6 = scmp.ne.s32.totalorder %s6059_s14, %s6838_s15  ;;  %p6844_p8 = scmp.lt.s32.totalorder %s6838_s15, %s6838_s15 }
  0x73   :  { %412 = vst [vmem:[#allocation20 + $0x28] sm:$0xff] %v380_v6  ;;  %v382_v8 = vld [vmem:[#allocation11 + $0x38] sm:$0xff]  ;;  %v383_v9 = vld [vmem:[#allocation11 + $0x40] sm:$0xff]  ;;  %413 = vst [vmem:[#allocation20 + $0x30] sm:$0xff] %v381_v7 }
  0x74   :  { %414 = vst [vmem:[#allocation20 + $0x38] sm:$0xff] %v382_v8  ;;  %415 = vst [vmem:[#allocation20 + $0x40] sm:$0xff] %v383_v9  ;;  %v384_v10 = vld [vmem:[#allocation11 + $0x48] sm:$0xff]  ;;  %v385_v11 = vld [vmem:[#allocation11 + $0x50] sm:$0xff]  ;;  %p6845_p9 = por %p6844_p8, %p6843_p7 }
  0x75   :  { %v386_v12 = vld [vmem:[#allocation11 + $0x58] sm:$0xff]  ;;  %416 = vst [vmem:[#allocation20 + $0x48] sm:$0xff] %v384_v10  ;;  %417 = vst [vmem:[#allocation20 + $0x50] sm:$0xff] %v385_v11  ;;  %v387_v13 = vld [vmem:[#allocation11 + $0x60] sm:$0xff] }
  0x76   :  { %418 = vst [vmem:[#allocation20 + $0x58] sm:$0xff] %v386_v12  ;;  %v388_v14 = vld [vmem:[#allocation11 + $0x68] sm:$0xff]  ;;  %v389_v15 = vld [vmem:[#allocation11 + $0x70] sm:$0xff]  ;;  %419 = vst [vmem:[#allocation20 + $0x60] sm:$0xff] %v387_v13  ;;  %p6846_p10 = pnand %p6845_p9, %p6839_p6 }
  0x77   :  { %420 = vst [vmem:[#allocation20 + $0x68] sm:$0xff] %v388_v14  ;;  %421 = vst [vmem:[#allocation20 + $0x70] sm:$0xff] %v389_v15  ;;  %v390_v16 = vld [vmem:[#allocation11 + $0x78] sm:$0xff]  ;;  %v391_v17 = vld [vmem:[#allocation11 + $0x80] sm:$0xff] }
  0x78   :  { %v392_v18 = vld [vmem:[#allocation11 + $0x88] sm:$0xff]  ;;  %422 = vst [vmem:[#allocation20 + $0x78] sm:$0xff] %v390_v16  ;;  %423 = vst [vmem:[#allocation20 + $0x80] sm:$0xff] %v391_v17  ;;  %v393_v19 = vld [vmem:[#allocation11 + $0x90] sm:$0xff] }
  0x79   :  { %424 = vst [vmem:[#allocation20 + $0x88] sm:$0xff] %v392_v18  ;;  %v394_v20 = vld [vmem:[#allocation11 + $0x98] sm:$0xff]  ;;  %v395_v21 = vld [vmem:[#allocation11 + $0xa0] sm:$0xff]  ;;  %425 = vst [vmem:[#allocation20 + $0x90] sm:$0xff] %v393_v19 }
  0x7a   :  { %426 = vst [vmem:[#allocation20 + $0x98] sm:$0xff] %v394_v20  ;;  %427 = vst [vmem:[#allocation20 + $0xa0] sm:$0xff] %v395_v21  ;;  %v396_v22 = vld [vmem:[#allocation11 + $0xa8] sm:$0xff]  ;;  %v397_v23 = vld [vmem:[#allocation11 + $0xb0] sm:$0xff] }
  0x7b   :  { %v398_v24 = vld [vmem:[#allocation11 + $0xb8] sm:$0xff]  ;;  %428 = vst [vmem:[#allocation20 + $0xa8] sm:$0xff] %v396_v22  ;;  %429 = vst [vmem:[#allocation20 + $0xb0] sm:$0xff] %v397_v23  ;;  %v399_v25 = vld [vmem:[#allocation11 + $0xc0] sm:$0xff] }
  0x7c   :  { %430 = vst [vmem:[#allocation20 + $0xb8] sm:$0xff] %v398_v24  ;;  %v400_v26 = vld [vmem:[#allocation11 + $0xc8] sm:$0xff]  ;;  %v401_v27 = vld [vmem:[#allocation11 + $0xd0] sm:$0xff]  ;;  %431 = vst [vmem:[#allocation20 + $0xc0] sm:$0xff] %v399_v25 }
  0x7d   :  { %432 = vst [vmem:[#allocation20 + $0xc8] sm:$0xff] %v400_v26  ;;  %433 = vst [vmem:[#allocation20 + $0xd0] sm:$0xff] %v401_v27  ;;  %v402_v28 = vld [vmem:[#allocation11 + $0xd8] sm:$0xff]  ;;  %v403_v29 = vld [vmem:[#allocation11 + $0xe0] sm:$0xff] }
  0x7e   :  { %v404_v30 = vld [vmem:[#allocation11 + $0xe8] sm:$0xff]  ;;  %v183_v31 = vld [vmem:[#allocation7] sm:$0xff]  ;;  %434 = vst [vmem:[#allocation20 + $0xd8] sm:$0xff] %v402_v28  ;;  %435 = vst [vmem:[#allocation20 + $0xe0] sm:$0xff] %v403_v29  ;;  %v10702_v28 = vmov 0.0  }
  0x7f   :  { %436 = vst [vmem:[#allocation20 + $0xe8] sm:$0xff] %v404_v30  ;;  %v405_v32 = vld [vmem:[#allocation11 + $0xf0] sm:$0xff]  ;;  %v406_v33 = vld [vmem:[#allocation11 + $0xf8] sm:$0xff]  ;;  %v7172_v34 = vld [vmem:[#allocation2] sm:$0xff] }
  0x80   :  { %v184_v35 = vld [vmem:[#allocation7 + $0x8] sm:$0xff]  ;;  %v185_v36 = vld [vmem:[#allocation7 + $0x10] sm:$0xff]  ;;  %v186_v37 = vld [vmem:[#allocation7 + $0x18] sm:$0xff]  ;;  %437 = vst [vmem:[#allocation20 + $0xf0] sm:$0xff] %v405_v32  ;;  %v447_v38 = vunpack.c.0.s8 %v7172_v34  ;;  %v455_v42 = vunpack.c.1.s8 %v7172_v34  ;;  %v463_v43 = vunpack.c.2.s8 %v7172_v34  ;;  %v471_v44 = vunpack.c.3.s8 %v7172_v34 }
  0x81   :  { %438 = vst [vmem:[#allocation20 + $0xf8] sm:$0xff] %v406_v33  ;;  %v7175_v39 = vld [vmem:[#allocation2 + $0x8] sm:$0xff]  ;;  %v7177_v40 = vld [vmem:[#allocation2 + $0x10] sm:$0xff]  ;;  %v7179_v41 = vld [vmem:[#allocation2 + $0x18] sm:$0xff] }
  0x82   :  { %v448_v45 = vunpack.c.0.s8 %v7175_v39  ;;  %v449_v46 = vunpack.c.0.s8 %v7177_v40  ;;  %v450_v47 = vunpack.c.0.s8 %v7179_v41  ;;  %v7187_v48 = vld [vmem:[#allocation2 + $0x20] sm:$0xff]  ;;  %v7189_v49 = vld [vmem:[#allocation2 + $0x28] sm:$0xff]  ;;  %v7191_v50 = vld [vmem:[#allocation2 + $0x30] sm:$0xff]  ;;  %v456_v51 = vunpack.c.1.s8 %v7175_v39 }
  0x83   :  { %v187_v52 = vld [vmem:[#allocation7 + $0x20] sm:$0xff]  ;;  %v188_v53 = vld [vmem:[#allocation7 + $0x28] sm:$0xff]  ;;  %v479_v54 = vcvt.s32.f32 %v447_v38  ;;  %v451_v55 = vunpack.c.0.s8 %v7187_v48  ;;  %v452_v56 = vunpack.c.0.s8 %v7189_v49  ;;  %v453_v57 = vunpack.c.0.s8 %v7191_v50  ;;  %v7197_v58 = vld [vmem:[#allocation2 + $0x38] sm:$0xff] }
  0x84   :  { %v189_v59 = vld [vmem:[#allocation7 + $0x30] sm:$0xff]  ;;  %v190_v60 = vld [vmem:[#allocation7 + $0x38] sm:$0xff]  ;;  %v119_v61 = vld [vmem:[#allocation5] sm:$0xff]  ;;  %v480_v62 = vcvt.s32.f32 %v448_v45  ;;  %v481_v63 = vcvt.s32.f32 %v449_v46  ;;  %v482_v0 = vcvt.s32.f32 %v450_v47  ;;  %v454_v1 = vunpack.c.0.s8 %v7197_v58 }
  0x85   :  { %v120_v2 = vld [vmem:[#allocation5 + $0x8] sm:$0xff]  ;;  %v121_v3 = vld [vmem:[#allocation5 + $0x10] sm:$0xff]  ;;  %v122_v4 = vld [vmem:[#allocation5 + $0x18] sm:$0xff]  ;;  %v543_v5 = vadd.f32 %v479_v54, %v183_v31  ;;  %v483_v6 = vcvt.s32.f32 %v451_v55  ;;  %v484_v7 = vcvt.s32.f32 %v452_v56  ;;  %v485_v8 = vcvt.s32.f32 %v453_v57 }
  0x86   :  { %v123_v9 = vld [vmem:[#allocation5 + $0x20] sm:$0xff]  ;;  %v124_v10 = vld [vmem:[#allocation5 + $0x28] sm:$0xff]  ;;  %v125_v11 = vld [vmem:[#allocation5 + $0x30] sm:$0xff]  ;;  %v544_v12 = vadd.f32 %v480_v62, %v184_v35  ;;  %v545_v13 = vadd.f32 %v481_v63, %v185_v36  ;;  %v546_v14 = vadd.f32 %v482_v0, %v186_v37  ;;  %v486_v15 = vcvt.s32.f32 %v454_v1 }
  0x87   :  { %v607_v16 = vadd.f32 %v543_v5, %v119_v61  ;;  %v547_v17 = vadd.f32 %v483_v6, %v187_v52  ;;  %v548_v18 = vadd.f32 %v484_v7, %v188_v53  ;;  %v549_v19 = vadd.f32 %v485_v8, %v189_v59  ;;  %v126_v27 = vld [vmem:[#allocation5 + $0x38] sm:$0xff]  ;;  %v191_v38 = vld [vmem:[#allocation7 + $0x40] sm:$0xff]  ;;  %v192_v47 = vld [vmem:[#allocation7 + $0x48] sm:$0xff] }
  0x88   :  { %v608_v20 = vadd.f32 %v544_v12, %v120_v2  ;;  %v609_v21 = vadd.f32 %v545_v13, %v121_v3  ;;  %v610_v22 = vadd.f32 %v546_v14, %v122_v4  ;;  %v550_v23 = vadd.f32 %v486_v15, %v190_v60  ;;  %v127_v56 = vld [vmem:[#allocation5 + $0x40] sm:$0xff]  ;;  %v128_v61 = vld [vmem:[#allocation5 + $0x48] sm:$0xff]  ;;  %v194_v2 = vld [vmem:[#allocation7 + $0x58] sm:$0xff] }
  0x89   :  { %vm639_vm0 = vcmp.gt.f32.partialorder %v607_v16, 0.0  ;;  %v611_v24 = vadd.f32 %v547_v17, %v123_v9  ;;  %v612_v25 = vadd.f32 %v548_v18, %v124_v10  ;;  %v613_v26 = vadd.f32 %v549_v19, %v125_v11  ;;  %v195_v6 = vld [vmem:[#allocation7 + $0x60] sm:$0xff]  ;;  %v196_v7 = vld [vmem:[#allocation7 + $0x68] sm:$0xff]  ;;  %v129_v12 = vld [vmem:[#allocation5 + $0x50] sm:$0xff] }
  0x8a   :  { %v7201_v29 = vsel %vm639_vm0, 1.0, %v10702_v28  ;;  %vm640_vm1 = vcmp.gt.f32.partialorder %v608_v20, 0.0  ;;  %vm641_vm2 = vcmp.gt.f32.partialorder %v609_v21, 0.0  ;;  %vm642_vm3 = vcmp.gt.f32.partialorder %v610_v22, 0.0  ;;  %v130_v13 = vld [vmem:[#allocation5 + $0x58] sm:$0xff]  ;;  %v197_v18 = vld [vmem:[#allocation7 + $0x70] sm:$0xff] }
  0x8b   :  { %v735_v30 = vsub.f32 %v607_v16, %v7201_v29  ;;  %v7205_v31 = vsel %vm640_vm1, 1.0, %v10702_v28  ;;  %v7208_v32 = vsel %vm641_vm2, 1.0, %v10702_v28  ;;  %v7211_v33 = vsel %vm642_vm3, 1.0, %v10702_v28  ;;  %v131_v19 = vld [vmem:[#allocation5 + $0x60] sm:$0xff] }
  0x8c   :  { %v736_v35 = vsub.f32 %v608_v20, %v7205_v31  ;;  %v737_v36 = vsub.f32 %v609_v21, %v7208_v32  ;;  %v738_v37 = vsub.f32 %v610_v22, %v7211_v33  ;;  %vm643_vm4 = vcmp.gt.f32.partialorder %v611_v24, 0.0  ;;  %v132_v20 = vld [vmem:[#allocation5 + $0x68] sm:$0xff] }
  0x8d   :  { %767 = vst [vmem:[#allocation16] sm:$0xff] %v735_v30  ;;  %v7217_v45 = vsel %vm643_vm4, 1.0, %v10702_v28  ;;  %vm644_vm5 = vcmp.gt.f32.partialorder %v612_v25, 0.0  ;;  %vm645_vm6 = vcmp.gt.f32.partialorder %v613_v26, 0.0  ;;  %v614_v46 = vadd.f32 %v550_v23, %v126_v27 }
  0x8e   :  { %768 = vst [vmem:[#allocation16 + $0x8] sm:$0xff] %v736_v35  ;;  %769 = vst [vmem:[#allocation16 + $0x10] sm:$0xff] %v737_v36  ;;  %v739_v52 = vsub.f32 %v611_v24, %v7217_v45  ;;  %v7221_v53 = vsel %vm644_vm5, 1.0, %v10702_v28  ;;  %v7224_v54 = vsel %vm645_vm6, 1.0, %v10702_v28  ;;  %v487_v55 = vcvt.s32.f32 %v455_v42  ;;  %v193_v42 = vld [vmem:[#allocation7 + $0x50] sm:$0xff] }
  0x8f   :  { %770 = vst [vmem:[#allocation16 + $0x18] sm:$0xff] %v738_v37  ;;  %v740_v57 = vsub.f32 %v612_v25, %v7221_v53  ;;  %v741_v59 = vsub.f32 %v613_v26, %v7224_v54  ;;  %vm646_vm7 = vcmp.gt.f32.partialorder %v614_v46, 0.0  ;;  %v488_v60 = vcvt.s32.f32 %v456_v51 }
  0x90   :  { %771 = vst [vmem:[#allocation16 + $0x20] sm:$0xff] %v739_v52  ;;  %v7233_v62 = vsel %vm646_vm7, 1.0, %v10702_v28  ;;  %v551_v63 = vadd.f32 %v487_v55, %v191_v38  ;;  %v457_v0 = vunpack.c.1.s8 %v7177_v40  ;;  %v458_v1 = vunpack.c.1.s8 %v7179_v41  ;;  %v198_v52 = vld [vmem:[#allocation7 + $0x78] sm:$0xff]  ;;  %v133_v55 = vld [vmem:[#allocation5 + $0x70] sm:$0xff] }
  0x91   :  { %772 = vst [vmem:[#allocation16 + $0x28] sm:$0xff] %v740_v57  ;;  %773 = vst [vmem:[#allocation16 + $0x30] sm:$0xff] %v741_v59  ;;  %v742_v3 = vsub.f32 %v614_v46, %v7233_v62  ;;  %v552_v4 = vadd.f32 %v488_v60, %v192_v47  ;;  %v459_v5 = vunpack.c.1.s8 %v7187_v48  ;;  %v460_v51 = vunpack.c.1.s8 %v7189_v49  ;;  %v199_v59 = vld [vmem:[#allocation7 + $0x80] sm:$0xff] }
  0x92   :  { %v615_v8 = vadd.f32 %v551_v63, %v127_v56  ;;  %v489_v9 = vcvt.s32.f32 %v457_v0  ;;  %v490_v10 = vcvt.s32.f32 %v458_v1  ;;  %v461_v11 = vunpack.c.1.s8 %v7191_v50  ;;  %v134_v63 = vld [vmem:[#allocation5 + $0x78] sm:$0xff] }
  0x93   :  { %774 = vst [vmem:[#allocation16 + $0x38] sm:$0xff] %v742_v3  ;;  %v616_v14 = vadd.f32 %v552_v4, %v128_v61  ;;  %v491_v15 = vcvt.s32.f32 %v459_v5  ;;  %v492_v16 = vcvt.s32.f32 %v460_v51  ;;  %v462_v17 = vunpack.c.1.s8 %v7197_v58 }
  0x94   :  { %vm647_vm8 = vcmp.gt.f32.partialorder %v615_v8, 0.0  ;;  %v553_v21 = vadd.f32 %v489_v9, %v193_v42  ;;  %v554_v22 = vadd.f32 %v490_v10, %v194_v2  ;;  %v493_v23 = vcvt.s32.f32 %v461_v11  ;;  %v135_v2 = vld [vmem:[#allocation5 + $0x80] sm:$0xff]  ;;  %v200_v10 = vld [vmem:[#allocation7 + $0x88] sm:$0xff]  ;;  %v201_v11 = vld [vmem:[#allocation7 + $0x90] sm:$0xff] }
  0x95   :  { %v7243_v24 = vsel %vm647_vm8, 1.0, %v10702_v28  ;;  %vm648_vm9 = vcmp.gt.f32.partialorder %v616_v14, 0.0  ;;  %v555_v25 = vadd.f32 %v491_v15, %v195_v6  ;;  %v556_v26 = vadd.f32 %v492_v16, %v196_v7  ;;  %v202_v15 = vld [vmem:[#allocation7 + $0x98] sm:$0xff]  ;;  %v203_v16 = vld [vmem:[#allocation7 + $0xa0] sm:$0xff] }
  0x96   :  { %v743_v27 = vsub.f32 %v615_v8, %v7243_v24  ;;  %v7247_v30 = vsel %vm648_vm9, 1.0, %v10702_v28  ;;  %v617_v35 = vadd.f32 %v553_v21, %v129_v12  ;;  %v618_v36 = vadd.f32 %v554_v22, %v130_v13  ;;  %v136_v21 = vld [vmem:[#allocation5 + $0x88] sm:$0xff]  ;;  %v137_v22 = vld [vmem:[#allocation5 + $0x90] sm:$0xff] }
  0x97   :  { %v744_v37 = vsub.f32 %v616_v14, %v7247_v30  ;;  %v619_v38 = vadd.f32 %v555_v25, %v131_v19  ;;  %v620_v46 = vadd.f32 %v556_v26, %v132_v20  ;;  %v557_v47 = vadd.f32 %v493_v23, %v197_v18 }
  0x98   :  { %775 = vst [vmem:[#allocation16 + $0x40] sm:$0xff] %v743_v27  ;;  %vm649_vm10 = vcmp.gt.f32.partialorder %v617_v35, 0.0  ;;  %vm650_vm11 = vcmp.gt.f32.partialorder %v618_v36, 0.0  ;;  %v494_v56 = vcvt.s32.f32 %v462_v17  ;;  %v495_v57 = vcvt.s32.f32 %v463_v43  ;;  %v138_v27 = vld [vmem:[#allocation5 + $0x98] sm:$0xff] }
  0x99   :  { %776 = vst [vmem:[#allocation16 + $0x48] sm:$0xff] %v744_v37  ;;  %v7253_v60 = vsel %vm649_vm10, 1.0, %v10702_v28  ;;  %v7256_v61 = vsel %vm650_vm11, 1.0, %v10702_v28  ;;  %vm651_vm12 = vcmp.gt.f32.partialorder %v619_v38, 0.0  ;;  %vm652_vm13 = vcmp.gt.f32.partialorder %v620_v46, 0.0 }
  0x9a   :  { %v745_v0 = vsub.f32 %v617_v35, %v7253_v60  ;;  %v746_v1 = vsub.f32 %v618_v36, %v7256_v61  ;;  %v7261_v42 = vsel %vm651_vm12, 1.0, %v10702_v28  ;;  %v7264_v43 = vsel %vm652_vm13, 1.0, %v10702_v28  ;;  %v139_v35 = vld [vmem:[#allocation5 + $0xa0] sm:$0xff] }
  0x9b   :  { %v747_v3 = vsub.f32 %v619_v38, %v7261_v42  ;;  %v748_v4 = vsub.f32 %v620_v46, %v7264_v43  ;;  %v621_v5 = vadd.f32 %v557_v47, %v133_v55  ;;  %v558_v51 = vadd.f32 %v494_v56, %v198_v52  ;;  %v204_v46 = vld [vmem:[#allocation7 + $0xa8] sm:$0xff] }
  0x9c   :  { %777 = vst [vmem:[#allocation16 + $0x50] sm:$0xff] %v745_v0  ;;  %778 = vst [vmem:[#allocation16 + $0x58] sm:$0xff] %v746_v1  ;;  %v559_v6 = vadd.f32 %v495_v57, %v199_v59  ;;  %v464_v7 = vunpack.c.2.s8 %v7175_v39  ;;  %v465_v8 = vunpack.c.2.s8 %v7177_v40  ;;  %v466_v9 = vunpack.c.2.s8 %v7179_v41 }
  0x9d   :  { %779 = vst [vmem:[#allocation16 + $0x60] sm:$0xff] %v747_v3  ;;  %780 = vst [vmem:[#allocation16 + $0x68] sm:$0xff] %v748_v4  ;;  %vm653_vm14 = vcmp.gt.f32.partialorder %v621_v5, 0.0  ;;  %v622_v12 = vadd.f32 %v558_v51, %v134_v63  ;;  %v467_v13 = vunpack.c.2.s8 %v7187_v48  ;;  %v468_v14 = vunpack.c.2.s8 %v7189_v49 }
  0x9e   :  { %v7274_v17 = vsel %vm653_vm14, 1.0, %v10702_v28  ;;  %v623_v18 = vadd.f32 %v559_v6, %v135_v2  ;;  %v496_v19 = vcvt.s32.f32 %v464_v7  ;;  %v497_v20 = vcvt.s32.f32 %v465_v8  ;;  %v207_v7 = vld [vmem:[#allocation7 + $0xc0] sm:$0xff] }
  0x9f   :  { %v749_v23 = vsub.f32 %v621_v5, %v7274_v17  ;;  %vm654_vm15 = vcmp.gt.f32.partialorder %v622_v12, 0.0  ;;  %v498_v25 = vcvt.s32.f32 %v466_v9  ;;  %v499_v26 = vcvt.s32.f32 %v467_v13  ;;  %v140_v5 = vld [vmem:[#allocation5 + $0xa8] sm:$0xff] }
  0xa0   :  { %v7278_v36 = vsel %vm654_vm15, 1.0, %v10702_v28  ;;  %vm655_vm0 = vcmp.gt.f32.partialorder %v623_v18, 0.0  ;;  %v560_v37 = vadd.f32 %v496_v19, %v200_v10  ;;  %v561_v38 = vadd.f32 %v497_v20, %v201_v11  ;;  %v205_v10 = vld [vmem:[#allocation7 + $0xb0] sm:$0xff] }
  0xa1   :  { %781 = vst [vmem:[#allocation16 + $0x70] sm:$0xff] %v749_v23  ;;  %v750_v47 = vsub.f32 %v622_v12, %v7278_v36  ;;  %v7282_v52 = vsel %vm655_vm0, 1.0, %v10702_v28  ;;  %v562_v55 = vadd.f32 %v498_v25, %v202_v15  ;;  %v563_v56 = vadd.f32 %v499_v26, %v203_v16  ;;  %v141_v20 = vld [vmem:[#allocation5 + $0xb0] sm:$0xff]  ;;  %v208_v26 = vld [vmem:[#allocation7 + $0xc8] sm:$0xff] }
  0xa2   :  { %v751_v57 = vsub.f32 %v623_v18, %v7282_v52  ;;  %v624_v59 = vadd.f32 %v560_v37, %v136_v21  ;;  %v625_v63 = vadd.f32 %v561_v38, %v137_v22  ;;  %v500_v0 = vcvt.s32.f32 %v468_v14  ;;  %v143_v14 = vld [vmem:[#allocation5 + $0xc0] sm:$0xff] }
  0xa3   :  { %782 = vst [vmem:[#allocation16 + $0x78] sm:$0xff] %v750_v47  ;;  %v626_v1 = vadd.f32 %v562_v55, %v138_v27  ;;  %v627_v2 = vadd.f32 %v563_v56, %v139_v35  ;;  %v469_v3 = vunpack.c.2.s8 %v7191_v50  ;;  %v470_v4 = vunpack.c.2.s8 %v7197_v58  ;;  %v142_v27 = vld [vmem:[#allocation5 + $0xb8] sm:$0xff] }
  0xa4   :  { %783 = vst [vmem:[#allocation16 + $0x80] sm:$0xff] %v751_v57  ;;  %vm656_vm1 = vcmp.gt.f32.partialorder %v624_v59, 0.0  ;;  %vm657_vm2 = vcmp.gt.f32.partialorder %v625_v63, 0.0  ;;  %v564_v51 = vadd.f32 %v500_v0, %v204_v46  ;;  %v503_v6 = vcvt.s32.f32 %v471_v44  ;;  %v206_v44 = vld [vmem:[#allocation7 + $0xb8] sm:$0xff]  ;;  %v209_v46 = vld [vmem:[#allocation7 + $0xd0] sm:$0xff] }
  0xa5   :  { %v7290_v8 = vsel %vm656_vm1, 1.0, %v10702_v28  ;;  %v7293_v9 = vsel %vm657_vm2, 1.0, %v10702_v28  ;;  %vm658_vm3 = vcmp.gt.f32.partialorder %v626_v1, 0.0  ;;  %vm659_vm4 = vcmp.gt.f32.partialorder %v627_v2, 0.0  ;;  %v210_v47 = vld [vmem:[#allocation7 + $0xd8] sm:$0xff] }
  0xa6   :  { %v752_v11 = vsub.f32 %v624_v59, %v7290_v8  ;;  %v753_v12 = vsub.f32 %v625_v63, %v7293_v9  ;;  %v7298_v13 = vsel %vm658_vm3, 1.0, %v10702_v28  ;;  %v7301_v34 = vsel %vm659_vm4, 1.0, %v10702_v28  ;;  %v144_v59 = vld [vmem:[#allocation5 + $0xc8] sm:$0xff] }
  0xa7   :  { %v754_v15 = vsub.f32 %v626_v1, %v7298_v13  ;;  %v755_v16 = vsub.f32 %v627_v2, %v7301_v34  ;;  %v628_v18 = vadd.f32 %v564_v51, %v140_v5  ;;  %v501_v19 = vcvt.s32.f32 %v469_v3  ;;  %v145_v2 = vld [vmem:[#allocation5 + $0xd0] sm:$0xff]  ;;  %v146_v3 = vld [vmem:[#allocation5 + $0xd8] sm:$0xff]  ;;  %v211_v5 = vld [vmem:[#allocation7 + $0xe0] sm:$0xff] }
  0xa8   :  { %784 = vst [vmem:[#allocation16 + $0x88] sm:$0xff] %v752_v11  ;;  %785 = vst [vmem:[#allocation16 + $0x90] sm:$0xff] %v753_v12  ;;  %v502_v21 = vcvt.s32.f32 %v470_v4  ;;  %v567_v22 = vadd.f32 %v503_v6, %v207_v7  ;;  %v472_v23 = vunpack.c.3.s8 %v7175_v39  ;;  %v473_v25 = vunpack.c.3.s8 %v7177_v40 }
  0xa9   :  { %786 = vst [vmem:[#allocation16 + $0x98] sm:$0xff] %v754_v15  ;;  %787 = vst [vmem:[#allocation16 + $0xa0] sm:$0xff] %v755_v16  ;;  %vm660_vm5 = vcmp.gt.f32.partialorder %v628_v18, 0.0  ;;  %v565_v35 = vadd.f32 %v501_v19, %v205_v10  ;;  %v474_v37 = vunpack.c.3.s8 %v7179_v41  ;;  %v475_v38 = vunpack.c.3.s8 %v7187_v48 }
  0xaa   :  { %v7310_v55 = vsel %vm660_vm5, 1.0, %v10702_v28  ;;  %v566_v56 = vadd.f32 %v502_v21, %v206_v44  ;;  %v631_v57 = vadd.f32 %v567_v22, %v143_v14  ;;  %v504_v39 = vcvt.s32.f32 %v472_v23  ;;  %v147_v44 = vld [vmem:[#allocation5 + $0xe0] sm:$0xff] }
  0xab   :  { %v756_v40 = vsub.f32 %v628_v18, %v7310_v55  ;;  %v629_v63 = vadd.f32 %v565_v35, %v141_v20  ;;  %v505_v0 = vcvt.s32.f32 %v473_v25  ;;  %v506_v1 = vcvt.s32.f32 %v474_v37  ;;  %v212_v25 = vld [vmem:[#allocation7 + $0xe8] sm:$0xff] }
  0xac   :  { %v630_v4 = vadd.f32 %v566_v56, %v142_v27  ;;  %vm663_vm6 = vcmp.gt.f32.partialorder %v631_v57, 0.0  ;;  %v568_v41 = vadd.f32 %v504_v39, %v208_v26  ;;  %v507_v48 = vcvt.s32.f32 %v475_v38  ;;  %v213_v26 = vld [vmem:[#allocation7 + $0xf0] sm:$0xff] }
  0xad   :  { %788 = vst [vmem:[#allocation16 + $0xa8] sm:$0xff] %v756_v40  ;;  %vm661_vm7 = vcmp.gt.f32.partialorder %v629_v63, 0.0  ;;  %v7314_v51 = vsel %vm663_vm6, 1.0, %v10702_v28  ;;  %v569_v6 = vadd.f32 %v505_v0, %v209_v46  ;;  %v570_v7 = vadd.f32 %v506_v1, %v210_v47 }
  0xae   :  { %v7317_v10 = vsel %vm661_vm7, 1.0, %v10702_v28  ;;  %vm662_vm8 = vcmp.gt.f32.partialorder %v630_v4, 0.0  ;;  %v759_v11 = vsub.f32 %v631_v57, %v7314_v51  ;;  %v632_v12 = vadd.f32 %v568_v41, %v144_v59  ;;  %v148_v57 = vld [vmem:[#allocation5 + $0xe8] sm:$0xff] }
  0xaf   :  { %v757_v14 = vsub.f32 %v629_v63, %v7317_v10  ;;  %v7322_v15 = vsel %vm662_vm8, 1.0, %v10702_v28  ;;  %v633_v16 = vadd.f32 %v569_v6, %v145_v2  ;;  %v634_v18 = vadd.f32 %v570_v7, %v146_v3  ;;  %v542_v2 = vld [vmem:[#allocation16 + $0xf8] sm:$0xff] }
  0xb0   :  { %v758_v19 = vsub.f32 %v630_v4, %v7322_v15  ;;  %791 = vst [vmem:[#allocation16 + $0xc0] sm:$0xff] %v759_v11  ;;  %vm664_vm9 = vcmp.gt.f32.partialorder %v632_v12, 0.0  ;;  %v571_v20 = vadd.f32 %v507_v48, %v211_v5  ;;  %v476_v21 = vunpack.c.3.s8 %v7189_v49  ;;  %v150_v5 = vld [vmem:[#allocation5 + $0xf8] sm:$0xff] }
  0xb1   :  { %789 = vst [vmem:[#allocation16 + $0xb0] sm:$0xff] %v757_v14  ;;  %v7327_v22 = vsel %vm664_vm9, 1.0, %v10702_v28  ;;  %vm665_vm10 = vcmp.gt.f32.partialorder %v633_v16, 0.0  ;;  %vm666_vm11 = vcmp.gt.f32.partialorder %v634_v18, 0.0  ;;  %v477_v23 = vunpack.c.3.s8 %v7191_v50  ;;  %v149_v50 = vld [vmem:[#allocation5 + $0xf0] sm:$0xff] }
  0xb2   :  { %790 = vst [vmem:[#allocation16 + $0xb8] sm:$0xff] %v758_v19  ;;  %v760_v27 = vsub.f32 %v632_v12, %v7327_v22  ;;  %v7332_v35 = vsel %vm665_vm10, 1.0, %v10702_v28  ;;  %v7335_v37 = vsel %vm666_vm11, 1.0, %v10702_v28  ;;  %v635_v49 = vadd.f32 %v571_v20, %v147_v44 }
  0xb3   :  { %v761_v38 = vsub.f32 %v633_v16, %v7332_v35  ;;  %v762_v46 = vsub.f32 %v634_v18, %v7335_v37  ;;  %v508_v47 = vcvt.s32.f32 %v476_v21  ;;  %v509_v56 = vcvt.s32.f32 %v477_v23 }
  0xb4   :  { %792 = vst [vmem:[#allocation16 + $0xc8] sm:$0xff] %v760_v27  ;;  %vm667_vm12 = vcmp.gt.f32.partialorder %v635_v49, 0.0  ;;  %v478_v39 = vunpack.c.3.s8 %v7197_v58  ;;  %v799_v59 = vsub.f32 1.0, %v7201_v29  ;;  %v800_v40 = vsub.f32 1.0, %v7205_v31 }
  0xb5   :  { %793 = vst [vmem:[#allocation16 + $0xd0] sm:$0xff] %v761_v38  ;;  %794 = vst [vmem:[#allocation16 + $0xd8] sm:$0xff] %v762_v46  ;;  %v7343_v63 = vsel %vm667_vm12, 1.0, %v10702_v28  ;;  %v572_v0 = vadd.f32 %v508_v47, %v212_v25  ;;  %v573_v1 = vadd.f32 %v509_v56, %v213_v26  ;;  %v801_v3 = vsub.f32 1.0, %v7208_v32 }
  0xb6   :  { %v763_v4 = vsub.f32 %v635_v49, %v7343_v63  ;;  %v510_v41 = vcvt.s32.f32 %v478_v39  ;;  %863 = vst [vmem:[#allocation17] sm:$0xff] %v799_v59  ;;  %864 = vst [vmem:[#allocation17 + $0x8] sm:$0xff] %v800_v40  ;;  %v802_v58 = vsub.f32 1.0, %v7211_v33  ;;  %v803_v48 = vsub.f32 1.0, %v7217_v45 }
  0xb7   :  { %v636_v6 = vadd.f32 %v572_v0, %v148_v57  ;;  %v637_v7 = vadd.f32 %v573_v1, %v149_v50  ;;  %865 = vst [vmem:[#allocation17 + $0x10] sm:$0xff] %v801_v3  ;;  %v804_v11 = vsub.f32 1.0, %v7221_v53  ;;  %v805_v12 = vsub.f32 1.0, %v7224_v54 }
  0xb8   :  { %795 = vst [vmem:[#allocation16 + $0xe0] sm:$0xff] %v763_v4  ;;  %v574_v44 = vadd.f32 %v542_v2, %v510_v41  ;;  %866 = vst [vmem:[#allocation17 + $0x18] sm:$0xff] %v802_v58  ;;  %v806_v14 = vsub.f32 1.0, %v7233_v62  ;;  %v807_v16 = vsub.f32 1.0, %v7243_v24  ;;  %v808_v18 = vsub.f32 1.0, %v7247_v30 }
  0xb9   :  { %867 = vst [vmem:[#allocation17 + $0x20] sm:$0xff] %v803_v48  ;;  %vm668_vm13 = vcmp.gt.f32.partialorder %v636_v6, 0.0  ;;  %vm669_vm14 = vcmp.gt.f32.partialorder %v637_v7, 0.0  ;;  %868 = vst [vmem:[#allocation17 + $0x28] sm:$0xff] %v804_v11  ;;  %v809_v19 = vsub.f32 1.0, %v7253_v60  ;;  %v810_v20 = vsub.f32 1.0, %v7256_v61 }
  0xba   :  { %869 = vst [vmem:[#allocation17 + $0x30] sm:$0xff] %v805_v12  ;;  %v7357_v21 = vsel %vm668_vm13, 1.0, %v10702_v28  ;;  %v7360_v23 = vsel %vm669_vm14, 1.0, %v10702_v28  ;;  %v638_v25 = vadd.f32 %v574_v44, %v150_v5  ;;  %870 = vst [vmem:[#allocation17 + $0x38] sm:$0xff] %v806_v14  ;;  %v811_v26 = vsub.f32 1.0, %v7261_v42 }
  0xbb   :  { %871 = vst [vmem:[#allocation17 + $0x40] sm:$0xff] %v807_v16  ;;  %872 = vst [vmem:[#allocation17 + $0x48] sm:$0xff] %v808_v18  ;;  %v764_v27 = vsub.f32 %v636_v6, %v7357_v21  ;;  %v765_v49 = vsub.f32 %v637_v7, %v7360_v23  ;;  %v812_v38 = vsub.f32 1.0, %v7264_v43  ;;  %v813_v46 = vsub.f32 1.0, %v7274_v17 }
  0xbc   :  { %873 = vst [vmem:[#allocation17 + $0x50] sm:$0xff] %v809_v19  ;;  %874 = vst [vmem:[#allocation17 + $0x58] sm:$0xff] %v810_v20  ;;  %vm670_vm15 = vcmp.gt.f32.partialorder %v638_v25, 0.0  ;;  %v814_v47 = vsub.f32 1.0, %v7278_v36  ;;  %v815_v56 = vsub.f32 1.0, %v7282_v52  ;;  %v816_v57 = vsub.f32 1.0, %v7290_v8 }
  0xbd   :  { %875 = vst [vmem:[#allocation17 + $0x60] sm:$0xff] %v811_v26  ;;  %796 = vst [vmem:[#allocation16 + $0xe8] sm:$0xff] %v764_v27  ;;  %v7371_v50 = vsel %vm670_vm15, 1.0, %v10702_v28  ;;  %v817_v39 = vsub.f32 1.0, %v7293_v9  ;;  %v818_v59 = vsub.f32 1.0, %v7298_v13  ;;  %v819_v40 = vsub.f32 1.0, %v7301_v34 }
  0xbe   :  { %797 = vst [vmem:[#allocation16 + $0xf0] sm:$0xff] %v765_v49  ;;  %876 = vst [vmem:[#allocation17 + $0x68] sm:$0xff] %v812_v38  ;;  %v766_v0 = vsub.f32 %v638_v25, %v7371_v50  ;;  %v820_v1 = vsub.f32 1.0, %v7310_v55  ;;  %v821_v2 = vsub.f32 1.0, %v7317_v10  ;;  %v822_v3 = vsub.f32 1.0, %v7322_v15 }
  0xbf   :  { %877 = vst [vmem:[#allocation17 + $0x70] sm:$0xff] %v813_v46  ;;  %878 = vst [vmem:[#allocation17 + $0x78] sm:$0xff] %v814_v47  ;;  %v823_v4 = vsub.f32 1.0, %v7314_v51  ;;  %v824_v41 = vsub.f32 1.0, %v7327_v22  ;;  %v825_v58 = vsub.f32 1.0, %v7332_v35  ;;  %v826_v48 = vsub.f32 1.0, %v7335_v37 }
  0xc0   :  { %879 = vst [vmem:[#allocation17 + $0x80] sm:$0xff] %v815_v56  ;;  %880 = vst [vmem:[#allocation17 + $0x88] sm:$0xff] %v816_v57  ;;  %v827_v5 = vsub.f32 1.0, %v7343_v63  ;;  %v828_v6 = vsub.f32 1.0, %v7357_v21  ;;  %v829_v7 = vsub.f32 1.0, %v7360_v23  ;;  %v830_v11 = vsub.f32 1.0, %v7371_v50 }
  0xc1   :  { %881 = vst [vmem:[#allocation17 + $0x90] sm:$0xff] %v817_v39  ;;  %882 = vst [vmem:[#allocation17 + $0x98] sm:$0xff] %v818_v59  ;;  %v1247_v12 = vtrunc.f32 %v7201_v29  ;;  %v1255_v44 = vtrunc.f32 %v7243_v24  ;;  %v1263_v14 = vtrunc.f32 %v7282_v52  ;;  %v1271_v16 = vtrunc.f32 %v7314_v51 }
  0xc2   :  { %883 = vst [vmem:[#allocation17 + $0xa0] sm:$0xff] %v819_v40  ;;  %798 = vst [vmem:[#allocation16 + $0xf8] sm:$0xff] %v766_v0  ;;  %v1248_v18 = vtrunc.f32 %v7205_v31  ;;  %v1256_v19 = vtrunc.f32 %v7247_v30  ;;  %v1264_v20 = vtrunc.f32 %v7290_v8  ;;  %v1272_v25 = vtrunc.f32 %v7327_v22 }
  0xc3   :  { %884 = vst [vmem:[#allocation17 + $0xa8] sm:$0xff] %v820_v1  ;;  %885 = vst [vmem:[#allocation17 + $0xb0] sm:$0xff] %v821_v2  ;;  %v1279_v26 = vpack.c.f32.eXmY %v1247_v12, %v1255_v44, 312  ;;  %v1283_v27 = vpack.c.f32.eXmY %v1263_v14, %v1271_v16, 312  ;;  %v1249_v49 = vtrunc.f32 %v7208_v32  ;;  %v1257_v38 = vtrunc.f32 %v7253_v60 }
  0xc4   :  { %886 = vst [vmem:[#allocation17 + $0xb8] sm:$0xff] %v822_v3  ;;  %887 = vst [vmem:[#allocation17 + $0xc0] sm:$0xff] %v823_v4  ;;  %v1289_v46 = vpack.c.f32.eXmY %v1248_v18, %v1256_v19, 312  ;;  %v1293_v47 = vpack.c.f32.eXmY %v1264_v20, %v1272_v25, 312  ;;  %v1265_v56 = vtrunc.f32 %v7293_v9  ;;  %v1273_v57 = vtrunc.f32 %v7332_v35 }
  0xc5   :  { %888 = vst [vmem:[#allocation17 + $0xc8] sm:$0xff] %v824_v41  ;;  %889 = vst [vmem:[#allocation17 + $0xd0] sm:$0xff] %v825_v58  ;;  %v1287_v39 = vpack.c.b8 %v1283_v27, %v1279_v26  ;;  %v1299_v59 = vpack.c.f32.eXmY %v1249_v49, %v1257_v38, 312  ;;  %v1250_v40 = vtrunc.f32 %v7211_v33  ;;  %v1258_v0 = vtrunc.f32 %v7256_v61 }
  0xc6   :  { %890 = vst [vmem:[#allocation17 + $0xd8] sm:$0xff] %v826_v48  ;;  %891 = vst [vmem:[#allocation17 + $0xe0] sm:$0xff] %v827_v5  ;;  %v1297_v1 = vpack.c.b8 %v1293_v47, %v1289_v46  ;;  %v1303_v2 = vpack.c.f32.eXmY %v1265_v56, %v1273_v57, 312  ;;  %v1266_v3 = vtrunc.f32 %v7298_v13  ;;  %v1274_v4 = vtrunc.f32 %v7335_v37 }
  0xc7   :  { %892 = vst [vmem:[#allocation17 + $0xe8] sm:$0xff] %v828_v6  ;;  %893 = vst [vmem:[#allocation17 + $0xf0] sm:$0xff] %v829_v7  ;;  %v1309_v41 = vpack.c.f32.eXmY %v1250_v40, %v1258_v0, 312  ;;  %v1251_v58 = vtrunc.f32 %v7217_v45  ;;  %v1259_v48 = vtrunc.f32 %v7261_v42  ;;  %v1267_v5 = vtrunc.f32 %v7301_v34 }
  0xc8   :  { %894 = vst [vmem:[#allocation17 + $0xf8] sm:$0xff] %v830_v11  ;;  %1359 = vst [vmem:[#allocation13] sm:$0xff] %v1287_v39  ;;  %v1307_v6 = vpack.c.b8 %v1303_v2, %v1299_v59  ;;  %v1313_v7 = vpack.c.f32.eXmY %v1266_v3, %v1274_v4, 312  ;;  %v1275_v11 = vtrunc.f32 %v7343_v63  ;;  %v1252_v12 = vtrunc.f32 %v7221_v53 }
  0xc9   :  { %1360 = vst [vmem:[#allocation13 + $0x8] sm:$0xff] %v1297_v1  ;;  %v1319_v44 = vpack.c.f32.eXmY %v1251_v58, %v1259_v48, 312  ;;  %v1260_v14 = vtrunc.f32 %v7264_v43  ;;  %v1268_v16 = vtrunc.f32 %v7310_v55  ;;  %v1276_v18 = vtrunc.f32 %v7357_v21 }
  0xca   :  { %1361 = vst [vmem:[#allocation13 + $0x10] sm:$0xff] %v1307_v6  ;;  %v1317_v19 = vpack.c.b8 %v1313_v7, %v1309_v41  ;;  %v1323_v20 = vpack.c.f32.eXmY %v1267_v5, %v1275_v11, 312  ;;  %v1253_v25 = vtrunc.f32 %v7224_v54  ;;  %v1261_v26 = vtrunc.f32 %v7274_v17  ;;  %v895_v5 = vld [vmem:[#allocation20] sm:$0xff]  ;;  %v896_v6 = vld [vmem:[#allocation20 + $0x8] sm:$0xff]  ;;  %v897_v7 = vld [vmem:[#allocation20 + $0x10] sm:$0xff] }
  0xcb   :  { %v1329_v27 = vpack.c.f32.eXmY %v1252_v12, %v1260_v14, 312  ;;  %v1333_v49 = vpack.c.f32.eXmY %v1268_v16, %v1276_v18, 312  ;;  %v1269_v38 = vtrunc.f32 %v7317_v10  ;;  %v1277_v46 = vtrunc.f32 %v7360_v23  ;;  %v898_v18 = vld [vmem:[#allocation20 + $0x18] sm:$0xff] }
  0xcc   :  { %1362 = vst [vmem:[#allocation13 + $0x18] sm:$0xff] %v1317_v19  ;;  %v1327_v47 = vpack.c.b8 %v1323_v20, %v1319_v44  ;;  %v1339_v56 = vpack.c.f32.eXmY %v1253_v25, %v1261_v26, 312  ;;  %v1254_v57 = vtrunc.f32 %v7233_v62  ;;  %v1262_v39 = vtrunc.f32 %v7278_v36  ;;  %v899_v19 = vld [vmem:[#allocation20 + $0x20] sm:$0xff]  ;;  %v900_v25 = vld [vmem:[#allocation20 + $0x28] sm:$0xff] }
  0xcd   :  { %v1337_v59 = vpack.c.b8 %v1333_v49, %v1329_v27  ;;  %v1343_v40 = vpack.c.f32.eXmY %v1269_v38, %v1277_v46, 312  ;;  %v1270_v0 = vtrunc.f32 %v7322_v15  ;;  %v1278_v1 = vtrunc.f32 %v7371_v50 }
  0xce   :  { %1363 = vst [vmem:[#allocation13 + $0x20] sm:$0xff] %v1327_v47  ;;  %v1349_v2 = vpack.c.f32.eXmY %v1254_v57, %v1262_v39, 312  ;;  %v927_v3 = vmul.f32 2.0, %v7201_v29  ;;  %v928_v4 = vmul.f32 2.0, %v7205_v31  ;;  %v929_v41 = vmul.f32 2.0, %v7208_v32  ;;  %v901_v57 = vld [vmem:[#allocation20 + $0x30] sm:$0xff] }
  0xcf   :  { %1364 = vst [vmem:[#allocation13 + $0x28] sm:$0xff] %v1337_v59  ;;  %v1347_v58 = vpack.c.b8 %v1343_v40, %v1339_v56  ;;  %v1353_v48 = vpack.c.f32.eXmY %v1270_v0, %v1278_v1, 312  ;;  %v930_v11 = vmul.f32 2.0, %v7211_v33  ;;  %v931_v12 = vmul.f32 2.0, %v7217_v45 }
  0xd0   :  { %v6147_v44 = vadd.f32 -1.0, %v927_v3  ;;  %v6148_v14 = vadd.f32 -1.0, %v928_v4  ;;  %v6149_v16 = vadd.f32 -1.0, %v929_v41  ;;  %v932_v29 = vmul.f32 2.0, %v7221_v53  ;;  %v902_v4 = vld [vmem:[#allocation20 + $0x38] sm:$0xff] }
  0xd1   :  { %1365 = vst [vmem:[#allocation13 + $0x30] sm:$0xff] %v1347_v58  ;;  %v1357_v31 = vpack.c.b8 %v1353_v48, %v1349_v2  ;;  %v6150_v32 = vadd.f32 -1.0, %v930_v11  ;;  %v6151_v20 = vadd.f32 -1.0, %v931_v12  ;;  %v933_v26 = vmul.f32 2.0, %v7224_v54  ;;  %v903_v11 = vld [vmem:[#allocation20 + $0x40] sm:$0xff] }
  0xd2   :  { %v991_v27 = vadd.f32 %v6147_v44, %v895_v5  ;;  %v992_v49 = vadd.f32 %v6148_v14, %v896_v6  ;;  %v993_v38 = vadd.f32 %v6149_v16, %v897_v7  ;;  %v6152_v33 = vadd.f32 -1.0, %v932_v29 }
  0xd3   :  { %1366 = vst [vmem:[#allocation13 + $0x38] sm:$0xff] %v1357_v31  ;;  %v994_v45 = vadd.f32 %v6150_v32, %v898_v18  ;;  %v995_v46 = vadd.f32 %v6151_v20, %v899_v19  ;;  %v6153_v47 = vadd.f32 -1.0, %v933_v26  ;;  %v934_v56 = vmul.f32 2.0, %v7233_v62  ;;  %v904_v18 = vld [vmem:[#allocation20 + $0x48] sm:$0xff]  ;;  %v905_v31 = vld [vmem:[#allocation20 + $0x50] sm:$0xff]  ;;  %v906_v26 = vld [vmem:[#allocation20 + $0x58] sm:$0xff] }
  0xd4   :  { %vm1023_vm0 = vcmp.gt.f32.partialorder %v991_v27, 0.0  ;;  %vm1024_vm1 = vcmp.gt.f32.partialorder %v992_v49, 0.0  ;;  %vm1025_vm2 = vcmp.gt.f32.partialorder %v993_v38, 0.0  ;;  %v996_v53 = vadd.f32 %v6152_v33, %v900_v25 }
  0xd5   :  { %v7429_v39 = vsel %vm1023_vm0, 1.0, %v10702_v28  ;;  %v7432_v54 = vsel %vm1024_vm1, 1.0, %v10702_v28  ;;  %v7435_v59 = vsel %vm1025_vm2, 1.0, %v10702_v28  ;;  %vm1026_vm3 = vcmp.gt.f32.partialorder %v994_v45, 0.0 }
  0xd6   :  { %v1119_v40 = vsub.f32 %v991_v27, %v7429_v39  ;;  %v1120_v0 = vsub.f32 %v992_v49, %v7432_v54  ;;  %v1121_v62 = vsub.f32 %v993_v38, %v7435_v59  ;;  %v7441_v1 = vsel %vm1026_vm3, 1.0, %v10702_v28  ;;  %v907_v27 = vld [vmem:[#allocation20 + $0x60] sm:$0xff] }
  0xd7   :  { %v1122_v2 = vsub.f32 %v994_v45, %v7441_v1  ;;  %vm1027_vm4 = vcmp.gt.f32.partialorder %v995_v46, 0.0  ;;  %vm1028_vm5 = vcmp.gt.f32.partialorder %v996_v53, 0.0  ;;  %v997_v3 = vadd.f32 %v6153_v47, %v901_v57 }
  0xd8   :  { %1151 = vst [vmem:[#allocation20] sm:$0xff] %v1119_v40  ;;  %1152 = vst [vmem:[#allocation20 + $0x8] sm:$0xff] %v1120_v0  ;;  %v7445_v41 = vsel %vm1027_vm4, 1.0, %v10702_v28  ;;  %v7448_v58 = vsel %vm1028_vm5, 1.0, %v10702_v28  ;;  %v6154_v48 = vadd.f32 -1.0, %v934_v56  ;;  %v935_v5 = vmul.f32 2.0, %v7243_v24 }
  0xd9   :  { %1153 = vst [vmem:[#allocation20 + $0x10] sm:$0xff] %v1121_v62  ;;  %1154 = vst [vmem:[#allocation20 + $0x18] sm:$0xff] %v1122_v2  ;;  %v1123_v6 = vsub.f32 %v995_v46, %v7445_v41  ;;  %v1124_v7 = vsub.f32 %v996_v53, %v7448_v58  ;;  %vm1029_vm6 = vcmp.gt.f32.partialorder %v997_v3, 0.0  ;;  %v936_v12 = vmul.f32 2.0, %v7247_v30  ;;  %v908_v46 = vld [vmem:[#allocation20 + $0x68] sm:$0xff] }
  0xda   :  { %v7455_v44 = vsel %vm1029_vm6, 1.0, %v10702_v28  ;;  %v998_v14 = vadd.f32 %v6154_v48, %v902_v4  ;;  %v6155_v16 = vadd.f32 -1.0, %v935_v5  ;;  %v937_v19 = vmul.f32 2.0, %v7253_v60 }
  0xdb   :  { %1155 = vst [vmem:[#allocation20 + $0x20] sm:$0xff] %v1123_v6  ;;  %1156 = vst [vmem:[#allocation20 + $0x28] sm:$0xff] %v1124_v7  ;;  %v1125_v24 = vsub.f32 %v997_v3, %v7455_v44  ;;  %v6156_v29 = vadd.f32 -1.0, %v936_v12  ;;  %v938_v32 = vmul.f32 2.0, %v7256_v61  ;;  %v939_v20 = vmul.f32 2.0, %v7261_v42 }
  0xdc   :  { %vm1030_vm7 = vcmp.gt.f32.partialorder %v998_v14, 0.0  ;;  %v999_v30 = vadd.f32 %v6155_v16, %v903_v11  ;;  %v6157_v25 = vadd.f32 -1.0, %v937_v19  ;;  %v940_v49 = vmul.f32 2.0, %v7264_v43  ;;  %v910_v16 = vld [vmem:[#allocation20 + $0x78] sm:$0xff]  ;;  %v911_v19 = vld [vmem:[#allocation20 + $0x80] sm:$0xff] }
  0xdd   :  { %1157 = vst [vmem:[#allocation20 + $0x30] sm:$0xff] %v1125_v24  ;;  %v7463_v60 = vsel %vm1030_vm7, 1.0, %v10702_v28  ;;  %v1000_v38 = vadd.f32 %v6156_v29, %v904_v18  ;;  %v6158_v33 = vadd.f32 -1.0, %v938_v32  ;;  %v6159_v45 = vadd.f32 -1.0, %v939_v20  ;;  %v912_v32 = vld [vmem:[#allocation20 + $0x88] sm:$0xff]  ;;  %v913_v20 = vld [vmem:[#allocation20 + $0x90] sm:$0xff] }
  0xde   :  { %v1126_v47 = vsub.f32 %v998_v14, %v7463_v60  ;;  %vm1031_vm8 = vcmp.gt.f32.partialorder %v999_v30, 0.0  ;;  %v1001_v61 = vadd.f32 %v6157_v25, %v905_v31  ;;  %v6160_v42 = vadd.f32 -1.0, %v940_v49  ;;  %v909_v14 = vld [vmem:[#allocation20 + $0x70] sm:$0xff]  ;;  %v914_v49 = vld [vmem:[#allocation20 + $0x98] sm:$0xff] }
  0xdf   :  { %v7467_v56 = vsel %vm1031_vm8, 1.0, %v10702_v28  ;;  %vm1032_vm9 = vcmp.gt.f32.partialorder %v1000_v38, 0.0  ;;  %v1002_v53 = vadd.f32 %v6158_v33, %v906_v26  ;;  %v1003_v57 = vadd.f32 %v6159_v45, %v907_v27 }
  0xe0   :  { %1158 = vst [vmem:[#allocation20 + $0x38] sm:$0xff] %v1126_v47  ;;  %v1127_v43 = vsub.f32 %v999_v30, %v7467_v56  ;;  %v7471_v40 = vsel %vm1032_vm9, 1.0, %v10702_v28  ;;  %vm1033_vm10 = vcmp.gt.f32.partialorder %v1001_v61, 0.0  ;;  %v1004_v0 = vadd.f32 %v6160_v42, %v908_v46 }
  0xe1   :  { %v1128_v62 = vsub.f32 %v1000_v38, %v7471_v40  ;;  %v7475_v2 = vsel %vm1033_vm10, 1.0, %v10702_v28  ;;  %vm1034_vm11 = vcmp.gt.f32.partialorder %v1002_v53, 0.0  ;;  %vm1035_vm12 = vcmp.gt.f32.partialorder %v1003_v57, 0.0  ;;  %v915_v38 = vld [vmem:[#allocation20 + $0xa0] sm:$0xff] }
  0xe2   :  { %1159 = vst [vmem:[#allocation20 + $0x40] sm:$0xff] %v1127_v43  ;;  %v1129_v3 = vsub.f32 %v1001_v61, %v7475_v2  ;;  %v7479_v4 = vsel %vm1034_vm11, 1.0, %v10702_v28  ;;  %v7482_v48 = vsel %vm1035_vm12, 1.0, %v10702_v28  ;;  %vm1036_vm13 = vcmp.gt.f32.partialorder %v1004_v0, 0.0  ;;  %v916_v43 = vld [vmem:[#allocation20 + $0xa8] sm:$0xff] }
  0xe3   :  { %1160 = vst [vmem:[#allocation20 + $0x48] sm:$0xff] %v1128_v62  ;;  %v1130_v5 = vsub.f32 %v1002_v53, %v7479_v4  ;;  %v1131_v6 = vsub.f32 %v1003_v57, %v7482_v48  ;;  %v7487_v7 = vsel %vm1036_vm13, 1.0, %v10702_v28  ;;  %v941_v11 = vmul.f32 2.0, %v7274_v17 }
  0xe4   :  { %1161 = vst [vmem:[#allocation20 + $0x50] sm:$0xff] %v1129_v3  ;;  %v1132_v12 = vsub.f32 %v1004_v0, %v7487_v7  ;;  %v942_v18 = vmul.f32 2.0, %v7278_v36  ;;  %v943_v24 = vmul.f32 2.0, %v7282_v52  ;;  %v944_v29 = vmul.f32 2.0, %v7290_v8 }
  0xe5   :  { %1162 = vst [vmem:[#allocation20 + $0x58] sm:$0xff] %v1130_v5  ;;  %1163 = vst [vmem:[#allocation20 + $0x60] sm:$0xff] %v1131_v6  ;;  %v6161_v31 = vadd.f32 -1.0, %v941_v11  ;;  %v945_v30 = vmul.f32 2.0, %v7293_v9  ;;  %v946_v17 = vmul.f32 2.0, %v7298_v13  ;;  %v947_v25 = vmul.f32 2.0, %v7301_v34 }
  0xe6   :  { %1164 = vst [vmem:[#allocation20 + $0x68] sm:$0xff] %v1132_v12  ;;  %v6162_v26 = vadd.f32 -1.0, %v942_v18  ;;  %v6163_v27 = vadd.f32 -1.0, %v943_v24  ;;  %v6164_v36 = vadd.f32 -1.0, %v944_v29  ;;  %v948_v52 = vmul.f32 2.0, %v7310_v55 }
  0xe7   :  { %v1005_v8 = vadd.f32 %v6161_v31, %v909_v14  ;;  %v6165_v33 = vadd.f32 -1.0, %v945_v30  ;;  %v6166_v45 = vadd.f32 -1.0, %v946_v17  ;;  %v6167_v46 = vadd.f32 -1.0, %v947_v25  ;;  %v918_v25 = vld [vmem:[#allocation20 + $0xb8] sm:$0xff] }
  0xe8   :  { %v1006_v47 = vadd.f32 %v6162_v26, %v910_v16  ;;  %v1007_v61 = vadd.f32 %v6163_v27, %v911_v19  ;;  %v1008_v42 = vadd.f32 %v6164_v36, %v912_v32  ;;  %v6168_v9 = vadd.f32 -1.0, %v948_v52  ;;  %v917_v32 = vld [vmem:[#allocation20 + $0xb0] sm:$0xff] }
  0xe9   :  { %vm1037_vm14 = vcmp.gt.f32.partialorder %v1005_v8, 0.0  ;;  %v1009_v13 = vadd.f32 %v6165_v33, %v913_v20  ;;  %v1010_v53 = vadd.f32 %v6166_v45, %v914_v49  ;;  %v1011_v34 = vadd.f32 %v6167_v46, %v915_v38  ;;  %v919_v49 = vld [vmem:[#allocation20 + $0xc0] sm:$0xff]  ;;  %v920_v38 = vld [vmem:[#allocation20 + $0xc8] sm:$0xff]  ;;  %v921_v46 = vld [vmem:[#allocation20 + $0xd0] sm:$0xff] }
  0xea   :  { %v7499_v57 = vsel %vm1037_vm14, 1.0, %v10702_v28  ;;  %vm1038_vm15 = vcmp.gt.f32.partialorder %v1006_v47, 0.0  ;;  %vm1039_vm0 = vcmp.gt.f32.partialorder %v1007_v61, 0.0  ;;  %vm1040_vm1 = vcmp.gt.f32.partialorder %v1008_v42, 0.0 }
  0xeb   :  { %v1133_v55 = vsub.f32 %v1005_v8, %v7499_v57  ;;  %v7503_v0 = vsel %vm1038_vm15, 1.0, %v10702_v28  ;;  %v7506_v62 = vsel %vm1039_vm0, 1.0, %v10702_v28  ;;  %v7509_v3 = vsel %vm1040_vm1, 1.0, %v10702_v28 }
  0xec   :  { %v1134_v5 = vsub.f32 %v1006_v47, %v7503_v0  ;;  %v1135_v6 = vsub.f32 %v1007_v61, %v7506_v62  ;;  %v1136_v11 = vsub.f32 %v1008_v42, %v7509_v3  ;;  %vm1041_vm2 = vcmp.gt.f32.partialorder %v1009_v13, 0.0  ;;  %v922_v47 = vld [vmem:[#allocation20 + $0xd8] sm:$0xff] }
  0xed   :  { %1165 = vst [vmem:[#allocation20 + $0x70] sm:$0xff] %v1133_v55  ;;  %v7515_v12 = vsel %vm1041_vm2, 1.0, %v10702_v28  ;;  %vm1042_vm3 = vcmp.gt.f32.partialorder %v1010_v53, 0.0  ;;  %vm1043_vm4 = vcmp.gt.f32.partialorder %v1011_v34, 0.0  ;;  %v1012_v14 = vadd.f32 %v6168_v9, %v916_v43 }
  0xee   :  { %1166 = vst [vmem:[#allocation20 + $0x78] sm:$0xff] %v1134_v5  ;;  %1167 = vst [vmem:[#allocation20 + $0x80] sm:$0xff] %v1135_v6  ;;  %v1137_v16 = vsub.f32 %v1009_v13, %v7515_v12  ;;  %v7519_v18 = vsel %vm1042_vm3, 1.0, %v10702_v28  ;;  %v7522_v19 = vsel %vm1043_vm4, 1.0, %v10702_v28  ;;  %v949_v24 = vmul.f32 2.0, %v7317_v10  ;;  %v923_v5 = vld [vmem:[#allocation20 + $0xe0] sm:$0xff] }
  0xef   :  { %1168 = vst [vmem:[#allocation20 + $0x88] sm:$0xff] %v1136_v11  ;;  %v1138_v29 = vsub.f32 %v1010_v53, %v7519_v18  ;;  %v1139_v31 = vsub.f32 %v1011_v34, %v7522_v19  ;;  %vm1044_vm5 = vcmp.gt.f32.partialorder %v1012_v14, 0.0  ;;  %v950_v20 = vmul.f32 2.0, %v7322_v15  ;;  %v247_v6 = vld [vmem:[#allocation8] sm:$0xff] }
  0xf0   :  { %1169 = vst [vmem:[#allocation20 + $0x90] sm:$0xff] %v1137_v16  ;;  %v7529_v30 = vsel %vm1044_vm5, 1.0, %v10702_v28  ;;  %v6169_v17 = vadd.f32 -1.0, %v949_v24  ;;  %v951_v26 = vmul.f32 2.0, %v7314_v51  ;;  %v952_v27 = vmul.f32 2.0, %v7327_v22  ;;  %v248_v16 = vld [vmem:[#allocation8 + $0x8] sm:$0xff] }
  0xf1   :  { %1170 = vst [vmem:[#allocation20 + $0x98] sm:$0xff] %v1138_v29  ;;  %1171 = vst [vmem:[#allocation20 + $0xa0] sm:$0xff] %v1139_v31  ;;  %v1140_v10 = vsub.f32 %v1012_v14, %v7529_v30  ;;  %v6170_v36 = vadd.f32 -1.0, %v950_v20  ;;  %v953_v52 = vmul.f32 2.0, %v7332_v35  ;;  %v954_v15 = vmul.f32 2.0, %v7335_v37  ;;  %v249_v24 = vld [vmem:[#allocation8 + $0x10] sm:$0xff] }
  0xf2   :  { %v1013_v8 = vadd.f32 %v6169_v17, %v917_v32  ;;  %v6171_v33 = vadd.f32 -1.0, %v951_v26  ;;  %v6172_v45 = vadd.f32 -1.0, %v952_v27  ;;  %v955_v51 = vmul.f32 2.0, %v7343_v63  ;;  %v924_v20 = vld [vmem:[#allocation20 + $0xe8] sm:$0xff]  ;;  %v250_v17 = vld [vmem:[#allocation8 + $0x18] sm:$0xff] }
  0xf3   :  { %1172 = vst [vmem:[#allocation20 + $0xa8] sm:$0xff] %v1140_v10  ;;  %v1014_v22 = vadd.f32 %v6170_v36, %v918_v25  ;;  %v6173_v61 = vadd.f32 -1.0, %v953_v52  ;;  %v6174_v42 = vadd.f32 -1.0, %v954_v15  ;;  %v956_v9 = vmul.f32 2.0, %v7357_v21  ;;  %v251_v25 = vld [vmem:[#allocation8 + $0x20] sm:$0xff]  ;;  %v252_v26 = vld [vmem:[#allocation8 + $0x28] sm:$0xff] }
  0xf4   :  { %vm1045_vm6 = vcmp.gt.f32.partialorder %v1013_v8, 0.0  ;;  %v1015_v13 = vadd.f32 %v6171_v33, %v919_v49  ;;  %v1016_v53 = vadd.f32 %v6172_v45, %v920_v38  ;;  %v6175_v34 = vadd.f32 -1.0, %v955_v51  ;;  %v253_v38 = vld [vmem:[#allocation8 + $0x30] sm:$0xff]  ;;  %v254_v52 = vld [vmem:[#allocation8 + $0x38] sm:$0xff]  ;;  %v255_v15 = vld [vmem:[#allocation8 + $0x40] sm:$0xff] }
  0xf5   :  { %v7539_v35 = vsel %vm1045_vm6, 1.0, %v10702_v28  ;;  %vm1046_vm7 = vcmp.gt.f32.partialorder %v1014_v22, 0.0  ;;  %v1017_v37 = vadd.f32 %v6173_v61, %v921_v46  ;;  %v1018_v43 = vadd.f32 %v6174_v42, %v922_v47  ;;  %v256_v47 = vld [vmem:[#allocation8 + $0x48] sm:$0xff]  ;;  %v926_v61 = vld [vmem:[#allocation20 + $0xf8] sm:$0xff] }
  0xf6   :  { %v1141_v55 = vsub.f32 %v1013_v8, %v7539_v35  ;;  %v7543_v63 = vsel %vm1046_vm7, 1.0, %v10702_v28  ;;  %vm1047_vm8 = vcmp.gt.f32.partialorder %v1015_v13, 0.0  ;;  %vm1048_vm9 = vcmp.gt.f32.partialorder %v1016_v53, 0.0 }
  0xf7   :  { %v1142_v21 = vsub.f32 %v1014_v22, %v7543_v63  ;;  %v7547_v11 = vsel %vm1047_vm8, 1.0, %v10702_v28  ;;  %v7550_v14 = vsel %vm1048_vm9, 1.0, %v10702_v28  ;;  %vm1049_vm10 = vcmp.gt.f32.partialorder %v1017_v37, 0.0  ;;  %v925_v22 = vld [vmem:[#allocation20 + $0xf0] sm:$0xff] }
  0xf8   :  { %1173 = vst [vmem:[#allocation20 + $0xb0] sm:$0xff] %v1141_v55  ;;  %v1143_v29 = vsub.f32 %v1015_v13, %v7547_v11  ;;  %v1144_v31 = vsub.f32 %v1016_v53, %v7550_v14  ;;  %v7555_v32 = vsel %vm1049_vm10, 1.0, %v10702_v28  ;;  %vm1050_vm11 = vcmp.gt.f32.partialorder %v1018_v43, 0.0  ;;  %v257_v13 = vld [vmem:[#allocation8 + $0x50] sm:$0xff]  ;;  %v258_v53 = vld [vmem:[#allocation8 + $0x58] sm:$0xff] }
  0xf9   :  { %1174 = vst [vmem:[#allocation20 + $0xb8] sm:$0xff] %v1142_v21  ;;  %v1145_v27 = vsub.f32 %v1017_v37, %v7555_v32  ;;  %v7559_v10 = vsel %vm1050_vm11, 1.0, %v10702_v28  ;;  %v1019_v36 = vadd.f32 %v6175_v34, %v923_v5  ;;  %v6176_v49 = vadd.f32 -1.0, %v956_v9  ;;  %v261_v55 = vld [vmem:[#allocation8 + $0x70] sm:$0xff]  ;;  %v262_v5 = vld [vmem:[#allocation8 + $0x78] sm:$0xff]  ;;  %v263_v21 = vld [vmem:[#allocation8 + $0x80] sm:$0xff] }
  0xfa   :  { %1175 = vst [vmem:[#allocation20 + $0xc0] sm:$0xff] %v1143_v29  ;;  %1176 = vst [vmem:[#allocation20 + $0xc8] sm:$0xff] %v1144_v31  ;;  %v1146_v8 = vsub.f32 %v1018_v43, %v7559_v10  ;;  %v957_v33 = vmul.f32 2.0, %v7360_v23  ;;  %v958_v45 = vmul.f32 2.0, %v7371_v50  ;;  %v7565_v46 = vmul.f32 %v7429_v39, %v247_v6  ;;  %v259_v23 = vld [vmem:[#allocation8 + $0x60] sm:$0xff]  ;;  %v260_v43 = vld [vmem:[#allocation8 + $0x68] sm:$0xff] }
  0xfb   :  { %1177 = vst [vmem:[#allocation20 + $0xd0] sm:$0xff] %v1145_v27  ;;  %vm1051_vm12 = vcmp.gt.f32.partialorder %v1019_v36, 0.0  ;;  %v1020_v51 = vadd.f32 %v6176_v49, %v924_v20  ;;  %v7568_v42 = vmul.f32 %v7432_v54, %v248_v16  ;;  %v7571_v9 = vmul.f32 %v7435_v59, %v249_v24  ;;  %v264_v16 = vld [vmem:[#allocation8 + $0x88] sm:$0xff]  ;;  %v265_v24 = vld [vmem:[#allocation8 + $0x90] sm:$0xff]  ;;  %v267_v27 = vld [vmem:[#allocation8 + $0xa0] sm:$0xff] }
  0xfc   :  { %1178 = vst [vmem:[#allocation20 + $0xd8] sm:$0xff] %v1146_v8  ;;  %v7574_v50 = vsel %vm1051_vm12, 1.0, %v10702_v28  ;;  %v6177_v39 = vadd.f32 -1.0, %v957_v33  ;;  %v6178_v34 = vadd.f32 -1.0, %v958_v45  ;;  %v7577_v37 = vmul.f32 %v7441_v1, %v250_v17  ;;  %v266_v17 = vld [vmem:[#allocation8 + $0x98] sm:$0xff]  ;;  %v271_v33 = vld [vmem:[#allocation8 + $0xc0] sm:$0xff] }
  0xfd   :  { %v1147_v54 = vsub.f32 %v1019_v36, %v7574_v50  ;;  %vm1052_vm13 = vcmp.gt.f32.partialorder %v1020_v51, 0.0  ;;  %v7581_v59 = vmul.f32 %v7445_v41, %v251_v25  ;;  %v7584_v6 = vmul.f32 %v7448_v58, %v252_v26  ;;  %v268_v36 = vld [vmem:[#allocation8 + $0xa8] sm:$0xff]  ;;  %v269_v26 = vld [vmem:[#allocation8 + $0xb0] sm:$0xff]  ;;  %v270_v8 = vld [vmem:[#allocation8 + $0xb8] sm:$0xff] }
  0xfe   :  { %v6208_v29 = vsel %vm1052_vm13, 1.0, %v10702_v28  ;;  %v1021_v31 = vadd.f32 %v6177_v39, %v925_v22  ;;  %v1022_v1 = vadd.f32 %v6178_v34, %v926_v61  ;;  %v7588_v20 = vmul.f32 %v7455_v44, %v253_v38  ;;  %v272_v45 = vld [vmem:[#allocation8 + $0xc8] sm:$0xff]  ;;  %v277_v22 = vld [vmem:[#allocation8 + $0xf0] sm:$0xff]  ;;  %v278_v39 = vld [vmem:[#allocation8 + $0xf8] sm:$0xff] }
  0xff   :  { %1179 = vst [vmem:[#allocation20 + $0xe0] sm:$0xff] %v1147_v54  ;;  %v1148_v49 = vsub.f32 %v1020_v51, %v6208_v29  ;;  %v7591_v41 = vmul.f32 %v7463_v60, %v254_v52  ;;  %v7594_v58 = vmul.f32 %v7467_v56, %v255_v15  ;;  %v7597_v25 = vmul.f32 %v7471_v40, %v256_v47  ;;  %v273_v60 = vld [vmem:[#allocation8 + $0xd0] sm:$0xff]  ;;  %v274_v52 = vld [vmem:[#allocation8 + $0xd8] sm:$0xff]  ;;  %v275_v51 = vld [vmem:[#allocation8 + $0xe0] sm:$0xff] }
 0x100   :  { %vm1053_vm14 = vcmp.gt.f32.partialorder %v1021_v31, 0.0  ;;  %vm1054_vm15 = vcmp.gt.f32.partialorder %v1022_v1, 0.0  ;;  %v7600_v44 = vmul.f32 %v7475_v2, %v257_v13  ;;  %v7603_v38 = vmul.f32 %v7479_v4, %v258_v53  ;;  %v276_v2 = vld [vmem:[#allocation8 + $0xe8] sm:$0xff] }
 0x101   :  { %1180 = vst [vmem:[#allocation20 + $0xe8] sm:$0xff] %v1148_v49  ;;  %v6209_v56 = vsel %vm1053_vm14, 1.0, %v10702_v28  ;;  %v6210_v40 = vsel %vm1054_vm15, 1.0, %v10702_v28  ;;  %v7608_v15 = vmul.f32 %v7482_v48, %v259_v23  ;;  %v7611_v47 = vmul.f32 %v7487_v7, %v260_v43  ;;  %v7631_v43 = vld [vmem:[#allocation2 + $0x40] sm:$0xff]  ;;  %v1442_v49 = vld [vmem:[#allocation16 + $0x10] sm:$0xff] }
 0x102   :  { %v1149_v61 = vsub.f32 %v1021_v31, %v6209_v56  ;;  %v1150_v4 = vsub.f32 %v1022_v1, %v6210_v40  ;;  %v7614_v13 = vmul.f32 %v7499_v57, %v261_v55  ;;  %v7617_v53 = vmul.f32 %v7503_v0, %v262_v5  ;;  %v7633_v57 = vld [vmem:[#allocation2 + $0x48] sm:$0xff]  ;;  %v7649_v55 = vld [vmem:[#allocation2 + $0x58] sm:$0xff]  ;;  %v7651_v5 = vld [vmem:[#allocation2 + $0x60] sm:$0xff] }
 0x103   :  { %v7620_v34 = vmul.f32 %v7506_v62, %v263_v21  ;;  %v7623_v48 = vmul.f32 %v7509_v3, %v264_v16  ;;  %v7626_v7 = vmul.f32 %v7515_v12, %v265_v24  ;;  %v7629_v23 = vmul.f32 %v7519_v18, %v266_v17  ;;  %v7647_v18 = vld [vmem:[#allocation2 + $0x50] sm:$0xff]  ;;  %v7669_v16 = vld [vmem:[#allocation2 + $0x78] sm:$0xff]  ;;  %v1440_v1 = vld [vmem:[#allocation16] sm:$0xff] }
 0x104   :  { %1181 = vst [vmem:[#allocation20 + $0xf0] sm:$0xff] %v1149_v61  ;;  %1182 = vst [vmem:[#allocation20 + $0xf8] sm:$0xff] %v1150_v4  ;;  %v7636_v0 = vmul.f32 %v7522_v19, %v267_v27  ;;  %v7639_v62 = vmul.f32 %v7529_v30, %v268_v36  ;;  %v7642_v3 = vmul.f32 %v7539_v35, %v269_v26  ;;  %v7667_v21 = vld [vmem:[#allocation2 + $0x70] sm:$0xff]  ;;  %v1441_v17 = vld [vmem:[#allocation16 + $0x8] sm:$0xff]  ;;  %v1378_v27 = vunpack.c.0.s8 %v7647_v18 }
 0x105   :  { %v7645_v12 = vmul.f32 %v7543_v63, %v270_v8  ;;  %v7654_v54 = vmul.f32 %v7547_v11, %v271_v33  ;;  %v7657_v19 = vmul.f32 %v7550_v14, %v272_v45  ;;  %v7660_v30 = vmul.f32 %v7555_v32, %v273_v60  ;;  %v7665_v63 = vld [vmem:[#allocation2 + $0x68] sm:$0xff]  ;;  %v1443_v26 = vld [vmem:[#allocation16 + $0x18] sm:$0xff] }
 0x106   :  { %v7663_v35 = vmul.f32 %v7559_v10, %v274_v52  ;;  %v7672_v24 = vmul.f32 %v7574_v50, %v275_v51  ;;  %v7674_v11 = vmul.f32 %v6208_v29, %v276_v2  ;;  %v7676_v31 = vmul.f32 %v6209_v56, %v277_v22  ;;  %v1444_v29 = vld [vmem:[#allocation16 + $0x20] sm:$0xff]  ;;  %v1445_v51 = vld [vmem:[#allocation16 + $0x28] sm:$0xff]  ;;  %v1446_v2 = vld [vmem:[#allocation16 + $0x30] sm:$0xff] }
 0x107   :  { %10706 = vst [vmem:[#allocation30_spill] sm:$0xff] %v7654_v54  ;;  %10707 = vst [vmem:[#allocation31_spill] sm:$0xff] %v7657_v19  ;;  %v7678_v14 = vmul.f32 %v6210_v40, %v278_v39  ;;  %v1376_v32 = vunpack.c.0.s8 %v7631_v43  ;;  %v1377_v10 = vunpack.c.0.s8 %v7633_v57  ;;  %v1379_v36 = vunpack.c.0.s8 %v7649_v55  ;;  %v1447_v22 = vld [vmem:[#allocation16 + $0x38] sm:$0xff] }
 0x108   :  { %10708 = vst [vmem:[#allocation32_spill] sm:$0xff] %v7660_v30  ;;  %10709 = vst [vmem:[#allocation33_spill] sm:$0xff] %v7663_v35  ;;  %v1380_v50 = vunpack.c.0.s8 %v7651_v5  ;;  %v1381_v8 = vunpack.c.0.s8 %v7665_v63  ;;  %v1382_v33 = vunpack.c.0.s8 %v7667_v21  ;;  %v1383_v45 = vunpack.c.0.s8 %v7669_v16 }
 0x109   :  { %10710 = vst [vmem:[#allocation34_spill] sm:$0xff] %v7672_v24  ;;  %10711 = vst [vmem:[#allocation35_spill] sm:$0xff] %v7674_v11  ;;  %v1408_v60 = vcvt.s32.f32 %v1376_v32  ;;  %v1409_v52 = vcvt.s32.f32 %v1377_v10  ;;  %v1410_v56 = vcvt.s32.f32 %v1378_v27  ;;  %v1411_v40 = vcvt.s32.f32 %v1379_v36 }
 0x10a   :  { %10712 = vst [vmem:[#allocation36_spill] sm:$0xff] %v7676_v31  ;;  %10713 = vst [vmem:[#allocation37_spill] sm:$0xff] %v7678_v14  ;;  %v1412_v61 = vcvt.s32.f32 %v1380_v50  ;;  %v1413_v4 = vcvt.s32.f32 %v1381_v8  ;;  %v1414_v39 = vcvt.s32.f32 %v1382_v33  ;;  %v1415_v28 = vcvt.s32.f32 %v1383_v45  ;;  %v1449_v33 = vld [vmem:[#allocation16 + $0x48] sm:$0xff] }
 0x10b   :  { %v1472_v14 = vadd.f32 %v1440_v1, %v1408_v60  ;;  %v1473_v31 = vadd.f32 %v1441_v17, %v1409_v52  ;;  %v1474_v11 = vadd.f32 %v1442_v49, %v1410_v56  ;;  %v1475_v24 = vadd.f32 %v1443_v26, %v1411_v40  ;;  %v1448_v26 = vld [vmem:[#allocation16 + $0x40] sm:$0xff]  ;;  %v1450_v52 = vld [vmem:[#allocation16 + $0x50] sm:$0xff]  ;;  %v1451_v56 = vld [vmem:[#allocation16 + $0x58] sm:$0xff] }
 0x10c   :  { %v1476_v35 = vadd.f32 %v1444_v29, %v1412_v61  ;;  %v1477_v30 = vadd.f32 %v1445_v51, %v1413_v4  ;;  %v1478_v19 = vadd.f32 %v1446_v2, %v1414_v39  ;;  %v1479_v54 = vadd.f32 %v1447_v22, %v1415_v28  ;;  %v1452_v51 = vld [vmem:[#allocation16 + $0x60] sm:$0xff] }
 0x10d   :  { %v1536_v32 = vadd.f32 %v1472_v14, %v7565_v46  ;;  %v1537_v10 = vadd.f32 %v1473_v31, %v7568_v42  ;;  %v1538_v27 = vadd.f32 %v1474_v11, %v7571_v9  ;;  %v1539_v36 = vadd.f32 %v1475_v24, %v7577_v37 }
 0x10e   :  { %v1540_v50 = vadd.f32 %v1476_v35, %v7581_v59  ;;  %v1541_v8 = vadd.f32 %v1477_v30, %v7584_v6  ;;  %v1542_v1 = vadd.f32 %v1478_v19, %v7588_v20  ;;  %v1543_v17 = vadd.f32 %v1479_v54, %v7591_v41 }
 0x10f   :  { %vm1568_vm0 = vcmp.gt.f32.partialorder %v1536_v32, 0.0  ;;  %vm1569_vm1 = vcmp.gt.f32.partialorder %v1537_v10, 0.0  ;;  %vm1570_vm2 = vcmp.gt.f32.partialorder %v1538_v27, 0.0  ;;  %vm1571_vm3 = vcmp.gt.f32.partialorder %v1539_v36, 0.0 }
 0x110   :  { %v10714_v28 = vmov 0.0   ;;  %vm1572_vm4 = vcmp.gt.f32.partialorder %v1540_v50, 0.0  ;;  %vm1573_vm5 = vcmp.gt.f32.partialorder %v1541_v8, 0.0  ;;  %vm1574_vm6 = vcmp.gt.f32.partialorder %v1542_v1, 0.0 }
 0x111   :  { %v7697_v46 = vsel %vm1568_vm0, 1.0, %v10714_v28  ;;  %v7700_v42 = vsel %vm1569_vm1, 1.0, %v10714_v28  ;;  %v7703_v9 = vsel %vm1570_vm2, 1.0, %v10714_v28  ;;  %v7706_v37 = vsel %vm1571_vm3, 1.0, %v10714_v28 }
 0x112   :  { %v1664_v59 = vsub.f32 %v1536_v32, %v7697_v46  ;;  %v1665_v6 = vsub.f32 %v1537_v10, %v7700_v42  ;;  %v1666_v20 = vsub.f32 %v1538_v27, %v7703_v9  ;;  %v1667_v41 = vsub.f32 %v1539_v36, %v7706_v37  ;;  %v1453_v27 = vld [vmem:[#allocation16 + $0x68] sm:$0xff]  ;;  %v1454_v36 = vld [vmem:[#allocation16 + $0x70] sm:$0xff] }
 0x113   :  { %vm1575_vm7 = vcmp.gt.f32.partialorder %v1543_v17, 0.0  ;;  %v7713_v54 = vsel %vm1572_vm4, 1.0, %v10714_v28  ;;  %v7716_v19 = vsel %vm1573_vm5, 1.0, %v10714_v28  ;;  %v7719_v30 = vsel %vm1574_vm6, 1.0, %v10714_v28 }
 0x114   :  { %1696 = vst [vmem:[#allocation16] sm:$0xff] %v1664_v59  ;;  %1697 = vst [vmem:[#allocation16 + $0x8] sm:$0xff] %v1665_v6  ;;  %v7722_v35 = vsel %vm1575_vm7, 1.0, %v10714_v28  ;;  %v1668_v24 = vsub.f32 %v1540_v50, %v7713_v54  ;;  %v1669_v11 = vsub.f32 %v1541_v8, %v7716_v19  ;;  %v1670_v31 = vsub.f32 %v1542_v1, %v7719_v30  ;;  %v1455_v50 = vld [vmem:[#allocation16 + $0x78] sm:$0xff] }
 0x115   :  { %1698 = vst [vmem:[#allocation16 + $0x10] sm:$0xff] %v1666_v20  ;;  %1699 = vst [vmem:[#allocation16 + $0x18] sm:$0xff] %v1667_v41  ;;  %v1671_v14 = vsub.f32 %v1543_v17, %v7722_v35  ;;  %v1384_v49 = vunpack.c.1.s8 %v7631_v43  ;;  %v1385_v29 = vunpack.c.1.s8 %v7633_v57  ;;  %v1386_v45 = vunpack.c.1.s8 %v7647_v18 }
 0x116   :  { %10715 = vst [vmem:[#allocation38_spill] sm:$0xff] %v7722_v35  ;;  %v1387_v60 = vunpack.c.1.s8 %v7649_v55  ;;  %1700 = vst [vmem:[#allocation16 + $0x20] sm:$0xff] %v1668_v24  ;;  %v1388_v40 = vunpack.c.1.s8 %v7651_v5  ;;  %v1389_v2 = vunpack.c.1.s8 %v7665_v63  ;;  %v1390_v22 = vunpack.c.1.s8 %v7667_v21 }
 0x117   :  { %1701 = vst [vmem:[#allocation16 + $0x28] sm:$0xff] %v1669_v11  ;;  %1702 = vst [vmem:[#allocation16 + $0x30] sm:$0xff] %v1670_v31  ;;  %v1391_v61 = vunpack.c.1.s8 %v7669_v16  ;;  %v1416_v4 = vcvt.s32.f32 %v1384_v49  ;;  %v1417_v39 = vcvt.s32.f32 %v1385_v29  ;;  %v1418_v32 = vcvt.s32.f32 %v1386_v45 }
 0x118   :  { %1703 = vst [vmem:[#allocation16 + $0x38] sm:$0xff] %v1671_v14  ;;  %v1419_v10 = vcvt.s32.f32 %v1387_v60  ;;  %v1420_v8 = vcvt.s32.f32 %v1388_v40  ;;  %v1421_v1 = vcvt.s32.f32 %v1389_v2  ;;  %v1422_v17 = vcvt.s32.f32 %v1390_v22 }
 0x119   :  { %v1423_v59 = vcvt.s32.f32 %v1391_v61  ;;  %v1480_v6 = vadd.f32 %v1448_v26, %v1416_v4  ;;  %v1481_v20 = vadd.f32 %v1449_v33, %v1417_v39  ;;  %v1482_v41 = vadd.f32 %v1450_v52, %v1418_v32 }
 0x11a   :  { %v1483_v24 = vadd.f32 %v1451_v56, %v1419_v10  ;;  %v1484_v11 = vadd.f32 %v1452_v51, %v1420_v8  ;;  %v1485_v31 = vadd.f32 %v1453_v27, %v1421_v1  ;;  %v1486_v14 = vadd.f32 %v1454_v36, %v1422_v17  ;;  %v1456_v10 = vld [vmem:[#allocation16 + $0x80] sm:$0xff]  ;;  %v1457_v36 = vld [vmem:[#allocation16 + $0x88] sm:$0xff]  ;;  %v1458_v1 = vld [vmem:[#allocation16 + $0x90] sm:$0xff] }
 0x11b   :  { %v1487_v35 = vadd.f32 %v1455_v50, %v1423_v59  ;;  %v1544_v49 = vadd.f32 %v1480_v6, %v7594_v58  ;;  %v1545_v29 = vadd.f32 %v1481_v20, %v7597_v25  ;;  %v1546_v45 = vadd.f32 %v1482_v41, %v7600_v44  ;;  %v1459_v17 = vld [vmem:[#allocation16 + $0x98] sm:$0xff]  ;;  %v1460_v6 = vld [vmem:[#allocation16 + $0xa0] sm:$0xff] }
 0x11c   :  { %v1547_v60 = vadd.f32 %v1483_v24, %v7603_v38  ;;  %v1548_v40 = vadd.f32 %v1484_v11, %v7608_v15  ;;  %v1549_v2 = vadd.f32 %v1485_v31, %v7611_v47  ;;  %v1550_v26 = vadd.f32 %v1486_v14, %v7614_v13 }
 0x11d   :  { %v1551_v33 = vadd.f32 %v1487_v35, %v7617_v53  ;;  %vm1576_vm8 = vcmp.gt.f32.partialorder %v1544_v49, 0.0  ;;  %vm1577_vm9 = vcmp.gt.f32.partialorder %v1545_v29, 0.0  ;;  %vm1578_vm10 = vcmp.gt.f32.partialorder %v1546_v45, 0.0 }
 0x11e   :  { %vm1579_vm11 = vcmp.gt.f32.partialorder %v1547_v60, 0.0  ;;  %v7745_v58 = vsel %vm1576_vm8, 1.0, %v10714_v28  ;;  %v7748_v25 = vsel %vm1577_vm9, 1.0, %v10714_v28  ;;  %v7751_v44 = vsel %vm1578_vm10, 1.0, %v10714_v28 }
 0x11f   :  { %v7754_v38 = vsel %vm1579_vm11, 1.0, %v10714_v28  ;;  %v1672_v15 = vsub.f32 %v1544_v49, %v7745_v58  ;;  %v1673_v47 = vsub.f32 %v1545_v29, %v7748_v25  ;;  %v1674_v13 = vsub.f32 %v1546_v45, %v7751_v44  ;;  %v1461_v29 = vld [vmem:[#allocation16 + $0xa8] sm:$0xff]  ;;  %v1462_v45 = vld [vmem:[#allocation16 + $0xb0] sm:$0xff] }
 0x120   :  { %v1675_v53 = vsub.f32 %v1547_v60, %v7754_v38  ;;  %vm1580_vm12 = vcmp.gt.f32.partialorder %v1548_v40, 0.0  ;;  %vm1581_vm13 = vcmp.gt.f32.partialorder %v1549_v2, 0.0  ;;  %vm1582_vm14 = vcmp.gt.f32.partialorder %v1550_v26, 0.0  ;;  %v1463_v60 = vld [vmem:[#allocation16 + $0xb8] sm:$0xff] }
 0x121   :  { %vm1583_vm15 = vcmp.gt.f32.partialorder %v1551_v33, 0.0  ;;  %1704 = vst [vmem:[#allocation16 + $0x40] sm:$0xff] %v1672_v15  ;;  %1705 = vst [vmem:[#allocation16 + $0x48] sm:$0xff] %v1673_v47  ;;  %v7761_v35 = vsel %vm1580_vm12, 1.0, %v10714_v28  ;;  %v7764_v52 = vsel %vm1581_vm13, 1.0, %v10714_v28  ;;  %v7767_v56 = vsel %vm1582_vm14, 1.0, %v10714_v28 }
 0x122   :  { %1706 = vst [vmem:[#allocation16 + $0x50] sm:$0xff] %v1674_v13  ;;  %1707 = vst [vmem:[#allocation16 + $0x58] sm:$0xff] %v1675_v53  ;;  %v7770_v51 = vsel %vm1583_vm15, 1.0, %v10714_v28  ;;  %v1676_v22 = vsub.f32 %v1548_v40, %v7761_v35  ;;  %v1677_v61 = vsub.f32 %v1549_v2, %v7764_v52  ;;  %v1678_v4 = vsub.f32 %v1550_v26, %v7767_v56 }
 0x123   :  { %v1679_v39 = vsub.f32 %v1551_v33, %v7770_v51  ;;  %v1392_v32 = vunpack.c.2.s8 %v7631_v43  ;;  %v1393_v27 = vunpack.c.2.s8 %v7633_v57  ;;  %v1394_v50 = vunpack.c.2.s8 %v7647_v18 }
 0x124   :  { %v1395_v8 = vunpack.c.2.s8 %v7649_v55  ;;  %1708 = vst [vmem:[#allocation16 + $0x60] sm:$0xff] %v1676_v22  ;;  %1709 = vst [vmem:[#allocation16 + $0x68] sm:$0xff] %v1677_v61  ;;  %v1396_v59 = vunpack.c.2.s8 %v7651_v5  ;;  %v1397_v20 = vunpack.c.2.s8 %v7665_v63  ;;  %v1398_v41 = vunpack.c.2.s8 %v7667_v21 }
 0x125   :  { %1710 = vst [vmem:[#allocation16 + $0x70] sm:$0xff] %v1678_v4  ;;  %1711 = vst [vmem:[#allocation16 + $0x78] sm:$0xff] %v1679_v39  ;;  %v1399_v24 = vunpack.c.2.s8 %v7669_v16  ;;  %v1424_v11 = vcvt.s32.f32 %v1392_v32  ;;  %v1425_v31 = vcvt.s32.f32 %v1393_v27  ;;  %v1426_v14 = vcvt.s32.f32 %v1394_v50 }
 0x126   :  { %v1427_v49 = vcvt.s32.f32 %v1395_v8  ;;  %v1428_v40 = vcvt.s32.f32 %v1396_v59  ;;  %v1429_v2 = vcvt.s32.f32 %v1397_v20  ;;  %v1430_v26 = vcvt.s32.f32 %v1398_v41 }
 0x127   :  { %v1431_v33 = vcvt.s32.f32 %v1399_v24  ;;  %v1488_v15 = vadd.f32 %v1456_v10, %v1424_v11  ;;  %v1489_v47 = vadd.f32 %v1457_v36, %v1425_v31  ;;  %v1490_v13 = vadd.f32 %v1458_v1, %v1426_v14 }
 0x128   :  { %v1491_v53 = vadd.f32 %v1459_v17, %v1427_v49  ;;  %v1492_v22 = vadd.f32 %v1460_v6, %v1428_v40  ;;  %v1493_v61 = vadd.f32 %v1461_v29, %v1429_v2  ;;  %v1494_v4 = vadd.f32 %v1462_v45, %v1430_v26  ;;  %v1464_v29 = vld [vmem:[#allocation16 + $0xc0] sm:$0xff]  ;;  %v1466_v26 = vld [vmem:[#allocation16 + $0xd0] sm:$0xff] }
 0x129   :  { %v1495_v39 = vadd.f32 %v1463_v60, %v1431_v33  ;;  %v1552_v32 = vadd.f32 %v1488_v15, %v7620_v34  ;;  %v1553_v27 = vadd.f32 %v1489_v47, %v7623_v48  ;;  %v1554_v50 = vadd.f32 %v1490_v13, %v7626_v7  ;;  %v1465_v60 = vld [vmem:[#allocation16 + $0xc8] sm:$0xff]  ;;  %v1467_v33 = vld [vmem:[#allocation16 + $0xd8] sm:$0xff]  ;;  %v1468_v47 = vld [vmem:[#allocation16 + $0xe0] sm:$0xff] }
 0x12a   :  { %v1555_v8 = vadd.f32 %v1491_v53, %v7629_v23  ;;  %v1556_v59 = vadd.f32 %v1492_v22, %v7636_v0  ;;  %v1557_v20 = vadd.f32 %v1493_v61, %v7639_v62  ;;  %v1558_v10 = vadd.f32 %v1494_v4, %v7642_v3  ;;  %v1470_v4 = vld [vmem:[#allocation16 + $0xf0] sm:$0xff] }
 0x12b   :  { %v1559_v36 = vadd.f32 %v1495_v39, %v7645_v12  ;;  %vm1584_vm0 = vcmp.gt.f32.partialorder %v1552_v32, 0.0  ;;  %vm1585_vm1 = vcmp.gt.f32.partialorder %v1553_v27, 0.0  ;;  %vm1586_vm2 = vcmp.gt.f32.partialorder %v1554_v50, 0.0  ;;  %v1471_v39 = vld [vmem:[#allocation16 + $0xf8] sm:$0xff] }
 0x12c   :  { %vm1587_vm3 = vcmp.gt.f32.partialorder %v1555_v8, 0.0  ;;  %v7793_v34 = vsel %vm1584_vm0, 1.0, %v10714_v28  ;;  %v7796_v48 = vsel %vm1585_vm1, 1.0, %v10714_v28  ;;  %v7799_v7 = vsel %vm1586_vm2, 1.0, %v10714_v28 }
 0x12d   :  { %v7802_v23 = vsel %vm1587_vm3, 1.0, %v10714_v28  ;;  %v1680_v0 = vsub.f32 %v1552_v32, %v7793_v34  ;;  %v1681_v62 = vsub.f32 %v1553_v27, %v7796_v48  ;;  %v1682_v3 = vsub.f32 %v1554_v50, %v7799_v7 }
 0x12e   :  { %v1683_v12 = vsub.f32 %v1555_v8, %v7802_v23  ;;  %vm1588_vm4 = vcmp.gt.f32.partialorder %v1556_v59, 0.0  ;;  %vm1589_vm5 = vcmp.gt.f32.partialorder %v1557_v20, 0.0  ;;  %vm1590_vm6 = vcmp.gt.f32.partialorder %v1558_v10, 0.0 }
 0x12f   :  { %vm1591_vm7 = vcmp.gt.f32.partialorder %v1559_v36, 0.0  ;;  %1712 = vst [vmem:[#allocation16 + $0x80] sm:$0xff] %v1680_v0  ;;  %1713 = vst [vmem:[#allocation16 + $0x88] sm:$0xff] %v1681_v62  ;;  %v7809_v1 = vsel %vm1588_vm4, 1.0, %v10714_v28  ;;  %v7812_v17 = vsel %vm1589_vm5, 1.0, %v10714_v28  ;;  %v7815_v6 = vsel %vm1590_vm6, 1.0, %v10714_v28 }
 0x130   :  { %1714 = vst [vmem:[#allocation16 + $0x90] sm:$0xff] %v1682_v3  ;;  %1715 = vst [vmem:[#allocation16 + $0x98] sm:$0xff] %v1683_v12  ;;  %v7818_v41 = vsel %vm1591_vm7, 1.0, %v10714_v28  ;;  %v1684_v24 = vsub.f32 %v1556_v59, %v7809_v1  ;;  %v1685_v11 = vsub.f32 %v1557_v20, %v7812_v17  ;;  %v1686_v31 = vsub.f32 %v1558_v10, %v7815_v6  ;;  %v10717_v3 = vld [vmem:[#allocation31_spill] sm:$0xff] }
 0x131   :  { %v1687_v14 = vsub.f32 %v1559_v36, %v7818_v41  ;;  %v1400_v49 = vunpack.c.3.s8 %v7631_v43  ;;  %v1401_v45 = vunpack.c.3.s8 %v7633_v57  ;;  %v1402_v40 = vunpack.c.3.s8 %v7647_v18 }
 0x132   :  { %v1403_v2 = vunpack.c.3.s8 %v7649_v55  ;;  %1716 = vst [vmem:[#allocation16 + $0xa0] sm:$0xff] %v1684_v24  ;;  %1717 = vst [vmem:[#allocation16 + $0xa8] sm:$0xff] %v1685_v11  ;;  %v1404_v15 = vunpack.c.3.s8 %v7651_v5  ;;  %v1405_v13 = vunpack.c.3.s8 %v7665_v63  ;;  %v1406_v43 = vunpack.c.3.s8 %v7667_v21  ;;  %v1469_v55 = vld [vmem:[#allocation16 + $0xe8] sm:$0xff]  ;;  %v10718_v24 = vld [vmem:[#allocation32_spill] sm:$0xff] }
 0x133   :  { %1718 = vst [vmem:[#allocation16 + $0xb0] sm:$0xff] %v1686_v31  ;;  %1719 = vst [vmem:[#allocation16 + $0xb8] sm:$0xff] %v1687_v14  ;;  %v1407_v57 = vunpack.c.3.s8 %v7669_v16  ;;  %v1432_v53 = vcvt.s32.f32 %v1400_v49  ;;  %v1433_v22 = vcvt.s32.f32 %v1401_v45  ;;  %v1434_v18 = vcvt.s32.f32 %v1402_v40  ;;  %v10716_v16 = vld [vmem:[#allocation30_spill] sm:$0xff]  ;;  %v10719_v31 = vld [vmem:[#allocation33_spill] sm:$0xff] }
 0x134   :  { %v1435_v61 = vcvt.s32.f32 %v1403_v2  ;;  %v1436_v32 = vcvt.s32.f32 %v1404_v15  ;;  %v1437_v27 = vcvt.s32.f32 %v1405_v13  ;;  %v1438_v50 = vcvt.s32.f32 %v1406_v43  ;;  %v10720_v49 = vld [vmem:[#allocation34_spill] sm:$0xff]  ;;  %v10721_v40 = vld [vmem:[#allocation35_spill] sm:$0xff] }
 0x135   :  { %v1439_v8 = vcvt.s32.f32 %v1407_v57  ;;  %v1496_v59 = vadd.f32 %v1464_v29, %v1432_v53  ;;  %v1497_v5 = vadd.f32 %v1465_v60, %v1433_v22  ;;  %v1498_v20 = vadd.f32 %v1466_v26, %v1434_v18  ;;  %v10722_v29 = vld [vmem:[#allocation36_spill] sm:$0xff]  ;;  %v10723_v26 = vld [vmem:[#allocation37_spill] sm:$0xff] }
 0x136   :  { %v1499_v10 = vadd.f32 %v1467_v33, %v1435_v61  ;;  %v1500_v63 = vadd.f32 %v1468_v47, %v1436_v32  ;;  %v1501_v36 = vadd.f32 %v1469_v55, %v1437_v27  ;;  %v1502_v21 = vadd.f32 %v1470_v4, %v1438_v50 }
 0x137   :  { %v1503_v0 = vadd.f32 %v1471_v39, %v1439_v8  ;;  %v1560_v62 = vadd.f32 %v1496_v59, %v10716_v16  ;;  %v1561_v12 = vadd.f32 %v1497_v5, %v10717_v3  ;;  %v1562_v11 = vadd.f32 %v1498_v20, %v10718_v24 }
 0x138   :  { %v1563_v14 = vadd.f32 %v1499_v10, %v10719_v31  ;;  %v1564_v45 = vadd.f32 %v1500_v63, %v10720_v49  ;;  %v1565_v2 = vadd.f32 %v1501_v36, %v10721_v40  ;;  %v1566_v60 = vadd.f32 %v1502_v21, %v10722_v29 }
 0x139   :  { %v1567_v33 = vadd.f32 %v1503_v0, %v10723_v26  ;;  %vm1592_vm8 = vcmp.gt.f32.partialorder %v1560_v62, 0.0  ;;  %vm1593_vm9 = vcmp.gt.f32.partialorder %v1561_v12, 0.0  ;;  %vm1594_vm10 = vcmp.gt.f32.partialorder %v1562_v11, 0.0  ;;  %v10724_v0 = vld [vmem:[#allocation38_spill] sm:$0xff] }
 0x13a   :  { %vm1595_vm11 = vcmp.gt.f32.partialorder %v1563_v14, 0.0  ;;  %v7841_v15 = vsel %vm1592_vm8, 1.0, %v10714_v28  ;;  %v7844_v47 = vsel %vm1593_vm9, 1.0, %v10714_v28  ;;  %v7847_v13 = vsel %vm1594_vm10, 1.0, %v10714_v28 }
 0x13b   :  { %v7850_v43 = vsel %vm1595_vm11, 1.0, %v10714_v28  ;;  %v1688_v57 = vsub.f32 %v1560_v62, %v7841_v15  ;;  %v1689_v53 = vsub.f32 %v1561_v12, %v7844_v47  ;;  %v1690_v22 = vsub.f32 %v1562_v11, %v7847_v13 }
 0x13c   :  { %v1691_v18 = vsub.f32 %v1563_v14, %v7850_v43  ;;  %vm1596_vm12 = vcmp.gt.f32.partialorder %v1564_v45, 0.0  ;;  %vm1597_vm13 = vcmp.gt.f32.partialorder %v1565_v2, 0.0  ;;  %vm1598_vm14 = vcmp.gt.f32.partialorder %v1566_v60, 0.0 }
 0x13d   :  { %vm1599_vm15 = vcmp.gt.f32.partialorder %v1567_v33, 0.0  ;;  %1720 = vst [vmem:[#allocation16 + $0xc0] sm:$0xff] %v1688_v57  ;;  %1721 = vst [vmem:[#allocation16 + $0xc8] sm:$0xff] %v1689_v53  ;;  %v7857_v61 = vsel %vm1596_vm12, 1.0, %v10714_v28  ;;  %v7860_v55 = vsel %vm1597_vm13, 1.0, %v10714_v28  ;;  %v7863_v4 = vsel %vm1598_vm14, 1.0, %v10714_v28 }
 0x13e   :  { %1722 = vst [vmem:[#allocation16 + $0xd0] sm:$0xff] %v1690_v22  ;;  %1723 = vst [vmem:[#allocation16 + $0xd8] sm:$0xff] %v1691_v18  ;;  %v7866_v39 = vsel %vm1599_vm15, 1.0, %v10714_v28  ;;  %v1692_v32 = vsub.f32 %v1564_v45, %v7857_v61  ;;  %v1693_v27 = vsub.f32 %v1565_v2, %v7860_v55  ;;  %v1694_v50 = vsub.f32 %v1566_v60, %v7863_v4 }
 0x13f   :  { %v1695_v8 = vsub.f32 %v1567_v33, %v7866_v39  ;;  %v1728_v59 = vsub.f32 1.0, %v7697_v46  ;;  %v1729_v5 = vsub.f32 1.0, %v7700_v42  ;;  %v1730_v20 = vsub.f32 1.0, %v7703_v9 }
 0x140   :  { %v1731_v10 = vsub.f32 1.0, %v7706_v37  ;;  %1724 = vst [vmem:[#allocation16 + $0xe0] sm:$0xff] %v1692_v32  ;;  %1725 = vst [vmem:[#allocation16 + $0xe8] sm:$0xff] %v1693_v27  ;;  %v1732_v63 = vsub.f32 1.0, %v7713_v54  ;;  %v1733_v36 = vsub.f32 1.0, %v7716_v19  ;;  %v1734_v21 = vsub.f32 1.0, %v7719_v30 }
 0x141   :  { %1726 = vst [vmem:[#allocation16 + $0xf0] sm:$0xff] %v1694_v50  ;;  %1727 = vst [vmem:[#allocation16 + $0xf8] sm:$0xff] %v1695_v8  ;;  %v1735_v16 = vsub.f32 1.0, %v10724_v0  ;;  %v1736_v62 = vsub.f32 1.0, %v7745_v58  ;;  %v1737_v3 = vsub.f32 1.0, %v7748_v25  ;;  %v1738_v12 = vsub.f32 1.0, %v7751_v44 }
 0x142   :  { %1792 = vst [vmem:[#allocation19] sm:$0xff] %v1728_v59  ;;  %1793 = vst [vmem:[#allocation19 + $0x8] sm:$0xff] %v1729_v5  ;;  %v1739_v24 = vsub.f32 1.0, %v7754_v38  ;;  %v1740_v11 = vsub.f32 1.0, %v7761_v35  ;;  %v1741_v31 = vsub.f32 1.0, %v7764_v52  ;;  %v1742_v14 = vsub.f32 1.0, %v7767_v56 }
 0x143   :  { %1794 = vst [vmem:[#allocation19 + $0x10] sm:$0xff] %v1730_v20  ;;  %1795 = vst [vmem:[#allocation19 + $0x18] sm:$0xff] %v1731_v10  ;;  %v1743_v49 = vsub.f32 1.0, %v7770_v51  ;;  %v1744_v45 = vsub.f32 1.0, %v7793_v34  ;;  %v1745_v40 = vsub.f32 1.0, %v7796_v48  ;;  %v1746_v2 = vsub.f32 1.0, %v7799_v7 }
 0x144   :  { %1796 = vst [vmem:[#allocation19 + $0x20] sm:$0xff] %v1732_v63  ;;  %1797 = vst [vmem:[#allocation19 + $0x28] sm:$0xff] %v1733_v36  ;;  %v1747_v29 = vsub.f32 1.0, %v7802_v23  ;;  %v1748_v60 = vsub.f32 1.0, %v7809_v1  ;;  %v1749_v26 = vsub.f32 1.0, %v7812_v17  ;;  %v1750_v33 = vsub.f32 1.0, %v7815_v6 }
 0x145   :  { %1798 = vst [vmem:[#allocation19 + $0x30] sm:$0xff] %v1734_v21  ;;  %1799 = vst [vmem:[#allocation19 + $0x38] sm:$0xff] %v1735_v16  ;;  %v1751_v57 = vsub.f32 1.0, %v7818_v41  ;;  %v1752_v53 = vsub.f32 1.0, %v7841_v15  ;;  %v1753_v22 = vsub.f32 1.0, %v7844_v47  ;;  %v1754_v18 = vsub.f32 1.0, %v7847_v13 }
 0x146   :  { %1800 = vst [vmem:[#allocation19 + $0x40] sm:$0xff] %v1736_v62  ;;  %1801 = vst [vmem:[#allocation19 + $0x48] sm:$0xff] %v1737_v3  ;;  %v1755_v32 = vsub.f32 1.0, %v7850_v43  ;;  %v1756_v27 = vsub.f32 1.0, %v7857_v61  ;;  %v1757_v50 = vsub.f32 1.0, %v7860_v55  ;;  %v1758_v8 = vsub.f32 1.0, %v7863_v4 }
 0x147   :  { %1802 = vst [vmem:[#allocation19 + $0x50] sm:$0xff] %v1738_v12  ;;  %1803 = vst [vmem:[#allocation19 + $0x58] sm:$0xff] %v1739_v24  ;;  %v1759_v59 = vsub.f32 1.0, %v7866_v39  ;;  %v2176_v5 = vtrunc.f32 %v7697_v46  ;;  %v2184_v20 = vtrunc.f32 %v7745_v58  ;;  %v2192_v10 = vtrunc.f32 %v7793_v34 }
 0x148   :  { %1804 = vst [vmem:[#allocation19 + $0x60] sm:$0xff] %v1740_v11  ;;  %1805 = vst [vmem:[#allocation19 + $0x68] sm:$0xff] %v1741_v31  ;;  %v2200_v63 = vtrunc.f32 %v7841_v15  ;;  %v2177_v36 = vtrunc.f32 %v7700_v42  ;;  %v2185_v21 = vtrunc.f32 %v7748_v25  ;;  %v2193_v16 = vtrunc.f32 %v7796_v48 }
 0x149   :  { %1806 = vst [vmem:[#allocation19 + $0x70] sm:$0xff] %v1742_v14  ;;  %1807 = vst [vmem:[#allocation19 + $0x78] sm:$0xff] %v1743_v49  ;;  %v2201_v62 = vtrunc.f32 %v7844_v47  ;;  %v2208_v3 = vpack.c.f32.eXmY %v2176_v5, %v2184_v20, 312  ;;  %v2178_v24 = vtrunc.f32 %v7703_v9  ;;  %v2186_v11 = vtrunc.f32 %v7751_v44 }
 0x14a   :  { %1808 = vst [vmem:[#allocation19 + $0x80] sm:$0xff] %v1744_v45  ;;  %1809 = vst [vmem:[#allocation19 + $0x88] sm:$0xff] %v1745_v40  ;;  %v2212_v12 = vpack.c.f32.eXmY %v2192_v10, %v2200_v63, 312  ;;  %v2218_v31 = vpack.c.f32.eXmY %v2177_v36, %v2185_v21, 312  ;;  %v2194_v49 = vtrunc.f32 %v7799_v7  ;;  %v2202_v45 = vtrunc.f32 %v7847_v13 }
 0x14b   :  { %1810 = vst [vmem:[#allocation19 + $0x90] sm:$0xff] %v1746_v2  ;;  %1811 = vst [vmem:[#allocation19 + $0x98] sm:$0xff] %v1747_v29  ;;  %v2222_v14 = vpack.c.f32.eXmY %v2193_v16, %v2201_v62, 312  ;;  %v2228_v2 = vpack.c.f32.eXmY %v2178_v24, %v2186_v11, 312  ;;  %v2179_v29 = vtrunc.f32 %v7706_v37  ;;  %v2181_v5 = vtrunc.f32 %v7716_v19 }
 0x14c   :  { %1812 = vst [vmem:[#allocation19 + $0xa0] sm:$0xff] %v1748_v60  ;;  %1813 = vst [vmem:[#allocation19 + $0xa8] sm:$0xff] %v1749_v26  ;;  %v2216_v40 = vpack.c.b8 %v2212_v12, %v2208_v3  ;;  %v2187_v60 = vtrunc.f32 %v7754_v38  ;;  %v2189_v10 = vtrunc.f32 %v7764_v52  ;;  %v2197_v63 = vtrunc.f32 %v7812_v17 }
 0x14d   :  { %1814 = vst [vmem:[#allocation19 + $0xb0] sm:$0xff] %v1750_v33  ;;  %1815 = vst [vmem:[#allocation19 + $0xb8] sm:$0xff] %v1751_v57  ;;  %v2226_v26 = vpack.c.b8 %v2222_v14, %v2218_v31  ;;  %v2232_v33 = vpack.c.f32.eXmY %v2194_v49, %v2202_v45, 312  ;;  %v2195_v57 = vtrunc.f32 %v7802_v23  ;;  %v2205_v36 = vtrunc.f32 %v7860_v55 }
 0x14e   :  { %1816 = vst [vmem:[#allocation19 + $0xc0] sm:$0xff] %v1752_v53  ;;  %1817 = vst [vmem:[#allocation19 + $0xc8] sm:$0xff] %v1753_v22  ;;  %v2203_v53 = vtrunc.f32 %v7850_v43  ;;  %v2238_v22 = vpack.c.f32.eXmY %v2179_v29, %v2187_v60, 312  ;;  %v2182_v62 = vtrunc.f32 %v7719_v30  ;;  %v2190_v3 = vtrunc.f32 %v7767_v56 }
 0x14f   :  { %1818 = vst [vmem:[#allocation19 + $0xd0] sm:$0xff] %v1754_v18  ;;  %1819 = vst [vmem:[#allocation19 + $0xd8] sm:$0xff] %v1755_v32  ;;  %v2180_v18 = vtrunc.f32 %v7713_v54  ;;  %v2188_v32 = vtrunc.f32 %v7761_v35  ;;  %v2258_v12 = vpack.c.f32.eXmY %v2181_v5, %v2189_v10, 312  ;;  %v2262_v24 = vpack.c.f32.eXmY %v2197_v63, %v2205_v36, 312  ;;  %v1827_v36 = vld [vmem:[#allocation20 + $0x18] sm:$0xff] }
 0x150   :  { %1820 = vst [vmem:[#allocation19 + $0xe0] sm:$0xff] %v1756_v27  ;;  %1821 = vst [vmem:[#allocation19 + $0xe8] sm:$0xff] %v1757_v50  ;;  %v2196_v27 = vtrunc.f32 %v7809_v1  ;;  %v2236_v50 = vpack.c.b8 %v2232_v33, %v2228_v2  ;;  %v2198_v11 = vtrunc.f32 %v7815_v6  ;;  %v2206_v31 = vtrunc.f32 %v7863_v4 }
 0x151   :  { %1822 = vst [vmem:[#allocation19 + $0xf0] sm:$0xff] %v1758_v8  ;;  %1823 = vst [vmem:[#allocation19 + $0xf8] sm:$0xff] %v1759_v59  ;;  %v2242_v8 = vpack.c.f32.eXmY %v2195_v57, %v2203_v53, 312  ;;  %v2204_v59 = vtrunc.f32 %v7857_v61  ;;  %v2248_v20 = vpack.c.f32.eXmY %v2180_v18, %v2188_v32, 312  ;;  %v2183_v45 = vtrunc.f32 %v10724_v0 }
 0x152   :  { %2289 = vst [vmem:[#allocation13 + $0x40] sm:$0xff] %v2216_v40  ;;  %2290 = vst [vmem:[#allocation13 + $0x48] sm:$0xff] %v2226_v26  ;;  %v2268_v49 = vpack.c.f32.eXmY %v2182_v62, %v2190_v3, 312  ;;  %v2191_v40 = vtrunc.f32 %v7770_v51  ;;  %v2266_v2 = vpack.c.b8 %v2262_v24, %v2258_v12  ;;  %v2272_v29 = vpack.c.f32.eXmY %v2198_v11, %v2206_v31, 312  ;;  %v1829_v62 = vld [vmem:[#allocation20 + $0x28] sm:$0xff] }
 0x153   :  { %2291 = vst [vmem:[#allocation13 + $0x50] sm:$0xff] %v2236_v50  ;;  %v2246_v21 = vpack.c.b8 %v2242_v8, %v2238_v22  ;;  %v2252_v16 = vpack.c.f32.eXmY %v2196_v27, %v2204_v59, 312  ;;  %v2199_v60 = vtrunc.f32 %v7818_v41  ;;  %v2207_v26 = vtrunc.f32 %v7866_v39  ;;  %v1824_v27 = vld [vmem:[#allocation20] sm:$0xff]  ;;  %v1825_v50 = vld [vmem:[#allocation20 + $0x8] sm:$0xff]  ;;  %v1826_v8 = vld [vmem:[#allocation20 + $0x10] sm:$0xff] }
 0x154   :  { %v2278_v33 = vpack.c.f32.eXmY %v2183_v45, %v2191_v40, 312  ;;  %v1856_v57 = vmul.f32 2.0, %v7697_v46  ;;  %v1857_v53 = vmul.f32 2.0, %v7700_v42  ;;  %v1858_v22 = vmul.f32 2.0, %v7703_v9  ;;  %2294 = vst [vmem:[#allocation13 + $0x68] sm:$0xff] %v2266_v2  ;;  %v1830_v45 = vld [vmem:[#allocation20 + $0x30] sm:$0xff] }
 0x155   :  { %2292 = vst [vmem:[#allocation13 + $0x58] sm:$0xff] %v2246_v21  ;;  %v2256_v14 = vpack.c.b8 %v2252_v16, %v2248_v20  ;;  %v2276_v18 = vpack.c.b8 %v2272_v29, %v2268_v49  ;;  %v2282_v32 = vpack.c.f32.eXmY %v2199_v60, %v2207_v26, 312  ;;  %v1859_v59 = vmul.f32 2.0, %v7706_v37  ;;  %v1828_v21 = vld [vmem:[#allocation20 + $0x20] sm:$0xff] }
 0x156   :  { %v1860_v5 = vmul.f32 2.0, %v7713_v54  ;;  %v6243_v20 = vadd.f32 -1.0, %v1856_v57  ;;  %v6244_v10 = vadd.f32 -1.0, %v1857_v53  ;;  %v6245_v63 = vadd.f32 -1.0, %v1858_v22  ;;  %v1831_v53 = vld [vmem:[#allocation20 + $0x38] sm:$0xff] }
 0x157   :  { %2293 = vst [vmem:[#allocation13 + $0x60] sm:$0xff] %v2256_v14  ;;  %v1861_v46 = vmul.f32 2.0, %v7716_v19  ;;  %2295 = vst [vmem:[#allocation13 + $0x70] sm:$0xff] %v2276_v18  ;;  %v2286_v42 = vpack.c.b8 %v2282_v32, %v2278_v33  ;;  %v6246_v9 = vadd.f32 -1.0, %v1859_v59  ;;  %v1862_v3 = vmul.f32 2.0, %v7719_v30  ;;  %v1832_v59 = vld [vmem:[#allocation20 + $0x40] sm:$0xff] }
 0x158   :  { %v6247_v16 = vadd.f32 -1.0, %v1860_v5  ;;  %v1920_v12 = vadd.f32 %v6243_v20, %v1824_v27  ;;  %v1921_v24 = vadd.f32 %v6244_v10, %v1825_v50  ;;  %v1922_v11 = vadd.f32 %v6245_v63, %v1826_v8 }
 0x159   :  { %v6248_v37 = vadd.f32 -1.0, %v1861_v46  ;;  %2296 = vst [vmem:[#allocation13 + $0x78] sm:$0xff] %v2286_v42  ;;  %v1923_v54 = vadd.f32 %v6246_v9, %v1827_v36  ;;  %v6249_v14 = vadd.f32 -1.0, %v1862_v3  ;;  %v1863_v49 = vmul.f32 2.0, %v10724_v0  ;;  %v1833_v36 = vld [vmem:[#allocation20 + $0x48] sm:$0xff]  ;;  %v1834_v42 = vld [vmem:[#allocation20 + $0x50] sm:$0xff] }
 0x15a   :  { %v1924_v31 = vadd.f32 %v6247_v16, %v1828_v21  ;;  %vm1952_vm0 = vcmp.gt.f32.partialorder %v1920_v12, 0.0  ;;  %vm1953_vm1 = vcmp.gt.f32.partialorder %v1921_v24, 0.0  ;;  %vm1954_vm2 = vcmp.gt.f32.partialorder %v1922_v11, 0.0  ;;  %v1835_v3 = vld [vmem:[#allocation20 + $0x58] sm:$0xff] }
 0x15b   :  { %v1925_v19 = vadd.f32 %v6248_v37, %v1829_v62  ;;  %v7945_v40 = vsel %vm1952_vm0, 1.0, %v10714_v28  ;;  %v7948_v30 = vsel %vm1953_vm1, 1.0, %v10714_v28  ;;  %v7951_v2 = vsel %vm1954_vm2, 1.0, %v10714_v28 }
 0x15c   :  { %vm1955_vm3 = vcmp.gt.f32.partialorder %v1923_v54, 0.0  ;;  %v2048_v29 = vsub.f32 %v1920_v12, %v7945_v40  ;;  %v2049_v60 = vsub.f32 %v1921_v24, %v7948_v30  ;;  %v2050_v0 = vsub.f32 %v1922_v11, %v7951_v2  ;;  %v1836_v12 = vld [vmem:[#allocation20 + $0x60] sm:$0xff] }
 0x15d   :  { %v7957_v26 = vsel %vm1955_vm3, 1.0, %v10714_v28  ;;  %vm1956_vm4 = vcmp.gt.f32.partialorder %v1924_v31, 0.0  ;;  %vm1957_vm5 = vcmp.gt.f32.partialorder %v1925_v19, 0.0  ;;  %v1926_v57 = vadd.f32 %v6249_v14, %v1830_v45 }
 0x15e   :  { %v2051_v33 = vsub.f32 %v1923_v54, %v7957_v26  ;;  %2080 = vst [vmem:[#allocation20] sm:$0xff] %v2048_v29  ;;  %2081 = vst [vmem:[#allocation20 + $0x8] sm:$0xff] %v2049_v60  ;;  %v7961_v22 = vsel %vm1956_vm4, 1.0, %v10714_v28  ;;  %v7964_v18 = vsel %vm1957_vm5, 1.0, %v10714_v28  ;;  %v6250_v32 = vadd.f32 -1.0, %v1863_v49 }
 0x15f   :  { %2082 = vst [vmem:[#allocation20 + $0x10] sm:$0xff] %v2050_v0  ;;  %v1864_v27 = vmul.f32 2.0, %v7745_v58  ;;  %v2052_v50 = vsub.f32 %v1924_v31, %v7961_v22  ;;  %v2053_v8 = vsub.f32 %v1925_v19, %v7964_v18  ;;  %vm1958_vm6 = vcmp.gt.f32.partialorder %v1926_v57, 0.0  ;;  %v1837_v31 = vld [vmem:[#allocation20 + $0x68] sm:$0xff] }
 0x160   :  { %2083 = vst [vmem:[#allocation20 + $0x18] sm:$0xff] %v2051_v33  ;;  %v1865_v5 = vmul.f32 2.0, %v7748_v25  ;;  %v7971_v20 = vsel %vm1958_vm6, 1.0, %v10714_v28  ;;  %v1927_v10 = vadd.f32 %v6250_v32, %v1831_v53  ;;  %v1866_v21 = vmul.f32 2.0, %v7751_v44 }
 0x161   :  { %v6251_v63 = vadd.f32 -1.0, %v1864_v27  ;;  %2084 = vst [vmem:[#allocation20 + $0x20] sm:$0xff] %v2052_v50  ;;  %2085 = vst [vmem:[#allocation20 + $0x28] sm:$0xff] %v2053_v8  ;;  %v2054_v58 = vsub.f32 %v1926_v57, %v7971_v20  ;;  %v1867_v9 = vmul.f32 2.0, %v7754_v38  ;;  %v1868_v16 = vmul.f32 2.0, %v7761_v35 }
 0x162   :  { %v6252_v46 = vadd.f32 -1.0, %v1865_v5  ;;  %vm1959_vm7 = vcmp.gt.f32.partialorder %v1927_v10, 0.0  ;;  %v6253_v62 = vadd.f32 -1.0, %v1866_v21  ;;  %v1869_v24 = vmul.f32 2.0, %v7764_v52  ;;  %v1840_v21 = vld [vmem:[#allocation20 + $0x80] sm:$0xff] }
 0x163   :  { %v1928_v25 = vadd.f32 %v6251_v63, %v1832_v59  ;;  %2086 = vst [vmem:[#allocation20 + $0x30] sm:$0xff] %v2054_v58  ;;  %v7979_v44 = vsel %vm1959_vm7, 1.0, %v10714_v28  ;;  %v6254_v37 = vadd.f32 -1.0, %v1867_v9  ;;  %v6255_v54 = vadd.f32 -1.0, %v1868_v16  ;;  %v1839_v63 = vld [vmem:[#allocation20 + $0x78] sm:$0xff]  ;;  %v1841_v9 = vld [vmem:[#allocation20 + $0x88] sm:$0xff] }
 0x164   :  { %v1929_v11 = vadd.f32 %v6252_v46, %v1833_v36  ;;  %v2055_v14 = vsub.f32 %v1927_v10, %v7979_v44  ;;  %v1930_v38 = vadd.f32 %v6253_v62, %v1834_v42  ;;  %v6256_v35 = vadd.f32 -1.0, %v1869_v24  ;;  %v1838_v10 = vld [vmem:[#allocation20 + $0x70] sm:$0xff]  ;;  %v1843_v24 = vld [vmem:[#allocation20 + $0x98] sm:$0xff] }
 0x165   :  { %vm1960_vm8 = vcmp.gt.f32.partialorder %v1928_v25, 0.0  ;;  %v1931_v19 = vadd.f32 %v6254_v37, %v1835_v3  ;;  %v1932_v45 = vadd.f32 %v6255_v54, %v1836_v12  ;;  %v1870_v59 = vmul.f32 2.0, %v7767_v56  ;;  %v1842_v16 = vld [vmem:[#allocation20 + $0x90] sm:$0xff] }
 0x166   :  { %v7983_v49 = vsel %vm1960_vm8, 1.0, %v10714_v28  ;;  %vm1961_vm9 = vcmp.gt.f32.partialorder %v1929_v11, 0.0  ;;  %2087 = vst [vmem:[#allocation20 + $0x38] sm:$0xff] %v2055_v14  ;;  %vm1962_vm10 = vcmp.gt.f32.partialorder %v1930_v38, 0.0  ;;  %v1933_v60 = vadd.f32 %v6256_v35, %v1837_v31 }
 0x167   :  { %v2056_v52 = vsub.f32 %v1928_v25, %v7983_v49  ;;  %v7987_v29 = vsel %vm1961_vm9, 1.0, %v10714_v28  ;;  %v7991_v33 = vsel %vm1962_vm10, 1.0, %v10714_v28  ;;  %vm1963_vm11 = vcmp.gt.f32.partialorder %v1931_v19, 0.0 }
 0x168   :  { %v2057_v0 = vsub.f32 %v1929_v11, %v7987_v29  ;;  %vm1964_vm12 = vcmp.gt.f32.partialorder %v1932_v45, 0.0  ;;  %v2058_v57 = vsub.f32 %v1930_v38, %v7991_v33  ;;  %v7995_v53 = vsel %vm1963_vm11, 1.0, %v10714_v28  ;;  %v1844_v11 = vld [vmem:[#allocation20 + $0xa0] sm:$0xff] }
 0x169   :  { %2088 = vst [vmem:[#allocation20 + $0x40] sm:$0xff] %v2056_v52  ;;  %v7998_v32 = vsel %vm1964_vm12, 1.0, %v10714_v28  ;;  %vm1965_vm13 = vcmp.gt.f32.partialorder %v1933_v60, 0.0  ;;  %v2059_v27 = vsub.f32 %v1931_v19, %v7995_v53  ;;  %v1871_v36 = vmul.f32 2.0, %v7770_v51  ;;  %v1845_v52 = vld [vmem:[#allocation20 + $0xa8] sm:$0xff] }
 0x16a   :  { %2089 = vst [vmem:[#allocation20 + $0x48] sm:$0xff] %v2057_v0  ;;  %v2060_v50 = vsub.f32 %v1932_v45, %v7998_v32  ;;  %v8003_v8 = vsel %vm1965_vm13, 1.0, %v10714_v28  ;;  %2090 = vst [vmem:[#allocation20 + $0x50] sm:$0xff] %v2058_v57  ;;  %v1872_v58 = vmul.f32 2.0, %v7793_v34  ;;  %v1873_v46 = vmul.f32 2.0, %v7796_v48 }
 0x16b   :  { %v2061_v5 = vsub.f32 %v1933_v60, %v8003_v8  ;;  %2091 = vst [vmem:[#allocation20 + $0x58] sm:$0xff] %v2059_v27  ;;  %v6257_v42 = vadd.f32 -1.0, %v1870_v59  ;;  %v1874_v25 = vmul.f32 2.0, %v7799_v7  ;;  %v1875_v56 = vmul.f32 2.0, %v7802_v23 }
 0x16c   :  { %2092 = vst [vmem:[#allocation20 + $0x60] sm:$0xff] %v2060_v50  ;;  %v1876_v62 = vmul.f32 2.0, %v7809_v1  ;;  %v6258_v3 = vadd.f32 -1.0, %v1871_v36  ;;  %v6259_v12 = vadd.f32 -1.0, %v1872_v58  ;;  %v6260_v51 = vadd.f32 -1.0, %v1873_v46 }
 0x16d   :  { %2093 = vst [vmem:[#allocation20 + $0x68] sm:$0xff] %v2061_v5  ;;  %v1877_v34 = vmul.f32 2.0, %v7812_v17  ;;  %v1934_v48 = vadd.f32 %v6257_v42, %v1838_v10  ;;  %v6261_v37 = vadd.f32 -1.0, %v1874_v25  ;;  %v6262_v54 = vadd.f32 -1.0, %v1875_v56 }
 0x16e   :  { %v6263_v31 = vadd.f32 -1.0, %v1876_v62  ;;  %v1935_v14 = vadd.f32 %v6258_v3, %v1839_v63  ;;  %v1936_v38 = vadd.f32 %v6259_v12, %v1840_v21  ;;  %v1937_v35 = vadd.f32 %v6260_v51, %v1841_v9  ;;  %v1846_v9 = vld [vmem:[#allocation20 + $0xb0] sm:$0xff]  ;;  %v1847_v62 = vld [vmem:[#allocation20 + $0xb8] sm:$0xff] }
 0x16f   :  { %v6264_v7 = vadd.f32 -1.0, %v1877_v34  ;;  %vm1966_vm14 = vcmp.gt.f32.partialorder %v1934_v48, 0.0  ;;  %v1938_v23 = vadd.f32 %v6261_v37, %v1842_v16  ;;  %v1939_v19 = vadd.f32 %v6262_v54, %v1843_v24  ;;  %v1848_v24 = vld [vmem:[#allocation20 + $0xc0] sm:$0xff] }
 0x170   :  { %v1940_v1 = vadd.f32 %v6263_v31, %v1844_v11  ;;  %v8015_v45 = vsel %vm1966_vm14, 1.0, %v10714_v28  ;;  %vm1967_vm15 = vcmp.gt.f32.partialorder %v1935_v14, 0.0  ;;  %vm1968_vm0 = vcmp.gt.f32.partialorder %v1936_v38, 0.0  ;;  %v1849_v11 = vld [vmem:[#allocation20 + $0xc8] sm:$0xff]  ;;  %v1850_v31 = vld [vmem:[#allocation20 + $0xd0] sm:$0xff] }
 0x171   :  { %vm1969_vm1 = vcmp.gt.f32.partialorder %v1937_v35, 0.0  ;;  %v2062_v17 = vsub.f32 %v1934_v48, %v8015_v45  ;;  %v8019_v60 = vsel %vm1967_vm15, 1.0, %v10714_v28  ;;  %v8022_v0 = vsel %vm1968_vm0, 1.0, %v10714_v28 }
 0x172   :  { %v8025_v57 = vsel %vm1969_vm1, 1.0, %v10714_v28  ;;  %v2063_v27 = vsub.f32 %v1935_v14, %v8019_v60  ;;  %v2064_v50 = vsub.f32 %v1936_v38, %v8022_v0  ;;  %vm1970_vm2 = vcmp.gt.f32.partialorder %v1938_v23, 0.0  ;;  %v1851_v14 = vld [vmem:[#allocation20 + $0xd8] sm:$0xff] }
 0x173   :  { %v2065_v59 = vsub.f32 %v1937_v35, %v8025_v57  ;;  %2094 = vst [vmem:[#allocation20 + $0x70] sm:$0xff] %v2062_v17  ;;  %v8031_v5 = vsel %vm1970_vm2, 1.0, %v10714_v28  ;;  %vm1971_vm3 = vcmp.gt.f32.partialorder %v1939_v19, 0.0  ;;  %vm1972_vm4 = vcmp.gt.f32.partialorder %v1940_v1, 0.0 }
 0x174   :  { %v1941_v10 = vadd.f32 %v6264_v7, %v1845_v52  ;;  %2095 = vst [vmem:[#allocation20 + $0x78] sm:$0xff] %v2063_v27  ;;  %2096 = vst [vmem:[#allocation20 + $0x80] sm:$0xff] %v2064_v50  ;;  %v2066_v63 = vsub.f32 %v1938_v23, %v8031_v5  ;;  %v8035_v36 = vsel %vm1971_vm3, 1.0, %v10714_v28  ;;  %v8038_v21 = vsel %vm1972_vm4, 1.0, %v10714_v28  ;;  %v1852_v27 = vld [vmem:[#allocation20 + $0xe0] sm:$0xff] }
 0x175   :  { %2097 = vst [vmem:[#allocation20 + $0x88] sm:$0xff] %v2065_v59  ;;  %v1878_v58 = vmul.f32 2.0, %v7815_v6  ;;  %v2067_v46 = vsub.f32 %v1939_v19, %v8035_v36  ;;  %v2068_v42 = vsub.f32 %v1940_v1, %v8038_v21  ;;  %v1879_v16 = vmul.f32 2.0, %v7818_v41  ;;  %v311_v50 = vld [vmem:[#allocation10] sm:$0xff] }
 0x176   :  { %vm1973_vm5 = vcmp.gt.f32.partialorder %v1941_v10, 0.0  ;;  %2098 = vst [vmem:[#allocation20 + $0x90] sm:$0xff] %v2066_v63  ;;  %v1880_v3 = vmul.f32 2.0, %v7841_v15  ;;  %v1881_v12 = vmul.f32 2.0, %v7844_v47  ;;  %v1882_v34 = vmul.f32 2.0, %v7847_v13  ;;  %v312_v63 = vld [vmem:[#allocation10 + $0x8] sm:$0xff] }
 0x177   :  { %v8045_v25 = vsel %vm1973_vm5, 1.0, %v10714_v28  ;;  %v6265_v56 = vadd.f32 -1.0, %v1878_v58  ;;  %2099 = vst [vmem:[#allocation20 + $0x98] sm:$0xff] %v2067_v46  ;;  %2100 = vst [vmem:[#allocation20 + $0xa0] sm:$0xff] %v2068_v42  ;;  %v6266_v51 = vadd.f32 -1.0, %v1879_v16  ;;  %v1883_v41 = vmul.f32 2.0, %v7850_v43 }
 0x178   :  { %v2069_v6 = vsub.f32 %v1941_v10, %v8045_v25  ;;  %v6267_v37 = vadd.f32 -1.0, %v1880_v3  ;;  %v6268_v54 = vadd.f32 -1.0, %v1881_v12  ;;  %v1884_v15 = vmul.f32 2.0, %v7857_v61  ;;  %v313_v58 = vld [vmem:[#allocation10 + $0x10] sm:$0xff]  ;;  %v1853_v16 = vld [vmem:[#allocation20 + $0xe8] sm:$0xff] }
 0x179   :  { %v1942_v48 = vadd.f32 %v6265_v56, %v1846_v9  ;;  %v1943_v47 = vadd.f32 %v6266_v51, %v1847_v62  ;;  %v6269_v38 = vadd.f32 -1.0, %v1882_v34  ;;  %v6270_v35 = vadd.f32 -1.0, %v1883_v41  ;;  %v314_v56 = vld [vmem:[#allocation10 + $0x18] sm:$0xff]  ;;  %v315_v62 = vld [vmem:[#allocation10 + $0x20] sm:$0xff]  ;;  %v316_v3 = vld [vmem:[#allocation10 + $0x28] sm:$0xff] }
 0x17a   :  { %2101 = vst [vmem:[#allocation20 + $0xa8] sm:$0xff] %v2069_v6  ;;  %v1885_v7 = vmul.f32 2.0, %v7860_v55  ;;  %v1944_v23 = vadd.f32 %v6267_v37, %v1848_v24  ;;  %v1945_v19 = vadd.f32 %v6268_v54, %v1849_v11  ;;  %v6271_v1 = vadd.f32 -1.0, %v1884_v15  ;;  %v317_v11 = vld [vmem:[#allocation10 + $0x30] sm:$0xff]  ;;  %v318_v34 = vld [vmem:[#allocation10 + $0x38] sm:$0xff]  ;;  %v319_v41 = vld [vmem:[#allocation10 + $0x40] sm:$0xff] }
 0x17b   :  { %vm1974_vm6 = vcmp.gt.f32.partialorder %v1942_v48, 0.0  ;;  %vm1975_vm7 = vcmp.gt.f32.partialorder %v1943_v47, 0.0  ;;  %v1946_v43 = vadd.f32 %v6269_v38, %v1850_v31  ;;  %v1947_v52 = vadd.f32 %v6270_v35, %v1851_v14  ;;  %v320_v14 = vld [vmem:[#allocation10 + $0x48] sm:$0xff]  ;;  %v321_v15 = vld [vmem:[#allocation10 + $0x50] sm:$0xff] }
 0x17c   :  { %v8055_v13 = vsel %vm1974_vm6, 1.0, %v10714_v28  ;;  %v8059_v61 = vsel %vm1975_vm7, 1.0, %v10714_v28  ;;  %vm1976_vm8 = vcmp.gt.f32.partialorder %v1944_v23, 0.0  ;;  %vm1977_vm9 = vcmp.gt.f32.partialorder %v1945_v19, 0.0  ;;  %v1854_v38 = vld [vmem:[#allocation20 + $0xf0] sm:$0xff] }
 0x17d   :  { %v2070_v17 = vsub.f32 %v1942_v48, %v8055_v13  ;;  %v2071_v55 = vsub.f32 %v1943_v47, %v8059_v61  ;;  %v8063_v59 = vsel %vm1976_vm8, 1.0, %v10714_v28  ;;  %v8066_v10 = vsel %vm1977_vm9, 1.0, %v10714_v28 }
 0x17e   :  { %vm1978_vm10 = vcmp.gt.f32.partialorder %v1946_v43, 0.0  ;;  %v2072_v46 = vsub.f32 %v1944_v23, %v8063_v59  ;;  %v2073_v42 = vsub.f32 %v1945_v19, %v8066_v10  ;;  %vm1979_vm11 = vcmp.gt.f32.partialorder %v1947_v52, 0.0  ;;  %v322_v23 = vld [vmem:[#allocation10 + $0x58] sm:$0xff]  ;;  %v323_v19 = vld [vmem:[#allocation10 + $0x60] sm:$0xff] }
 0x17f   :  { %2102 = vst [vmem:[#allocation20 + $0xb0] sm:$0xff] %v2070_v17  ;;  %v8071_v9 = vsel %vm1978_vm10, 1.0, %v10714_v28  ;;  %2103 = vst [vmem:[#allocation20 + $0xb8] sm:$0xff] %v2071_v55  ;;  %v8075_v6 = vsel %vm1979_vm11, 1.0, %v10714_v28  ;;  %v1948_v51 = vadd.f32 %v6271_v1, %v1852_v27  ;;  %v6272_v24 = vadd.f32 -1.0, %v1885_v7  ;;  %v326_v17 = vld [vmem:[#allocation10 + $0x78] sm:$0xff] }
 0x180   :  { %v2074_v12 = vsub.f32 %v1946_v43, %v8071_v9  ;;  %2104 = vst [vmem:[#allocation20 + $0xc0] sm:$0xff] %v2072_v46  ;;  %2105 = vst [vmem:[#allocation20 + $0xc8] sm:$0xff] %v2073_v42  ;;  %v2075_v48 = vsub.f32 %v1947_v52, %v8075_v6  ;;  %v1886_v37 = vmul.f32 2.0, %v7863_v4  ;;  %v1887_v54 = vmul.f32 2.0, %v7866_v39  ;;  %v324_v4 = vld [vmem:[#allocation10 + $0x68] sm:$0xff]  ;;  %v325_v52 = vld [vmem:[#allocation10 + $0x70] sm:$0xff] }
 0x181   :  { %v8081_v31 = vmul.f32 %v7945_v40, %v311_v50  ;;  %vm1980_vm12 = vcmp.gt.f32.partialorder %v1948_v51, 0.0  ;;  %v1949_v47 = vadd.f32 %v6272_v24, %v1853_v16  ;;  %v8084_v35 = vmul.f32 %v7948_v30, %v312_v63  ;;  %v1855_v27 = vld [vmem:[#allocation20 + $0xf8] sm:$0xff]  ;;  %v327_v55 = vld [vmem:[#allocation10 + $0x80] sm:$0xff]  ;;  %v328_v63 = vld [vmem:[#allocation10 + $0x88] sm:$0xff] }
 0x182   :  { %2106 = vst [vmem:[#allocation20 + $0xd0] sm:$0xff] %v2074_v12  ;;  %v8087_v7 = vmul.f32 %v7951_v2, %v313_v58  ;;  %2107 = vst [vmem:[#allocation20 + $0xd8] sm:$0xff] %v2075_v48  ;;  %v8090_v39 = vsel %vm1980_vm12, 1.0, %v10714_v28  ;;  %v6273_v40 = vadd.f32 -1.0, %v1886_v37  ;;  %v6274_v1 = vadd.f32 -1.0, %v1887_v54  ;;  %v329_v58 = vld [vmem:[#allocation10 + $0x90] sm:$0xff] }
 0x183   :  { %v8093_v43 = vmul.f32 %v7957_v26, %v314_v56  ;;  %v2076_v30 = vsub.f32 %v1948_v51, %v8090_v39  ;;  %vm1981_vm13 = vcmp.gt.f32.partialorder %v1949_v47, 0.0  ;;  %v8097_v2 = vmul.f32 %v7961_v22, %v315_v62  ;;  %v330_v56 = vld [vmem:[#allocation10 + $0x98] sm:$0xff]  ;;  %v331_v12 = vld [vmem:[#allocation10 + $0xa0] sm:$0xff]  ;;  %v332_v51 = vld [vmem:[#allocation10 + $0xa8] sm:$0xff] }
 0x184   :  { %v8100_v50 = vmul.f32 %v7964_v18, %v316_v3  ;;  %v6304_v46 = vsel %vm1981_vm13, 1.0, %v10714_v28  ;;  %v1950_v42 = vadd.f32 %v6273_v40, %v1854_v38  ;;  %v1951_v26 = vadd.f32 %v6274_v1, %v1855_v27  ;;  %v333_v3 = vld [vmem:[#allocation10 + $0xb0] sm:$0xff]  ;;  %v334_v48 = vld [vmem:[#allocation10 + $0xb8] sm:$0xff]  ;;  %v335_v37 = vld [vmem:[#allocation10 + $0xc0] sm:$0xff] }
 0x185   :  { %v8104_v16 = vmul.f32 %v7971_v20, %v317_v11  ;;  %2108 = vst [vmem:[#allocation20 + $0xe0] sm:$0xff] %v2076_v30  ;;  %v2077_v24 = vsub.f32 %v1949_v47, %v6304_v46  ;;  %v8107_v22 = vmul.f32 %v7979_v44, %v318_v34  ;;  %v8110_v18 = vmul.f32 %v7983_v49, %v319_v41  ;;  %v336_v54 = vld [vmem:[#allocation10 + $0xc8] sm:$0xff]  ;;  %v337_v44 = vld [vmem:[#allocation10 + $0xd0] sm:$0xff]  ;;  %v338_v34 = vld [vmem:[#allocation10 + $0xd8] sm:$0xff] }
 0x186   :  { %v8113_v62 = vmul.f32 %v7987_v29, %v320_v14  ;;  %vm1982_vm14 = vcmp.gt.f32.partialorder %v1950_v42, 0.0  ;;  %vm1983_vm15 = vcmp.gt.f32.partialorder %v1951_v26, 0.0  ;;  %v8116_v20 = vmul.f32 %v7991_v33, %v321_v15  ;;  %v339_v47 = vld [vmem:[#allocation10 + $0xe0] sm:$0xff]  ;;  %v340_v33 = vld [vmem:[#allocation10 + $0xe8] sm:$0xff]  ;;  %v341_v15 = vld [vmem:[#allocation10 + $0xf0] sm:$0xff] }
 0x187   :  { %v8119_v11 = vmul.f32 %v7995_v53, %v322_v23  ;;  %2109 = vst [vmem:[#allocation20 + $0xe8] sm:$0xff] %v2077_v24  ;;  %v6305_v49 = vsel %vm1982_vm14, 1.0, %v10714_v28  ;;  %v6306_v29 = vsel %vm1983_vm15, 1.0, %v10714_v28  ;;  %v8124_v41 = vmul.f32 %v7998_v32, %v323_v19  ;;  %v342_v1 = vld [vmem:[#allocation10 + $0xf8] sm:$0xff]  ;;  %v2372_v24 = vld [vmem:[#allocation16 + $0x10] sm:$0xff] }
 0x188   :  { %v8127_v14 = vmul.f32 %v8003_v8, %v324_v4  ;;  %v2078_v38 = vsub.f32 %v1950_v42, %v6305_v49  ;;  %v2079_v53 = vsub.f32 %v1951_v26, %v6306_v29  ;;  %v8130_v23 = vmul.f32 %v8015_v45, %v325_v52  ;;  %v8147_v4 = vld [vmem:[#allocation2 + $0x80] sm:$0xff]  ;;  %v8149_v45 = vld [vmem:[#allocation2 + $0x88] sm:$0xff]  ;;  %v8165_v52 = vld [vmem:[#allocation2 + $0x98] sm:$0xff] }
 0x189   :  { %v8133_v40 = vmul.f32 %v8019_v60, %v326_v17  ;;  %v8136_v30 = vmul.f32 %v8022_v0, %v327_v55  ;;  %v8139_v32 = vmul.f32 %v8025_v57, %v328_v63  ;;  %v8142_v8 = vmul.f32 %v8031_v5, %v329_v58  ;;  %v8167_v17 = vld [vmem:[#allocation2 + $0xa0] sm:$0xff]  ;;  %v8183_v55 = vld [vmem:[#allocation2 + $0xb0] sm:$0xff]  ;;  %v8185_v63 = vld [vmem:[#allocation2 + $0xb8] sm:$0xff] }
 0x18a   :  { %v8145_v19 = vmul.f32 %v8035_v36, %v330_v56  ;;  %2110 = vst [vmem:[#allocation20 + $0xf0] sm:$0xff] %v2078_v38  ;;  %2111 = vst [vmem:[#allocation20 + $0xf8] sm:$0xff] %v2079_v53  ;;  %v8152_v60 = vmul.f32 %v8038_v21, %v331_v12  ;;  %v8155_v0 = vmul.f32 %v8045_v25, %v332_v51  ;;  %v8163_v36 = vld [vmem:[#allocation2 + $0x90] sm:$0xff]  ;;  %v2370_v26 = vld [vmem:[#allocation16] sm:$0xff]  ;;  %v2309_v51 = vunpack.c.0.s8 %v8165_v52 }
 0x18b   :  { %v8158_v57 = vmul.f32 %v8055_v13, %v333_v3  ;;  %v8161_v5 = vmul.f32 %v8059_v61, %v334_v48  ;;  %v8170_v27 = vmul.f32 %v8063_v59, %v335_v37  ;;  %v8173_v21 = vmul.f32 %v8066_v10, %v336_v54  ;;  %v8181_v61 = vld [vmem:[#allocation2 + $0xa8] sm:$0xff]  ;;  %v2373_v3 = vld [vmem:[#allocation16 + $0x18] sm:$0xff] }
 0x18c   :  { %v8176_v25 = vmul.f32 %v8071_v9, %v337_v44  ;;  %v8179_v13 = vmul.f32 %v8075_v6, %v338_v34  ;;  %v8188_v58 = vmul.f32 %v8090_v39, %v339_v47  ;;  %v8190_v59 = vmul.f32 %v6304_v46, %v340_v33  ;;  %v2371_v56 = vld [vmem:[#allocation16 + $0x8] sm:$0xff]  ;;  %v2374_v46 = vld [vmem:[#allocation16 + $0x20] sm:$0xff]  ;;  %v2376_v33 = vld [vmem:[#allocation16 + $0x30] sm:$0xff] }
 0x18d   :  { %10725 = vst [vmem:[#allocation30_spill] sm:$0xff] %v8161_v5  ;;  %10726 = vst [vmem:[#allocation31_spill] sm:$0xff] %v8170_v27  ;;  %v8192_v42 = vmul.f32 %v6305_v49, %v341_v15  ;;  %v8194_v10 = vmul.f32 %v6306_v29, %v342_v1  ;;  %v2306_v9 = vunpack.c.0.s8 %v8147_v4  ;;  %v2307_v6 = vunpack.c.0.s8 %v8149_v45  ;;  %v2375_v47 = vld [vmem:[#allocation16 + $0x28] sm:$0xff]  ;;  %v2377_v15 = vld [vmem:[#allocation16 + $0x38] sm:$0xff] }
 0x18e   :  { %10727 = vst [vmem:[#allocation32_spill] sm:$0xff] %v8173_v21  ;;  %10728 = vst [vmem:[#allocation33_spill] sm:$0xff] %v8176_v25  ;;  %v2308_v12 = vunpack.c.0.s8 %v8163_v36  ;;  %v2310_v39 = vunpack.c.0.s8 %v8167_v17  ;;  %v2311_v48 = vunpack.c.0.s8 %v8181_v61  ;;  %v2312_v37 = vunpack.c.0.s8 %v8183_v55 }
 0x18f   :  { %10729 = vst [vmem:[#allocation34_spill] sm:$0xff] %v8179_v13  ;;  %10730 = vst [vmem:[#allocation35_spill] sm:$0xff] %v8188_v58  ;;  %v2313_v54 = vunpack.c.0.s8 %v8185_v63  ;;  %v2338_v44 = vcvt.s32.f32 %v2306_v9  ;;  %v2339_v34 = vcvt.s32.f32 %v2307_v6  ;;  %v2341_v29 = vcvt.s32.f32 %v2309_v51 }
 0x190   :  { %10731 = vst [vmem:[#allocation36_spill] sm:$0xff] %v8190_v59  ;;  %10732 = vst [vmem:[#allocation37_spill] sm:$0xff] %v8192_v42  ;;  %v2340_v49 = vcvt.s32.f32 %v2308_v12  ;;  %v2342_v38 = vcvt.s32.f32 %v2310_v39  ;;  %v2343_v53 = vcvt.s32.f32 %v2311_v48  ;;  %v2344_v1 = vcvt.s32.f32 %v2312_v37 }
 0x191   :  { %10733 = vst [vmem:[#allocation38_spill] sm:$0xff] %v8194_v10  ;;  %v2345_v10 = vcvt.s32.f32 %v2313_v54  ;;  %v2402_v42 = vadd.f32 %v2370_v26, %v2338_v44  ;;  %v2403_v59 = vadd.f32 %v2371_v56, %v2339_v34  ;;  %v2405_v13 = vadd.f32 %v2373_v3, %v2341_v29  ;;  %v2380_v44 = vld [vmem:[#allocation16 + $0x50] sm:$0xff]  ;;  %v2381_v34 = vld [vmem:[#allocation16 + $0x58] sm:$0xff]  ;;  %v2382_v29 = vld [vmem:[#allocation16 + $0x60] sm:$0xff] }
 0x192   :  { %v2404_v58 = vadd.f32 %v2372_v24, %v2340_v49  ;;  %v2406_v25 = vadd.f32 %v2374_v46, %v2342_v38  ;;  %v2407_v21 = vadd.f32 %v2375_v47, %v2343_v53  ;;  %v2408_v27 = vadd.f32 %v2376_v33, %v2344_v1  ;;  %v2378_v24 = vld [vmem:[#allocation16 + $0x40] sm:$0xff]  ;;  %v2379_v46 = vld [vmem:[#allocation16 + $0x48] sm:$0xff] }
 0x193   :  { %v2409_v5 = vadd.f32 %v2377_v15, %v2345_v10  ;;  %v2466_v9 = vadd.f32 %v2402_v42, %v8081_v31  ;;  %v2467_v6 = vadd.f32 %v2403_v59, %v8084_v35  ;;  %v2469_v51 = vadd.f32 %v2405_v13, %v8093_v43 }
 0x194   :  { %v2468_v12 = vadd.f32 %v2404_v58, %v8087_v7  ;;  %v2470_v39 = vadd.f32 %v2406_v25, %v8097_v2  ;;  %v2471_v48 = vadd.f32 %v2407_v21, %v8100_v50  ;;  %v2472_v26 = vadd.f32 %v2408_v27, %v8104_v16 }
 0x195   :  { %v2473_v56 = vadd.f32 %v2409_v5, %v8107_v22  ;;  %vm2498_vm0 = vcmp.gt.f32.partialorder %v2466_v9, 0.0  ;;  %vm2499_vm1 = vcmp.gt.f32.partialorder %v2467_v6, 0.0  ;;  %vm2501_vm3 = vcmp.gt.f32.partialorder %v2469_v51, 0.0 }
 0x196   :  { %vm2500_vm2 = vcmp.gt.f32.partialorder %v2468_v12, 0.0  ;;  %v8213_v31 = vsel %vm2498_vm0, 1.0, %v10714_v28  ;;  %v8216_v35 = vsel %vm2499_vm1, 1.0, %v10714_v28  ;;  %v8222_v43 = vsel %vm2501_vm3, 1.0, %v10714_v28 }
 0x197   :  { %v8219_v7 = vsel %vm2500_vm2, 1.0, %v10714_v28  ;;  %v2594_v2 = vsub.f32 %v2466_v9, %v8213_v31  ;;  %v2595_v50 = vsub.f32 %v2467_v6, %v8216_v35  ;;  %v2597_v22 = vsub.f32 %v2469_v51, %v8222_v43  ;;  %v2383_v6 = vld [vmem:[#allocation16 + $0x68] sm:$0xff]  ;;  %v2385_v51 = vld [vmem:[#allocation16 + $0x78] sm:$0xff] }
 0x198   :  { %v2596_v16 = vsub.f32 %v2468_v12, %v8219_v7  ;;  %vm2502_vm4 = vcmp.gt.f32.partialorder %v2470_v39, 0.0  ;;  %vm2503_vm5 = vcmp.gt.f32.partialorder %v2471_v48, 0.0  ;;  %vm2504_vm6 = vcmp.gt.f32.partialorder %v2472_v26, 0.0  ;;  %v2384_v12 = vld [vmem:[#allocation16 + $0x70] sm:$0xff] }
 0x199   :  { %vm2505_vm7 = vcmp.gt.f32.partialorder %v2473_v56, 0.0  ;;  %2626 = vst [vmem:[#allocation16] sm:$0xff] %v2594_v2  ;;  %2627 = vst [vmem:[#allocation16 + $0x8] sm:$0xff] %v2595_v50  ;;  %v8229_v5 = vsel %vm2502_vm4, 1.0, %v10714_v28  ;;  %v8232_v27 = vsel %vm2503_vm5, 1.0, %v10714_v28  ;;  %v8235_v21 = vsel %vm2504_vm6, 1.0, %v10714_v28 }
 0x19a   :  { %2628 = vst [vmem:[#allocation16 + $0x10] sm:$0xff] %v2596_v16  ;;  %2629 = vst [vmem:[#allocation16 + $0x18] sm:$0xff] %v2597_v22  ;;  %v8238_v25 = vsel %vm2505_vm7, 1.0, %v10714_v28  ;;  %v2598_v13 = vsub.f32 %v2470_v39, %v8229_v5  ;;  %v2599_v58 = vsub.f32 %v2471_v48, %v8232_v27  ;;  %v2600_v59 = vsub.f32 %v2472_v26, %v8235_v21 }
 0x19b   :  { %v2601_v42 = vsub.f32 %v2473_v56, %v8238_v25  ;;  %v2314_v10 = vunpack.c.1.s8 %v8147_v4  ;;  %v2315_v3 = vunpack.c.1.s8 %v8149_v45  ;;  %v2316_v37 = vunpack.c.1.s8 %v8163_v36 }
 0x19c   :  { %v2317_v54 = vunpack.c.1.s8 %v8165_v52  ;;  %2630 = vst [vmem:[#allocation16 + $0x20] sm:$0xff] %v2598_v13  ;;  %2631 = vst [vmem:[#allocation16 + $0x28] sm:$0xff] %v2599_v58  ;;  %v2318_v49 = vunpack.c.1.s8 %v8167_v17  ;;  %v2319_v47 = vunpack.c.1.s8 %v8181_v61  ;;  %v2320_v33 = vunpack.c.1.s8 %v8183_v55 }
 0x19d   :  { %2632 = vst [vmem:[#allocation16 + $0x30] sm:$0xff] %v2600_v59  ;;  %2633 = vst [vmem:[#allocation16 + $0x38] sm:$0xff] %v2601_v42  ;;  %v2321_v15 = vunpack.c.1.s8 %v8185_v63  ;;  %v2346_v38 = vcvt.s32.f32 %v2314_v10  ;;  %v2347_v53 = vcvt.s32.f32 %v2315_v3  ;;  %v2348_v1 = vcvt.s32.f32 %v2316_v37 }
 0x19e   :  { %v2349_v9 = vcvt.s32.f32 %v2317_v54  ;;  %v2350_v39 = vcvt.s32.f32 %v2318_v49  ;;  %v2351_v48 = vcvt.s32.f32 %v2319_v47  ;;  %v2352_v26 = vcvt.s32.f32 %v2320_v33 }
 0x19f   :  { %v2353_v56 = vcvt.s32.f32 %v2321_v15  ;;  %v2410_v2 = vadd.f32 %v2378_v24, %v2346_v38  ;;  %v2411_v50 = vadd.f32 %v2379_v46, %v2347_v53  ;;  %v2412_v16 = vadd.f32 %v2380_v44, %v2348_v1 }
 0x1a0   :  { %v2413_v22 = vadd.f32 %v2381_v34, %v2349_v9  ;;  %v2414_v13 = vadd.f32 %v2382_v29, %v2350_v39  ;;  %v2415_v58 = vadd.f32 %v2383_v6, %v2351_v48  ;;  %v2416_v59 = vadd.f32 %v2384_v12, %v2352_v26  ;;  %v2386_v6 = vld [vmem:[#allocation16 + $0x80] sm:$0xff]  ;;  %v2388_v26 = vld [vmem:[#allocation16 + $0x90] sm:$0xff] }
 0x1a1   :  { %v2417_v42 = vadd.f32 %v2385_v51, %v2353_v56  ;;  %v2474_v10 = vadd.f32 %v2410_v2, %v8110_v18  ;;  %v2475_v3 = vadd.f32 %v2411_v50, %v8113_v62  ;;  %v2476_v37 = vadd.f32 %v2412_v16, %v8116_v20  ;;  %v2387_v51 = vld [vmem:[#allocation16 + $0x88] sm:$0xff]  ;;  %v2389_v56 = vld [vmem:[#allocation16 + $0x98] sm:$0xff]  ;;  %v2390_v50 = vld [vmem:[#allocation16 + $0xa0] sm:$0xff] }
 0x1a2   :  { %v2477_v54 = vadd.f32 %v2413_v22, %v8119_v11  ;;  %v2478_v49 = vadd.f32 %v2414_v13, %v8124_v41  ;;  %v2479_v47 = vadd.f32 %v2415_v58, %v8127_v14  ;;  %v2480_v24 = vadd.f32 %v2416_v59, %v8130_v23 }
 0x1a3   :  { %v2481_v46 = vadd.f32 %v2417_v42, %v8133_v40  ;;  %vm2506_vm8 = vcmp.gt.f32.partialorder %v2474_v10, 0.0  ;;  %vm2507_vm9 = vcmp.gt.f32.partialorder %v2475_v3, 0.0  ;;  %vm2508_vm10 = vcmp.gt.f32.partialorder %v2476_v37, 0.0 }
 0x1a4   :  { %vm2509_vm11 = vcmp.gt.f32.partialorder %v2477_v54, 0.0  ;;  %v8261_v18 = vsel %vm2506_vm8, 1.0, %v10714_v28  ;;  %v8264_v62 = vsel %vm2507_vm9, 1.0, %v10714_v28  ;;  %v8267_v20 = vsel %vm2508_vm10, 1.0, %v10714_v28 }
 0x1a5   :  { %v8270_v11 = vsel %vm2509_vm11, 1.0, %v10714_v28  ;;  %v2602_v41 = vsub.f32 %v2474_v10, %v8261_v18  ;;  %v2603_v14 = vsub.f32 %v2475_v3, %v8264_v62  ;;  %v2604_v23 = vsub.f32 %v2476_v37, %v8267_v20  ;;  %v2391_v3 = vld [vmem:[#allocation16 + $0xa8] sm:$0xff]  ;;  %v2392_v37 = vld [vmem:[#allocation16 + $0xb0] sm:$0xff] }
 0x1a6   :  { %v2605_v40 = vsub.f32 %v2477_v54, %v8270_v11  ;;  %vm2510_vm12 = vcmp.gt.f32.partialorder %v2478_v49, 0.0  ;;  %vm2511_vm13 = vcmp.gt.f32.partialorder %v2479_v47, 0.0  ;;  %vm2512_vm14 = vcmp.gt.f32.partialorder %v2480_v24, 0.0  ;;  %v2393_v54 = vld [vmem:[#allocation16 + $0xb8] sm:$0xff] }
 0x1a7   :  { %vm2513_vm15 = vcmp.gt.f32.partialorder %v2481_v46, 0.0  ;;  %2634 = vst [vmem:[#allocation16 + $0x40] sm:$0xff] %v2602_v41  ;;  %2635 = vst [vmem:[#allocation16 + $0x48] sm:$0xff] %v2603_v14  ;;  %v8277_v44 = vsel %vm2510_vm12, 1.0, %v10714_v28  ;;  %v8280_v34 = vsel %vm2511_vm13, 1.0, %v10714_v28  ;;  %v8283_v29 = vsel %vm2512_vm14, 1.0, %v10714_v28 }
 0x1a8   :  { %2636 = vst [vmem:[#allocation16 + $0x50] sm:$0xff] %v2604_v23  ;;  %2637 = vst [vmem:[#allocation16 + $0x58] sm:$0xff] %v2605_v40  ;;  %v8286_v33 = vsel %vm2513_vm15, 1.0, %v10714_v28  ;;  %v2606_v15 = vsub.f32 %v2478_v49, %v8277_v44  ;;  %v2607_v38 = vsub.f32 %v2479_v47, %v8280_v34  ;;  %v2608_v53 = vsub.f32 %v2480_v24, %v8283_v29 }
 0x1a9   :  { %v2609_v1 = vsub.f32 %v2481_v46, %v8286_v33  ;;  %v2322_v9 = vunpack.c.2.s8 %v8147_v4  ;;  %v2323_v12 = vunpack.c.2.s8 %v8149_v45  ;;  %v2324_v39 = vunpack.c.2.s8 %v8163_v36 }
 0x1aa   :  { %v2325_v48 = vunpack.c.2.s8 %v8165_v52  ;;  %2638 = vst [vmem:[#allocation16 + $0x60] sm:$0xff] %v2606_v15  ;;  %2639 = vst [vmem:[#allocation16 + $0x68] sm:$0xff] %v2607_v38  ;;  %v2326_v2 = vunpack.c.2.s8 %v8167_v17  ;;  %v2327_v16 = vunpack.c.2.s8 %v8181_v61  ;;  %v2328_v22 = vunpack.c.2.s8 %v8183_v55 }
 0x1ab   :  { %2640 = vst [vmem:[#allocation16 + $0x70] sm:$0xff] %v2608_v53  ;;  %2641 = vst [vmem:[#allocation16 + $0x78] sm:$0xff] %v2609_v1  ;;  %v2329_v13 = vunpack.c.2.s8 %v8185_v63  ;;  %v2354_v58 = vcvt.s32.f32 %v2322_v9  ;;  %v2355_v59 = vcvt.s32.f32 %v2323_v12  ;;  %v2356_v42 = vcvt.s32.f32 %v2324_v39 }
 0x1ac   :  { %v2357_v10 = vcvt.s32.f32 %v2325_v48  ;;  %v2358_v49 = vcvt.s32.f32 %v2326_v2  ;;  %v2359_v47 = vcvt.s32.f32 %v2327_v16  ;;  %v2360_v24 = vcvt.s32.f32 %v2328_v22 }
 0x1ad   :  { %v2361_v46 = vcvt.s32.f32 %v2329_v13  ;;  %v2418_v41 = vadd.f32 %v2386_v6, %v2354_v58  ;;  %v2419_v14 = vadd.f32 %v2387_v51, %v2355_v59  ;;  %v2420_v23 = vadd.f32 %v2388_v26, %v2356_v42  ;;  %v10734_v51 = vld [vmem:[#allocation30_spill] sm:$0xff] }
 0x1ae   :  { %v2421_v40 = vadd.f32 %v2389_v56, %v2357_v10  ;;  %v2422_v15 = vadd.f32 %v2390_v50, %v2358_v49  ;;  %v2423_v38 = vadd.f32 %v2391_v3, %v2359_v47  ;;  %v2424_v53 = vadd.f32 %v2392_v37, %v2360_v24  ;;  %v2395_v47 = vld [vmem:[#allocation16 + $0xc8] sm:$0xff] }
 0x1af   :  { %v2425_v1 = vadd.f32 %v2393_v54, %v2361_v46  ;;  %v2482_v9 = vadd.f32 %v2418_v41, %v8136_v30  ;;  %v2483_v12 = vadd.f32 %v2419_v14, %v8139_v32  ;;  %v2484_v39 = vadd.f32 %v2420_v23, %v8142_v8  ;;  %v2394_v54 = vld [vmem:[#allocation16 + $0xc0] sm:$0xff]  ;;  %v2396_v41 = vld [vmem:[#allocation16 + $0xd0] sm:$0xff]  ;;  %v2397_v14 = vld [vmem:[#allocation16 + $0xd8] sm:$0xff] }
 0x1b0   :  { %v2485_v48 = vadd.f32 %v2421_v40, %v8145_v19  ;;  %v2486_v2 = vadd.f32 %v2422_v15, %v8152_v60  ;;  %v2487_v16 = vadd.f32 %v2423_v38, %v8155_v0  ;;  %v2488_v6 = vadd.f32 %v2424_v53, %v8158_v57  ;;  %v2398_v40 = vld [vmem:[#allocation16 + $0xe0] sm:$0xff] }
 0x1b1   :  { %v2489_v26 = vadd.f32 %v2425_v1, %v10734_v51  ;;  %vm2514_vm0 = vcmp.gt.f32.partialorder %v2482_v9, 0.0  ;;  %vm2515_vm1 = vcmp.gt.f32.partialorder %v2483_v12, 0.0  ;;  %vm2516_vm2 = vcmp.gt.f32.partialorder %v2484_v39, 0.0 }
 0x1b2   :  { %vm2517_vm3 = vcmp.gt.f32.partialorder %v2485_v48, 0.0  ;;  %v8309_v30 = vsel %vm2514_vm0, 1.0, %v10714_v28  ;;  %v8312_v32 = vsel %vm2515_vm1, 1.0, %v10714_v28  ;;  %v8315_v8 = vsel %vm2516_vm2, 1.0, %v10714_v28 }
 0x1b3   :  { %v8318_v19 = vsel %vm2517_vm3, 1.0, %v10714_v28  ;;  %v2610_v60 = vsub.f32 %v2482_v9, %v8309_v30  ;;  %v2611_v0 = vsub.f32 %v2483_v12, %v8312_v32  ;;  %v2612_v57 = vsub.f32 %v2484_v39, %v8315_v8  ;;  %v2400_v9 = vld [vmem:[#allocation16 + $0xf0] sm:$0xff]  ;;  %v2401_v12 = vld [vmem:[#allocation16 + $0xf8] sm:$0xff] }
 0x1b4   :  { %v2613_v56 = vsub.f32 %v2485_v48, %v8318_v19  ;;  %vm2518_vm4 = vcmp.gt.f32.partialorder %v2486_v2, 0.0  ;;  %vm2519_vm5 = vcmp.gt.f32.partialorder %v2487_v16, 0.0  ;;  %vm2520_vm6 = vcmp.gt.f32.partialorder %v2488_v6, 0.0 }
 0x1b5   :  { %vm2521_vm7 = vcmp.gt.f32.partialorder %v2489_v26, 0.0  ;;  %2642 = vst [vmem:[#allocation16 + $0x80] sm:$0xff] %v2610_v60  ;;  %2643 = vst [vmem:[#allocation16 + $0x88] sm:$0xff] %v2611_v0  ;;  %v8325_v50 = vsel %vm2518_vm4, 1.0, %v10714_v28  ;;  %v8328_v22 = vsel %vm2519_vm5, 1.0, %v10714_v28  ;;  %v8331_v13 = vsel %vm2520_vm6, 1.0, %v10714_v28 }
 0x1b6   :  { %2644 = vst [vmem:[#allocation16 + $0x90] sm:$0xff] %v2612_v57  ;;  %2645 = vst [vmem:[#allocation16 + $0x98] sm:$0xff] %v2613_v56  ;;  %v8334_v58 = vsel %vm2521_vm7, 1.0, %v10714_v28  ;;  %v2614_v59 = vsub.f32 %v2486_v2, %v8325_v50  ;;  %v2615_v42 = vsub.f32 %v2487_v16, %v8328_v22  ;;  %v2616_v10 = vsub.f32 %v2488_v6, %v8331_v13  ;;  %v10736_v56 = vld [vmem:[#allocation32_spill] sm:$0xff] }
 0x1b7   :  { %v2617_v3 = vsub.f32 %v2489_v26, %v8334_v58  ;;  %v2330_v37 = vunpack.c.3.s8 %v8147_v4  ;;  %v2331_v49 = vunpack.c.3.s8 %v8149_v45  ;;  %v2332_v24 = vunpack.c.3.s8 %v8163_v36 }
 0x1b8   :  { %v2333_v46 = vunpack.c.3.s8 %v8165_v52  ;;  %2646 = vst [vmem:[#allocation16 + $0xa0] sm:$0xff] %v2614_v59  ;;  %2647 = vst [vmem:[#allocation16 + $0xa8] sm:$0xff] %v2615_v42  ;;  %v2334_v23 = vunpack.c.3.s8 %v8167_v17  ;;  %v2335_v15 = vunpack.c.3.s8 %v8181_v61  ;;  %v2336_v4 = vunpack.c.3.s8 %v8183_v55  ;;  %v2399_v52 = vld [vmem:[#allocation16 + $0xe8] sm:$0xff]  ;;  %v10737_v42 = vld [vmem:[#allocation33_spill] sm:$0xff] }
 0x1b9   :  { %2648 = vst [vmem:[#allocation16 + $0xb0] sm:$0xff] %v2616_v10  ;;  %2649 = vst [vmem:[#allocation16 + $0xb8] sm:$0xff] %v2617_v3  ;;  %v2337_v45 = vunpack.c.3.s8 %v8185_v63  ;;  %v2362_v38 = vcvt.s32.f32 %v2330_v37  ;;  %v2363_v53 = vcvt.s32.f32 %v2331_v49  ;;  %v2364_v36 = vcvt.s32.f32 %v2332_v24  ;;  %v10735_v63 = vld [vmem:[#allocation31_spill] sm:$0xff]  ;;  %v10738_v3 = vld [vmem:[#allocation34_spill] sm:$0xff] }
 0x1ba   :  { %v2365_v1 = vcvt.s32.f32 %v2333_v46  ;;  %v2366_v39 = vcvt.s32.f32 %v2334_v23  ;;  %v2367_v48 = vcvt.s32.f32 %v2335_v15  ;;  %v2368_v2 = vcvt.s32.f32 %v2336_v4  ;;  %v10739_v49 = vld [vmem:[#allocation35_spill] sm:$0xff]  ;;  %v10740_v46 = vld [vmem:[#allocation36_spill] sm:$0xff] }
 0x1bb   :  { %v2369_v16 = vcvt.s32.f32 %v2337_v45  ;;  %v2426_v6 = vadd.f32 %v2394_v54, %v2362_v38  ;;  %v2427_v17 = vadd.f32 %v2395_v47, %v2363_v53  ;;  %v2428_v51 = vadd.f32 %v2396_v41, %v2364_v36  ;;  %v10741_v54 = vld [vmem:[#allocation37_spill] sm:$0xff]  ;;  %v10742_v41 = vld [vmem:[#allocation38_spill] sm:$0xff] }
 0x1bc   :  { %v2429_v26 = vadd.f32 %v2397_v14, %v2365_v1  ;;  %v2430_v61 = vadd.f32 %v2398_v40, %v2366_v39  ;;  %v2431_v60 = vadd.f32 %v2399_v52, %v2367_v48  ;;  %v2432_v55 = vadd.f32 %v2400_v9, %v2368_v2  ;;  %v8372_v52 = vld [vmem:[#allocation17] sm:$0xff]  ;;  %v8374_v9 = vld [vmem:[#allocation17 + $0x8] sm:$0xff]  ;;  %v8378_v39 = vld [vmem:[#allocation17 + $0x18] sm:$0xff] }
 0x1bd   :  { %v2433_v0 = vadd.f32 %v2401_v12, %v2369_v16  ;;  %v2490_v57 = vadd.f32 %v2426_v6, %v10735_v63  ;;  %v2491_v59 = vadd.f32 %v2427_v17, %v10736_v56  ;;  %v2492_v10 = vadd.f32 %v2428_v51, %v10737_v42  ;;  %v8376_v12 = vld [vmem:[#allocation17 + $0x10] sm:$0xff]  ;;  %v8392_v17 = vld [vmem:[#allocation17 + $0x20] sm:$0xff]  ;;  %v8394_v51 = vld [vmem:[#allocation17 + $0x28] sm:$0xff] }
 0x1be   :  { %v2493_v37 = vadd.f32 %v2429_v26, %v10738_v3  ;;  %v2494_v24 = vadd.f32 %v2430_v61, %v10739_v49  ;;  %v2495_v23 = vadd.f32 %v2431_v60, %v10740_v46  ;;  %v2496_v47 = vadd.f32 %v2432_v55, %v10741_v54  ;;  %v8396_v26 = vld [vmem:[#allocation17 + $0x30] sm:$0xff]  ;;  %v8398_v61 = vld [vmem:[#allocation17 + $0x38] sm:$0xff]  ;;  %v8406_v56 = vld [vmem:[#allocation17 + $0x48] sm:$0xff] }
 0x1bf   :  { %v2497_v14 = vadd.f32 %v2433_v0, %v10742_v41  ;;  %vm2522_vm8 = vcmp.gt.f32.partialorder %v2490_v57, 0.0  ;;  %vm2523_vm9 = vcmp.gt.f32.partialorder %v2491_v59, 0.0  ;;  %vm2524_vm10 = vcmp.gt.f32.partialorder %v2492_v10, 0.0  ;;  %10743 = vst [vmem:[#allocation30_spill] sm:$0xff] %v8406_v56  ;;  %v8410_v42 = vld [vmem:[#allocation17 + $0x58] sm:$0xff]  ;;  %v8418_v46 = vld [vmem:[#allocation17 + $0x68] sm:$0xff] }
 0x1c0   :  { %vm2525_vm11 = vcmp.gt.f32.partialorder %v2493_v37, 0.0  ;;  %v8357_v40 = vsel %vm2522_vm8, 1.0, %v10714_v28  ;;  %v8360_v15 = vsel %vm2523_vm9, 1.0, %v10714_v28  ;;  %v8363_v4 = vsel %vm2524_vm10, 1.0, %v10714_v28  ;;  %10745 = vst [vmem:[#allocation32_spill] sm:$0xff] %v8410_v42  ;;  %10747 = vst [vmem:[#allocation34_spill] sm:$0xff] %v8418_v46 }
 0x1c1   :  { %v8366_v45 = vsel %vm2525_vm11, 1.0, %v10714_v28  ;;  %v2618_v38 = vsub.f32 %v2490_v57, %v8357_v40  ;;  %v2619_v53 = vsub.f32 %v2491_v59, %v8360_v15  ;;  %v2620_v36 = vsub.f32 %v2492_v10, %v8363_v4  ;;  %v8404_v57 = vld [vmem:[#allocation17 + $0x40] sm:$0xff]  ;;  %v8408_v59 = vld [vmem:[#allocation17 + $0x50] sm:$0xff]  ;;  %v8422_v54 = vld [vmem:[#allocation17 + $0x78] sm:$0xff] }
 0x1c2   :  { %v2621_v1 = vsub.f32 %v2493_v37, %v8366_v45  ;;  %vm2526_vm12 = vcmp.gt.f32.partialorder %v2494_v24, 0.0  ;;  %vm2527_vm13 = vcmp.gt.f32.partialorder %v2495_v23, 0.0  ;;  %vm2528_vm14 = vcmp.gt.f32.partialorder %v2496_v47, 0.0  ;;  %10744 = vst [vmem:[#allocation31_spill] sm:$0xff] %v8408_v59  ;;  %10749 = vst [vmem:[#allocation36_spill] sm:$0xff] %v8422_v54  ;;  %v8440_v54 = vld [vmem:[#allocation17 + $0xa0] sm:$0xff] }
 0x1c3   :  { %vm2529_vm15 = vcmp.gt.f32.partialorder %v2497_v14, 0.0  ;;  %2650 = vst [vmem:[#allocation16 + $0xc0] sm:$0xff] %v2618_v38  ;;  %2651 = vst [vmem:[#allocation16 + $0xc8] sm:$0xff] %v2619_v53  ;;  %v8381_v48 = vsel %vm2526_vm12, 1.0, %v10714_v28  ;;  %v8384_v2 = vsel %vm2527_vm13, 1.0, %v10714_v28  ;;  %v8387_v16 = vsel %vm2528_vm14, 1.0, %v10714_v28 }
 0x1c4   :  { %2652 = vst [vmem:[#allocation16 + $0xd0] sm:$0xff] %v2620_v36  ;;  %2653 = vst [vmem:[#allocation16 + $0xd8] sm:$0xff] %v2621_v1  ;;  %v8390_v6 = vsel %vm2529_vm15, 1.0, %v10714_v28  ;;  %v2622_v60 = vsub.f32 %v2494_v24, %v8381_v48  ;;  %v2623_v55 = vsub.f32 %v2495_v23, %v8384_v2  ;;  %v2624_v0 = vsub.f32 %v2496_v47, %v8387_v16  ;;  %v8416_v24 = vld [vmem:[#allocation17 + $0x60] sm:$0xff]  ;;  %v8420_v23 = vld [vmem:[#allocation17 + $0x70] sm:$0xff] }
 0x1c5   :  { %v2625_v63 = vsub.f32 %v2497_v14, %v8390_v6  ;;  %v2658_v10 = vsub.f32 1.0, %v8213_v31  ;;  %v2659_v3 = vsub.f32 1.0, %v8216_v35  ;;  %v2660_v37 = vsub.f32 1.0, %v8219_v7  ;;  %10746 = vst [vmem:[#allocation33_spill] sm:$0xff] %v8416_v24  ;;  %10748 = vst [vmem:[#allocation35_spill] sm:$0xff] %v8420_v23  ;;  %v8428_v53 = vld [vmem:[#allocation17 + $0x80] sm:$0xff] }
 0x1c6   :  { %v2661_v49 = vsub.f32 1.0, %v8222_v43  ;;  %2654 = vst [vmem:[#allocation16 + $0xe0] sm:$0xff] %v2622_v60  ;;  %2655 = vst [vmem:[#allocation16 + $0xe8] sm:$0xff] %v2623_v55  ;;  %v2662_v47 = vsub.f32 1.0, %v8229_v5  ;;  %v2663_v41 = vsub.f32 1.0, %v8232_v27  ;;  %v2664_v14 = vsub.f32 1.0, %v8235_v21 }
 0x1c7   :  { %2656 = vst [vmem:[#allocation16 + $0xf0] sm:$0xff] %v2624_v0  ;;  %2657 = vst [vmem:[#allocation16 + $0xf8] sm:$0xff] %v2625_v63  ;;  %v2665_v38 = vsub.f32 1.0, %v8238_v25  ;;  %v8430_v36 = vld [vmem:[#allocation17 + $0x88] sm:$0xff]  ;;  %v8432_v1 = vld [vmem:[#allocation17 + $0x90] sm:$0xff]  ;;  %v2666_v60 = vsub.f32 1.0, %v8261_v18  ;;  %v3109_v24 = vtrunc.f32 %v8222_v43  ;;  %v3117_v42 = vtrunc.f32 %v8270_v11 }
 0x1c8   :  { %10750 = vst [vmem:[#allocation37_spill] sm:$0xff] %v8428_v53  ;;  %10751 = vst [vmem:[#allocation38_spill] sm:$0xff] %v8430_v36  ;;  %v8434_v23 = vld [vmem:[#allocation17 + $0x98] sm:$0xff]  ;;  %v2667_v55 = vsub.f32 1.0, %v8264_v62  ;;  %v2668_v0 = vsub.f32 1.0, %v8267_v20  ;;  %v2669_v63 = vsub.f32 1.0, %v8270_v11 }
 0x1c9   :  { %10752 = vst [vmem:[#allocation39_spill] sm:$0xff] %v8432_v1  ;;  %10753 = vst [vmem:[#allocation40_spill] sm:$0xff] %v8434_v23  ;;  %v8442_v53 = vld [vmem:[#allocation17 + $0xa8] sm:$0xff]  ;;  %v8444_v36 = vld [vmem:[#allocation17 + $0xb0] sm:$0xff] }
 0x1ca   :  { %2722 = vst [vmem:[#allocation17] sm:$0xff] %v2658_v10  ;;  %2723 = vst [vmem:[#allocation17 + $0x8] sm:$0xff] %v2659_v3  ;;  %v2670_v10 = vsub.f32 1.0, %v8277_v44  ;;  %v2671_v3 = vsub.f32 1.0, %v8280_v34  ;;  %v8450_v23 = vld [vmem:[#allocation17 + $0xb8] sm:$0xff]  ;;  %v8452_v1 = vld [vmem:[#allocation17 + $0xc0] sm:$0xff] }
 0x1cb   :  { %2724 = vst [vmem:[#allocation17 + $0x10] sm:$0xff] %v2660_v37  ;;  %2725 = vst [vmem:[#allocation17 + $0x18] sm:$0xff] %v2661_v49  ;;  %v2672_v37 = vsub.f32 1.0, %v8283_v29  ;;  %v2673_v49 = vsub.f32 1.0, %v8286_v33 }
 0x1cc   :  { %10754 = vst [vmem:[#allocation41_spill] sm:$0xff] %v8440_v54  ;;  %10755 = vst [vmem:[#allocation42_spill] sm:$0xff] %v8442_v53  ;;  %v8460_v53 = vld [vmem:[#allocation17 + $0xd0] sm:$0xff] }
 0x1cd   :  { %10756 = vst [vmem:[#allocation43_spill] sm:$0xff] %v8444_v36  ;;  %2726 = vst [vmem:[#allocation17 + $0x20] sm:$0xff] %v2662_v47  ;;  %v2674_v47 = vsub.f32 1.0, %v8309_v30  ;;  %v8458_v36 = vld [vmem:[#allocation17 + $0xc8] sm:$0xff] }
 0x1ce   :  { %2727 = vst [vmem:[#allocation17 + $0x28] sm:$0xff] %v2663_v41  ;;  %2728 = vst [vmem:[#allocation17 + $0x30] sm:$0xff] %v2664_v14  ;;  %v2675_v41 = vsub.f32 1.0, %v8312_v32  ;;  %v2676_v14 = vsub.f32 1.0, %v8315_v8 }
 0x1cf   :  { %2729 = vst [vmem:[#allocation17 + $0x38] sm:$0xff] %v2665_v38  ;;  %10757 = vst [vmem:[#allocation44_spill] sm:$0xff] %v8450_v23  ;;  %v2677_v38 = vsub.f32 1.0, %v8318_v19  ;;  %v8468_v23 = vld [vmem:[#allocation17 + $0xe0] sm:$0xff] }
 0x1d0   :  { %10758 = vst [vmem:[#allocation45_spill] sm:$0xff] %v8452_v1  ;;  %2730 = vst [vmem:[#allocation17 + $0x40] sm:$0xff] %v2666_v60  ;;  %v2678_v60 = vsub.f32 1.0, %v8325_v50  ;;  %v8466_v1 = vld [vmem:[#allocation17 + $0xd8] sm:$0xff] }
 0x1d1   :  { %2731 = vst [vmem:[#allocation17 + $0x48] sm:$0xff] %v2667_v55  ;;  %2732 = vst [vmem:[#allocation17 + $0x50] sm:$0xff] %v2668_v0  ;;  %v2679_v55 = vsub.f32 1.0, %v8328_v22  ;;  %v2680_v0 = vsub.f32 1.0, %v8331_v13 }
 0x1d2   :  { %2733 = vst [vmem:[#allocation17 + $0x58] sm:$0xff] %v2669_v63  ;;  %10759 = vst [vmem:[#allocation46_spill] sm:$0xff] %v8458_v36  ;;  %v2681_v63 = vsub.f32 1.0, %v8334_v58  ;;  %v8476_v36 = vld [vmem:[#allocation17 + $0xf0] sm:$0xff] }
 0x1d3   :  { %10760 = vst [vmem:[#allocation47_spill] sm:$0xff] %v8460_v53  ;;  %2734 = vst [vmem:[#allocation17 + $0x60] sm:$0xff] %v2670_v10  ;;  %v2682_v10 = vsub.f32 1.0, %v8357_v40  ;;  %v8474_v53 = vld [vmem:[#allocation17 + $0xe8] sm:$0xff] }
 0x1d4   :  { %2735 = vst [vmem:[#allocation17 + $0x68] sm:$0xff] %v2671_v3  ;;  %2736 = vst [vmem:[#allocation17 + $0x70] sm:$0xff] %v2672_v37  ;;  %v2683_v3 = vsub.f32 1.0, %v8360_v15  ;;  %v2684_v37 = vsub.f32 1.0, %v8363_v4 }
 0x1d5   :  { %2737 = vst [vmem:[#allocation17 + $0x78] sm:$0xff] %v2673_v49  ;;  %10761 = vst [vmem:[#allocation48_spill] sm:$0xff] %v8466_v1  ;;  %v2685_v49 = vsub.f32 1.0, %v8366_v45  ;;  %v3116_v1 = vtrunc.f32 %v8267_v20 }
 0x1d6   :  { %10762 = vst [vmem:[#allocation49_spill] sm:$0xff] %v8468_v23  ;;  %2738 = vst [vmem:[#allocation17 + $0x80] sm:$0xff] %v2674_v47  ;;  %v2686_v47 = vsub.f32 1.0, %v8381_v48  ;;  %v8482_v23 = vld [vmem:[#allocation17 + $0xf8] sm:$0xff] }
 0x1d7   :  { %2739 = vst [vmem:[#allocation17 + $0x88] sm:$0xff] %v2675_v41  ;;  %2740 = vst [vmem:[#allocation17 + $0x90] sm:$0xff] %v2676_v14  ;;  %v2687_v41 = vsub.f32 1.0, %v8384_v2  ;;  %v2688_v14 = vsub.f32 1.0, %v8387_v16 }
 0x1d8   :  { %2741 = vst [vmem:[#allocation17 + $0x98] sm:$0xff] %v2677_v38  ;;  %10763 = vst [vmem:[#allocation50_spill] sm:$0xff] %v8474_v53  ;;  %v2689_v38 = vsub.f32 1.0, %v8390_v6  ;;  %v3108_v53 = vtrunc.f32 %v8219_v7 }
 0x1d9   :  { %10764 = vst [vmem:[#allocation51_spill] sm:$0xff] %v8476_v36  ;;  %2742 = vst [vmem:[#allocation17 + $0xa0] sm:$0xff] %v2678_v60  ;;  %v3106_v36 = vtrunc.f32 %v8213_v31  ;;  %v3114_v60 = vtrunc.f32 %v8261_v18 }
 0x1da   :  { %2743 = vst [vmem:[#allocation17 + $0xa8] sm:$0xff] %v2679_v55  ;;  %2744 = vst [vmem:[#allocation17 + $0xb0] sm:$0xff] %v2680_v0  ;;  %v3122_v55 = vtrunc.f32 %v8309_v30  ;;  %v3130_v0 = vtrunc.f32 %v8357_v40 }
 0x1db   :  { %2745 = vst [vmem:[#allocation17 + $0xb8] sm:$0xff] %v2681_v63  ;;  %2746 = vst [vmem:[#allocation17 + $0xc0] sm:$0xff] %v2682_v10  ;;  %v3107_v63 = vtrunc.f32 %v8216_v35  ;;  %v3115_v10 = vtrunc.f32 %v8264_v62 }
 0x1dc   :  { %2747 = vst [vmem:[#allocation17 + $0xc8] sm:$0xff] %v2683_v3  ;;  %2748 = vst [vmem:[#allocation17 + $0xd0] sm:$0xff] %v2684_v37  ;;  %v3123_v3 = vtrunc.f32 %v8312_v32  ;;  %v3131_v37 = vtrunc.f32 %v8360_v15 }
 0x1dd   :  { %2749 = vst [vmem:[#allocation17 + $0xd8] sm:$0xff] %v2685_v49  ;;  %10765 = vst [vmem:[#allocation52_spill] sm:$0xff] %v8482_v23  ;;  %v3138_v49 = vpack.c.f32.eXmY %v3106_v36, %v3114_v60, 312  ;;  %v3142_v23 = vpack.c.f32.eXmY %v3122_v55, %v3130_v0, 312  ;;  %v3125_v36 = vtrunc.f32 %v8318_v19  ;;  %v3133_v60 = vtrunc.f32 %v8366_v45 }
 0x1de   :  { %2750 = vst [vmem:[#allocation17 + $0xe0] sm:$0xff] %v2686_v47  ;;  %2751 = vst [vmem:[#allocation17 + $0xe8] sm:$0xff] %v2687_v41  ;;  %v3148_v54 = vpack.c.f32.eXmY %v3107_v63, %v3115_v10, 312  ;;  %v3152_v46 = vpack.c.f32.eXmY %v3123_v3, %v3131_v37, 312  ;;  %v3124_v47 = vtrunc.f32 %v8315_v8  ;;  %v3132_v41 = vtrunc.f32 %v8363_v4 }
 0x1df   :  { %2752 = vst [vmem:[#allocation17 + $0xf0] sm:$0xff] %v2688_v14  ;;  %2753 = vst [vmem:[#allocation17 + $0xf8] sm:$0xff] %v2689_v38  ;;  %v3146_v14 = vpack.c.b8 %v3142_v23, %v3138_v49  ;;  %v3158_v38 = vpack.c.f32.eXmY %v3108_v53, %v3116_v1, 312  ;;  %v3168_v55 = vpack.c.f32.eXmY %v3109_v24, %v3117_v42, 312  ;;  %v3110_v0 = vtrunc.f32 %v8229_v5 }
 0x1e0   :  { %v3156_v59 = vpack.c.b8 %v3152_v46, %v3148_v54  ;;  %v3162_v56 = vpack.c.f32.eXmY %v3124_v47, %v3132_v41, 312  ;;  %v3118_v63 = vtrunc.f32 %v8277_v44  ;;  %v3126_v10 = vtrunc.f32 %v8325_v50 }
 0x1e1   :  { %3219 = vst [vmem:[#allocation13 + $0x80] sm:$0xff] %v3146_v14  ;;  %v3172_v53 = vpack.c.f32.eXmY %v3125_v36, %v3133_v60, 312  ;;  %v3134_v1 = vtrunc.f32 %v8381_v48  ;;  %v3111_v46 = vtrunc.f32 %v8232_v27  ;;  %v3119_v3 = vtrunc.f32 %v8280_v34 }
 0x1e2   :  { %3220 = vst [vmem:[#allocation13 + $0x88] sm:$0xff] %v3156_v59  ;;  %v3166_v23 = vpack.c.b8 %v3162_v56, %v3158_v38  ;;  %v3178_v54 = vpack.c.f32.eXmY %v3110_v0, %v3118_v63, 312  ;;  %v3127_v37 = vtrunc.f32 %v8328_v22  ;;  %v3135_v42 = vtrunc.f32 %v8384_v2 }
 0x1e3   :  { %v3176_v24 = vpack.c.b8 %v3172_v53, %v3168_v55  ;;  %v3182_v49 = vpack.c.f32.eXmY %v3126_v10, %v3134_v1, 312  ;;  %v3112_v47 = vtrunc.f32 %v8235_v21  ;;  %v3120_v59 = vtrunc.f32 %v8283_v29 }
 0x1e4   :  { %3221 = vst [vmem:[#allocation13 + $0x90] sm:$0xff] %v3166_v23  ;;  %v3188_v56 = vpack.c.f32.eXmY %v3111_v46, %v3119_v3, 312  ;;  %v3192_v41 = vpack.c.f32.eXmY %v3127_v37, %v3135_v42, 312  ;;  %v3128_v14 = vtrunc.f32 %v8331_v13  ;;  %v3136_v38 = vtrunc.f32 %v8387_v16 }
 0x1e5   :  { %3222 = vst [vmem:[#allocation13 + $0x98] sm:$0xff] %v3176_v24  ;;  %v3186_v36 = vpack.c.b8 %v3182_v49, %v3178_v54  ;;  %v3198_v60 = vpack.c.f32.eXmY %v3112_v47, %v3120_v59, 312  ;;  %v3113_v0 = vtrunc.f32 %v8238_v25  ;;  %v3121_v63 = vtrunc.f32 %v8286_v33 }
 0x1e6   :  { %v3196_v23 = vpack.c.b8 %v3192_v41, %v3188_v56  ;;  %v3202_v55 = vpack.c.f32.eXmY %v3128_v14, %v3136_v38, 312  ;;  %v3129_v10 = vtrunc.f32 %v8334_v58  ;;  %v3137_v53 = vtrunc.f32 %v8390_v6  ;;  %v2754_v38 = vld [vmem:[#allocation20] sm:$0xff] }
 0x1e7   :  { %3223 = vst [vmem:[#allocation13 + $0xa0] sm:$0xff] %v3186_v36  ;;  %v3208_v1 = vpack.c.f32.eXmY %v3113_v0, %v3121_v63, 312  ;;  %v2786_v46 = vmul.f32 2.0, %v8213_v31  ;;  %v2787_v3 = vmul.f32 2.0, %v8216_v35  ;;  %v2788_v37 = vmul.f32 2.0, %v8219_v7  ;;  %v2755_v31 = vld [vmem:[#allocation20 + $0x8] sm:$0xff] }
 0x1e8   :  { %3224 = vst [vmem:[#allocation13 + $0xa8] sm:$0xff] %v3196_v23  ;;  %v3206_v54 = vpack.c.b8 %v3202_v55, %v3198_v60  ;;  %v3212_v42 = vpack.c.f32.eXmY %v3129_v10, %v3137_v53, 312  ;;  %v2789_v24 = vmul.f32 2.0, %v8222_v43  ;;  %v2790_v49 = vmul.f32 2.0, %v8229_v5  ;;  %v2756_v36 = vld [vmem:[#allocation20 + $0x10] sm:$0xff]  ;;  %v2757_v43 = vld [vmem:[#allocation20 + $0x18] sm:$0xff] }
 0x1e9   :  { %v6339_v47 = vadd.f32 -1.0, %v2786_v46  ;;  %v6340_v59 = vadd.f32 -1.0, %v2787_v3  ;;  %v6341_v56 = vadd.f32 -1.0, %v2788_v37  ;;  %v2791_v41 = vmul.f32 2.0, %v8232_v27  ;;  %v2758_v55 = vld [vmem:[#allocation20 + $0x20] sm:$0xff]  ;;  %v2759_v46 = vld [vmem:[#allocation20 + $0x28] sm:$0xff] }
 0x1ea   :  { %3225 = vst [vmem:[#allocation13 + $0xb0] sm:$0xff] %v3206_v54  ;;  %v3216_v14 = vpack.c.b8 %v3212_v42, %v3208_v1  ;;  %v6342_v35 = vadd.f32 -1.0, %v2789_v24  ;;  %v6343_v0 = vadd.f32 -1.0, %v2790_v49  ;;  %v2792_v7 = vmul.f32 2.0, %v8235_v21 }
 0x1eb   :  { %v2850_v60 = vadd.f32 %v6339_v47, %v2754_v38  ;;  %v2851_v63 = vadd.f32 %v6340_v59, %v2755_v31  ;;  %v2852_v23 = vadd.f32 %v6341_v56, %v2756_v36  ;;  %v6344_v5 = vadd.f32 -1.0, %v2791_v41  ;;  %v2760_v47 = vld [vmem:[#allocation20 + $0x30] sm:$0xff] }
 0x1ec   :  { %3226 = vst [vmem:[#allocation13 + $0xb8] sm:$0xff] %v3216_v14  ;;  %v2853_v10 = vadd.f32 %v6342_v35, %v2757_v43  ;;  %v2854_v53 = vadd.f32 %v6343_v0, %v2758_v55  ;;  %v6345_v27 = vadd.f32 -1.0, %v2792_v7  ;;  %v2793_v1 = vmul.f32 2.0, %v8238_v25  ;;  %v2761_v0 = vld [vmem:[#allocation20 + $0x38] sm:$0xff]  ;;  %v2762_v55 = vld [vmem:[#allocation20 + $0x40] sm:$0xff] }
 0x1ed   :  { %vm2882_vm0 = vcmp.gt.f32.partialorder %v2850_v60, 0.0  ;;  %vm2883_vm1 = vcmp.gt.f32.partialorder %v2851_v63, 0.0  ;;  %vm2884_vm2 = vcmp.gt.f32.partialorder %v2852_v23, 0.0  ;;  %v2855_v3 = vadd.f32 %v6344_v5, %v2759_v46 }
 0x1ee   :  { %v8525_v37 = vsel %vm2882_vm0, 1.0, %v10714_v28  ;;  %v8528_v21 = vsel %vm2883_vm1, 1.0, %v10714_v28  ;;  %v8531_v54 = vsel %vm2884_vm2, 1.0, %v10714_v28  ;;  %vm2885_vm3 = vcmp.gt.f32.partialorder %v2853_v10, 0.0 }
 0x1ef   :  { %v2978_v42 = vsub.f32 %v2850_v60, %v8525_v37  ;;  %v2979_v24 = vsub.f32 %v2851_v63, %v8528_v21  ;;  %v2980_v25 = vsub.f32 %v2852_v23, %v8531_v54  ;;  %v8537_v49 = vsel %vm2885_vm3, 1.0, %v10714_v28 }
 0x1f0   :  { %v2981_v59 = vsub.f32 %v2853_v10, %v8537_v49  ;;  %vm2886_vm4 = vcmp.gt.f32.partialorder %v2854_v53, 0.0  ;;  %vm2887_vm5 = vcmp.gt.f32.partialorder %v2855_v3, 0.0  ;;  %v2856_v56 = vadd.f32 %v6345_v27, %v2760_v47 }
 0x1f1   :  { %3010 = vst [vmem:[#allocation20] sm:$0xff] %v2978_v42  ;;  %3011 = vst [vmem:[#allocation20 + $0x8] sm:$0xff] %v2979_v24  ;;  %v8541_v41 = vsel %vm2886_vm4, 1.0, %v10714_v28  ;;  %v8544_v14 = vsel %vm2887_vm5, 1.0, %v10714_v28  ;;  %v6346_v38 = vadd.f32 -1.0, %v2793_v1  ;;  %v2794_v31 = vmul.f32 2.0, %v8261_v18 }
 0x1f2   :  { %3012 = vst [vmem:[#allocation20 + $0x10] sm:$0xff] %v2980_v25  ;;  %3013 = vst [vmem:[#allocation20 + $0x18] sm:$0xff] %v2981_v59  ;;  %v2982_v36 = vsub.f32 %v2854_v53, %v8541_v41  ;;  %v2983_v35 = vsub.f32 %v2855_v3, %v8544_v14  ;;  %vm2888_vm6 = vcmp.gt.f32.partialorder %v2856_v56, 0.0  ;;  %v2795_v7 = vmul.f32 2.0, %v8264_v62  ;;  %v2763_v62 = vld [vmem:[#allocation20 + $0x48] sm:$0xff]  ;;  %v2764_v42 = vld [vmem:[#allocation20 + $0x50] sm:$0xff] }
 0x1f3   :  { %v8551_v60 = vsel %vm2888_vm6, 1.0, %v10714_v28  ;;  %v2857_v63 = vadd.f32 %v6346_v38, %v2761_v0  ;;  %v6347_v23 = vadd.f32 -1.0, %v2794_v31  ;;  %v2796_v43 = vmul.f32 2.0, %v8267_v20  ;;  %v2765_v59 = vld [vmem:[#allocation20 + $0x58] sm:$0xff] }
 0x1f4   :  { %3014 = vst [vmem:[#allocation20 + $0x20] sm:$0xff] %v2982_v36  ;;  %3015 = vst [vmem:[#allocation20 + $0x28] sm:$0xff] %v2983_v35  ;;  %v2984_v18 = vsub.f32 %v2856_v56, %v8551_v60  ;;  %v6348_v5 = vadd.f32 -1.0, %v2795_v7  ;;  %v2797_v10 = vmul.f32 2.0, %v8270_v11  ;;  %v2798_v53 = vmul.f32 2.0, %v8277_v44  ;;  %v2766_v44 = vld [vmem:[#allocation20 + $0x60] sm:$0xff] }
 0x1f5   :  { %vm2889_vm7 = vcmp.gt.f32.partialorder %v2857_v63, 0.0  ;;  %v2858_v46 = vadd.f32 %v6347_v23, %v2762_v55  ;;  %v6349_v27 = vadd.f32 -1.0, %v2796_v43  ;;  %v2799_v1 = vmul.f32 2.0, %v8280_v34  ;;  %v2767_v36 = vld [vmem:[#allocation20 + $0x68] sm:$0xff] }
 0x1f6   :  { %3016 = vst [vmem:[#allocation20 + $0x30] sm:$0xff] %v2984_v18  ;;  %v8559_v3 = vsel %vm2889_vm7, 1.0, %v10714_v28  ;;  %v2859_v20 = vadd.f32 %v6348_v5, %v2763_v62  ;;  %v6350_v24 = vadd.f32 -1.0, %v2797_v10  ;;  %v6351_v25 = vadd.f32 -1.0, %v2798_v53 }
 0x1f7   :  { %v2985_v47 = vsub.f32 %v2857_v63, %v8559_v3  ;;  %vm2890_vm8 = vcmp.gt.f32.partialorder %v2858_v46, 0.0  ;;  %v2860_v11 = vadd.f32 %v6349_v27, %v2764_v42  ;;  %v6352_v56 = vadd.f32 -1.0, %v2799_v1 }
 0x1f8   :  { %v8563_v38 = vsel %vm2890_vm8, 1.0, %v10714_v28  ;;  %vm2891_vm9 = vcmp.gt.f32.partialorder %v2859_v20, 0.0  ;;  %v2861_v34 = vadd.f32 %v6350_v24, %v2765_v59  ;;  %v2862_v31 = vadd.f32 %v6351_v25, %v2766_v44 }
 0x1f9   :  { %3017 = vst [vmem:[#allocation20 + $0x38] sm:$0xff] %v2985_v47  ;;  %v2986_v35 = vsub.f32 %v2858_v46, %v8563_v38  ;;  %v8567_v0 = vsel %vm2891_vm9, 1.0, %v10714_v28  ;;  %vm2892_vm10 = vcmp.gt.f32.partialorder %v2860_v11, 0.0  ;;  %v2863_v7 = vadd.f32 %v6352_v56, %v2767_v36 }
 0x1fa   :  { %v2987_v63 = vsub.f32 %v2859_v20, %v8567_v0  ;;  %v8571_v23 = vsel %vm2892_vm10, 1.0, %v10714_v28  ;;  %vm2893_vm11 = vcmp.gt.f32.partialorder %v2861_v34, 0.0  ;;  %vm2894_vm12 = vcmp.gt.f32.partialorder %v2862_v31, 0.0 }
 0x1fb   :  { %3018 = vst [vmem:[#allocation20 + $0x40] sm:$0xff] %v2986_v35  ;;  %v2988_v43 = vsub.f32 %v2860_v11, %v8571_v23  ;;  %v8575_v18 = vsel %vm2893_vm11, 1.0, %v10714_v28  ;;  %v8578_v55 = vsel %vm2894_vm12, 1.0, %v10714_v28  ;;  %vm2895_vm13 = vcmp.gt.f32.partialorder %v2863_v7, 0.0 }
 0x1fc   :  { %3019 = vst [vmem:[#allocation20 + $0x48] sm:$0xff] %v2987_v63  ;;  %v2989_v5 = vsub.f32 %v2861_v34, %v8575_v18  ;;  %v2990_v10 = vsub.f32 %v2862_v31, %v8578_v55  ;;  %v8583_v53 = vsel %vm2895_vm13, 1.0, %v10714_v28  ;;  %v2800_v46 = vmul.f32 2.0, %v8283_v29  ;;  %v2768_v29 = vld [vmem:[#allocation20 + $0x70] sm:$0xff]  ;;  %v2770_v34 = vld [vmem:[#allocation20 + $0x80] sm:$0xff] }
 0x1fd   :  { %3020 = vst [vmem:[#allocation20 + $0x50] sm:$0xff] %v2988_v43  ;;  %v2991_v62 = vsub.f32 %v2863_v7, %v8583_v53  ;;  %v2801_v27 = vmul.f32 2.0, %v8286_v33  ;;  %v2802_v1 = vmul.f32 2.0, %v8309_v30  ;;  %v2803_v20 = vmul.f32 2.0, %v8312_v32  ;;  %v2769_v30 = vld [vmem:[#allocation20 + $0x78] sm:$0xff]  ;;  %v2771_v32 = vld [vmem:[#allocation20 + $0x88] sm:$0xff] }
 0x1fe   :  { %3021 = vst [vmem:[#allocation20 + $0x58] sm:$0xff] %v2989_v5  ;;  %3022 = vst [vmem:[#allocation20 + $0x60] sm:$0xff] %v2990_v10  ;;  %v6353_v42 = vadd.f32 -1.0, %v2800_v46  ;;  %v2804_v24 = vmul.f32 2.0, %v8315_v8  ;;  %v2805_v25 = vmul.f32 2.0, %v8318_v19  ;;  %v2806_v47 = vmul.f32 2.0, %v8325_v50 }
 0x1ff   :  { %3023 = vst [vmem:[#allocation20 + $0x68] sm:$0xff] %v2991_v62  ;;  %v6354_v11 = vadd.f32 -1.0, %v2801_v27  ;;  %v6355_v59 = vadd.f32 -1.0, %v2802_v1  ;;  %v6356_v44 = vadd.f32 -1.0, %v2803_v20  ;;  %v2807_v33 = vmul.f32 2.0, %v8328_v22  ;;  %v2772_v19 = vld [vmem:[#allocation20 + $0x90] sm:$0xff] }
 0x200   :  { %v2864_v56 = vadd.f32 %v6353_v42, %v2768_v29  ;;  %v6357_v31 = vadd.f32 -1.0, %v2804_v24  ;;  %v6358_v36 = vadd.f32 -1.0, %v2805_v25  ;;  %v6359_v35 = vadd.f32 -1.0, %v2806_v47  ;;  %v2773_v43 = vld [vmem:[#allocation20 + $0x98] sm:$0xff]  ;;  %v2774_v50 = vld [vmem:[#allocation20 + $0xa0] sm:$0xff]  ;;  %v2775_v29 = vld [vmem:[#allocation20 + $0xa8] sm:$0xff] }
 0x201   :  { %v2865_v7 = vadd.f32 %v6354_v11, %v2769_v30  ;;  %v2866_v8 = vadd.f32 %v6355_v59, %v2770_v34  ;;  %v2867_v63 = vadd.f32 %v6356_v44, %v2771_v32  ;;  %v6360_v5 = vadd.f32 -1.0, %v2807_v33 }
 0x202   :  { %vm2896_vm14 = vcmp.gt.f32.partialorder %v2864_v56, 0.0  ;;  %v2868_v10 = vadd.f32 %v6357_v31, %v2772_v19  ;;  %v2869_v46 = vadd.f32 %v6358_v36, %v2773_v43  ;;  %v2870_v62 = vadd.f32 %v6359_v35, %v2774_v50 }
 0x203   :  { %v8595_v22 = vsel %vm2896_vm14, 1.0, %v10714_v28  ;;  %vm2897_vm15 = vcmp.gt.f32.partialorder %v2865_v7, 0.0  ;;  %vm2898_vm0 = vcmp.gt.f32.partialorder %v2866_v8, 0.0  ;;  %vm2899_vm1 = vcmp.gt.f32.partialorder %v2867_v63, 0.0 }
 0x204   :  { %v2992_v27 = vsub.f32 %v2864_v56, %v8595_v22  ;;  %v8599_v1 = vsel %vm2897_vm15, 1.0, %v10714_v28  ;;  %v8602_v20 = vsel %vm2898_vm0, 1.0, %v10714_v28  ;;  %v8605_v42 = vsel %vm2899_vm1, 1.0, %v10714_v28 }
 0x205   :  { %v2993_v24 = vsub.f32 %v2865_v7, %v8599_v1  ;;  %v2994_v25 = vsub.f32 %v2866_v8, %v8602_v20  ;;  %v2995_v47 = vsub.f32 %v2867_v63, %v8605_v42  ;;  %vm2900_vm2 = vcmp.gt.f32.partialorder %v2868_v10, 0.0  ;;  %v2776_v63 = vld [vmem:[#allocation20 + $0xb0] sm:$0xff] }
 0x206   :  { %3024 = vst [vmem:[#allocation20 + $0x70] sm:$0xff] %v2992_v27  ;;  %v8611_v11 = vsel %vm2900_vm2, 1.0, %v10714_v28  ;;  %vm2901_vm3 = vcmp.gt.f32.partialorder %v2869_v46, 0.0  ;;  %vm2902_vm4 = vcmp.gt.f32.partialorder %v2870_v62, 0.0  ;;  %v2871_v59 = vadd.f32 %v6360_v5, %v2775_v29  ;;  %v2777_v5 = vld [vmem:[#allocation20 + $0xb8] sm:$0xff]  ;;  %v2778_v27 = vld [vmem:[#allocation20 + $0xc0] sm:$0xff] }
 0x207   :  { %3025 = vst [vmem:[#allocation20 + $0x78] sm:$0xff] %v2993_v24  ;;  %3026 = vst [vmem:[#allocation20 + $0x80] sm:$0xff] %v2994_v25  ;;  %v2996_v44 = vsub.f32 %v2868_v10, %v8611_v11  ;;  %v8615_v33 = vsel %vm2901_vm3, 1.0, %v10714_v28  ;;  %v8618_v56 = vsel %vm2902_vm4, 1.0, %v10714_v28  ;;  %v2808_v30 = vmul.f32 2.0, %v8331_v13 }
 0x208   :  { %3027 = vst [vmem:[#allocation20 + $0x88] sm:$0xff] %v2995_v47  ;;  %v2997_v34 = vsub.f32 %v2869_v46, %v8615_v33  ;;  %v2998_v32 = vsub.f32 %v2870_v62, %v8618_v56  ;;  %vm2903_vm5 = vcmp.gt.f32.partialorder %v2871_v59, 0.0  ;;  %v2809_v31 = vmul.f32 2.0, %v8334_v58 }
 0x209   :  { %3028 = vst [vmem:[#allocation20 + $0x90] sm:$0xff] %v2996_v44  ;;  %v8625_v36 = vsel %vm2903_vm5, 1.0, %v10714_v28  ;;  %v6361_v35 = vadd.f32 -1.0, %v2808_v30  ;;  %v2810_v7 = vmul.f32 2.0, %v8357_v40  ;;  %v2811_v8 = vmul.f32 2.0, %v8360_v15  ;;  %v2779_v15 = vld [vmem:[#allocation20 + $0xc8] sm:$0xff] }
 0x20a   :  { %3029 = vst [vmem:[#allocation20 + $0x98] sm:$0xff] %v2997_v34  ;;  %3030 = vst [vmem:[#allocation20 + $0xa0] sm:$0xff] %v2998_v32  ;;  %v2999_v13 = vsub.f32 %v2871_v59, %v8625_v36  ;;  %v6362_v19 = vadd.f32 -1.0, %v2809_v31  ;;  %v2812_v43 = vmul.f32 2.0, %v8363_v4  ;;  %v2813_v50 = vmul.f32 2.0, %v8366_v45  ;;  %v2780_v4 = vld [vmem:[#allocation20 + $0xd0] sm:$0xff] }
 0x20b   :  { %v2872_v58 = vadd.f32 %v6361_v35, %v2776_v63  ;;  %v6363_v10 = vadd.f32 -1.0, %v2810_v7  ;;  %v6364_v46 = vadd.f32 -1.0, %v2811_v8  ;;  %v2814_v62 = vmul.f32 2.0, %v8381_v48  ;;  %v2781_v44 = vld [vmem:[#allocation20 + $0xd8] sm:$0xff] }
 0x20c   :  { %3031 = vst [vmem:[#allocation20 + $0xa8] sm:$0xff] %v2999_v13  ;;  %v2873_v40 = vadd.f32 %v6362_v19, %v2777_v5  ;;  %v6365_v24 = vadd.f32 -1.0, %v2812_v43  ;;  %v6366_v25 = vadd.f32 -1.0, %v2813_v50  ;;  %v2815_v47 = vmul.f32 2.0, %v8384_v2  ;;  %v2782_v19 = vld [vmem:[#allocation20 + $0xe0] sm:$0xff] }
 0x20d   :  { %vm2904_vm6 = vcmp.gt.f32.partialorder %v2872_v58, 0.0  ;;  %v2874_v29 = vadd.f32 %v6363_v10, %v2778_v27  ;;  %v2875_v59 = vadd.f32 %v6364_v46, %v2779_v15  ;;  %v6367_v45 = vadd.f32 -1.0, %v2814_v62  ;;  %v2783_v46 = vld [vmem:[#allocation20 + $0xe8] sm:$0xff] }
 0x20e   :  { %v8635_v30 = vsel %vm2904_vm6, 1.0, %v10714_v28  ;;  %vm2905_vm7 = vcmp.gt.f32.partialorder %v2873_v40, 0.0  ;;  %v2876_v34 = vadd.f32 %v6365_v24, %v2780_v4  ;;  %v2877_v48 = vadd.f32 %v6366_v25, %v2781_v44 }
 0x20f   :  { %v3000_v32 = vsub.f32 %v2872_v58, %v8635_v30  ;;  %v8639_v31 = vsel %vm2905_vm7, 1.0, %v10714_v28  ;;  %vm2906_vm8 = vcmp.gt.f32.partialorder %v2874_v29, 0.0  ;;  %vm2907_vm9 = vcmp.gt.f32.partialorder %v2875_v59, 0.0 }
 0x210   :  { %v3001_v2 = vsub.f32 %v2873_v40, %v8639_v31  ;;  %v8643_v35 = vsel %vm2906_vm8, 1.0, %v10714_v28  ;;  %v8646_v7 = vsel %vm2907_vm9, 1.0, %v10714_v28  ;;  %vm2908_vm10 = vcmp.gt.f32.partialorder %v2876_v34, 0.0 }
 0x211   :  { %3032 = vst [vmem:[#allocation20 + $0xb0] sm:$0xff] %v3000_v32  ;;  %v3002_v8 = vsub.f32 %v2874_v29, %v8643_v35  ;;  %v3003_v13 = vsub.f32 %v2875_v59, %v8646_v7  ;;  %v8651_v63 = vsel %vm2908_vm10, 1.0, %v10714_v28  ;;  %vm2909_vm11 = vcmp.gt.f32.partialorder %v2877_v48, 0.0  ;;  %v2784_v29 = vld [vmem:[#allocation20 + $0xf0] sm:$0xff]  ;;  %v2785_v59 = vld [vmem:[#allocation20 + $0xf8] sm:$0xff]  ;;  %v10771_v32 = vld [vmem:[#allocation35_spill] sm:$0xff] }
 0x212   :  { %3033 = vst [vmem:[#allocation20 + $0xb8] sm:$0xff] %v3001_v2  ;;  %v3004_v43 = vsub.f32 %v2876_v34, %v8651_v63  ;;  %v8655_v50 = vsel %vm2909_vm11, 1.0, %v10714_v28  ;;  %v2878_v58 = vadd.f32 %v6367_v45, %v2782_v19  ;;  %v6368_v5 = vadd.f32 -1.0, %v2815_v47 }
 0x213   :  { %3034 = vst [vmem:[#allocation20 + $0xc0] sm:$0xff] %v3002_v8  ;;  %3035 = vst [vmem:[#allocation20 + $0xc8] sm:$0xff] %v3003_v13  ;;  %v3005_v10 = vsub.f32 %v2877_v48, %v8655_v50  ;;  %v2816_v62 = vmul.f32 2.0, %v8387_v16  ;;  %v2817_v40 = vmul.f32 2.0, %v8390_v6  ;;  %v8662_v27 = vmul.f32 %v8525_v37, %v8372_v52  ;;  %v10773_v13 = vld [vmem:[#allocation37_spill] sm:$0xff] }
 0x214   :  { %3036 = vst [vmem:[#allocation20 + $0xd0] sm:$0xff] %v3004_v43  ;;  %vm2910_vm12 = vcmp.gt.f32.partialorder %v2878_v58, 0.0  ;;  %v2879_v15 = vadd.f32 %v6368_v5, %v2783_v46  ;;  %v8666_v24 = vmul.f32 %v8528_v21, %v8374_v9  ;;  %v8670_v25 = vmul.f32 %v8531_v54, %v8376_v12  ;;  %v10776_v5 = vld [vmem:[#allocation40_spill] sm:$0xff] }
 0x215   :  { %3037 = vst [vmem:[#allocation20 + $0xd8] sm:$0xff] %v3005_v10  ;;  %v6399_v16 = vsel %vm2910_vm12, 1.0, %v10714_v28  ;;  %v6369_v47 = vadd.f32 -1.0, %v2816_v62  ;;  %v6370_v6 = vadd.f32 -1.0, %v2817_v40  ;;  %v8675_v52 = vmul.f32 %v8537_v49, %v8378_v39  ;;  %v8744_v10 = vld [vmem:[#allocation2 + $0xc0] sm:$0xff] }
 0x216   :  { %v3006_v37 = vsub.f32 %v2878_v58, %v6399_v16  ;;  %vm2911_vm13 = vcmp.gt.f32.partialorder %v2879_v15, 0.0  ;;  %v8679_v9 = vmul.f32 %v8541_v41, %v8392_v17  ;;  %v8683_v12 = vmul.f32 %v8544_v14, %v8394_v51  ;;  %v10766_v51 = vld [vmem:[#allocation30_spill] sm:$0xff]  ;;  %v10767_v14 = vld [vmem:[#allocation31_spill] sm:$0xff] }
 0x217   :  { %v6400_v21 = vsel %vm2911_vm13, 1.0, %v10714_v28  ;;  %v2880_v54 = vadd.f32 %v6369_v47, %v2784_v29  ;;  %v2881_v4 = vadd.f32 %v6370_v6, %v2785_v59  ;;  %v8688_v39 = vmul.f32 %v8551_v60, %v8396_v26  ;;  %v10768_v60 = vld [vmem:[#allocation32_spill] sm:$0xff]  ;;  %v8766_v6 = vld [vmem:[#allocation2 + $0xd8] sm:$0xff] }
 0x218   :  { %3038 = vst [vmem:[#allocation20 + $0xe0] sm:$0xff] %v3006_v37  ;;  %v3007_v49 = vsub.f32 %v2879_v15, %v6400_v21  ;;  %v8692_v44 = vmul.f32 %v8559_v3, %v8398_v61  ;;  %v8696_v17 = vmul.f32 %v8563_v38, %v8404_v57  ;;  %v8700_v41 = vmul.f32 %v8567_v0, %v10766_v51  ;;  %v10769_v3 = vld [vmem:[#allocation33_spill] sm:$0xff]  ;;  %v10770_v0 = vld [vmem:[#allocation34_spill] sm:$0xff]  ;;  %v8764_v47 = vld [vmem:[#allocation2 + $0xd0] sm:$0xff] }
 0x219   :  { %vm2912_vm14 = vcmp.gt.f32.partialorder %v2880_v54, 0.0  ;;  %vm2913_vm15 = vcmp.gt.f32.partialorder %v2881_v4, 0.0  ;;  %v8704_v26 = vmul.f32 %v8571_v23, %v10767_v14  ;;  %v8708_v45 = vmul.f32 %v8575_v18, %v10768_v60  ;;  %v10772_v18 = vld [vmem:[#allocation36_spill] sm:$0xff]  ;;  %v8768_v37 = vld [vmem:[#allocation2 + $0xe0] sm:$0xff]  ;;  %v8790_v14 = vld [vmem:[#allocation2 + $0xf8] sm:$0xff] }
 0x21a   :  { %3039 = vst [vmem:[#allocation20 + $0xe8] sm:$0xff] %v3007_v49  ;;  %v6401_v61 = vsel %vm2912_vm14, 1.0, %v10714_v28  ;;  %v6402_v57 = vsel %vm2913_vm15, 1.0, %v10714_v28  ;;  %v8714_v38 = vmul.f32 %v8578_v55, %v10769_v3  ;;  %v8718_v34 = vmul.f32 %v8583_v53, %v10770_v0  ;;  %v10774_v55 = vld [vmem:[#allocation38_spill] sm:$0xff]  ;;  %v10775_v53 = vld [vmem:[#allocation39_spill] sm:$0xff]  ;;  %v8788_v51 = vld [vmem:[#allocation2 + $0xf0] sm:$0xff] }
 0x21b   :  { %v3008_v48 = vsub.f32 %v2880_v54, %v6401_v61  ;;  %v3009_v23 = vsub.f32 %v2881_v4, %v6402_v57  ;;  %v8722_v2 = vmul.f32 %v8595_v22, %v10771_v32  ;;  %v8726_v8 = vmul.f32 %v8599_v1, %v10772_v18  ;;  %v8746_v1 = vld [vmem:[#allocation2 + $0xc8] sm:$0xff]  ;;  %v10792_v3 = vld [vmem:[#allocation50_spill] sm:$0xff] }
 0x21c   :  { %v8730_v19 = vmul.f32 %v8602_v20, %v10773_v13  ;;  %v8734_v43 = vmul.f32 %v8605_v42, %v10774_v55  ;;  %v8738_v58 = vmul.f32 %v8611_v11, %v10775_v53  ;;  %v8742_v22 = vmul.f32 %v8615_v33, %v10776_v5  ;;  %v10777_v20 = vld [vmem:[#allocation41_spill] sm:$0xff]  ;;  %v10778_v42 = vld [vmem:[#allocation42_spill] sm:$0xff]  ;;  %v10779_v11 = vld [vmem:[#allocation43_spill] sm:$0xff] }
 0x21d   :  { %3040 = vst [vmem:[#allocation20 + $0xf0] sm:$0xff] %v3008_v48  ;;  %3041 = vst [vmem:[#allocation20 + $0xf8] sm:$0xff] %v3009_v23  ;;  %v8750_v46 = vmul.f32 %v8618_v56, %v10777_v20  ;;  %v8754_v62 = vmul.f32 %v8625_v36, %v10778_v42  ;;  %v8758_v40 = vmul.f32 %v8635_v30, %v10779_v11  ;;  %v10780_v33 = vld [vmem:[#allocation44_spill] sm:$0xff]  ;;  %v10782_v56 = vld [vmem:[#allocation45_spill] sm:$0xff]  ;;  %v3237_v18 = vunpack.c.0.s8 %v8746_v1 }
 0x21e   :  { %v8762_v15 = vmul.f32 %v8639_v31, %v10780_v33  ;;  %v8772_v29 = vmul.f32 %v8643_v35, %v10782_v56  ;;  %v10784_v36 = vld [vmem:[#allocation46_spill] sm:$0xff]  ;;  %v10786_v30 = vld [vmem:[#allocation47_spill] sm:$0xff]  ;;  %v10788_v31 = vld [vmem:[#allocation48_spill] sm:$0xff]  ;;  %v3238_v55 = vunpack.c.0.s8 %v8764_v47  ;;  %v3243_v42 = vunpack.c.0.s8 %v8790_v14 }
 0x21f   :  { %v8776_v59 = vmul.f32 %v8646_v7, %v10784_v36  ;;  %v8780_v54 = vmul.f32 %v8651_v63, %v10786_v30  ;;  %v8784_v4 = vmul.f32 %v8655_v50, %v10788_v31  ;;  %v8786_v49 = vld [vmem:[#allocation2 + $0xe8] sm:$0xff]  ;;  %v10790_v35 = vld [vmem:[#allocation49_spill] sm:$0xff]  ;;  %v8796_v7 = vmul.f32 %v6400_v21, %v10792_v3  ;;  %v10796_v63 = vld [vmem:[#allocation52_spill] sm:$0xff] }
 0x220   :  { %10781 = vst [vmem:[#allocation30_spill] sm:$0xff] %v8762_v15  ;;  %10783 = vst [vmem:[#allocation31_spill] sm:$0xff] %v8772_v29  ;;  %v8793_v60 = vmul.f32 %v6399_v16, %v10790_v35  ;;  %v10794_v0 = vld [vmem:[#allocation51_spill] sm:$0xff]  ;;  %v8802_v23 = vmul.f32 %v6402_v57, %v10796_v63  ;;  %v3236_v50 = vunpack.c.0.s8 %v8744_v10  ;;  %v3300_v32 = vld [vmem:[#allocation16] sm:$0xff]  ;;  %v3239_v16 = vunpack.c.0.s8 %v8766_v6 }
 0x221   :  { %10785 = vst [vmem:[#allocation32_spill] sm:$0xff] %v8776_v59  ;;  %10787 = vst [vmem:[#allocation33_spill] sm:$0xff] %v8780_v54  ;;  %v8799_v48 = vmul.f32 %v6401_v61, %v10794_v0  ;;  %v3301_v13 = vld [vmem:[#allocation16 + $0x8] sm:$0xff]  ;;  %v3302_v53 = vld [vmem:[#allocation16 + $0x10] sm:$0xff]  ;;  %v3240_v21 = vunpack.c.0.s8 %v8768_v37  ;;  %v3241_v61 = vunpack.c.0.s8 %v8786_v49  ;;  %v3242_v57 = vunpack.c.0.s8 %v8788_v51 }
 0x222   :  { %10789 = vst [vmem:[#allocation34_spill] sm:$0xff] %v8784_v4  ;;  %10791 = vst [vmem:[#allocation35_spill] sm:$0xff] %v8793_v60  ;;  %v3303_v5 = vld [vmem:[#allocation16 + $0x18] sm:$0xff]  ;;  %v3304_v20 = vld [vmem:[#allocation16 + $0x20] sm:$0xff]  ;;  %v3268_v11 = vcvt.s32.f32 %v3236_v50  ;;  %v3269_v33 = vcvt.s32.f32 %v3237_v18  ;;  %v3270_v56 = vcvt.s32.f32 %v3238_v55  ;;  %v3271_v36 = vcvt.s32.f32 %v3239_v16 }
 0x223   :  { %10793 = vst [vmem:[#allocation36_spill] sm:$0xff] %v8796_v7  ;;  %10795 = vst [vmem:[#allocation37_spill] sm:$0xff] %v8799_v48  ;;  %v3305_v30 = vld [vmem:[#allocation16 + $0x28] sm:$0xff]  ;;  %v3306_v31 = vld [vmem:[#allocation16 + $0x30] sm:$0xff]  ;;  %v3272_v3 = vcvt.s32.f32 %v3240_v21  ;;  %v3273_v0 = vcvt.s32.f32 %v3241_v61  ;;  %v3274_v63 = vcvt.s32.f32 %v3242_v57  ;;  %v3246_v57 = vunpack.c.1.s8 %v8764_v47 }
 0x224   :  { %10797 = vst [vmem:[#allocation38_spill] sm:$0xff] %v8802_v23  ;;  %v3307_v35 = vld [vmem:[#allocation16 + $0x38] sm:$0xff]  ;;  %v3275_v23 = vcvt.s32.f32 %v3243_v42  ;;  %v3332_v48 = vadd.f32 %v3300_v32, %v3268_v11  ;;  %v3333_v7 = vadd.f32 %v3301_v13, %v3269_v33  ;;  %v3334_v60 = vadd.f32 %v3302_v53, %v3270_v56  ;;  %v3308_v53 = vld [vmem:[#allocation16 + $0x40] sm:$0xff]  ;;  %v3310_v11 = vld [vmem:[#allocation16 + $0x50] sm:$0xff] }
 0x225   :  { %v3335_v4 = vadd.f32 %v3303_v5, %v3271_v36  ;;  %v3336_v54 = vadd.f32 %v3304_v20, %v3272_v3  ;;  %v3337_v59 = vadd.f32 %v3305_v30, %v3273_v0  ;;  %v3338_v29 = vadd.f32 %v3306_v31, %v3274_v63  ;;  %v3309_v20 = vld [vmem:[#allocation16 + $0x48] sm:$0xff]  ;;  %v3311_v33 = vld [vmem:[#allocation16 + $0x58] sm:$0xff]  ;;  %v3312_v36 = vld [vmem:[#allocation16 + $0x60] sm:$0xff] }
 0x226   :  { %v3339_v15 = vadd.f32 %v3307_v35, %v3275_v23  ;;  %v3396_v50 = vadd.f32 %v3332_v48, %v8662_v27  ;;  %v3397_v18 = vadd.f32 %v3333_v7, %v8666_v24  ;;  %v3398_v55 = vadd.f32 %v3334_v60, %v8670_v25 }
 0x227   :  { %v3399_v16 = vadd.f32 %v3335_v4, %v8675_v52  ;;  %v3400_v21 = vadd.f32 %v3336_v54, %v8679_v9  ;;  %v3401_v61 = vadd.f32 %v3337_v59, %v8683_v12  ;;  %v3402_v32 = vadd.f32 %v3338_v29, %v8688_v39 }
 0x228   :  { %v3403_v13 = vadd.f32 %v3339_v15, %v8692_v44  ;;  %vm3428_vm0 = vcmp.gt.f32.partialorder %v3396_v50, 0.0  ;;  %vm3429_vm1 = vcmp.gt.f32.partialorder %v3397_v18, 0.0  ;;  %vm3430_vm2 = vcmp.gt.f32.partialorder %v3398_v55, 0.0 }
 0x229   :  { %vm3431_vm3 = vcmp.gt.f32.partialorder %v3399_v16, 0.0  ;;  %v8821_v27 = vsel %vm3428_vm0, 1.0, %v10714_v28  ;;  %v8824_v24 = vsel %vm3429_vm1, 1.0, %v10714_v28  ;;  %v8827_v25 = vsel %vm3430_vm2, 1.0, %v10714_v28 }
 0x22a   :  { %v8830_v52 = vsel %vm3431_vm3, 1.0, %v10714_v28  ;;  %v3524_v9 = vsub.f32 %v3396_v50, %v8821_v27  ;;  %v3525_v12 = vsub.f32 %v3397_v18, %v8824_v24  ;;  %v3526_v39 = vsub.f32 %v3398_v55, %v8827_v25  ;;  %v3313_v18 = vld [vmem:[#allocation16 + $0x68] sm:$0xff]  ;;  %v3314_v55 = vld [vmem:[#allocation16 + $0x70] sm:$0xff] }
 0x22b   :  { %v3527_v44 = vsub.f32 %v3399_v16, %v8830_v52  ;;  %vm3432_vm4 = vcmp.gt.f32.partialorder %v3400_v21, 0.0  ;;  %vm3433_vm5 = vcmp.gt.f32.partialorder %v3401_v61, 0.0  ;;  %vm3434_vm6 = vcmp.gt.f32.partialorder %v3402_v32, 0.0  ;;  %v3315_v16 = vld [vmem:[#allocation16 + $0x78] sm:$0xff] }
 0x22c   :  { %vm3435_vm7 = vcmp.gt.f32.partialorder %v3403_v13, 0.0  ;;  %3556 = vst [vmem:[#allocation16] sm:$0xff] %v3524_v9  ;;  %3557 = vst [vmem:[#allocation16 + $0x8] sm:$0xff] %v3525_v12  ;;  %v8837_v15 = vsel %vm3432_vm4, 1.0, %v10714_v28  ;;  %v8840_v29 = vsel %vm3433_vm5, 1.0, %v10714_v28  ;;  %v8843_v59 = vsel %vm3434_vm6, 1.0, %v10714_v28 }
 0x22d   :  { %3558 = vst [vmem:[#allocation16 + $0x10] sm:$0xff] %v3526_v39  ;;  %3559 = vst [vmem:[#allocation16 + $0x18] sm:$0xff] %v3527_v44  ;;  %v8846_v54 = vsel %vm3435_vm7, 1.0, %v10714_v28  ;;  %v3528_v4 = vsub.f32 %v3400_v21, %v8837_v15  ;;  %v3529_v60 = vsub.f32 %v3401_v61, %v8840_v29  ;;  %v3530_v7 = vsub.f32 %v3402_v32, %v8843_v59 }
 0x22e   :  { %v3531_v48 = vsub.f32 %v3403_v13, %v8846_v54  ;;  %v3244_v23 = vunpack.c.1.s8 %v8744_v10  ;;  %v3245_v5 = vunpack.c.1.s8 %v8746_v1  ;;  %v3247_v42 = vunpack.c.1.s8 %v8766_v6 }
 0x22f   :  { %3560 = vst [vmem:[#allocation16 + $0x20] sm:$0xff] %v3528_v4  ;;  %3561 = vst [vmem:[#allocation16 + $0x28] sm:$0xff] %v3529_v60  ;;  %v3248_v56 = vunpack.c.1.s8 %v8768_v37  ;;  %v3249_v30 = vunpack.c.1.s8 %v8786_v49  ;;  %v3250_v31 = vunpack.c.1.s8 %v8788_v51  ;;  %v3251_v35 = vunpack.c.1.s8 %v8790_v14 }
 0x230   :  { %3562 = vst [vmem:[#allocation16 + $0x30] sm:$0xff] %v3530_v7  ;;  %3563 = vst [vmem:[#allocation16 + $0x38] sm:$0xff] %v3531_v48  ;;  %v3276_v3 = vcvt.s32.f32 %v3244_v23  ;;  %v3277_v0 = vcvt.s32.f32 %v3245_v5  ;;  %v3278_v63 = vcvt.s32.f32 %v3246_v57  ;;  %v3279_v50 = vcvt.s32.f32 %v3247_v42 }
 0x231   :  { %v3280_v21 = vcvt.s32.f32 %v3248_v56  ;;  %v3281_v61 = vcvt.s32.f32 %v3249_v30  ;;  %v3282_v32 = vcvt.s32.f32 %v3250_v31  ;;  %v3283_v13 = vcvt.s32.f32 %v3251_v35 }
 0x232   :  { %v3340_v9 = vadd.f32 %v3308_v53, %v3276_v3  ;;  %v3341_v12 = vadd.f32 %v3309_v20, %v3277_v0  ;;  %v3342_v39 = vadd.f32 %v3310_v11, %v3278_v63  ;;  %v3343_v44 = vadd.f32 %v3311_v33, %v3279_v50 }
 0x233   :  { %v3344_v4 = vadd.f32 %v3312_v36, %v3280_v21  ;;  %v3345_v60 = vadd.f32 %v3313_v18, %v3281_v61  ;;  %v3346_v7 = vadd.f32 %v3314_v55, %v3282_v32  ;;  %v3347_v48 = vadd.f32 %v3315_v16, %v3283_v13  ;;  %v3316_v18 = vld [vmem:[#allocation16 + $0x80] sm:$0xff]  ;;  %v3317_v16 = vld [vmem:[#allocation16 + $0x88] sm:$0xff]  ;;  %v3318_v32 = vld [vmem:[#allocation16 + $0x90] sm:$0xff] }
 0x234   :  { %v3404_v23 = vadd.f32 %v3340_v9, %v8696_v17  ;;  %v3405_v5 = vadd.f32 %v3341_v12, %v8700_v41  ;;  %v3406_v57 = vadd.f32 %v3342_v39, %v8704_v26  ;;  %v3407_v42 = vadd.f32 %v3343_v44, %v8708_v45  ;;  %v3319_v13 = vld [vmem:[#allocation16 + $0x98] sm:$0xff]  ;;  %v3320_v12 = vld [vmem:[#allocation16 + $0xa0] sm:$0xff] }
 0x235   :  { %v3408_v56 = vadd.f32 %v3344_v4, %v8714_v38  ;;  %v3409_v30 = vadd.f32 %v3345_v60, %v8718_v34  ;;  %v3410_v53 = vadd.f32 %v3346_v7, %v8722_v2  ;;  %v3411_v20 = vadd.f32 %v3347_v48, %v8726_v8 }
 0x236   :  { %vm3436_vm8 = vcmp.gt.f32.partialorder %v3404_v23, 0.0  ;;  %vm3437_vm9 = vcmp.gt.f32.partialorder %v3405_v5, 0.0  ;;  %vm3438_vm10 = vcmp.gt.f32.partialorder %v3406_v57, 0.0  ;;  %vm3439_vm11 = vcmp.gt.f32.partialorder %v3407_v42, 0.0 }
 0x237   :  { %v8869_v17 = vsel %vm3436_vm8, 1.0, %v10714_v28  ;;  %v8872_v41 = vsel %vm3437_vm9, 1.0, %v10714_v28  ;;  %v8875_v26 = vsel %vm3438_vm10, 1.0, %v10714_v28  ;;  %v8878_v45 = vsel %vm3439_vm11, 1.0, %v10714_v28 }
 0x238   :  { %v3532_v38 = vsub.f32 %v3404_v23, %v8869_v17  ;;  %v3533_v34 = vsub.f32 %v3405_v5, %v8872_v41  ;;  %v3534_v2 = vsub.f32 %v3406_v57, %v8875_v26  ;;  %v3535_v8 = vsub.f32 %v3407_v42, %v8878_v45  ;;  %v3321_v5 = vld [vmem:[#allocation16 + $0xa8] sm:$0xff]  ;;  %v3322_v57 = vld [vmem:[#allocation16 + $0xb0] sm:$0xff]  ;;  %v3323_v42 = vld [vmem:[#allocation16 + $0xb8] sm:$0xff] }
 0x239   :  { %vm3440_vm12 = vcmp.gt.f32.partialorder %v3408_v56, 0.0  ;;  %vm3441_vm13 = vcmp.gt.f32.partialorder %v3409_v30, 0.0  ;;  %vm3442_vm14 = vcmp.gt.f32.partialorder %v3410_v53, 0.0  ;;  %vm3443_vm15 = vcmp.gt.f32.partialorder %v3411_v20, 0.0 }
 0x23a   :  { %3564 = vst [vmem:[#allocation16 + $0x40] sm:$0xff] %v3532_v38  ;;  %3565 = vst [vmem:[#allocation16 + $0x48] sm:$0xff] %v3533_v34  ;;  %v8885_v11 = vsel %vm3440_vm12, 1.0, %v10714_v28  ;;  %v8888_v33 = vsel %vm3441_vm13, 1.0, %v10714_v28  ;;  %v8891_v36 = vsel %vm3442_vm14, 1.0, %v10714_v28  ;;  %v8894_v31 = vsel %vm3443_vm15, 1.0, %v10714_v28 }
 0x23b   :  { %3566 = vst [vmem:[#allocation16 + $0x50] sm:$0xff] %v3534_v2  ;;  %3567 = vst [vmem:[#allocation16 + $0x58] sm:$0xff] %v3535_v8  ;;  %v3536_v35 = vsub.f32 %v3408_v56, %v8885_v11  ;;  %v3537_v3 = vsub.f32 %v3409_v30, %v8888_v33  ;;  %v3538_v0 = vsub.f32 %v3410_v53, %v8891_v36  ;;  %v3252_v50 = vunpack.c.2.s8 %v8744_v10 }
 0x23c   :  { %v3539_v63 = vsub.f32 %v3411_v20, %v8894_v31  ;;  %v3253_v55 = vunpack.c.2.s8 %v8746_v1  ;;  %v3254_v21 = vunpack.c.2.s8 %v8764_v47  ;;  %v3255_v61 = vunpack.c.2.s8 %v8766_v6 }
 0x23d   :  { %3568 = vst [vmem:[#allocation16 + $0x60] sm:$0xff] %v3536_v35  ;;  %3569 = vst [vmem:[#allocation16 + $0x68] sm:$0xff] %v3537_v3  ;;  %v3256_v9 = vunpack.c.2.s8 %v8768_v37  ;;  %v3257_v39 = vunpack.c.2.s8 %v8786_v49  ;;  %v3258_v44 = vunpack.c.2.s8 %v8788_v51  ;;  %v3259_v4 = vunpack.c.2.s8 %v8790_v14 }
 0x23e   :  { %3570 = vst [vmem:[#allocation16 + $0x70] sm:$0xff] %v3538_v0  ;;  %3571 = vst [vmem:[#allocation16 + $0x78] sm:$0xff] %v3539_v63  ;;  %v3284_v60 = vcvt.s32.f32 %v3252_v50  ;;  %v3285_v7 = vcvt.s32.f32 %v3253_v55  ;;  %v3286_v48 = vcvt.s32.f32 %v3254_v21  ;;  %v3287_v23 = vcvt.s32.f32 %v3255_v61 }
 0x23f   :  { %v3288_v56 = vcvt.s32.f32 %v3256_v9  ;;  %v3289_v30 = vcvt.s32.f32 %v3257_v39  ;;  %v3290_v53 = vcvt.s32.f32 %v3258_v44  ;;  %v3291_v20 = vcvt.s32.f32 %v3259_v4 }
 0x240   :  { %v3348_v38 = vadd.f32 %v3316_v18, %v3284_v60  ;;  %v3349_v34 = vadd.f32 %v3317_v16, %v3285_v7  ;;  %v3350_v2 = vadd.f32 %v3318_v32, %v3286_v48  ;;  %v3351_v8 = vadd.f32 %v3319_v13, %v3287_v23  ;;  %v10798_v16 = vld [vmem:[#allocation30_spill] sm:$0xff] }
 0x241   :  { %v3352_v35 = vadd.f32 %v3320_v12, %v3288_v56  ;;  %v3353_v3 = vadd.f32 %v3321_v5, %v3289_v30  ;;  %v3354_v0 = vadd.f32 %v3322_v57, %v3290_v53  ;;  %v3355_v63 = vadd.f32 %v3323_v42, %v3291_v20  ;;  %v3324_v42 = vld [vmem:[#allocation16 + $0xc0] sm:$0xff]  ;;  %v3325_v30 = vld [vmem:[#allocation16 + $0xc8] sm:$0xff] }
 0x242   :  { %v3412_v50 = vadd.f32 %v3348_v38, %v8730_v19  ;;  %v3413_v55 = vadd.f32 %v3349_v34, %v8734_v43  ;;  %v3414_v21 = vadd.f32 %v3350_v2, %v8738_v58  ;;  %v3415_v61 = vadd.f32 %v3351_v8, %v8742_v22  ;;  %v3326_v38 = vld [vmem:[#allocation16 + $0xd0] sm:$0xff]  ;;  %v3327_v34 = vld [vmem:[#allocation16 + $0xd8] sm:$0xff]  ;;  %v3328_v8 = vld [vmem:[#allocation16 + $0xe0] sm:$0xff] }
 0x243   :  { %v3416_v9 = vadd.f32 %v3352_v35, %v8750_v46  ;;  %v3417_v39 = vadd.f32 %v3353_v3, %v8754_v62  ;;  %v3418_v18 = vadd.f32 %v3354_v0, %v8758_v40  ;;  %v3419_v32 = vadd.f32 %v3355_v63, %v10798_v16 }
 0x244   :  { %vm3444_vm0 = vcmp.gt.f32.partialorder %v3412_v50, 0.0  ;;  %vm3445_vm1 = vcmp.gt.f32.partialorder %v3413_v55, 0.0  ;;  %vm3446_vm2 = vcmp.gt.f32.partialorder %v3414_v21, 0.0  ;;  %vm3447_vm3 = vcmp.gt.f32.partialorder %v3415_v61, 0.0 }
 0x245   :  { %v8917_v19 = vsel %vm3444_vm0, 1.0, %v10714_v28  ;;  %v8920_v43 = vsel %vm3445_vm1, 1.0, %v10714_v28  ;;  %v8923_v58 = vsel %vm3446_vm2, 1.0, %v10714_v28  ;;  %v8926_v22 = vsel %vm3447_vm3, 1.0, %v10714_v28 }
 0x246   :  { %v3540_v46 = vsub.f32 %v3412_v50, %v8917_v19  ;;  %v3541_v62 = vsub.f32 %v3413_v55, %v8920_v43  ;;  %v3542_v40 = vsub.f32 %v3414_v21, %v8923_v58  ;;  %v3543_v13 = vsub.f32 %v3415_v61, %v8926_v22  ;;  %v3330_v50 = vld [vmem:[#allocation16 + $0xf0] sm:$0xff]  ;;  %v3331_v55 = vld [vmem:[#allocation16 + $0xf8] sm:$0xff] }
 0x247   :  { %vm3448_vm4 = vcmp.gt.f32.partialorder %v3416_v9, 0.0  ;;  %vm3449_vm5 = vcmp.gt.f32.partialorder %v3417_v39, 0.0  ;;  %vm3450_vm6 = vcmp.gt.f32.partialorder %v3418_v18, 0.0  ;;  %vm3451_vm7 = vcmp.gt.f32.partialorder %v3419_v32, 0.0 }
 0x248   :  { %3572 = vst [vmem:[#allocation16 + $0x80] sm:$0xff] %v3540_v46  ;;  %3573 = vst [vmem:[#allocation16 + $0x88] sm:$0xff] %v3541_v62  ;;  %v8933_v12 = vsel %vm3448_vm4, 1.0, %v10714_v28  ;;  %v8936_v44 = vsel %vm3449_vm5, 1.0, %v10714_v28  ;;  %v8939_v4 = vsel %vm3450_vm6, 1.0, %v10714_v28  ;;  %v8942_v60 = vsel %vm3451_vm7, 1.0, %v10714_v28 }
 0x249   :  { %3574 = vst [vmem:[#allocation16 + $0x90] sm:$0xff] %v3542_v40  ;;  %3575 = vst [vmem:[#allocation16 + $0x98] sm:$0xff] %v3543_v13  ;;  %v3544_v7 = vsub.f32 %v3416_v9, %v8933_v12  ;;  %v3545_v48 = vsub.f32 %v3417_v39, %v8936_v44  ;;  %v3546_v23 = vsub.f32 %v3418_v18, %v8939_v4  ;;  %v3260_v57 = vunpack.c.3.s8 %v8744_v10  ;;  %v10800_v13 = vld [vmem:[#allocation32_spill] sm:$0xff] }
 0x24a   :  { %v3547_v5 = vsub.f32 %v3419_v32, %v8942_v60  ;;  %v3261_v56 = vunpack.c.3.s8 %v8746_v1  ;;  %v3262_v53 = vunpack.c.3.s8 %v8764_v47  ;;  %v3263_v20 = vunpack.c.3.s8 %v8766_v6  ;;  %v3329_v6 = vld [vmem:[#allocation16 + $0xe8] sm:$0xff] }
 0x24b   :  { %3576 = vst [vmem:[#allocation16 + $0xa0] sm:$0xff] %v3544_v7  ;;  %3577 = vst [vmem:[#allocation16 + $0xa8] sm:$0xff] %v3545_v48  ;;  %v3264_v2 = vunpack.c.3.s8 %v8768_v37  ;;  %v3265_v35 = vunpack.c.3.s8 %v8786_v49  ;;  %v3266_v10 = vunpack.c.3.s8 %v8788_v51  ;;  %v3267_v1 = vunpack.c.3.s8 %v8790_v14  ;;  %v10799_v14 = vld [vmem:[#allocation31_spill] sm:$0xff]  ;;  %v10801_v48 = vld [vmem:[#allocation33_spill] sm:$0xff] }
 0x24c   :  { %3578 = vst [vmem:[#allocation16 + $0xb0] sm:$0xff] %v3546_v23  ;;  %3579 = vst [vmem:[#allocation16 + $0xb8] sm:$0xff] %v3547_v5  ;;  %v3292_v3 = vcvt.s32.f32 %v3260_v57  ;;  %v3293_v0 = vcvt.s32.f32 %v3261_v56  ;;  %v3294_v47 = vcvt.s32.f32 %v3262_v53  ;;  %v3295_v63 = vcvt.s32.f32 %v3263_v20  ;;  %v10802_v5 = vld [vmem:[#allocation34_spill] sm:$0xff]  ;;  %v10803_v56 = vld [vmem:[#allocation35_spill] sm:$0xff] }
 0x24d   :  { %v3296_v21 = vcvt.s32.f32 %v3264_v2  ;;  %v3297_v61 = vcvt.s32.f32 %v3265_v35  ;;  %v3298_v9 = vcvt.s32.f32 %v3266_v10  ;;  %v3299_v39 = vcvt.s32.f32 %v3267_v1  ;;  %v10804_v20 = vld [vmem:[#allocation36_spill] sm:$0xff] }
 0x24e   :  { %v3356_v18 = vadd.f32 %v3324_v42, %v3292_v3  ;;  %v3357_v37 = vadd.f32 %v3325_v30, %v3293_v0  ;;  %v3358_v16 = vadd.f32 %v3326_v38, %v3294_v47  ;;  %v3359_v32 = vadd.f32 %v3327_v34, %v3295_v63  ;;  %v10805_v42 = vld [vmem:[#allocation37_spill] sm:$0xff]  ;;  %v10806_v38 = vld [vmem:[#allocation38_spill] sm:$0xff] }
 0x24f   :  { %v3360_v49 = vadd.f32 %v3328_v8, %v3296_v21  ;;  %v3361_v46 = vadd.f32 %v3329_v6, %v3297_v61  ;;  %v3362_v51 = vadd.f32 %v3330_v50, %v3298_v9  ;;  %v3363_v62 = vadd.f32 %v3331_v55, %v3299_v39 }
 0x250   :  { %v3420_v40 = vadd.f32 %v3356_v18, %v10799_v14  ;;  %v3421_v7 = vadd.f32 %v3357_v37, %v10800_v13  ;;  %v3422_v23 = vadd.f32 %v3358_v16, %v10801_v48  ;;  %v3423_v57 = vadd.f32 %v3359_v32, %v10802_v5  ;;  %v8996_v37 = vld [vmem:[#allocation19] sm:$0xff]  ;;  %v8998_v16 = vld [vmem:[#allocation19 + $0x8] sm:$0xff]  ;;  %v9000_v32 = vld [vmem:[#allocation19 + $0x10] sm:$0xff] }
 0x251   :  { %v3424_v53 = vadd.f32 %v3360_v49, %v10803_v56  ;;  %v3425_v2 = vadd.f32 %v3361_v46, %v10804_v20  ;;  %v3426_v30 = vadd.f32 %v3362_v51, %v10805_v42  ;;  %v3427_v34 = vadd.f32 %v3363_v62, %v10806_v38  ;;  %v9002_v49 = vld [vmem:[#allocation19 + $0x18] sm:$0xff]  ;;  %v9010_v13 = vld [vmem:[#allocation19 + $0x28] sm:$0xff] }
 0x252   :  { %vm3452_vm8 = vcmp.gt.f32.partialorder %v3420_v40, 0.0  ;;  %vm3453_vm9 = vcmp.gt.f32.partialorder %v3421_v7, 0.0  ;;  %vm3454_vm10 = vcmp.gt.f32.partialorder %v3422_v23, 0.0  ;;  %vm3455_vm11 = vcmp.gt.f32.partialorder %v3423_v57, 0.0  ;;  %v9014_v48 = vld [vmem:[#allocation19 + $0x38] sm:$0xff]  ;;  %v9022_v20 = vld [vmem:[#allocation19 + $0x48] sm:$0xff] }
 0x253   :  { %v8965_v8 = vsel %vm3452_vm8, 1.0, %v10714_v28  ;;  %v8968_v35 = vsel %vm3453_vm9, 1.0, %v10714_v28  ;;  %v8971_v10 = vsel %vm3454_vm10, 1.0, %v10714_v28  ;;  %v8974_v1 = vsel %vm3455_vm11, 1.0, %v10714_v28  ;;  %10807 = vst [vmem:[#allocation39_spill] sm:$0xff] %v9022_v20  ;;  %v9026_v42 = vld [vmem:[#allocation19 + $0x58] sm:$0xff] }
 0x254   :  { %v3548_v3 = vsub.f32 %v3420_v40, %v8965_v8  ;;  %v3549_v0 = vsub.f32 %v3421_v7, %v8968_v35  ;;  %v3550_v47 = vsub.f32 %v3422_v23, %v8971_v10  ;;  %v3551_v63 = vsub.f32 %v3423_v57, %v8974_v1  ;;  %v9008_v40 = vld [vmem:[#allocation19 + $0x20] sm:$0xff]  ;;  %v9012_v7 = vld [vmem:[#allocation19 + $0x30] sm:$0xff]  ;;  %10809 = vst [vmem:[#allocation41_spill] sm:$0xff] %v9026_v42 }
 0x255   :  { %vm3456_vm12 = vcmp.gt.f32.partialorder %v3424_v53, 0.0  ;;  %vm3457_vm13 = vcmp.gt.f32.partialorder %v3425_v2, 0.0  ;;  %vm3458_vm14 = vcmp.gt.f32.partialorder %v3426_v30, 0.0  ;;  %vm3459_vm15 = vcmp.gt.f32.partialorder %v3427_v34, 0.0 }
 0x256   :  { %3580 = vst [vmem:[#allocation16 + $0xc0] sm:$0xff] %v3548_v3  ;;  %3581 = vst [vmem:[#allocation16 + $0xc8] sm:$0xff] %v3549_v0  ;;  %v8981_v6 = vsel %vm3456_vm12, 1.0, %v10714_v28  ;;  %v8984_v50 = vsel %vm3457_vm13, 1.0, %v10714_v28  ;;  %v8987_v55 = vsel %vm3458_vm14, 1.0, %v10714_v28  ;;  %v8990_v21 = vsel %vm3459_vm15, 1.0, %v10714_v28 }
 0x257   :  { %3582 = vst [vmem:[#allocation16 + $0xd0] sm:$0xff] %v3550_v47  ;;  %3583 = vst [vmem:[#allocation16 + $0xd8] sm:$0xff] %v3551_v63  ;;  %v3552_v61 = vsub.f32 %v3424_v53, %v8981_v6  ;;  %v3553_v9 = vsub.f32 %v3425_v2, %v8984_v50  ;;  %v3554_v39 = vsub.f32 %v3426_v30, %v8987_v55  ;;  %v3588_v46 = vsub.f32 1.0, %v8821_v27  ;;  %v9020_v53 = vld [vmem:[#allocation19 + $0x40] sm:$0xff]  ;;  %v9024_v2 = vld [vmem:[#allocation19 + $0x50] sm:$0xff] }
 0x258   :  { %v3555_v18 = vsub.f32 %v3427_v34, %v8990_v21  ;;  %v3589_v51 = vsub.f32 1.0, %v8824_v24  ;;  %v3590_v62 = vsub.f32 1.0, %v8827_v25  ;;  %v3591_v14 = vsub.f32 1.0, %v8830_v52  ;;  %10808 = vst [vmem:[#allocation40_spill] sm:$0xff] %v9024_v2  ;;  %v9032_v0 = vld [vmem:[#allocation19 + $0x60] sm:$0xff]  ;;  %v9034_v47 = vld [vmem:[#allocation19 + $0x68] sm:$0xff] }
 0x259   :  { %3584 = vst [vmem:[#allocation16 + $0xe0] sm:$0xff] %v3552_v61  ;;  %3585 = vst [vmem:[#allocation16 + $0xe8] sm:$0xff] %v3553_v9  ;;  %v3592_v23 = vsub.f32 1.0, %v8837_v15  ;;  %v3593_v5 = vsub.f32 1.0, %v8840_v29  ;;  %v3594_v57 = vsub.f32 1.0, %v8843_v59  ;;  %v3595_v56 = vsub.f32 1.0, %v8846_v54 }
 0x25a   :  { %3586 = vst [vmem:[#allocation16 + $0xf0] sm:$0xff] %v3554_v39  ;;  %3587 = vst [vmem:[#allocation16 + $0xf8] sm:$0xff] %v3555_v18  ;;  %v3596_v30 = vsub.f32 1.0, %v8869_v17  ;;  %v3597_v38 = vsub.f32 1.0, %v8872_v41  ;;  %v3598_v34 = vsub.f32 1.0, %v8875_v26  ;;  %v3599_v3 = vsub.f32 1.0, %v8878_v45 }
 0x25b   :  { %3652 = vst [vmem:[#allocation19] sm:$0xff] %v3588_v46  ;;  %3653 = vst [vmem:[#allocation19 + $0x8] sm:$0xff] %v3589_v51  ;;  %v9036_v63 = vld [vmem:[#allocation19 + $0x70] sm:$0xff]  ;;  %v9038_v61 = vld [vmem:[#allocation19 + $0x78] sm:$0xff]  ;;  %v3600_v9 = vsub.f32 1.0, %v8885_v11  ;;  %v3601_v39 = vsub.f32 1.0, %v8888_v33  ;;  %v4047_v42 = vtrunc.f32 %v8878_v45 }
 0x25c   :  { %3654 = vst [vmem:[#allocation19 + $0x10] sm:$0xff] %v3590_v62  ;;  %3655 = vst [vmem:[#allocation19 + $0x18] sm:$0xff] %v3591_v14  ;;  %v3602_v18 = vsub.f32 1.0, %v8891_v36  ;;  %v3603_v46 = vsub.f32 1.0, %v8894_v31  ;;  %v9044_v51 = vld [vmem:[#allocation19 + $0x80] sm:$0xff]  ;;  %v9046_v62 = vld [vmem:[#allocation19 + $0x88] sm:$0xff] }
 0x25d   :  { %10810 = vst [vmem:[#allocation42_spill] sm:$0xff] %v9032_v0  ;;  %10811 = vst [vmem:[#allocation43_spill] sm:$0xff] %v9034_v47  ;;  %v9048_v14 = vld [vmem:[#allocation19 + $0x90] sm:$0xff]  ;;  %v4039_v0 = vtrunc.f32 %v8830_v52 }
 0x25e   :  { %10812 = vst [vmem:[#allocation44_spill] sm:$0xff] %v9036_v63  ;;  %10813 = vst [vmem:[#allocation45_spill] sm:$0xff] %v9038_v61  ;;  %v9050_v63 = vld [vmem:[#allocation19 + $0x98] sm:$0xff]  ;;  %v9056_v61 = vld [vmem:[#allocation19 + $0xa0] sm:$0xff] }
 0x25f   :  { %3656 = vst [vmem:[#allocation19 + $0x20] sm:$0xff] %v3592_v23  ;;  %3657 = vst [vmem:[#allocation19 + $0x28] sm:$0xff] %v3593_v5  ;;  %v3604_v23 = vsub.f32 1.0, %v8917_v19  ;;  %v3605_v5 = vsub.f32 1.0, %v8920_v43 }
 0x260   :  { %3658 = vst [vmem:[#allocation19 + $0x30] sm:$0xff] %v3594_v57  ;;  %3659 = vst [vmem:[#allocation19 + $0x38] sm:$0xff] %v3595_v56  ;;  %v3606_v57 = vsub.f32 1.0, %v8923_v58  ;;  %v3607_v56 = vsub.f32 1.0, %v8926_v22 }
 0x261   :  { %10814 = vst [vmem:[#allocation46_spill] sm:$0xff] %v9044_v51  ;;  %10815 = vst [vmem:[#allocation47_spill] sm:$0xff] %v9046_v62  ;;  %v9058_v51 = vld [vmem:[#allocation19 + $0xa8] sm:$0xff]  ;;  %v9060_v62 = vld [vmem:[#allocation19 + $0xb0] sm:$0xff] }
 0x262   :  { %10816 = vst [vmem:[#allocation48_spill] sm:$0xff] %v9048_v14  ;;  %10817 = vst [vmem:[#allocation49_spill] sm:$0xff] %v9050_v63  ;;  %v9066_v63 = vld [vmem:[#allocation19 + $0xb8] sm:$0xff]  ;;  %v9068_v14 = vld [vmem:[#allocation19 + $0xc0] sm:$0xff] }
 0x263   :  { %3660 = vst [vmem:[#allocation19 + $0x40] sm:$0xff] %v3596_v30  ;;  %3661 = vst [vmem:[#allocation19 + $0x48] sm:$0xff] %v3597_v38  ;;  %v3608_v30 = vsub.f32 1.0, %v8933_v12  ;;  %v3609_v38 = vsub.f32 1.0, %v8936_v44 }
 0x264   :  { %3662 = vst [vmem:[#allocation19 + $0x50] sm:$0xff] %v3598_v34  ;;  %3663 = vst [vmem:[#allocation19 + $0x58] sm:$0xff] %v3599_v3  ;;  %v3610_v34 = vsub.f32 1.0, %v8939_v4  ;;  %v3611_v3 = vsub.f32 1.0, %v8942_v60 }
 0x265   :  { %10818 = vst [vmem:[#allocation50_spill] sm:$0xff] %v9056_v61  ;;  %10819 = vst [vmem:[#allocation51_spill] sm:$0xff] %v9058_v51  ;;  %v3615_v51 = vsub.f32 1.0, %v8974_v1 }
 0x266   :  { %10820 = vst [vmem:[#allocation52_spill] sm:$0xff] %v9060_v62  ;;  %3664 = vst [vmem:[#allocation19 + $0x60] sm:$0xff] %v3600_v9  ;;  %v3612_v9 = vsub.f32 1.0, %v8965_v8  ;;  %v9075_v62 = vld [vmem:[#allocation19 + $0xd0] sm:$0xff] }
 0x267   :  { %3665 = vst [vmem:[#allocation19 + $0x68] sm:$0xff] %v3601_v39  ;;  %3666 = vst [vmem:[#allocation19 + $0x70] sm:$0xff] %v3602_v18  ;;  %v3613_v39 = vsub.f32 1.0, %v8968_v35  ;;  %v9072_v18 = vld [vmem:[#allocation19 + $0xc8] sm:$0xff] }
 0x268   :  { %3667 = vst [vmem:[#allocation19 + $0x78] sm:$0xff] %v3603_v46  ;;  %10821 = vst [vmem:[#allocation30_spill] sm:$0xff] %v9066_v63  ;;  %v3614_v46 = vsub.f32 1.0, %v8971_v10  ;;  %v4046_v63 = vtrunc.f32 %v8875_v26 }
 0x269   :  { %10822 = vst [vmem:[#allocation31_spill] sm:$0xff] %v9068_v14  ;;  %3668 = vst [vmem:[#allocation19 + $0x80] sm:$0xff] %v3604_v23  ;;  %v9078_v23 = vld [vmem:[#allocation19 + $0xd8] sm:$0xff]  ;;  %v3619_v14 = vsub.f32 1.0, %v8990_v21 }
 0x26a   :  { %3669 = vst [vmem:[#allocation19 + $0x88] sm:$0xff] %v3605_v5  ;;  %3670 = vst [vmem:[#allocation19 + $0x90] sm:$0xff] %v3606_v57  ;;  %v3616_v5 = vsub.f32 1.0, %v8981_v6  ;;  %v9081_v57 = vld [vmem:[#allocation19 + $0xe0] sm:$0xff] }
 0x26b   :  { %3671 = vst [vmem:[#allocation19 + $0x98] sm:$0xff] %v3607_v56  ;;  %10823 = vst [vmem:[#allocation32_spill] sm:$0xff] %v9072_v18  ;;  %v3617_v56 = vsub.f32 1.0, %v8984_v50  ;;  %v3618_v18 = vsub.f32 1.0, %v8987_v55 }
 0x26c   :  { %10824 = vst [vmem:[#allocation33_spill] sm:$0xff] %v9075_v62  ;;  %3672 = vst [vmem:[#allocation19 + $0xa0] sm:$0xff] %v3608_v30  ;;  %v9086_v30 = vld [vmem:[#allocation19 + $0xe8] sm:$0xff]  ;;  %v4060_v62 = vtrunc.f32 %v8965_v8 }
 0x26d   :  { %3673 = vst [vmem:[#allocation19 + $0xa8] sm:$0xff] %v3609_v38  ;;  %3674 = vst [vmem:[#allocation19 + $0xb0] sm:$0xff] %v3610_v34  ;;  %v9088_v38 = vld [vmem:[#allocation19 + $0xf0] sm:$0xff]  ;;  %v9090_v34 = vld [vmem:[#allocation19 + $0xf8] sm:$0xff] }
 0x26e   :  { %3675 = vst [vmem:[#allocation19 + $0xb8] sm:$0xff] %v3611_v3  ;;  %10825 = vst [vmem:[#allocation34_spill] sm:$0xff] %v9078_v23  ;;  %v4036_v3 = vtrunc.f32 %v8821_v27  ;;  %v4052_v23 = vtrunc.f32 %v8917_v19 }
 0x26f   :  { %10826 = vst [vmem:[#allocation35_spill] sm:$0xff] %v9081_v57  ;;  %3676 = vst [vmem:[#allocation19 + $0xc0] sm:$0xff] %v3612_v9  ;;  %v4044_v57 = vtrunc.f32 %v8869_v17  ;;  %v4045_v9 = vtrunc.f32 %v8872_v41 }
 0x270   :  { %3677 = vst [vmem:[#allocation19 + $0xc8] sm:$0xff] %v3613_v39  ;;  %3678 = vst [vmem:[#allocation19 + $0xd0] sm:$0xff] %v3614_v46  ;;  %v4053_v39 = vtrunc.f32 %v8920_v43  ;;  %v4061_v46 = vtrunc.f32 %v8968_v35 }
 0x271   :  { %3679 = vst [vmem:[#allocation19 + $0xd8] sm:$0xff] %v3615_v51  ;;  %10827 = vst [vmem:[#allocation36_spill] sm:$0xff] %v9086_v30  ;;  %v4037_v51 = vtrunc.f32 %v8824_v24  ;;  %v4038_v30 = vtrunc.f32 %v8827_v25 }
 0x272   :  { %10828 = vst [vmem:[#allocation37_spill] sm:$0xff] %v9088_v38  ;;  %10829 = vst [vmem:[#allocation38_spill] sm:$0xff] %v9090_v34  ;;  %v4068_v34 = vpack.c.f32.eXmY %v4036_v3, %v4044_v57, 312  ;;  %v4072_v38 = vpack.c.f32.eXmY %v4052_v23, %v4060_v62, 312  ;;  %v4055_v62 = vtrunc.f32 %v8926_v22  ;;  %v4063_v23 = vtrunc.f32 %v8974_v1 }
 0x273   :  { %3680 = vst [vmem:[#allocation19 + $0xe0] sm:$0xff] %v3616_v5  ;;  %3681 = vst [vmem:[#allocation19 + $0xe8] sm:$0xff] %v3617_v56  ;;  %v4078_v61 = vpack.c.f32.eXmY %v4037_v51, %v4045_v9, 312  ;;  %v4082_v47 = vpack.c.f32.eXmY %v4053_v39, %v4061_v46, 312  ;;  %v4054_v5 = vtrunc.f32 %v8923_v58  ;;  %v4040_v3 = vtrunc.f32 %v8837_v15 }
 0x274   :  { %3682 = vst [vmem:[#allocation19 + $0xf0] sm:$0xff] %v3618_v18  ;;  %3683 = vst [vmem:[#allocation19 + $0xf8] sm:$0xff] %v3619_v14  ;;  %v4062_v14 = vtrunc.f32 %v8971_v10  ;;  %v4076_v18 = vpack.c.b8 %v4072_v38, %v4068_v34  ;;  %v4088_v56 = vpack.c.f32.eXmY %v4038_v30, %v4046_v63, 312  ;;  %v4098_v57 = vpack.c.f32.eXmY %v4039_v0, %v4047_v42, 312 }
 0x275   :  { %v4086_v2 = vpack.c.b8 %v4082_v47, %v4078_v61  ;;  %v4048_v51 = vtrunc.f32 %v8885_v11  ;;  %v4056_v9 = vtrunc.f32 %v8933_v12  ;;  %v4102_v30 = vpack.c.f32.eXmY %v4055_v62, %v4063_v23, 312 }
 0x276   :  { %v4092_v20 = vpack.c.f32.eXmY %v4054_v5, %v4062_v14, 312  ;;  %4149 = vst [vmem:[#allocation13 + $0xc0] sm:$0xff] %v4076_v18  ;;  %v4064_v38 = vtrunc.f32 %v8981_v6  ;;  %v4041_v47 = vtrunc.f32 %v8840_v29  ;;  %v4049_v34 = vtrunc.f32 %v8888_v33 }
 0x277   :  { %4150 = vst [vmem:[#allocation13 + $0xc8] sm:$0xff] %v4086_v2  ;;  %v4108_v61 = vpack.c.f32.eXmY %v4040_v3, %v4048_v51, 312  ;;  %v4057_v39 = vtrunc.f32 %v8936_v44  ;;  %v4065_v42 = vtrunc.f32 %v8984_v50  ;;  %v4106_v0 = vpack.c.b8 %v4102_v30, %v4098_v57 }
 0x278   :  { %v4096_v63 = vpack.c.b8 %v4092_v20, %v4088_v56  ;;  %v4112_v46 = vpack.c.f32.eXmY %v4056_v9, %v4064_v38, 312  ;;  %v4042_v5 = vtrunc.f32 %v8843_v59  ;;  %v4050_v2 = vtrunc.f32 %v8891_v36 }
 0x279   :  { %v4118_v20 = vpack.c.f32.eXmY %v4041_v47, %v4049_v34, 312  ;;  %v4122_v14 = vpack.c.f32.eXmY %v4057_v39, %v4065_v42, 312  ;;  %v4058_v18 = vtrunc.f32 %v8939_v4  ;;  %v4066_v56 = vtrunc.f32 %v8987_v55  ;;  %4152 = vst [vmem:[#allocation13 + $0xd8] sm:$0xff] %v4106_v0 }
 0x27a   :  { %4151 = vst [vmem:[#allocation13 + $0xd0] sm:$0xff] %v4096_v63  ;;  %v4116_v62 = vpack.c.b8 %v4112_v46, %v4108_v61  ;;  %v4128_v23 = vpack.c.f32.eXmY %v4042_v5, %v4050_v2, 312  ;;  %v4043_v3 = vtrunc.f32 %v8846_v54  ;;  %v4051_v51 = vtrunc.f32 %v8894_v31 }
 0x27b   :  { %v4126_v63 = vpack.c.b8 %v4122_v14, %v4118_v20  ;;  %v4132_v57 = vpack.c.f32.eXmY %v4058_v18, %v4066_v56, 312  ;;  %v4059_v9 = vtrunc.f32 %v8942_v60  ;;  %v4067_v30 = vtrunc.f32 %v8990_v21  ;;  %v3684_v56 = vld [vmem:[#allocation20] sm:$0xff] }
 0x27c   :  { %4153 = vst [vmem:[#allocation13 + $0xe0] sm:$0xff] %v4116_v62  ;;  %v4138_v38 = vpack.c.f32.eXmY %v4043_v3, %v4051_v51, 312  ;;  %v3716_v47 = vmul.f32 2.0, %v8821_v27  ;;  %v3717_v34 = vmul.f32 2.0, %v8824_v24  ;;  %v3718_v39 = vmul.f32 2.0, %v8827_v25  ;;  %v3685_v27 = vld [vmem:[#allocation20 + $0x8] sm:$0xff] }
 0x27d   :  { %4154 = vst [vmem:[#allocation13 + $0xe8] sm:$0xff] %v4126_v63  ;;  %v4136_v61 = vpack.c.b8 %v4132_v57, %v4128_v23  ;;  %v4142_v42 = vpack.c.f32.eXmY %v4059_v9, %v4067_v30, 312  ;;  %v3719_v0 = vmul.f32 2.0, %v8830_v52  ;;  %v3720_v46 = vmul.f32 2.0, %v8837_v15  ;;  %v3686_v62 = vld [vmem:[#allocation20 + $0x10] sm:$0xff]  ;;  %v3687_v52 = vld [vmem:[#allocation20 + $0x18] sm:$0xff] }
 0x27e   :  { %v6435_v5 = vadd.f32 -1.0, %v3716_v47  ;;  %v6436_v2 = vadd.f32 -1.0, %v3717_v34  ;;  %v6437_v20 = vadd.f32 -1.0, %v3718_v39  ;;  %v3721_v14 = vmul.f32 2.0, %v8840_v29  ;;  %v3688_v57 = vld [vmem:[#allocation20 + $0x20] sm:$0xff]  ;;  %v3689_v47 = vld [vmem:[#allocation20 + $0x28] sm:$0xff] }
 0x27f   :  { %4155 = vst [vmem:[#allocation13 + $0xf0] sm:$0xff] %v4136_v61  ;;  %v4146_v18 = vpack.c.b8 %v4142_v42, %v4138_v38  ;;  %v6438_v24 = vadd.f32 -1.0, %v3719_v0  ;;  %v6439_v3 = vadd.f32 -1.0, %v3720_v46  ;;  %v3722_v25 = vmul.f32 2.0, %v8843_v59 }
 0x280   :  { %v3780_v23 = vadd.f32 %v6435_v5, %v3684_v56  ;;  %v3781_v51 = vadd.f32 %v6436_v2, %v3685_v27  ;;  %v3782_v63 = vadd.f32 %v6437_v20, %v3686_v62  ;;  %v6440_v15 = vadd.f32 -1.0, %v3721_v14  ;;  %v3690_v5 = vld [vmem:[#allocation20 + $0x30] sm:$0xff] }
 0x281   :  { %4156 = vst [vmem:[#allocation13 + $0xf8] sm:$0xff] %v4146_v18  ;;  %v3783_v9 = vadd.f32 %v6438_v24, %v3687_v52  ;;  %v3784_v30 = vadd.f32 %v6439_v3, %v3688_v57  ;;  %v6441_v29 = vadd.f32 -1.0, %v3722_v25  ;;  %v3723_v38 = vmul.f32 2.0, %v8846_v54  ;;  %v3691_v3 = vld [vmem:[#allocation20 + $0x38] sm:$0xff]  ;;  %v3692_v57 = vld [vmem:[#allocation20 + $0x40] sm:$0xff] }
 0x282   :  { %vm3812_vm0 = vcmp.gt.f32.partialorder %v3780_v23, 0.0  ;;  %vm3813_vm1 = vcmp.gt.f32.partialorder %v3781_v51, 0.0  ;;  %vm3814_vm2 = vcmp.gt.f32.partialorder %v3782_v63, 0.0  ;;  %v3785_v34 = vadd.f32 %v6440_v15, %v3689_v47 }
 0x283   :  { %v9133_v39 = vsel %vm3812_vm0, 1.0, %v10714_v28  ;;  %v9136_v59 = vsel %vm3813_vm1, 1.0, %v10714_v28  ;;  %v9139_v61 = vsel %vm3814_vm2, 1.0, %v10714_v28  ;;  %vm3815_vm3 = vcmp.gt.f32.partialorder %v3783_v9, 0.0 }
 0x284   :  { %v3908_v42 = vsub.f32 %v3780_v23, %v9133_v39  ;;  %v3909_v0 = vsub.f32 %v3781_v51, %v9136_v59  ;;  %v3910_v54 = vsub.f32 %v3782_v63, %v9139_v61  ;;  %v9145_v46 = vsel %vm3815_vm3, 1.0, %v10714_v28 }
 0x285   :  { %v3911_v2 = vsub.f32 %v3783_v9, %v9145_v46  ;;  %vm3816_vm4 = vcmp.gt.f32.partialorder %v3784_v30, 0.0  ;;  %vm3817_vm5 = vcmp.gt.f32.partialorder %v3785_v34, 0.0  ;;  %v3786_v20 = vadd.f32 %v6441_v29, %v3690_v5 }
 0x286   :  { %3940 = vst [vmem:[#allocation20] sm:$0xff] %v3908_v42  ;;  %3941 = vst [vmem:[#allocation20 + $0x8] sm:$0xff] %v3909_v0  ;;  %v9149_v14 = vsel %vm3816_vm4, 1.0, %v10714_v28  ;;  %v9152_v18 = vsel %vm3817_vm5, 1.0, %v10714_v28  ;;  %v6442_v56 = vadd.f32 -1.0, %v3723_v38  ;;  %v3724_v27 = vmul.f32 2.0, %v8869_v17 }
 0x287   :  { %3942 = vst [vmem:[#allocation20 + $0x10] sm:$0xff] %v3910_v54  ;;  %3943 = vst [vmem:[#allocation20 + $0x18] sm:$0xff] %v3911_v2  ;;  %v3912_v62 = vsub.f32 %v3784_v30, %v9149_v14  ;;  %v3913_v24 = vsub.f32 %v3785_v34, %v9152_v18  ;;  %vm3818_vm6 = vcmp.gt.f32.partialorder %v3786_v20, 0.0  ;;  %v3725_v25 = vmul.f32 2.0, %v8872_v41  ;;  %v3693_v41 = vld [vmem:[#allocation20 + $0x48] sm:$0xff]  ;;  %v3694_v42 = vld [vmem:[#allocation20 + $0x50] sm:$0xff] }
 0x288   :  { %v9159_v23 = vsel %vm3818_vm6, 1.0, %v10714_v28  ;;  %v3787_v51 = vadd.f32 %v6442_v56, %v3691_v3  ;;  %v6443_v63 = vadd.f32 -1.0, %v3724_v27  ;;  %v3726_v52 = vmul.f32 2.0, %v8875_v26  ;;  %v3695_v2 = vld [vmem:[#allocation20 + $0x58] sm:$0xff] }
 0x289   :  { %3944 = vst [vmem:[#allocation20 + $0x20] sm:$0xff] %v3912_v62  ;;  %3945 = vst [vmem:[#allocation20 + $0x28] sm:$0xff] %v3913_v24  ;;  %v3914_v17 = vsub.f32 %v3786_v20, %v9159_v23  ;;  %v6444_v15 = vadd.f32 -1.0, %v3725_v25  ;;  %v3727_v9 = vmul.f32 2.0, %v8878_v45  ;;  %v3728_v30 = vmul.f32 2.0, %v8885_v11  ;;  %v3696_v11 = vld [vmem:[#allocation20 + $0x60] sm:$0xff] }
 0x28a   :  { %vm3819_vm7 = vcmp.gt.f32.partialorder %v3787_v51, 0.0  ;;  %v3788_v47 = vadd.f32 %v6443_v63, %v3692_v57  ;;  %v6445_v29 = vadd.f32 -1.0, %v3726_v52  ;;  %v3729_v38 = vmul.f32 2.0, %v8888_v33  ;;  %v3697_v62 = vld [vmem:[#allocation20 + $0x68] sm:$0xff] }
 0x28b   :  { %3946 = vst [vmem:[#allocation20 + $0x30] sm:$0xff] %v3914_v17  ;;  %v9167_v34 = vsel %vm3819_vm7, 1.0, %v10714_v28  ;;  %v3789_v26 = vadd.f32 %v6444_v15, %v3693_v41  ;;  %v6446_v0 = vadd.f32 -1.0, %v3727_v9  ;;  %v6447_v54 = vadd.f32 -1.0, %v3728_v30 }
 0x28c   :  { %v3915_v5 = vsub.f32 %v3787_v51, %v9167_v34  ;;  %vm3820_vm8 = vcmp.gt.f32.partialorder %v3788_v47, 0.0  ;;  %v3790_v45 = vadd.f32 %v6445_v29, %v3694_v42  ;;  %v6448_v20 = vadd.f32 -1.0, %v3729_v38 }
 0x28d   :  { %v9171_v56 = vsel %vm3820_vm8, 1.0, %v10714_v28  ;;  %vm3821_vm9 = vcmp.gt.f32.partialorder %v3789_v26, 0.0  ;;  %v3791_v33 = vadd.f32 %v6446_v0, %v3695_v2  ;;  %v3792_v27 = vadd.f32 %v6447_v54, %v3696_v11 }
 0x28e   :  { %3947 = vst [vmem:[#allocation20 + $0x38] sm:$0xff] %v3915_v5  ;;  %v3916_v24 = vsub.f32 %v3788_v47, %v9171_v56  ;;  %v9175_v3 = vsel %vm3821_vm9, 1.0, %v10714_v28  ;;  %vm3822_vm10 = vcmp.gt.f32.partialorder %v3790_v45, 0.0  ;;  %v3793_v25 = vadd.f32 %v6448_v20, %v3697_v62 }
 0x28f   :  { %v3917_v51 = vsub.f32 %v3789_v26, %v9175_v3  ;;  %v9179_v63 = vsel %vm3822_vm10, 1.0, %v10714_v28  ;;  %vm3823_vm11 = vcmp.gt.f32.partialorder %v3791_v33, 0.0  ;;  %vm3824_vm12 = vcmp.gt.f32.partialorder %v3792_v27, 0.0 }
 0x290   :  { %3948 = vst [vmem:[#allocation20 + $0x40] sm:$0xff] %v3916_v24  ;;  %v3918_v52 = vsub.f32 %v3790_v45, %v9179_v63  ;;  %v9183_v17 = vsel %vm3823_vm11, 1.0, %v10714_v28  ;;  %v9186_v57 = vsel %vm3824_vm12, 1.0, %v10714_v28  ;;  %vm3825_vm13 = vcmp.gt.f32.partialorder %v3793_v25, 0.0 }
 0x291   :  { %3949 = vst [vmem:[#allocation20 + $0x48] sm:$0xff] %v3917_v51  ;;  %v3919_v15 = vsub.f32 %v3791_v33, %v9183_v17  ;;  %v3920_v9 = vsub.f32 %v3792_v27, %v9186_v57  ;;  %v9191_v30 = vsel %vm3825_vm13, 1.0, %v10714_v28  ;;  %v3730_v47 = vmul.f32 2.0, %v8891_v36  ;;  %v3698_v36 = vld [vmem:[#allocation20 + $0x70] sm:$0xff]  ;;  %v3700_v33 = vld [vmem:[#allocation20 + $0x80] sm:$0xff] }
 0x292   :  { %3950 = vst [vmem:[#allocation20 + $0x50] sm:$0xff] %v3918_v52  ;;  %v3921_v41 = vsub.f32 %v3793_v25, %v9191_v30  ;;  %v3731_v29 = vmul.f32 2.0, %v8894_v31  ;;  %v3732_v38 = vmul.f32 2.0, %v8917_v19  ;;  %v3733_v26 = vmul.f32 2.0, %v8920_v43  ;;  %v3699_v19 = vld [vmem:[#allocation20 + $0x78] sm:$0xff]  ;;  %v3701_v43 = vld [vmem:[#allocation20 + $0x88] sm:$0xff] }
 0x293   :  { %3951 = vst [vmem:[#allocation20 + $0x58] sm:$0xff] %v3919_v15  ;;  %3952 = vst [vmem:[#allocation20 + $0x60] sm:$0xff] %v3920_v9  ;;  %v6449_v42 = vadd.f32 -1.0, %v3730_v47  ;;  %v3734_v0 = vmul.f32 2.0, %v8923_v58  ;;  %v3735_v54 = vmul.f32 2.0, %v8926_v22  ;;  %v3736_v5 = vmul.f32 2.0, %v8933_v12 }
 0x294   :  { %3953 = vst [vmem:[#allocation20 + $0x68] sm:$0xff] %v3921_v41  ;;  %v6450_v45 = vadd.f32 -1.0, %v3731_v29  ;;  %v6451_v2 = vadd.f32 -1.0, %v3732_v38  ;;  %v6452_v11 = vadd.f32 -1.0, %v3733_v26  ;;  %v3737_v31 = vmul.f32 2.0, %v8936_v44  ;;  %v3702_v22 = vld [vmem:[#allocation20 + $0x90] sm:$0xff] }
 0x295   :  { %v3794_v20 = vadd.f32 %v6449_v42, %v3698_v36  ;;  %v6453_v27 = vadd.f32 -1.0, %v3734_v0  ;;  %v6454_v62 = vadd.f32 -1.0, %v3735_v54  ;;  %v6455_v24 = vadd.f32 -1.0, %v3736_v5  ;;  %v3703_v52 = vld [vmem:[#allocation20 + $0x98] sm:$0xff]  ;;  %v3704_v12 = vld [vmem:[#allocation20 + $0xa0] sm:$0xff]  ;;  %v3705_v36 = vld [vmem:[#allocation20 + $0xa8] sm:$0xff] }
 0x296   :  { %v3795_v25 = vadd.f32 %v6450_v45, %v3699_v19  ;;  %v3796_v58 = vadd.f32 %v6451_v2, %v3700_v33  ;;  %v3797_v51 = vadd.f32 %v6452_v11, %v3701_v43  ;;  %v6456_v15 = vadd.f32 -1.0, %v3737_v31 }
 0x297   :  { %vm3826_vm14 = vcmp.gt.f32.partialorder %v3794_v20, 0.0  ;;  %v3798_v9 = vadd.f32 %v6453_v27, %v3702_v22  ;;  %v3799_v47 = vadd.f32 %v6454_v62, %v3703_v52  ;;  %v3800_v41 = vadd.f32 %v6455_v24, %v3704_v12 }
 0x298   :  { %v9203_v44 = vsel %vm3826_vm14, 1.0, %v10714_v28  ;;  %vm3827_vm15 = vcmp.gt.f32.partialorder %v3795_v25, 0.0  ;;  %vm3828_vm0 = vcmp.gt.f32.partialorder %v3796_v58, 0.0  ;;  %vm3829_vm1 = vcmp.gt.f32.partialorder %v3797_v51, 0.0 }
 0x299   :  { %v3922_v29 = vsub.f32 %v3794_v20, %v9203_v44  ;;  %v9207_v38 = vsel %vm3827_vm15, 1.0, %v10714_v28  ;;  %v9210_v26 = vsel %vm3828_vm0, 1.0, %v10714_v28  ;;  %v9213_v42 = vsel %vm3829_vm1, 1.0, %v10714_v28 }
 0x29a   :  { %v3923_v0 = vsub.f32 %v3795_v25, %v9207_v38  ;;  %v3924_v54 = vsub.f32 %v3796_v58, %v9210_v26  ;;  %v3925_v5 = vsub.f32 %v3797_v51, %v9213_v42  ;;  %vm3830_vm2 = vcmp.gt.f32.partialorder %v3798_v9, 0.0  ;;  %v3706_v51 = vld [vmem:[#allocation20 + $0xb0] sm:$0xff] }
 0x29b   :  { %3954 = vst [vmem:[#allocation20 + $0x70] sm:$0xff] %v3922_v29  ;;  %v9219_v45 = vsel %vm3830_vm2, 1.0, %v10714_v28  ;;  %vm3831_vm3 = vcmp.gt.f32.partialorder %v3799_v47, 0.0  ;;  %vm3832_vm4 = vcmp.gt.f32.partialorder %v3800_v41, 0.0  ;;  %v3801_v2 = vadd.f32 %v6456_v15, %v3705_v36  ;;  %v3707_v15 = vld [vmem:[#allocation20 + $0xb8] sm:$0xff]  ;;  %v3708_v29 = vld [vmem:[#allocation20 + $0xc0] sm:$0xff] }
 0x29c   :  { %3955 = vst [vmem:[#allocation20 + $0x78] sm:$0xff] %v3923_v0  ;;  %3956 = vst [vmem:[#allocation20 + $0x80] sm:$0xff] %v3924_v54  ;;  %v3926_v11 = vsub.f32 %v3798_v9, %v9219_v45  ;;  %v9223_v31 = vsel %vm3831_vm3, 1.0, %v10714_v28  ;;  %v9226_v20 = vsel %vm3832_vm4, 1.0, %v10714_v28  ;;  %v3738_v19 = vmul.f32 2.0, %v8939_v4 }
 0x29d   :  { %3957 = vst [vmem:[#allocation20 + $0x88] sm:$0xff] %v3925_v5  ;;  %v3927_v33 = vsub.f32 %v3799_v47, %v9223_v31  ;;  %v3928_v43 = vsub.f32 %v3800_v41, %v9226_v20  ;;  %vm3833_vm5 = vcmp.gt.f32.partialorder %v3801_v2, 0.0  ;;  %v3739_v27 = vmul.f32 2.0, %v8942_v60 }
 0x29e   :  { %3958 = vst [vmem:[#allocation20 + $0x90] sm:$0xff] %v3926_v11  ;;  %v9233_v62 = vsel %vm3833_vm5, 1.0, %v10714_v28  ;;  %v6457_v24 = vadd.f32 -1.0, %v3738_v19  ;;  %v3740_v25 = vmul.f32 2.0, %v8965_v8  ;;  %v3741_v58 = vmul.f32 2.0, %v8968_v35  ;;  %v3709_v35 = vld [vmem:[#allocation20 + $0xc8] sm:$0xff] }
 0x29f   :  { %3959 = vst [vmem:[#allocation20 + $0x98] sm:$0xff] %v3927_v33  ;;  %3960 = vst [vmem:[#allocation20 + $0xa0] sm:$0xff] %v3928_v43  ;;  %v3929_v4 = vsub.f32 %v3801_v2, %v9233_v62  ;;  %v6458_v22 = vadd.f32 -1.0, %v3739_v27  ;;  %v3742_v52 = vmul.f32 2.0, %v8971_v10  ;;  %v3743_v12 = vmul.f32 2.0, %v8974_v1  ;;  %v3710_v10 = vld [vmem:[#allocation20 + $0xd0] sm:$0xff] }
 0x2a0   :  { %v3802_v60 = vadd.f32 %v6457_v24, %v3706_v51  ;;  %v6459_v9 = vadd.f32 -1.0, %v3740_v25  ;;  %v6460_v47 = vadd.f32 -1.0, %v3741_v58  ;;  %v3744_v41 = vmul.f32 2.0, %v8981_v6  ;;  %v3711_v11 = vld [vmem:[#allocation20 + $0xd8] sm:$0xff] }
 0x2a1   :  { %3961 = vst [vmem:[#allocation20 + $0xa8] sm:$0xff] %v3929_v4  ;;  %v3803_v8 = vadd.f32 %v6458_v22, %v3707_v15  ;;  %v6461_v0 = vadd.f32 -1.0, %v3742_v52  ;;  %v6462_v54 = vadd.f32 -1.0, %v3743_v12  ;;  %v3745_v5 = vmul.f32 2.0, %v8984_v50  ;;  %v3712_v22 = vld [vmem:[#allocation20 + $0xe0] sm:$0xff] }
 0x2a2   :  { %vm3834_vm6 = vcmp.gt.f32.partialorder %v3802_v60, 0.0  ;;  %v3804_v36 = vadd.f32 %v6459_v9, %v3708_v29  ;;  %v3805_v2 = vadd.f32 %v6460_v47, %v3709_v35  ;;  %v6463_v1 = vadd.f32 -1.0, %v3744_v41  ;;  %v3713_v47 = vld [vmem:[#allocation20 + $0xe8] sm:$0xff] }
 0x2a3   :  { %v9243_v19 = vsel %vm3834_vm6, 1.0, %v10714_v28  ;;  %vm3835_vm7 = vcmp.gt.f32.partialorder %v3803_v8, 0.0  ;;  %v3806_v33 = vadd.f32 %v6461_v0, %v3710_v10  ;;  %v3807_v6 = vadd.f32 %v6462_v54, %v3711_v11 }
 0x2a4   :  { %v3930_v43 = vsub.f32 %v3802_v60, %v9243_v19  ;;  %v9247_v27 = vsel %vm3835_vm7, 1.0, %v10714_v28  ;;  %vm3836_vm8 = vcmp.gt.f32.partialorder %v3804_v36, 0.0  ;;  %vm3837_vm9 = vcmp.gt.f32.partialorder %v3805_v2, 0.0 }
 0x2a5   :  { %v3931_v50 = vsub.f32 %v3803_v8, %v9247_v27  ;;  %v9251_v24 = vsel %vm3836_vm8, 1.0, %v10714_v28  ;;  %v9254_v25 = vsel %vm3837_vm9, 1.0, %v10714_v28  ;;  %vm3838_vm10 = vcmp.gt.f32.partialorder %v3806_v33, 0.0 }
 0x2a6   :  { %3962 = vst [vmem:[#allocation20 + $0xb0] sm:$0xff] %v3930_v43  ;;  %v3932_v58 = vsub.f32 %v3804_v36, %v9251_v24  ;;  %v3933_v4 = vsub.f32 %v3805_v2, %v9254_v25  ;;  %v9259_v51 = vsel %vm3838_vm10, 1.0, %v10714_v28  ;;  %vm3839_vm11 = vcmp.gt.f32.partialorder %v3807_v6, 0.0  ;;  %v3714_v36 = vld [vmem:[#allocation20 + $0xf0] sm:$0xff]  ;;  %v3715_v2 = vld [vmem:[#allocation20 + $0xf8] sm:$0xff] }
 0x2a7   :  { %3963 = vst [vmem:[#allocation20 + $0xb8] sm:$0xff] %v3931_v50  ;;  %v3934_v52 = vsub.f32 %v3806_v33, %v9259_v51  ;;  %v9263_v12 = vsel %vm3839_vm11, 1.0, %v10714_v28  ;;  %v3808_v60 = vadd.f32 %v6463_v1, %v3712_v22  ;;  %v6464_v15 = vadd.f32 -1.0, %v3745_v5  ;;  %v10835_v43 = vld [vmem:[#allocation44_spill] sm:$0xff] }
 0x2a8   :  { %3964 = vst [vmem:[#allocation20 + $0xc0] sm:$0xff] %v3932_v58  ;;  %3965 = vst [vmem:[#allocation20 + $0xc8] sm:$0xff] %v3933_v4  ;;  %v3935_v9 = vsub.f32 %v3807_v6, %v9263_v12  ;;  %v3746_v41 = vmul.f32 2.0, %v8987_v55  ;;  %v3747_v8 = vmul.f32 2.0, %v8990_v21  ;;  %v9270_v29 = vmul.f32 %v9133_v39, %v8996_v37  ;;  %v10837_v4 = vld [vmem:[#allocation46_spill] sm:$0xff] }
 0x2a9   :  { %3966 = vst [vmem:[#allocation20 + $0xd0] sm:$0xff] %v3934_v52  ;;  %vm3840_vm12 = vcmp.gt.f32.partialorder %v3808_v60, 0.0  ;;  %v3809_v35 = vadd.f32 %v6464_v15, %v3713_v47  ;;  %v9274_v0 = vmul.f32 %v9136_v59, %v8998_v16  ;;  %v9278_v54 = vmul.f32 %v9139_v61, %v9000_v32  ;;  %v10840_v15 = vld [vmem:[#allocation49_spill] sm:$0xff] }
 0x2aa   :  { %3967 = vst [vmem:[#allocation20 + $0xd8] sm:$0xff] %v3935_v9  ;;  %v6495_v55 = vsel %vm3840_vm12, 1.0, %v10714_v28  ;;  %v6465_v5 = vadd.f32 -1.0, %v3746_v41  ;;  %v6466_v21 = vadd.f32 -1.0, %v3747_v8  ;;  %v9283_v37 = vmul.f32 %v9145_v46, %v9002_v49  ;;  %v9352_v9 = vld [vmem:[#allocation2 + $0x100] sm:$0xff] }
 0x2ab   :  { %v3936_v39 = vsub.f32 %v3808_v60, %v6495_v55  ;;  %vm3841_vm13 = vcmp.gt.f32.partialorder %v3809_v35, 0.0  ;;  %v9287_v16 = vmul.f32 %v9149_v14, %v9008_v40  ;;  %v9291_v32 = vmul.f32 %v9152_v18, %v9010_v13  ;;  %v10830_v13 = vld [vmem:[#allocation39_spill] sm:$0xff]  ;;  %v10831_v18 = vld [vmem:[#allocation40_spill] sm:$0xff] }
 0x2ac   :  { %v6496_v59 = vsel %vm3841_vm13, 1.0, %v10714_v28  ;;  %v3810_v61 = vadd.f32 %v6465_v5, %v3714_v36  ;;  %v3811_v10 = vadd.f32 %v6466_v21, %v3715_v2  ;;  %v9296_v49 = vmul.f32 %v9159_v23, %v9012_v7  ;;  %v10832_v23 = vld [vmem:[#allocation41_spill] sm:$0xff]  ;;  %v9372_v5 = vld [vmem:[#allocation2 + $0x110] sm:$0xff] }
 0x2ad   :  { %3968 = vst [vmem:[#allocation20 + $0xe0] sm:$0xff] %v3936_v39  ;;  %v3937_v46 = vsub.f32 %v3809_v35, %v6496_v59  ;;  %v9300_v11 = vmul.f32 %v9167_v34, %v9014_v48  ;;  %v9304_v40 = vmul.f32 %v9171_v56, %v9020_v53  ;;  %v9308_v14 = vmul.f32 %v9175_v3, %v10830_v13  ;;  %v10833_v34 = vld [vmem:[#allocation42_spill] sm:$0xff]  ;;  %v10834_v3 = vld [vmem:[#allocation43_spill] sm:$0xff]  ;;  %v9374_v21 = vld [vmem:[#allocation2 + $0x118] sm:$0xff] }
 0x2ae   :  { %vm3842_vm14 = vcmp.gt.f32.partialorder %v3810_v61, 0.0  ;;  %vm3843_vm15 = vcmp.gt.f32.partialorder %v3811_v10, 0.0  ;;  %v9312_v7 = vmul.f32 %v9179_v63, %v10831_v18  ;;  %v9316_v1 = vmul.f32 %v9183_v17, %v10832_v23  ;;  %v10836_v17 = vld [vmem:[#allocation45_spill] sm:$0xff]  ;;  %v9376_v39 = vld [vmem:[#allocation2 + $0x120] sm:$0xff]  ;;  %v9396_v13 = vld [vmem:[#allocation2 + $0x130] sm:$0xff] }
 0x2af   :  { %3969 = vst [vmem:[#allocation20 + $0xe8] sm:$0xff] %v3937_v46  ;;  %v6497_v48 = vsel %vm3842_vm14, 1.0, %v10714_v28  ;;  %v6498_v53 = vsel %vm3843_vm15, 1.0, %v10714_v28  ;;  %v9322_v56 = vmul.f32 %v9186_v57, %v10833_v34  ;;  %v9326_v33 = vmul.f32 %v9191_v30, %v10834_v3  ;;  %v10838_v57 = vld [vmem:[#allocation47_spill] sm:$0xff]  ;;  %v10839_v30 = vld [vmem:[#allocation48_spill] sm:$0xff]  ;;  %v9398_v18 = vld [vmem:[#allocation2 + $0x138] sm:$0xff] }
 0x2b0   :  { %v3938_v6 = vsub.f32 %v3810_v61, %v6497_v48  ;;  %v3939_v63 = vsub.f32 %v3811_v10, %v6498_v53  ;;  %v9330_v50 = vmul.f32 %v9203_v44, %v10835_v43  ;;  %v9334_v58 = vmul.f32 %v9207_v38, %v10836_v17  ;;  %v9354_v38 = vld [vmem:[#allocation2 + $0x108] sm:$0xff]  ;;  %v10856_v34 = vld [vmem:[#allocation36_spill] sm:$0xff]  ;;  %v10858_v3 = vld [vmem:[#allocation37_spill] sm:$0xff] }
 0x2b1   :  { %v9338_v22 = vmul.f32 %v9210_v26, %v10837_v4  ;;  %v9342_v52 = vmul.f32 %v9213_v42, %v10838_v57  ;;  %v9346_v60 = vmul.f32 %v9219_v45, %v10839_v30  ;;  %v9350_v44 = vmul.f32 %v9223_v31, %v10840_v15  ;;  %v10841_v26 = vld [vmem:[#allocation50_spill] sm:$0xff]  ;;  %v10842_v42 = vld [vmem:[#allocation51_spill] sm:$0xff]  ;;  %v10843_v45 = vld [vmem:[#allocation52_spill] sm:$0xff] }
 0x2b2   :  { %3970 = vst [vmem:[#allocation20 + $0xf0] sm:$0xff] %v3938_v6  ;;  %3971 = vst [vmem:[#allocation20 + $0xf8] sm:$0xff] %v3939_v63  ;;  %v9358_v47 = vmul.f32 %v9226_v20, %v10841_v26  ;;  %v9362_v41 = vmul.f32 %v9233_v62, %v10842_v42  ;;  %v9366_v8 = vmul.f32 %v9243_v19, %v10843_v45  ;;  %v10844_v31 = vld [vmem:[#allocation30_spill] sm:$0xff]  ;;  %v10846_v20 = vld [vmem:[#allocation31_spill] sm:$0xff]  ;;  %v4167_v17 = vunpack.c.0.s8 %v9354_v38 }
 0x2b3   :  { %v9370_v35 = vmul.f32 %v9247_v27, %v10844_v31  ;;  %v9380_v36 = vmul.f32 %v9251_v24, %v10846_v20  ;;  %v10848_v62 = vld [vmem:[#allocation32_spill] sm:$0xff]  ;;  %v10850_v19 = vld [vmem:[#allocation33_spill] sm:$0xff]  ;;  %v10852_v27 = vld [vmem:[#allocation34_spill] sm:$0xff]  ;;  %v9407_v6 = vmul.f32 %v6497_v48, %v10858_v3  ;;  %v4168_v57 = vunpack.c.0.s8 %v9372_v5 }
 0x2b4   :  { %v9384_v2 = vmul.f32 %v9254_v25, %v10848_v62  ;;  %v9388_v61 = vmul.f32 %v9259_v51, %v10850_v19  ;;  %v9392_v10 = vmul.f32 %v9263_v12, %v10852_v27  ;;  %v9394_v46 = vld [vmem:[#allocation2 + $0x128] sm:$0xff]  ;;  %v9404_v25 = vmul.f32 %v6496_v59, %v10856_v34  ;;  %v10860_v51 = vld [vmem:[#allocation38_spill] sm:$0xff]  ;;  %v4232_v30 = vld [vmem:[#allocation16 + $0x10] sm:$0xff] }
 0x2b5   :  { %10845 = vst [vmem:[#allocation39_spill] sm:$0xff] %v9370_v35  ;;  %10847 = vst [vmem:[#allocation40_spill] sm:$0xff] %v9380_v36  ;;  %v10854_v24 = vld [vmem:[#allocation35_spill] sm:$0xff]  ;;  %v9410_v63 = vmul.f32 %v6498_v53, %v10860_v51  ;;  %v4166_v12 = vunpack.c.0.s8 %v9352_v9  ;;  %v4230_v43 = vld [vmem:[#allocation16] sm:$0xff]  ;;  %v4170_v59 = vunpack.c.0.s8 %v9376_v39  ;;  %v4171_v48 = vunpack.c.0.s8 %v9394_v46 }
 0x2b6   :  { %10849 = vst [vmem:[#allocation41_spill] sm:$0xff] %v9384_v2  ;;  %10851 = vst [vmem:[#allocation42_spill] sm:$0xff] %v9388_v61  ;;  %v9401_v23 = vmul.f32 %v6495_v55, %v10854_v24  ;;  %v4231_v4 = vld [vmem:[#allocation16 + $0x8] sm:$0xff]  ;;  %v4169_v55 = vunpack.c.0.s8 %v9374_v21  ;;  %v4233_v15 = vld [vmem:[#allocation16 + $0x18] sm:$0xff]  ;;  %v4172_v53 = vunpack.c.0.s8 %v9396_v13  ;;  %v4173_v42 = vunpack.c.0.s8 %v9398_v18 }
 0x2b7   :  { %10853 = vst [vmem:[#allocation43_spill] sm:$0xff] %v9392_v10  ;;  %10857 = vst [vmem:[#allocation45_spill] sm:$0xff] %v9404_v25  ;;  %v4234_v26 = vld [vmem:[#allocation16 + $0x20] sm:$0xff]  ;;  %v4198_v45 = vcvt.s32.f32 %v4166_v12  ;;  %v4199_v31 = vcvt.s32.f32 %v4167_v17  ;;  %v4200_v20 = vcvt.s32.f32 %v4168_v57  ;;  %v4235_v19 = vld [vmem:[#allocation16 + $0x28] sm:$0xff]  ;;  %v4202_v34 = vcvt.s32.f32 %v4170_v59 }
 0x2b8   :  { %10855 = vst [vmem:[#allocation44_spill] sm:$0xff] %v9401_v23  ;;  %10859 = vst [vmem:[#allocation46_spill] sm:$0xff] %v9407_v6  ;;  %v4201_v62 = vcvt.s32.f32 %v4169_v55  ;;  %v4236_v27 = vld [vmem:[#allocation16 + $0x30] sm:$0xff]  ;;  %v4237_v24 = vld [vmem:[#allocation16 + $0x38] sm:$0xff]  ;;  %v4203_v3 = vcvt.s32.f32 %v4171_v48  ;;  %v4204_v51 = vcvt.s32.f32 %v4172_v53  ;;  %v4176_v53 = vunpack.c.1.s8 %v9372_v5 }
 0x2b9   :  { %10861 = vst [vmem:[#allocation47_spill] sm:$0xff] %v9410_v63  ;;  %v4205_v63 = vcvt.s32.f32 %v4173_v42  ;;  %v4262_v6 = vadd.f32 %v4230_v43, %v4198_v45  ;;  %v4263_v25 = vadd.f32 %v4231_v4, %v4199_v31  ;;  %v4264_v23 = vadd.f32 %v4232_v30, %v4200_v20  ;;  %v4238_v30 = vld [vmem:[#allocation16 + $0x40] sm:$0xff]  ;;  %v4240_v45 = vld [vmem:[#allocation16 + $0x50] sm:$0xff]  ;;  %v4241_v31 = vld [vmem:[#allocation16 + $0x58] sm:$0xff] }
 0x2ba   :  { %v4265_v10 = vadd.f32 %v4233_v15, %v4201_v62  ;;  %v4266_v61 = vadd.f32 %v4234_v26, %v4202_v34  ;;  %v4267_v2 = vadd.f32 %v4235_v19, %v4203_v3  ;;  %v4268_v36 = vadd.f32 %v4236_v27, %v4204_v51  ;;  %v4239_v26 = vld [vmem:[#allocation16 + $0x48] sm:$0xff]  ;;  %v4242_v62 = vld [vmem:[#allocation16 + $0x60] sm:$0xff] }
 0x2bb   :  { %v4269_v35 = vadd.f32 %v4237_v24, %v4205_v63  ;;  %v4326_v12 = vadd.f32 %v4262_v6, %v9270_v29  ;;  %v4327_v17 = vadd.f32 %v4263_v25, %v9274_v0  ;;  %v4328_v57 = vadd.f32 %v4264_v23, %v9278_v54 }
 0x2bc   :  { %v4329_v55 = vadd.f32 %v4265_v10, %v9283_v37  ;;  %v4330_v59 = vadd.f32 %v4266_v61, %v9287_v16  ;;  %v4331_v48 = vadd.f32 %v4267_v2, %v9291_v32  ;;  %v4332_v43 = vadd.f32 %v4268_v36, %v9296_v49 }
 0x2bd   :  { %v4333_v4 = vadd.f32 %v4269_v35, %v9300_v11  ;;  %vm4358_vm0 = vcmp.gt.f32.partialorder %v4326_v12, 0.0  ;;  %vm4359_vm1 = vcmp.gt.f32.partialorder %v4327_v17, 0.0  ;;  %vm4360_vm2 = vcmp.gt.f32.partialorder %v4328_v57, 0.0 }
 0x2be   :  { %vm4361_vm3 = vcmp.gt.f32.partialorder %v4329_v55, 0.0  ;;  %v9429_v29 = vsel %vm4358_vm0, 1.0, %v10714_v28  ;;  %v9432_v0 = vsel %vm4359_vm1, 1.0, %v10714_v28  ;;  %v9435_v54 = vsel %vm4360_vm2, 1.0, %v10714_v28 }
 0x2bf   :  { %v9438_v37 = vsel %vm4361_vm3, 1.0, %v10714_v28  ;;  %v4454_v16 = vsub.f32 %v4326_v12, %v9429_v29  ;;  %v4455_v32 = vsub.f32 %v4327_v17, %v9432_v0  ;;  %v4456_v49 = vsub.f32 %v4328_v57, %v9435_v54  ;;  %v4243_v17 = vld [vmem:[#allocation16 + $0x68] sm:$0xff]  ;;  %v4244_v57 = vld [vmem:[#allocation16 + $0x70] sm:$0xff] }
 0x2c0   :  { %v4457_v11 = vsub.f32 %v4329_v55, %v9438_v37  ;;  %vm4362_vm4 = vcmp.gt.f32.partialorder %v4330_v59, 0.0  ;;  %vm4363_vm5 = vcmp.gt.f32.partialorder %v4331_v48, 0.0  ;;  %vm4364_vm6 = vcmp.gt.f32.partialorder %v4332_v43, 0.0  ;;  %v4245_v55 = vld [vmem:[#allocation16 + $0x78] sm:$0xff] }
 0x2c1   :  { %vm4365_vm7 = vcmp.gt.f32.partialorder %v4333_v4, 0.0  ;;  %4486 = vst [vmem:[#allocation16] sm:$0xff] %v4454_v16  ;;  %4487 = vst [vmem:[#allocation16 + $0x8] sm:$0xff] %v4455_v32  ;;  %v9445_v35 = vsel %vm4362_vm4, 1.0, %v10714_v28  ;;  %v9448_v36 = vsel %vm4363_vm5, 1.0, %v10714_v28  ;;  %v9451_v2 = vsel %vm4364_vm6, 1.0, %v10714_v28 }
 0x2c2   :  { %4488 = vst [vmem:[#allocation16 + $0x10] sm:$0xff] %v4456_v49  ;;  %4489 = vst [vmem:[#allocation16 + $0x18] sm:$0xff] %v4457_v11  ;;  %v9454_v61 = vsel %vm4365_vm7, 1.0, %v10714_v28  ;;  %v4458_v10 = vsub.f32 %v4330_v59, %v9445_v35  ;;  %v4459_v23 = vsub.f32 %v4331_v48, %v9448_v36  ;;  %v4460_v25 = vsub.f32 %v4332_v43, %v9451_v2 }
 0x2c3   :  { %v4461_v6 = vsub.f32 %v4333_v4, %v9454_v61  ;;  %v4174_v63 = vunpack.c.1.s8 %v9352_v9  ;;  %v4175_v15 = vunpack.c.1.s8 %v9354_v38  ;;  %v4177_v42 = vunpack.c.1.s8 %v9374_v21 }
 0x2c4   :  { %4490 = vst [vmem:[#allocation16 + $0x20] sm:$0xff] %v4458_v10  ;;  %4491 = vst [vmem:[#allocation16 + $0x28] sm:$0xff] %v4459_v23  ;;  %v4178_v20 = vunpack.c.1.s8 %v9376_v39  ;;  %v4179_v19 = vunpack.c.1.s8 %v9394_v46  ;;  %v4180_v27 = vunpack.c.1.s8 %v9396_v13  ;;  %v4181_v24 = vunpack.c.1.s8 %v9398_v18 }
 0x2c5   :  { %4492 = vst [vmem:[#allocation16 + $0x30] sm:$0xff] %v4460_v25  ;;  %4493 = vst [vmem:[#allocation16 + $0x38] sm:$0xff] %v4461_v6  ;;  %v4206_v34 = vcvt.s32.f32 %v4174_v63  ;;  %v4207_v3 = vcvt.s32.f32 %v4175_v15  ;;  %v4208_v51 = vcvt.s32.f32 %v4176_v53  ;;  %v4209_v12 = vcvt.s32.f32 %v4177_v42 }
 0x2c6   :  { %v4210_v59 = vcvt.s32.f32 %v4178_v20  ;;  %v4211_v48 = vcvt.s32.f32 %v4179_v19  ;;  %v4212_v43 = vcvt.s32.f32 %v4180_v27  ;;  %v4213_v4 = vcvt.s32.f32 %v4181_v24 }
 0x2c7   :  { %v4270_v16 = vadd.f32 %v4238_v30, %v4206_v34  ;;  %v4271_v32 = vadd.f32 %v4239_v26, %v4207_v3  ;;  %v4272_v49 = vadd.f32 %v4240_v45, %v4208_v51  ;;  %v4273_v11 = vadd.f32 %v4241_v31, %v4209_v12 }
 0x2c8   :  { %v4274_v10 = vadd.f32 %v4242_v62, %v4210_v59  ;;  %v4275_v23 = vadd.f32 %v4243_v17, %v4211_v48  ;;  %v4276_v25 = vadd.f32 %v4244_v57, %v4212_v43  ;;  %v4277_v6 = vadd.f32 %v4245_v55, %v4213_v4  ;;  %v4246_v17 = vld [vmem:[#allocation16 + $0x80] sm:$0xff]  ;;  %v4247_v55 = vld [vmem:[#allocation16 + $0x88] sm:$0xff]  ;;  %v4248_v43 = vld [vmem:[#allocation16 + $0x90] sm:$0xff] }
 0x2c9   :  { %v4334_v63 = vadd.f32 %v4270_v16, %v9304_v40  ;;  %v4335_v15 = vadd.f32 %v4271_v32, %v9308_v14  ;;  %v4336_v53 = vadd.f32 %v4272_v49, %v9312_v7  ;;  %v4337_v42 = vadd.f32 %v4273_v11, %v9316_v1  ;;  %v4249_v4 = vld [vmem:[#allocation16 + $0x98] sm:$0xff]  ;;  %v4250_v32 = vld [vmem:[#allocation16 + $0xa0] sm:$0xff] }
 0x2ca   :  { %v4338_v20 = vadd.f32 %v4274_v10, %v9322_v56  ;;  %v4339_v19 = vadd.f32 %v4275_v23, %v9326_v33  ;;  %v4340_v30 = vadd.f32 %v4276_v25, %v9330_v50  ;;  %v4341_v26 = vadd.f32 %v4277_v6, %v9334_v58 }
 0x2cb   :  { %vm4366_vm8 = vcmp.gt.f32.partialorder %v4334_v63, 0.0  ;;  %vm4367_vm9 = vcmp.gt.f32.partialorder %v4335_v15, 0.0  ;;  %vm4368_vm10 = vcmp.gt.f32.partialorder %v4336_v53, 0.0  ;;  %vm4369_vm11 = vcmp.gt.f32.partialorder %v4337_v42, 0.0 }
 0x2cc   :  { %v9477_v40 = vsel %vm4366_vm8, 1.0, %v10714_v28  ;;  %v9480_v14 = vsel %vm4367_vm9, 1.0, %v10714_v28  ;;  %v9483_v7 = vsel %vm4368_vm10, 1.0, %v10714_v28  ;;  %v9486_v1 = vsel %vm4369_vm11, 1.0, %v10714_v28 }
 0x2cd   :  { %v4462_v56 = vsub.f32 %v4334_v63, %v9477_v40  ;;  %v4463_v33 = vsub.f32 %v4335_v15, %v9480_v14  ;;  %v4464_v50 = vsub.f32 %v4336_v53, %v9483_v7  ;;  %v4465_v58 = vsub.f32 %v4337_v42, %v9486_v1  ;;  %v4251_v15 = vld [vmem:[#allocation16 + $0xa8] sm:$0xff]  ;;  %v4252_v53 = vld [vmem:[#allocation16 + $0xb0] sm:$0xff]  ;;  %v4253_v42 = vld [vmem:[#allocation16 + $0xb8] sm:$0xff] }
 0x2ce   :  { %vm4370_vm12 = vcmp.gt.f32.partialorder %v4338_v20, 0.0  ;;  %vm4371_vm13 = vcmp.gt.f32.partialorder %v4339_v19, 0.0  ;;  %vm4372_vm14 = vcmp.gt.f32.partialorder %v4340_v30, 0.0  ;;  %vm4373_vm15 = vcmp.gt.f32.partialorder %v4341_v26, 0.0 }
 0x2cf   :  { %4494 = vst [vmem:[#allocation16 + $0x40] sm:$0xff] %v4462_v56  ;;  %4495 = vst [vmem:[#allocation16 + $0x48] sm:$0xff] %v4463_v33  ;;  %v9493_v45 = vsel %vm4370_vm12, 1.0, %v10714_v28  ;;  %v9496_v31 = vsel %vm4371_vm13, 1.0, %v10714_v28  ;;  %v9499_v62 = vsel %vm4372_vm14, 1.0, %v10714_v28  ;;  %v9502_v27 = vsel %vm4373_vm15, 1.0, %v10714_v28 }
 0x2d0   :  { %4496 = vst [vmem:[#allocation16 + $0x50] sm:$0xff] %v4464_v50  ;;  %4497 = vst [vmem:[#allocation16 + $0x58] sm:$0xff] %v4465_v58  ;;  %v4466_v24 = vsub.f32 %v4338_v20, %v9493_v45  ;;  %v4467_v34 = vsub.f32 %v4339_v19, %v9496_v31  ;;  %v4468_v3 = vsub.f32 %v4340_v30, %v9499_v62  ;;  %v4182_v12 = vunpack.c.2.s8 %v9352_v9 }
 0x2d1   :  { %v4469_v51 = vsub.f32 %v4341_v26, %v9502_v27  ;;  %v4183_v57 = vunpack.c.2.s8 %v9354_v38  ;;  %v4184_v59 = vunpack.c.2.s8 %v9372_v5  ;;  %v4185_v48 = vunpack.c.2.s8 %v9374_v21 }
 0x2d2   :  { %4498 = vst [vmem:[#allocation16 + $0x60] sm:$0xff] %v4466_v24  ;;  %4499 = vst [vmem:[#allocation16 + $0x68] sm:$0xff] %v4467_v34  ;;  %v4186_v16 = vunpack.c.2.s8 %v9376_v39  ;;  %v4187_v49 = vunpack.c.2.s8 %v9394_v46  ;;  %v4188_v11 = vunpack.c.2.s8 %v9396_v13  ;;  %v4189_v10 = vunpack.c.2.s8 %v9398_v18 }
 0x2d3   :  { %4500 = vst [vmem:[#allocation16 + $0x70] sm:$0xff] %v4468_v3  ;;  %4501 = vst [vmem:[#allocation16 + $0x78] sm:$0xff] %v4469_v51  ;;  %v4214_v23 = vcvt.s32.f32 %v4182_v12  ;;  %v4215_v25 = vcvt.s32.f32 %v4183_v57  ;;  %v4216_v6 = vcvt.s32.f32 %v4184_v59  ;;  %v4217_v63 = vcvt.s32.f32 %v4185_v48 }
 0x2d4   :  { %v4218_v20 = vcvt.s32.f32 %v4186_v16  ;;  %v4219_v19 = vcvt.s32.f32 %v4187_v49  ;;  %v4220_v30 = vcvt.s32.f32 %v4188_v11  ;;  %v4221_v26 = vcvt.s32.f32 %v4189_v10 }
 0x2d5   :  { %v4278_v56 = vadd.f32 %v4246_v17, %v4214_v23  ;;  %v4279_v33 = vadd.f32 %v4247_v55, %v4215_v25  ;;  %v4280_v50 = vadd.f32 %v4248_v43, %v4216_v6  ;;  %v4281_v58 = vadd.f32 %v4249_v4, %v4217_v63  ;;  %v10862_v55 = vld [vmem:[#allocation39_spill] sm:$0xff] }
 0x2d6   :  { %v4282_v24 = vadd.f32 %v4250_v32, %v4218_v20  ;;  %v4283_v34 = vadd.f32 %v4251_v15, %v4219_v19  ;;  %v4284_v3 = vadd.f32 %v4252_v53, %v4220_v30  ;;  %v4285_v51 = vadd.f32 %v4253_v42, %v4221_v26  ;;  %v4254_v42 = vld [vmem:[#allocation16 + $0xc0] sm:$0xff]  ;;  %v4255_v19 = vld [vmem:[#allocation16 + $0xc8] sm:$0xff] }
 0x2d7   :  { %v4342_v12 = vadd.f32 %v4278_v56, %v9338_v22  ;;  %v4343_v57 = vadd.f32 %v4279_v33, %v9342_v52  ;;  %v4344_v59 = vadd.f32 %v4280_v50, %v9346_v60  ;;  %v4345_v48 = vadd.f32 %v4281_v58, %v9350_v44  ;;  %v4256_v56 = vld [vmem:[#allocation16 + $0xd0] sm:$0xff]  ;;  %v4257_v33 = vld [vmem:[#allocation16 + $0xd8] sm:$0xff]  ;;  %v4258_v58 = vld [vmem:[#allocation16 + $0xe0] sm:$0xff] }
 0x2d8   :  { %v4346_v16 = vadd.f32 %v4282_v24, %v9358_v47  ;;  %v4347_v49 = vadd.f32 %v4283_v34, %v9362_v41  ;;  %v4348_v17 = vadd.f32 %v4284_v3, %v9366_v8  ;;  %v4349_v43 = vadd.f32 %v4285_v51, %v10862_v55 }
 0x2d9   :  { %vm4374_vm0 = vcmp.gt.f32.partialorder %v4342_v12, 0.0  ;;  %vm4375_vm1 = vcmp.gt.f32.partialorder %v4343_v57, 0.0  ;;  %vm4376_vm2 = vcmp.gt.f32.partialorder %v4344_v59, 0.0  ;;  %vm4377_vm3 = vcmp.gt.f32.partialorder %v4345_v48, 0.0 }
 0x2da   :  { %v9525_v22 = vsel %vm4374_vm0, 1.0, %v10714_v28  ;;  %v9528_v52 = vsel %vm4375_vm1, 1.0, %v10714_v28  ;;  %v9531_v60 = vsel %vm4376_vm2, 1.0, %v10714_v28  ;;  %v9534_v44 = vsel %vm4377_vm3, 1.0, %v10714_v28 }
 0x2db   :  { %v4470_v47 = vsub.f32 %v4342_v12, %v9525_v22  ;;  %v4471_v41 = vsub.f32 %v4343_v57, %v9528_v52  ;;  %v4472_v8 = vsub.f32 %v4344_v59, %v9531_v60  ;;  %v4473_v4 = vsub.f32 %v4345_v48, %v9534_v44  ;;  %v4260_v12 = vld [vmem:[#allocation16 + $0xf0] sm:$0xff]  ;;  %v4261_v57 = vld [vmem:[#allocation16 + $0xf8] sm:$0xff] }
 0x2dc   :  { %vm4378_vm4 = vcmp.gt.f32.partialorder %v4346_v16, 0.0  ;;  %vm4379_vm5 = vcmp.gt.f32.partialorder %v4347_v49, 0.0  ;;  %vm4380_vm6 = vcmp.gt.f32.partialorder %v4348_v17, 0.0  ;;  %vm4381_vm7 = vcmp.gt.f32.partialorder %v4349_v43, 0.0 }
 0x2dd   :  { %4502 = vst [vmem:[#allocation16 + $0x80] sm:$0xff] %v4470_v47  ;;  %4503 = vst [vmem:[#allocation16 + $0x88] sm:$0xff] %v4471_v41  ;;  %v9541_v32 = vsel %vm4378_vm4, 1.0, %v10714_v28  ;;  %v9544_v11 = vsel %vm4379_vm5, 1.0, %v10714_v28  ;;  %v9547_v10 = vsel %vm4380_vm6, 1.0, %v10714_v28  ;;  %v9550_v23 = vsel %vm4381_vm7, 1.0, %v10714_v28 }
 0x2de   :  { %4504 = vst [vmem:[#allocation16 + $0x90] sm:$0xff] %v4472_v8  ;;  %4505 = vst [vmem:[#allocation16 + $0x98] sm:$0xff] %v4473_v4  ;;  %v4474_v25 = vsub.f32 %v4346_v16, %v9541_v32  ;;  %v4475_v6 = vsub.f32 %v4347_v49, %v9544_v11  ;;  %v4476_v63 = vsub.f32 %v4348_v17, %v9547_v10  ;;  %v4190_v53 = vunpack.c.3.s8 %v9352_v9  ;;  %v10864_v4 = vld [vmem:[#allocation41_spill] sm:$0xff] }
 0x2df   :  { %v4477_v15 = vsub.f32 %v4349_v43, %v9550_v23  ;;  %v4191_v20 = vunpack.c.3.s8 %v9354_v38  ;;  %v4192_v30 = vunpack.c.3.s8 %v9372_v5  ;;  %v4193_v26 = vunpack.c.3.s8 %v9374_v21  ;;  %v4259_v21 = vld [vmem:[#allocation16 + $0xe8] sm:$0xff] }
 0x2e0   :  { %4506 = vst [vmem:[#allocation16 + $0xa0] sm:$0xff] %v4474_v25  ;;  %4507 = vst [vmem:[#allocation16 + $0xa8] sm:$0xff] %v4475_v6  ;;  %v4194_v50 = vunpack.c.3.s8 %v9376_v39  ;;  %v4195_v24 = vunpack.c.3.s8 %v9394_v46  ;;  %v4196_v9 = vunpack.c.3.s8 %v9396_v13  ;;  %v4197_v38 = vunpack.c.3.s8 %v9398_v18  ;;  %v10863_v18 = vld [vmem:[#allocation40_spill] sm:$0xff]  ;;  %v10865_v6 = vld [vmem:[#allocation42_spill] sm:$0xff] }
 0x2e1   :  { %4508 = vst [vmem:[#allocation16 + $0xb0] sm:$0xff] %v4476_v63  ;;  %4509 = vst [vmem:[#allocation16 + $0xb8] sm:$0xff] %v4477_v15  ;;  %v4222_v34 = vcvt.s32.f32 %v4190_v53  ;;  %v4223_v3 = vcvt.s32.f32 %v4191_v20  ;;  %v4224_v5 = vcvt.s32.f32 %v4192_v30  ;;  %v4225_v51 = vcvt.s32.f32 %v4193_v26  ;;  %v10866_v15 = vld [vmem:[#allocation43_spill] sm:$0xff]  ;;  %v10867_v20 = vld [vmem:[#allocation44_spill] sm:$0xff] }
 0x2e2   :  { %v4226_v59 = vcvt.s32.f32 %v4194_v50  ;;  %v4227_v48 = vcvt.s32.f32 %v4195_v24  ;;  %v4228_v16 = vcvt.s32.f32 %v4196_v9  ;;  %v4229_v49 = vcvt.s32.f32 %v4197_v38  ;;  %v10868_v26 = vld [vmem:[#allocation45_spill] sm:$0xff] }
 0x2e3   :  { %v4286_v17 = vadd.f32 %v4254_v42, %v4222_v34  ;;  %v4287_v39 = vadd.f32 %v4255_v19, %v4223_v3  ;;  %v4288_v55 = vadd.f32 %v4256_v56, %v4224_v5  ;;  %v4289_v43 = vadd.f32 %v4257_v33, %v4225_v51  ;;  %v10869_v42 = vld [vmem:[#allocation46_spill] sm:$0xff]  ;;  %v10870_v56 = vld [vmem:[#allocation47_spill] sm:$0xff] }
 0x2e4   :  { %v4290_v46 = vadd.f32 %v4258_v58, %v4226_v59  ;;  %v4291_v47 = vadd.f32 %v4259_v21, %v4227_v48  ;;  %v4292_v13 = vadd.f32 %v4260_v12, %v4228_v16  ;;  %v4293_v41 = vadd.f32 %v4261_v57, %v4229_v49 }
 0x2e5   :  { %v4350_v8 = vadd.f32 %v4286_v17, %v10863_v18  ;;  %v4351_v25 = vadd.f32 %v4287_v39, %v10864_v4  ;;  %v4352_v63 = vadd.f32 %v4288_v55, %v10865_v6  ;;  %v4353_v53 = vadd.f32 %v4289_v43, %v10866_v15  ;;  %v9604_v39 = vld [vmem:[#allocation17] sm:$0xff]  ;;  %v9606_v55 = vld [vmem:[#allocation17 + $0x8] sm:$0xff]  ;;  %v9608_v43 = vld [vmem:[#allocation17 + $0x10] sm:$0xff] }
 0x2e6   :  { %v4354_v30 = vadd.f32 %v4290_v46, %v10867_v20  ;;  %v4355_v50 = vadd.f32 %v4291_v47, %v10868_v26  ;;  %v4356_v19 = vadd.f32 %v4292_v13, %v10869_v42  ;;  %v4357_v33 = vadd.f32 %v4293_v41, %v10870_v56  ;;  %v9610_v46 = vld [vmem:[#allocation17 + $0x18] sm:$0xff]  ;;  %v9618_v4 = vld [vmem:[#allocation17 + $0x28] sm:$0xff] }
 0x2e7   :  { %vm4382_vm8 = vcmp.gt.f32.partialorder %v4350_v8, 0.0  ;;  %vm4383_vm9 = vcmp.gt.f32.partialorder %v4351_v25, 0.0  ;;  %vm4384_vm10 = vcmp.gt.f32.partialorder %v4352_v63, 0.0  ;;  %vm4385_vm11 = vcmp.gt.f32.partialorder %v4353_v53, 0.0  ;;  %v9622_v6 = vld [vmem:[#allocation17 + $0x38] sm:$0xff]  ;;  %v9630_v26 = vld [vmem:[#allocation17 + $0x48] sm:$0xff] }
 0x2e8   :  { %v9573_v58 = vsel %vm4382_vm8, 1.0, %v10714_v28  ;;  %v9576_v24 = vsel %vm4383_vm9, 1.0, %v10714_v28  ;;  %v9579_v9 = vsel %vm4384_vm10, 1.0, %v10714_v28  ;;  %v9582_v38 = vsel %vm4385_vm11, 1.0, %v10714_v28  ;;  %10871 = vst [vmem:[#allocation48_spill] sm:$0xff] %v9630_v26  ;;  %v9634_v42 = vld [vmem:[#allocation17 + $0x58] sm:$0xff] }
 0x2e9   :  { %v4478_v34 = vsub.f32 %v4350_v8, %v9573_v58  ;;  %v4479_v3 = vsub.f32 %v4351_v25, %v9576_v24  ;;  %v4480_v5 = vsub.f32 %v4352_v63, %v9579_v9  ;;  %v4481_v51 = vsub.f32 %v4353_v53, %v9582_v38  ;;  %v9616_v8 = vld [vmem:[#allocation17 + $0x20] sm:$0xff]  ;;  %v9620_v25 = vld [vmem:[#allocation17 + $0x30] sm:$0xff]  ;;  %10873 = vst [vmem:[#allocation50_spill] sm:$0xff] %v9634_v42 }
 0x2ea   :  { %vm4386_vm12 = vcmp.gt.f32.partialorder %v4354_v30, 0.0  ;;  %vm4387_vm13 = vcmp.gt.f32.partialorder %v4355_v50, 0.0  ;;  %vm4388_vm14 = vcmp.gt.f32.partialorder %v4356_v19, 0.0  ;;  %vm4389_vm15 = vcmp.gt.f32.partialorder %v4357_v33, 0.0 }
 0x2eb   :  { %4510 = vst [vmem:[#allocation16 + $0xc0] sm:$0xff] %v4478_v34  ;;  %4511 = vst [vmem:[#allocation16 + $0xc8] sm:$0xff] %v4479_v3  ;;  %v9589_v21 = vsel %vm4386_vm12, 1.0, %v10714_v28  ;;  %v9592_v12 = vsel %vm4387_vm13, 1.0, %v10714_v28  ;;  %v9595_v57 = vsel %vm4388_vm14, 1.0, %v10714_v28  ;;  %v9598_v59 = vsel %vm4389_vm15, 1.0, %v10714_v28 }
 0x2ec   :  { %4512 = vst [vmem:[#allocation16 + $0xd0] sm:$0xff] %v4480_v5  ;;  %4513 = vst [vmem:[#allocation16 + $0xd8] sm:$0xff] %v4481_v51  ;;  %v4482_v48 = vsub.f32 %v4354_v30, %v9589_v21  ;;  %v4483_v16 = vsub.f32 %v4355_v50, %v9592_v12  ;;  %v4484_v49 = vsub.f32 %v4356_v19, %v9595_v57  ;;  %v4518_v47 = vsub.f32 1.0, %v9429_v29  ;;  %v9628_v30 = vld [vmem:[#allocation17 + $0x40] sm:$0xff]  ;;  %v9632_v50 = vld [vmem:[#allocation17 + $0x50] sm:$0xff] }
 0x2ed   :  { %v4485_v17 = vsub.f32 %v4357_v33, %v9598_v59  ;;  %v4519_v13 = vsub.f32 1.0, %v9432_v0  ;;  %v4520_v41 = vsub.f32 1.0, %v9435_v54  ;;  %v4521_v18 = vsub.f32 1.0, %v9438_v37  ;;  %10872 = vst [vmem:[#allocation49_spill] sm:$0xff] %v9632_v50  ;;  %v9640_v3 = vld [vmem:[#allocation17 + $0x60] sm:$0xff]  ;;  %v9642_v5 = vld [vmem:[#allocation17 + $0x68] sm:$0xff] }
 0x2ee   :  { %4514 = vst [vmem:[#allocation16 + $0xe0] sm:$0xff] %v4482_v48  ;;  %4515 = vst [vmem:[#allocation16 + $0xe8] sm:$0xff] %v4483_v16  ;;  %v4522_v63 = vsub.f32 1.0, %v9445_v35  ;;  %v4523_v15 = vsub.f32 1.0, %v9448_v36  ;;  %v4524_v53 = vsub.f32 1.0, %v9451_v2  ;;  %v4525_v20 = vsub.f32 1.0, %v9454_v61 }
 0x2ef   :  { %4516 = vst [vmem:[#allocation16 + $0xf0] sm:$0xff] %v4484_v49  ;;  %4517 = vst [vmem:[#allocation16 + $0xf8] sm:$0xff] %v4485_v17  ;;  %v4526_v19 = vsub.f32 1.0, %v9477_v40  ;;  %v4527_v56 = vsub.f32 1.0, %v9480_v14  ;;  %v4528_v33 = vsub.f32 1.0, %v9483_v7  ;;  %v4529_v34 = vsub.f32 1.0, %v9486_v1 }
 0x2f0   :  { %4582 = vst [vmem:[#allocation17] sm:$0xff] %v4518_v47  ;;  %4583 = vst [vmem:[#allocation17 + $0x8] sm:$0xff] %v4519_v13  ;;  %v9644_v51 = vld [vmem:[#allocation17 + $0x70] sm:$0xff]  ;;  %v9646_v48 = vld [vmem:[#allocation17 + $0x78] sm:$0xff]  ;;  %v4530_v16 = vsub.f32 1.0, %v9493_v45  ;;  %v4531_v49 = vsub.f32 1.0, %v9496_v31  ;;  %v4977_v42 = vtrunc.f32 %v9486_v1 }
 0x2f1   :  { %4584 = vst [vmem:[#allocation17 + $0x10] sm:$0xff] %v4520_v41  ;;  %4585 = vst [vmem:[#allocation17 + $0x18] sm:$0xff] %v4521_v18  ;;  %v4532_v17 = vsub.f32 1.0, %v9499_v62  ;;  %v4533_v47 = vsub.f32 1.0, %v9502_v27  ;;  %v9652_v13 = vld [vmem:[#allocation17 + $0x80] sm:$0xff]  ;;  %v9654_v41 = vld [vmem:[#allocation17 + $0x88] sm:$0xff] }
 0x2f2   :  { %10874 = vst [vmem:[#allocation51_spill] sm:$0xff] %v9640_v3  ;;  %10875 = vst [vmem:[#allocation52_spill] sm:$0xff] %v9642_v5  ;;  %v9656_v18 = vld [vmem:[#allocation17 + $0x90] sm:$0xff]  ;;  %v4969_v3 = vtrunc.f32 %v9438_v37 }
 0x2f3   :  { %10876 = vst [vmem:[#allocation30_spill] sm:$0xff] %v9644_v51  ;;  %10877 = vst [vmem:[#allocation31_spill] sm:$0xff] %v9646_v48  ;;  %v9658_v51 = vld [vmem:[#allocation17 + $0x98] sm:$0xff]  ;;  %v9664_v48 = vld [vmem:[#allocation17 + $0xa0] sm:$0xff] }
 0x2f4   :  { %4586 = vst [vmem:[#allocation17 + $0x20] sm:$0xff] %v4522_v63  ;;  %4587 = vst [vmem:[#allocation17 + $0x28] sm:$0xff] %v4523_v15  ;;  %v4534_v63 = vsub.f32 1.0, %v9525_v22  ;;  %v4535_v15 = vsub.f32 1.0, %v9528_v52 }
 0x2f5   :  { %4588 = vst [vmem:[#allocation17 + $0x30] sm:$0xff] %v4524_v53  ;;  %4589 = vst [vmem:[#allocation17 + $0x38] sm:$0xff] %v4525_v20  ;;  %v4536_v53 = vsub.f32 1.0, %v9531_v60  ;;  %v4537_v20 = vsub.f32 1.0, %v9534_v44 }
 0x2f6   :  { %10878 = vst [vmem:[#allocation32_spill] sm:$0xff] %v9652_v13  ;;  %10879 = vst [vmem:[#allocation33_spill] sm:$0xff] %v9654_v41  ;;  %v9666_v13 = vld [vmem:[#allocation17 + $0xa8] sm:$0xff]  ;;  %v9668_v41 = vld [vmem:[#allocation17 + $0xb0] sm:$0xff] }
 0x2f7   :  { %10880 = vst [vmem:[#allocation34_spill] sm:$0xff] %v9656_v18  ;;  %10881 = vst [vmem:[#allocation35_spill] sm:$0xff] %v9658_v51  ;;  %v9674_v51 = vld [vmem:[#allocation17 + $0xb8] sm:$0xff]  ;;  %v9676_v18 = vld [vmem:[#allocation17 + $0xc0] sm:$0xff] }
 0x2f8   :  { %4590 = vst [vmem:[#allocation17 + $0x40] sm:$0xff] %v4526_v19  ;;  %4591 = vst [vmem:[#allocation17 + $0x48] sm:$0xff] %v4527_v56  ;;  %v4538_v19 = vsub.f32 1.0, %v9541_v32  ;;  %v4539_v56 = vsub.f32 1.0, %v9544_v11 }
 0x2f9   :  { %4592 = vst [vmem:[#allocation17 + $0x50] sm:$0xff] %v4528_v33  ;;  %4593 = vst [vmem:[#allocation17 + $0x58] sm:$0xff] %v4529_v34  ;;  %v4540_v33 = vsub.f32 1.0, %v9547_v10  ;;  %v4541_v34 = vsub.f32 1.0, %v9550_v23 }
 0x2fa   :  { %10882 = vst [vmem:[#allocation36_spill] sm:$0xff] %v9664_v48  ;;  %10883 = vst [vmem:[#allocation37_spill] sm:$0xff] %v9666_v13  ;;  %v4545_v13 = vsub.f32 1.0, %v9582_v38 }
 0x2fb   :  { %10884 = vst [vmem:[#allocation38_spill] sm:$0xff] %v9668_v41  ;;  %4594 = vst [vmem:[#allocation17 + $0x60] sm:$0xff] %v4530_v16  ;;  %v4542_v16 = vsub.f32 1.0, %v9573_v58  ;;  %v9683_v41 = vld [vmem:[#allocation17 + $0xd0] sm:$0xff] }
 0x2fc   :  { %4595 = vst [vmem:[#allocation17 + $0x68] sm:$0xff] %v4531_v49  ;;  %4596 = vst [vmem:[#allocation17 + $0x70] sm:$0xff] %v4532_v17  ;;  %v4543_v49 = vsub.f32 1.0, %v9576_v24  ;;  %v9680_v17 = vld [vmem:[#allocation17 + $0xc8] sm:$0xff] }
 0x2fd   :  { %4597 = vst [vmem:[#allocation17 + $0x78] sm:$0xff] %v4533_v47  ;;  %10885 = vst [vmem:[#allocation39_spill] sm:$0xff] %v9674_v51  ;;  %v4544_v47 = vsub.f32 1.0, %v9579_v9  ;;  %v4976_v51 = vtrunc.f32 %v9483_v7 }
 0x2fe   :  { %10886 = vst [vmem:[#allocation40_spill] sm:$0xff] %v9676_v18  ;;  %4598 = vst [vmem:[#allocation17 + $0x80] sm:$0xff] %v4534_v63  ;;  %v9686_v63 = vld [vmem:[#allocation17 + $0xd8] sm:$0xff]  ;;  %v4549_v18 = vsub.f32 1.0, %v9598_v59 }
 0x2ff   :  { %4599 = vst [vmem:[#allocation17 + $0x88] sm:$0xff] %v4535_v15  ;;  %4600 = vst [vmem:[#allocation17 + $0x90] sm:$0xff] %v4536_v53  ;;  %v4546_v15 = vsub.f32 1.0, %v9589_v21  ;;  %v9689_v53 = vld [vmem:[#allocation17 + $0xe0] sm:$0xff] }
 0x300   :  { %4601 = vst [vmem:[#allocation17 + $0x98] sm:$0xff] %v4537_v20  ;;  %10887 = vst [vmem:[#allocation41_spill] sm:$0xff] %v9680_v17  ;;  %v4547_v20 = vsub.f32 1.0, %v9592_v12  ;;  %v4548_v17 = vsub.f32 1.0, %v9595_v57 }
 0x301   :  { %10888 = vst [vmem:[#allocation42_spill] sm:$0xff] %v9683_v41  ;;  %4602 = vst [vmem:[#allocation17 + $0xa0] sm:$0xff] %v4538_v19  ;;  %v9694_v19 = vld [vmem:[#allocation17 + $0xe8] sm:$0xff]  ;;  %v4990_v41 = vtrunc.f32 %v9573_v58 }
 0x302   :  { %4603 = vst [vmem:[#allocation17 + $0xa8] sm:$0xff] %v4539_v56  ;;  %4604 = vst [vmem:[#allocation17 + $0xb0] sm:$0xff] %v4540_v33  ;;  %v9696_v56 = vld [vmem:[#allocation17 + $0xf0] sm:$0xff]  ;;  %v9698_v33 = vld [vmem:[#allocation17 + $0xf8] sm:$0xff] }
 0x303   :  { %4605 = vst [vmem:[#allocation17 + $0xb8] sm:$0xff] %v4541_v34  ;;  %10889 = vst [vmem:[#allocation43_spill] sm:$0xff] %v9686_v63  ;;  %v4966_v34 = vtrunc.f32 %v9429_v29  ;;  %v4982_v63 = vtrunc.f32 %v9525_v22 }
 0x304   :  { %10890 = vst [vmem:[#allocation44_spill] sm:$0xff] %v9689_v53  ;;  %4606 = vst [vmem:[#allocation17 + $0xc0] sm:$0xff] %v4542_v16  ;;  %v4974_v53 = vtrunc.f32 %v9477_v40  ;;  %v4975_v16 = vtrunc.f32 %v9480_v14 }
 0x305   :  { %4607 = vst [vmem:[#allocation17 + $0xc8] sm:$0xff] %v4543_v49  ;;  %4608 = vst [vmem:[#allocation17 + $0xd0] sm:$0xff] %v4544_v47  ;;  %v4983_v49 = vtrunc.f32 %v9528_v52  ;;  %v4991_v47 = vtrunc.f32 %v9576_v24 }
 0x306   :  { %4609 = vst [vmem:[#allocation17 + $0xd8] sm:$0xff] %v4545_v13  ;;  %10891 = vst [vmem:[#allocation45_spill] sm:$0xff] %v9694_v19  ;;  %v4967_v13 = vtrunc.f32 %v9432_v0  ;;  %v4968_v19 = vtrunc.f32 %v9435_v54 }
 0x307   :  { %10892 = vst [vmem:[#allocation46_spill] sm:$0xff] %v9696_v56  ;;  %10893 = vst [vmem:[#allocation47_spill] sm:$0xff] %v9698_v33  ;;  %v4998_v33 = vpack.c.f32.eXmY %v4966_v34, %v4974_v53, 312  ;;  %v5002_v56 = vpack.c.f32.eXmY %v4982_v63, %v4990_v41, 312  ;;  %v4985_v41 = vtrunc.f32 %v9534_v44  ;;  %v4993_v63 = vtrunc.f32 %v9582_v38 }
 0x308   :  { %4610 = vst [vmem:[#allocation17 + $0xe0] sm:$0xff] %v4546_v15  ;;  %4611 = vst [vmem:[#allocation17 + $0xe8] sm:$0xff] %v4547_v20  ;;  %v5008_v48 = vpack.c.f32.eXmY %v4967_v13, %v4975_v16, 312  ;;  %v5012_v5 = vpack.c.f32.eXmY %v4983_v49, %v4991_v47, 312  ;;  %v4984_v15 = vtrunc.f32 %v9531_v60  ;;  %v4970_v34 = vtrunc.f32 %v9445_v35 }
 0x309   :  { %4612 = vst [vmem:[#allocation17 + $0xf0] sm:$0xff] %v4548_v17  ;;  %4613 = vst [vmem:[#allocation17 + $0xf8] sm:$0xff] %v4549_v18  ;;  %v4992_v18 = vtrunc.f32 %v9579_v9  ;;  %v5006_v17 = vpack.c.b8 %v5002_v56, %v4998_v33  ;;  %v5018_v20 = vpack.c.f32.eXmY %v4968_v19, %v4976_v51, 312  ;;  %v5028_v53 = vpack.c.f32.eXmY %v4969_v3, %v4977_v42, 312 }
 0x30a   :  { %v5016_v50 = vpack.c.b8 %v5012_v5, %v5008_v48  ;;  %v4978_v13 = vtrunc.f32 %v9493_v45  ;;  %v4986_v16 = vtrunc.f32 %v9541_v32  ;;  %v5032_v19 = vpack.c.f32.eXmY %v4985_v41, %v4993_v63, 312 }
 0x30b   :  { %v5022_v26 = vpack.c.f32.eXmY %v4984_v15, %v4992_v18, 312  ;;  %5079 = vst [vmem:[#allocation13 + $0x100] sm:$0xff] %v5006_v17  ;;  %v4994_v56 = vtrunc.f32 %v9589_v21  ;;  %v4971_v5 = vtrunc.f32 %v9448_v36  ;;  %v4979_v33 = vtrunc.f32 %v9496_v31 }
 0x30c   :  { %5080 = vst [vmem:[#allocation13 + $0x108] sm:$0xff] %v5016_v50  ;;  %v5038_v48 = vpack.c.f32.eXmY %v4970_v34, %v4978_v13, 312  ;;  %v4987_v49 = vtrunc.f32 %v9544_v11  ;;  %v4995_v42 = vtrunc.f32 %v9592_v12  ;;  %v5036_v3 = vpack.c.b8 %v5032_v19, %v5028_v53 }
 0x30d   :  { %v5026_v51 = vpack.c.b8 %v5022_v26, %v5018_v20  ;;  %v5042_v47 = vpack.c.f32.eXmY %v4986_v16, %v4994_v56, 312  ;;  %v4972_v15 = vtrunc.f32 %v9451_v2  ;;  %v4980_v50 = vtrunc.f32 %v9499_v62 }
 0x30e   :  { %v5048_v26 = vpack.c.f32.eXmY %v4971_v5, %v4979_v33, 312  ;;  %v5052_v18 = vpack.c.f32.eXmY %v4987_v49, %v4995_v42, 312  ;;  %v4988_v17 = vtrunc.f32 %v9547_v10  ;;  %v4996_v20 = vtrunc.f32 %v9595_v57  ;;  %5082 = vst [vmem:[#allocation13 + $0x118] sm:$0xff] %v5036_v3 }
 0x30f   :  { %5081 = vst [vmem:[#allocation13 + $0x110] sm:$0xff] %v5026_v51  ;;  %v5046_v41 = vpack.c.b8 %v5042_v47, %v5038_v48  ;;  %v5058_v63 = vpack.c.f32.eXmY %v4972_v15, %v4980_v50, 312  ;;  %v4973_v34 = vtrunc.f32 %v9454_v61  ;;  %v4981_v13 = vtrunc.f32 %v9502_v27 }
 0x310   :  { %v5056_v51 = vpack.c.b8 %v5052_v18, %v5048_v26  ;;  %v5062_v53 = vpack.c.f32.eXmY %v4988_v17, %v4996_v20, 312  ;;  %v4989_v16 = vtrunc.f32 %v9550_v23  ;;  %v4997_v19 = vtrunc.f32 %v9598_v59  ;;  %v4614_v20 = vld [vmem:[#allocation20] sm:$0xff] }
 0x311   :  { %5083 = vst [vmem:[#allocation13 + $0x120] sm:$0xff] %v5046_v41  ;;  %v5068_v56 = vpack.c.f32.eXmY %v4973_v34, %v4981_v13, 312  ;;  %v4646_v5 = vmul.f32 2.0, %v9429_v29  ;;  %v4647_v33 = vmul.f32 2.0, %v9432_v0  ;;  %v4648_v49 = vmul.f32 2.0, %v9435_v54  ;;  %v4615_v29 = vld [vmem:[#allocation20 + $0x8] sm:$0xff] }
 0x312   :  { %5084 = vst [vmem:[#allocation13 + $0x128] sm:$0xff] %v5056_v51  ;;  %v5066_v48 = vpack.c.b8 %v5062_v53, %v5058_v63  ;;  %v5072_v42 = vpack.c.f32.eXmY %v4989_v16, %v4997_v19, 312  ;;  %v4649_v3 = vmul.f32 2.0, %v9438_v37  ;;  %v4650_v47 = vmul.f32 2.0, %v9445_v35  ;;  %v4616_v41 = vld [vmem:[#allocation20 + $0x10] sm:$0xff]  ;;  %v4617_v37 = vld [vmem:[#allocation20 + $0x18] sm:$0xff] }
 0x313   :  { %v6531_v15 = vadd.f32 -1.0, %v4646_v5  ;;  %v6532_v50 = vadd.f32 -1.0, %v4647_v33  ;;  %v6533_v26 = vadd.f32 -1.0, %v4648_v49  ;;  %v4651_v18 = vmul.f32 2.0, %v9448_v36  ;;  %v4618_v53 = vld [vmem:[#allocation20 + $0x20] sm:$0xff]  ;;  %v4619_v5 = vld [vmem:[#allocation20 + $0x28] sm:$0xff] }
 0x314   :  { %5085 = vst [vmem:[#allocation13 + $0x130] sm:$0xff] %v5066_v48  ;;  %v5076_v17 = vpack.c.b8 %v5072_v42, %v5068_v56  ;;  %v6534_v0 = vadd.f32 -1.0, %v4649_v3  ;;  %v6535_v34 = vadd.f32 -1.0, %v4650_v47  ;;  %v4652_v54 = vmul.f32 2.0, %v9451_v2 }
 0x315   :  { %v4710_v63 = vadd.f32 %v6531_v15, %v4614_v20  ;;  %v4711_v13 = vadd.f32 %v6532_v50, %v4615_v29  ;;  %v4712_v51 = vadd.f32 %v6533_v26, %v4616_v41  ;;  %v6536_v35 = vadd.f32 -1.0, %v4651_v18  ;;  %v4620_v15 = vld [vmem:[#allocation20 + $0x30] sm:$0xff] }
 0x316   :  { %5086 = vst [vmem:[#allocation13 + $0x138] sm:$0xff] %v5076_v17  ;;  %v4713_v16 = vadd.f32 %v6534_v0, %v4617_v37  ;;  %v4714_v19 = vadd.f32 %v6535_v34, %v4618_v53  ;;  %v6537_v36 = vadd.f32 -1.0, %v4652_v54  ;;  %v4653_v56 = vmul.f32 2.0, %v9454_v61  ;;  %v4621_v34 = vld [vmem:[#allocation20 + $0x38] sm:$0xff]  ;;  %v4622_v53 = vld [vmem:[#allocation20 + $0x40] sm:$0xff] }
 0x317   :  { %vm4742_vm0 = vcmp.gt.f32.partialorder %v4710_v63, 0.0  ;;  %vm4743_vm1 = vcmp.gt.f32.partialorder %v4711_v13, 0.0  ;;  %vm4744_vm2 = vcmp.gt.f32.partialorder %v4712_v51, 0.0  ;;  %v4715_v33 = vadd.f32 %v6536_v35, %v4619_v5 }
 0x318   :  { %v9741_v49 = vsel %vm4742_vm0, 1.0, %v10714_v28  ;;  %v9744_v2 = vsel %vm4743_vm1, 1.0, %v10714_v28  ;;  %v9747_v48 = vsel %vm4744_vm2, 1.0, %v10714_v28  ;;  %vm4745_vm3 = vcmp.gt.f32.partialorder %v4713_v16, 0.0 }
 0x319   :  { %v4838_v42 = vsub.f32 %v4710_v63, %v9741_v49  ;;  %v4839_v3 = vsub.f32 %v4711_v13, %v9744_v2  ;;  %v4840_v61 = vsub.f32 %v4712_v51, %v9747_v48  ;;  %v9753_v47 = vsel %vm4745_vm3, 1.0, %v10714_v28 }
 0x31a   :  { %v4841_v50 = vsub.f32 %v4713_v16, %v9753_v47  ;;  %vm4746_vm4 = vcmp.gt.f32.partialorder %v4714_v19, 0.0  ;;  %vm4747_vm5 = vcmp.gt.f32.partialorder %v4715_v33, 0.0  ;;  %v4716_v26 = vadd.f32 %v6537_v36, %v4620_v15 }
 0x31b   :  { %4870 = vst [vmem:[#allocation20] sm:$0xff] %v4838_v42  ;;  %4871 = vst [vmem:[#allocation20 + $0x8] sm:$0xff] %v4839_v3  ;;  %v9757_v18 = vsel %vm4746_vm4, 1.0, %v10714_v28  ;;  %v9760_v17 = vsel %vm4747_vm5, 1.0, %v10714_v28  ;;  %v6538_v20 = vadd.f32 -1.0, %v4653_v56  ;;  %v4654_v29 = vmul.f32 2.0, %v9477_v40 }
 0x31c   :  { %4872 = vst [vmem:[#allocation20 + $0x10] sm:$0xff] %v4840_v61  ;;  %4873 = vst [vmem:[#allocation20 + $0x18] sm:$0xff] %v4841_v50  ;;  %v4842_v41 = vsub.f32 %v4714_v19, %v9757_v18  ;;  %v4843_v0 = vsub.f32 %v4715_v33, %v9760_v17  ;;  %vm4748_vm6 = vcmp.gt.f32.partialorder %v4716_v26, 0.0  ;;  %v4655_v54 = vmul.f32 2.0, %v9480_v14  ;;  %v4623_v14 = vld [vmem:[#allocation20 + $0x48] sm:$0xff]  ;;  %v4624_v42 = vld [vmem:[#allocation20 + $0x50] sm:$0xff] }
 0x31d   :  { %v9767_v63 = vsel %vm4748_vm6, 1.0, %v10714_v28  ;;  %v4717_v13 = vadd.f32 %v6538_v20, %v4621_v34  ;;  %v6539_v51 = vadd.f32 -1.0, %v4654_v29  ;;  %v4656_v37 = vmul.f32 2.0, %v9483_v7  ;;  %v4625_v50 = vld [vmem:[#allocation20 + $0x58] sm:$0xff] }
 0x31e   :  { %4874 = vst [vmem:[#allocation20 + $0x20] sm:$0xff] %v4842_v41  ;;  %4875 = vst [vmem:[#allocation20 + $0x28] sm:$0xff] %v4843_v0  ;;  %v4844_v40 = vsub.f32 %v4716_v26, %v9767_v63  ;;  %v6540_v35 = vadd.f32 -1.0, %v4655_v54  ;;  %v4657_v16 = vmul.f32 2.0, %v9486_v1  ;;  %v4658_v19 = vmul.f32 2.0, %v9493_v45  ;;  %v4626_v45 = vld [vmem:[#allocation20 + $0x60] sm:$0xff] }
 0x31f   :  { %vm4749_vm7 = vcmp.gt.f32.partialorder %v4717_v13, 0.0  ;;  %v4718_v5 = vadd.f32 %v6539_v51, %v4622_v53  ;;  %v6541_v36 = vadd.f32 -1.0, %v4656_v37  ;;  %v4659_v56 = vmul.f32 2.0, %v9496_v31  ;;  %v4627_v41 = vld [vmem:[#allocation20 + $0x68] sm:$0xff] }
 0x320   :  { %4876 = vst [vmem:[#allocation20 + $0x30] sm:$0xff] %v4844_v40  ;;  %v9775_v33 = vsel %vm4749_vm7, 1.0, %v10714_v28  ;;  %v4719_v7 = vadd.f32 %v6540_v35, %v4623_v14  ;;  %v6542_v3 = vadd.f32 -1.0, %v4657_v16  ;;  %v6543_v61 = vadd.f32 -1.0, %v4658_v19 }
 0x321   :  { %v4845_v15 = vsub.f32 %v4717_v13, %v9775_v33  ;;  %vm4750_vm8 = vcmp.gt.f32.partialorder %v4718_v5, 0.0  ;;  %v4720_v1 = vadd.f32 %v6541_v36, %v4624_v42  ;;  %v6544_v26 = vadd.f32 -1.0, %v4659_v56 }
 0x322   :  { %v9779_v20 = vsel %vm4750_vm8, 1.0, %v10714_v28  ;;  %vm4751_vm9 = vcmp.gt.f32.partialorder %v4719_v7, 0.0  ;;  %v4721_v31 = vadd.f32 %v6542_v3, %v4625_v50  ;;  %v4722_v29 = vadd.f32 %v6543_v61, %v4626_v45 }
 0x323   :  { %4877 = vst [vmem:[#allocation20 + $0x38] sm:$0xff] %v4845_v15  ;;  %v4846_v0 = vsub.f32 %v4718_v5, %v9779_v20  ;;  %v9783_v34 = vsel %vm4751_vm9, 1.0, %v10714_v28  ;;  %vm4752_vm10 = vcmp.gt.f32.partialorder %v4720_v1, 0.0  ;;  %v4723_v54 = vadd.f32 %v6544_v26, %v4627_v41 }
 0x324   :  { %v4847_v13 = vsub.f32 %v4719_v7, %v9783_v34  ;;  %v9787_v51 = vsel %vm4752_vm10, 1.0, %v10714_v28  ;;  %vm4753_vm11 = vcmp.gt.f32.partialorder %v4721_v31, 0.0  ;;  %vm4754_vm12 = vcmp.gt.f32.partialorder %v4722_v29, 0.0 }
 0x325   :  { %4878 = vst [vmem:[#allocation20 + $0x40] sm:$0xff] %v4846_v0  ;;  %v4848_v37 = vsub.f32 %v4720_v1, %v9787_v51  ;;  %v9791_v40 = vsel %vm4753_vm11, 1.0, %v10714_v28  ;;  %v9794_v53 = vsel %vm4754_vm12, 1.0, %v10714_v28  ;;  %vm4755_vm13 = vcmp.gt.f32.partialorder %v4723_v54, 0.0 }
 0x326   :  { %4879 = vst [vmem:[#allocation20 + $0x48] sm:$0xff] %v4847_v13  ;;  %v4849_v35 = vsub.f32 %v4721_v31, %v9791_v40  ;;  %v4850_v16 = vsub.f32 %v4722_v29, %v9794_v53  ;;  %v9799_v19 = vsel %vm4755_vm13, 1.0, %v10714_v28  ;;  %v4660_v5 = vmul.f32 2.0, %v9499_v62  ;;  %v4628_v62 = vld [vmem:[#allocation20 + $0x70] sm:$0xff]  ;;  %v4630_v31 = vld [vmem:[#allocation20 + $0x80] sm:$0xff] }
 0x327   :  { %4880 = vst [vmem:[#allocation20 + $0x50] sm:$0xff] %v4848_v37  ;;  %v4851_v14 = vsub.f32 %v4723_v54, %v9799_v19  ;;  %v4661_v36 = vmul.f32 2.0, %v9502_v27  ;;  %v4662_v56 = vmul.f32 2.0, %v9525_v22  ;;  %v4663_v7 = vmul.f32 2.0, %v9528_v52  ;;  %v4629_v22 = vld [vmem:[#allocation20 + $0x78] sm:$0xff]  ;;  %v4631_v52 = vld [vmem:[#allocation20 + $0x88] sm:$0xff] }
 0x328   :  { %4881 = vst [vmem:[#allocation20 + $0x58] sm:$0xff] %v4849_v35  ;;  %4882 = vst [vmem:[#allocation20 + $0x60] sm:$0xff] %v4850_v16  ;;  %v6545_v42 = vadd.f32 -1.0, %v4660_v5  ;;  %v4664_v3 = vmul.f32 2.0, %v9531_v60  ;;  %v4665_v61 = vmul.f32 2.0, %v9534_v44  ;;  %v4666_v15 = vmul.f32 2.0, %v9541_v32 }
 0x329   :  { %4883 = vst [vmem:[#allocation20 + $0x68] sm:$0xff] %v4851_v14  ;;  %v6546_v1 = vadd.f32 -1.0, %v4661_v36  ;;  %v6547_v50 = vadd.f32 -1.0, %v4662_v56  ;;  %v6548_v45 = vadd.f32 -1.0, %v4663_v7  ;;  %v4667_v27 = vmul.f32 2.0, %v9544_v11  ;;  %v4632_v44 = vld [vmem:[#allocation20 + $0x90] sm:$0xff] }
 0x32a   :  { %v4724_v26 = vadd.f32 %v6545_v42, %v4628_v62  ;;  %v6549_v29 = vadd.f32 -1.0, %v4664_v3  ;;  %v6550_v41 = vadd.f32 -1.0, %v4665_v61  ;;  %v6551_v0 = vadd.f32 -1.0, %v4666_v15  ;;  %v4633_v37 = vld [vmem:[#allocation20 + $0x98] sm:$0xff]  ;;  %v4634_v32 = vld [vmem:[#allocation20 + $0xa0] sm:$0xff]  ;;  %v4635_v62 = vld [vmem:[#allocation20 + $0xa8] sm:$0xff] }
 0x32b   :  { %v4725_v54 = vadd.f32 %v6546_v1, %v4629_v22  ;;  %v4726_v60 = vadd.f32 %v6547_v50, %v4630_v31  ;;  %v4727_v13 = vadd.f32 %v6548_v45, %v4631_v52  ;;  %v6552_v35 = vadd.f32 -1.0, %v4667_v27 }
 0x32c   :  { %vm4756_vm14 = vcmp.gt.f32.partialorder %v4724_v26, 0.0  ;;  %v4728_v16 = vadd.f32 %v6549_v29, %v4632_v44  ;;  %v4729_v5 = vadd.f32 %v6550_v41, %v4633_v37  ;;  %v4730_v14 = vadd.f32 %v6551_v0, %v4634_v32 }
 0x32d   :  { %v9811_v11 = vsel %vm4756_vm14, 1.0, %v10714_v28  ;;  %vm4757_vm15 = vcmp.gt.f32.partialorder %v4725_v54, 0.0  ;;  %vm4758_vm0 = vcmp.gt.f32.partialorder %v4726_v60, 0.0  ;;  %vm4759_vm1 = vcmp.gt.f32.partialorder %v4727_v13, 0.0 }
 0x32e   :  { %v4852_v36 = vsub.f32 %v4724_v26, %v9811_v11  ;;  %v9815_v56 = vsel %vm4757_vm15, 1.0, %v10714_v28  ;;  %v9818_v7 = vsel %vm4758_vm0, 1.0, %v10714_v28  ;;  %v9821_v42 = vsel %vm4759_vm1, 1.0, %v10714_v28 }
 0x32f   :  { %v4853_v3 = vsub.f32 %v4725_v54, %v9815_v56  ;;  %v4854_v61 = vsub.f32 %v4726_v60, %v9818_v7  ;;  %v4855_v15 = vsub.f32 %v4727_v13, %v9821_v42  ;;  %vm4760_vm2 = vcmp.gt.f32.partialorder %v4728_v16, 0.0  ;;  %v4636_v13 = vld [vmem:[#allocation20 + $0xb0] sm:$0xff] }
 0x330   :  { %4884 = vst [vmem:[#allocation20 + $0x70] sm:$0xff] %v4852_v36  ;;  %v9827_v1 = vsel %vm4760_vm2, 1.0, %v10714_v28  ;;  %vm4761_vm3 = vcmp.gt.f32.partialorder %v4729_v5, 0.0  ;;  %vm4762_vm4 = vcmp.gt.f32.partialorder %v4730_v14, 0.0  ;;  %v4731_v50 = vadd.f32 %v6552_v35, %v4635_v62  ;;  %v4637_v35 = vld [vmem:[#allocation20 + $0xb8] sm:$0xff]  ;;  %v4638_v36 = vld [vmem:[#allocation20 + $0xc0] sm:$0xff] }
 0x331   :  { %4885 = vst [vmem:[#allocation20 + $0x78] sm:$0xff] %v4853_v3  ;;  %4886 = vst [vmem:[#allocation20 + $0x80] sm:$0xff] %v4854_v61  ;;  %v4856_v45 = vsub.f32 %v4728_v16, %v9827_v1  ;;  %v9831_v27 = vsel %vm4761_vm3, 1.0, %v10714_v28  ;;  %v9834_v26 = vsel %vm4762_vm4, 1.0, %v10714_v28  ;;  %v4668_v22 = vmul.f32 2.0, %v9547_v10 }
 0x332   :  { %4887 = vst [vmem:[#allocation20 + $0x88] sm:$0xff] %v4855_v15  ;;  %v4857_v31 = vsub.f32 %v4729_v5, %v9831_v27  ;;  %v4858_v52 = vsub.f32 %v4730_v14, %v9834_v26  ;;  %vm4763_vm5 = vcmp.gt.f32.partialorder %v4731_v50, 0.0  ;;  %v4669_v29 = vmul.f32 2.0, %v9550_v23 }
 0x333   :  { %4888 = vst [vmem:[#allocation20 + $0x90] sm:$0xff] %v4856_v45  ;;  %v9841_v41 = vsel %vm4763_vm5, 1.0, %v10714_v28  ;;  %v6553_v0 = vadd.f32 -1.0, %v4668_v22  ;;  %v4670_v54 = vmul.f32 2.0, %v9573_v58  ;;  %v4671_v60 = vmul.f32 2.0, %v9576_v24  ;;  %v4639_v24 = vld [vmem:[#allocation20 + $0xc8] sm:$0xff] }
 0x334   :  { %4889 = vst [vmem:[#allocation20 + $0x98] sm:$0xff] %v4857_v31  ;;  %4890 = vst [vmem:[#allocation20 + $0xa0] sm:$0xff] %v4858_v52  ;;  %v4859_v10 = vsub.f32 %v4731_v50, %v9841_v41  ;;  %v6554_v44 = vadd.f32 -1.0, %v4669_v29  ;;  %v4672_v37 = vmul.f32 2.0, %v9579_v9  ;;  %v4673_v32 = vmul.f32 2.0, %v9582_v38  ;;  %v4640_v9 = vld [vmem:[#allocation20 + $0xd0] sm:$0xff] }
 0x335   :  { %v4732_v23 = vadd.f32 %v6553_v0, %v4636_v13  ;;  %v6555_v16 = vadd.f32 -1.0, %v4670_v54  ;;  %v6556_v5 = vadd.f32 -1.0, %v4671_v60  ;;  %v4674_v14 = vmul.f32 2.0, %v9589_v21  ;;  %v4641_v45 = vld [vmem:[#allocation20 + $0xd8] sm:$0xff] }
 0x336   :  { %4891 = vst [vmem:[#allocation20 + $0xa8] sm:$0xff] %v4859_v10  ;;  %v4733_v58 = vadd.f32 %v6554_v44, %v4637_v35  ;;  %v6557_v3 = vadd.f32 -1.0, %v4672_v37  ;;  %v6558_v61 = vadd.f32 -1.0, %v4673_v32  ;;  %v4675_v15 = vmul.f32 2.0, %v9592_v12  ;;  %v4642_v44 = vld [vmem:[#allocation20 + $0xe0] sm:$0xff] }
 0x337   :  { %vm4764_vm6 = vcmp.gt.f32.partialorder %v4732_v23, 0.0  ;;  %v4734_v62 = vadd.f32 %v6555_v16, %v4638_v36  ;;  %v4735_v50 = vadd.f32 %v6556_v5, %v4639_v24  ;;  %v6559_v38 = vadd.f32 -1.0, %v4674_v14  ;;  %v4643_v5 = vld [vmem:[#allocation20 + $0xe8] sm:$0xff] }
 0x338   :  { %v9851_v22 = vsel %vm4764_vm6, 1.0, %v10714_v28  ;;  %vm4765_vm7 = vcmp.gt.f32.partialorder %v4733_v58, 0.0  ;;  %v4736_v31 = vadd.f32 %v6557_v3, %v4640_v9  ;;  %v4737_v21 = vadd.f32 %v6558_v61, %v4641_v45 }
 0x339   :  { %v4860_v52 = vsub.f32 %v4732_v23, %v9851_v22  ;;  %v9855_v29 = vsel %vm4765_vm7, 1.0, %v10714_v28  ;;  %vm4766_vm8 = vcmp.gt.f32.partialorder %v4734_v62, 0.0  ;;  %vm4767_vm9 = vcmp.gt.f32.partialorder %v4735_v50, 0.0 }
 0x33a   :  { %v4861_v12 = vsub.f32 %v4733_v58, %v9855_v29  ;;  %v9859_v0 = vsel %vm4766_vm8, 1.0, %v10714_v28  ;;  %v9862_v54 = vsel %vm4767_vm9, 1.0, %v10714_v28  ;;  %vm4768_vm10 = vcmp.gt.f32.partialorder %v4736_v31, 0.0 }
 0x33b   :  { %4892 = vst [vmem:[#allocation20 + $0xb0] sm:$0xff] %v4860_v52  ;;  %v4862_v60 = vsub.f32 %v4734_v62, %v9859_v0  ;;  %v4863_v10 = vsub.f32 %v4735_v50, %v9862_v54  ;;  %v9867_v13 = vsel %vm4768_vm10, 1.0, %v10714_v28  ;;  %vm4769_vm11 = vcmp.gt.f32.partialorder %v4737_v21, 0.0  ;;  %v4644_v62 = vld [vmem:[#allocation20 + $0xf0] sm:$0xff]  ;;  %v4645_v50 = vld [vmem:[#allocation20 + $0xf8] sm:$0xff]  ;;  %v10899_v52 = vld [vmem:[#allocation30_spill] sm:$0xff] }
 0x33c   :  { %4893 = vst [vmem:[#allocation20 + $0xb8] sm:$0xff] %v4861_v12  ;;  %v4864_v37 = vsub.f32 %v4736_v31, %v9867_v13  ;;  %v9871_v32 = vsel %vm4769_vm11, 1.0, %v10714_v28  ;;  %v4738_v23 = vadd.f32 %v6559_v38, %v4642_v44  ;;  %v6560_v35 = vadd.f32 -1.0, %v4675_v15 }
 0x33d   :  { %4894 = vst [vmem:[#allocation20 + $0xc0] sm:$0xff] %v4862_v60  ;;  %4895 = vst [vmem:[#allocation20 + $0xc8] sm:$0xff] %v4863_v10  ;;  %v4865_v16 = vsub.f32 %v4737_v21, %v9871_v32  ;;  %v4676_v14 = vmul.f32 2.0, %v9595_v57  ;;  %v4677_v58 = vmul.f32 2.0, %v9598_v59  ;;  %v9878_v36 = vmul.f32 %v9741_v49, %v9604_v39  ;;  %v10901_v10 = vld [vmem:[#allocation32_spill] sm:$0xff] }
 0x33e   :  { %4896 = vst [vmem:[#allocation20 + $0xd0] sm:$0xff] %v4864_v37  ;;  %vm4770_vm12 = vcmp.gt.f32.partialorder %v4738_v23, 0.0  ;;  %v4739_v24 = vadd.f32 %v6560_v35, %v4643_v5  ;;  %v9882_v3 = vmul.f32 %v9744_v2, %v9606_v55  ;;  %v9886_v61 = vmul.f32 %v9747_v48, %v9608_v43  ;;  %v10904_v35 = vld [vmem:[#allocation35_spill] sm:$0xff] }
 0x33f   :  { %4897 = vst [vmem:[#allocation20 + $0xd8] sm:$0xff] %v4865_v16  ;;  %v6591_v57 = vsel %vm4770_vm12, 1.0, %v10714_v28  ;;  %v6561_v15 = vadd.f32 -1.0, %v4676_v14  ;;  %v6562_v59 = vadd.f32 -1.0, %v4677_v58  ;;  %v9891_v39 = vmul.f32 %v9753_v47, %v9610_v46  ;;  %v9960_v16 = vld [vmem:[#allocation2 + $0x140] sm:$0xff] }
 0x340   :  { %v4866_v49 = vsub.f32 %v4738_v23, %v6591_v57  ;;  %vm4771_vm13 = vcmp.gt.f32.partialorder %v4739_v24, 0.0  ;;  %v9895_v55 = vmul.f32 %v9757_v18, %v9616_v8  ;;  %v9899_v43 = vmul.f32 %v9760_v17, %v9618_v4  ;;  %v10894_v4 = vld [vmem:[#allocation48_spill] sm:$0xff]  ;;  %v10895_v17 = vld [vmem:[#allocation49_spill] sm:$0xff] }
 0x341   :  { %v6592_v2 = vsel %vm4771_vm13, 1.0, %v10714_v28  ;;  %v4740_v48 = vadd.f32 %v6561_v15, %v4644_v62  ;;  %v4741_v9 = vadd.f32 %v6562_v59, %v4645_v50  ;;  %v9904_v46 = vmul.f32 %v9767_v63, %v9620_v25  ;;  %v10896_v63 = vld [vmem:[#allocation50_spill] sm:$0xff]  ;;  %v9980_v15 = vld [vmem:[#allocation2 + $0x150] sm:$0xff]  ;;  %v9982_v59 = vld [vmem:[#allocation2 + $0x158] sm:$0xff] }
 0x342   :  { %4898 = vst [vmem:[#allocation20 + $0xe0] sm:$0xff] %v4866_v49  ;;  %v4867_v47 = vsub.f32 %v4739_v24, %v6592_v2  ;;  %v9908_v45 = vmul.f32 %v9775_v33, %v9622_v6  ;;  %v9912_v8 = vmul.f32 %v9779_v20, %v9628_v30  ;;  %v9916_v18 = vmul.f32 %v9783_v34, %v10894_v4  ;;  %v10897_v33 = vld [vmem:[#allocation51_spill] sm:$0xff]  ;;  %v10898_v34 = vld [vmem:[#allocation52_spill] sm:$0xff]  ;;  %v9984_v49 = vld [vmem:[#allocation2 + $0x160] sm:$0xff] }
 0x343   :  { %vm4772_vm14 = vcmp.gt.f32.partialorder %v4740_v48, 0.0  ;;  %vm4773_vm15 = vcmp.gt.f32.partialorder %v4741_v9, 0.0  ;;  %v9920_v25 = vmul.f32 %v9787_v51, %v10895_v17  ;;  %v9924_v38 = vmul.f32 %v9791_v40, %v10896_v63  ;;  %v10900_v40 = vld [vmem:[#allocation31_spill] sm:$0xff]  ;;  %v10004_v4 = vld [vmem:[#allocation2 + $0x170] sm:$0xff]  ;;  %v10006_v17 = vld [vmem:[#allocation2 + $0x178] sm:$0xff] }
 0x344   :  { %4899 = vst [vmem:[#allocation20 + $0xe8] sm:$0xff] %v4867_v47  ;;  %v6593_v6 = vsel %vm4772_vm14, 1.0, %v10714_v28  ;;  %v6594_v30 = vsel %vm4773_vm15, 1.0, %v10714_v28  ;;  %v9930_v20 = vmul.f32 %v9794_v53, %v10897_v33  ;;  %v9934_v31 = vmul.f32 %v9799_v19, %v10898_v34  ;;  %v10902_v53 = vld [vmem:[#allocation33_spill] sm:$0xff]  ;;  %v10903_v19 = vld [vmem:[#allocation34_spill] sm:$0xff]  ;;  %v10002_v47 = vld [vmem:[#allocation2 + $0x168] sm:$0xff] }
 0x345   :  { %v4868_v21 = vsub.f32 %v4740_v48, %v6593_v6  ;;  %v4869_v51 = vsub.f32 %v4741_v9, %v6594_v30  ;;  %v9938_v12 = vmul.f32 %v9811_v11, %v10899_v52  ;;  %v9942_v60 = vmul.f32 %v9815_v56, %v10900_v40  ;;  %v9962_v56 = vld [vmem:[#allocation2 + $0x148] sm:$0xff]  ;;  %v10920_v33 = vld [vmem:[#allocation45_spill] sm:$0xff]  ;;  %v10922_v34 = vld [vmem:[#allocation46_spill] sm:$0xff] }
 0x346   :  { %v9946_v44 = vmul.f32 %v9818_v7, %v10901_v10  ;;  %v9950_v37 = vmul.f32 %v9821_v42, %v10902_v53  ;;  %v9954_v23 = vmul.f32 %v9827_v1, %v10903_v19  ;;  %v9958_v11 = vmul.f32 %v9831_v27, %v10904_v35  ;;  %v10905_v7 = vld [vmem:[#allocation36_spill] sm:$0xff]  ;;  %v10906_v42 = vld [vmem:[#allocation37_spill] sm:$0xff]  ;;  %v10907_v1 = vld [vmem:[#allocation38_spill] sm:$0xff] }
 0x347   :  { %4900 = vst [vmem:[#allocation20 + $0xf0] sm:$0xff] %v4868_v21  ;;  %4901 = vst [vmem:[#allocation20 + $0xf8] sm:$0xff] %v4869_v51  ;;  %v9966_v5 = vmul.f32 %v9834_v26, %v10905_v7  ;;  %v9970_v14 = vmul.f32 %v9841_v41, %v10906_v42  ;;  %v9974_v58 = vmul.f32 %v9851_v22, %v10907_v1  ;;  %v10908_v27 = vld [vmem:[#allocation39_spill] sm:$0xff]  ;;  %v10910_v26 = vld [vmem:[#allocation40_spill] sm:$0xff]  ;;  %v5097_v40 = vunpack.c.0.s8 %v9962_v56 }
 0x348   :  { %v9978_v24 = vmul.f32 %v9855_v29, %v10908_v27  ;;  %v9988_v62 = vmul.f32 %v9859_v0, %v10910_v26  ;;  %v10912_v41 = vld [vmem:[#allocation41_spill] sm:$0xff]  ;;  %v10914_v22 = vld [vmem:[#allocation42_spill] sm:$0xff]  ;;  %v10916_v29 = vld [vmem:[#allocation43_spill] sm:$0xff]  ;;  %v10015_v21 = vmul.f32 %v6593_v6, %v10922_v34  ;;  %v5098_v53 = vunpack.c.0.s8 %v9980_v15 }
 0x349   :  { %v9992_v50 = vmul.f32 %v9862_v54, %v10912_v41  ;;  %v9996_v48 = vmul.f32 %v9867_v13, %v10914_v22  ;;  %v10000_v9 = vmul.f32 %v9871_v32, %v10916_v29  ;;  %v10918_v0 = vld [vmem:[#allocation44_spill] sm:$0xff]  ;;  %v10012_v54 = vmul.f32 %v6592_v2, %v10920_v33  ;;  %v10924_v13 = vld [vmem:[#allocation47_spill] sm:$0xff]  ;;  %v5160_v52 = vld [vmem:[#allocation16] sm:$0xff] }
 0x34a   :  { %10909 = vst [vmem:[#allocation48_spill] sm:$0xff] %v9978_v24  ;;  %10911 = vst [vmem:[#allocation49_spill] sm:$0xff] %v9988_v62  ;;  %v10009_v63 = vmul.f32 %v6591_v57, %v10918_v0  ;;  %v10018_v51 = vmul.f32 %v6594_v30, %v10924_v13  ;;  %v5096_v32 = vunpack.c.0.s8 %v9960_v16  ;;  %v5161_v10 = vld [vmem:[#allocation16 + $0x8] sm:$0xff]  ;;  %v5099_v57 = vunpack.c.0.s8 %v9982_v59  ;;  %v5162_v19 = vld [vmem:[#allocation16 + $0x10] sm:$0xff] }
 0x34b   :  { %10913 = vst [vmem:[#allocation50_spill] sm:$0xff] %v9992_v50  ;;  %10915 = vst [vmem:[#allocation51_spill] sm:$0xff] %v9996_v48  ;;  %v5163_v35 = vld [vmem:[#allocation16 + $0x18] sm:$0xff]  ;;  %v5100_v2 = vunpack.c.0.s8 %v9984_v49  ;;  %v5164_v7 = vld [vmem:[#allocation16 + $0x20] sm:$0xff]  ;;  %v5101_v6 = vunpack.c.0.s8 %v10002_v47  ;;  %v5102_v30 = vunpack.c.0.s8 %v10004_v4  ;;  %v5103_v42 = vunpack.c.0.s8 %v10006_v17 }
 0x34c   :  { %10917 = vst [vmem:[#allocation52_spill] sm:$0xff] %v10000_v9  ;;  %10919 = vst [vmem:[#allocation30_spill] sm:$0xff] %v10009_v63  ;;  %v5128_v1 = vcvt.s32.f32 %v5096_v32  ;;  %v5129_v27 = vcvt.s32.f32 %v5097_v40  ;;  %v5130_v26 = vcvt.s32.f32 %v5098_v53  ;;  %v5131_v41 = vcvt.s32.f32 %v5099_v57  ;;  %v5165_v22 = vld [vmem:[#allocation16 + $0x28] sm:$0xff]  ;;  %v5166_v29 = vld [vmem:[#allocation16 + $0x30] sm:$0xff] }
 0x34d   :  { %10921 = vst [vmem:[#allocation31_spill] sm:$0xff] %v10012_v54  ;;  %10923 = vst [vmem:[#allocation32_spill] sm:$0xff] %v10015_v21  ;;  %v5167_v0 = vld [vmem:[#allocation16 + $0x38] sm:$0xff]  ;;  %v5132_v33 = vcvt.s32.f32 %v5100_v2  ;;  %v5133_v34 = vcvt.s32.f32 %v5101_v6  ;;  %v5134_v13 = vcvt.s32.f32 %v5102_v30 }
 0x34e   :  { %10925 = vst [vmem:[#allocation33_spill] sm:$0xff] %v10018_v51  ;;  %v5135_v51 = vcvt.s32.f32 %v5103_v42  ;;  %v5192_v21 = vadd.f32 %v5160_v52, %v5128_v1  ;;  %v5193_v54 = vadd.f32 %v5161_v10, %v5129_v27  ;;  %v5194_v63 = vadd.f32 %v5162_v19, %v5130_v26 }
 0x34f   :  { %v5195_v9 = vadd.f32 %v5163_v35, %v5131_v41  ;;  %v5196_v48 = vadd.f32 %v5164_v7, %v5132_v33  ;;  %v5197_v50 = vadd.f32 %v5165_v22, %v5133_v34  ;;  %v5198_v62 = vadd.f32 %v5166_v29, %v5134_v13 }
 0x350   :  { %v5199_v24 = vadd.f32 %v5167_v0, %v5135_v51  ;;  %v5256_v32 = vadd.f32 %v5192_v21, %v9878_v36  ;;  %v5257_v40 = vadd.f32 %v5193_v54, %v9882_v3  ;;  %v5258_v53 = vadd.f32 %v5194_v63, %v9886_v61 }
 0x351   :  { %v5259_v57 = vadd.f32 %v5195_v9, %v9891_v39  ;;  %v5260_v2 = vadd.f32 %v5196_v48, %v9895_v55  ;;  %v5261_v6 = vadd.f32 %v5197_v50, %v9899_v43  ;;  %v5262_v52 = vadd.f32 %v5198_v62, %v9904_v46 }
 0x352   :  { %v5263_v10 = vadd.f32 %v5199_v24, %v9908_v45  ;;  %vm5288_vm0 = vcmp.gt.f32.partialorder %v5256_v32, 0.0  ;;  %vm5289_vm1 = vcmp.gt.f32.partialorder %v5257_v40, 0.0  ;;  %vm5290_vm2 = vcmp.gt.f32.partialorder %v5258_v53, 0.0 }
 0x353   :  { %vm5291_vm3 = vcmp.gt.f32.partialorder %v5259_v57, 0.0  ;;  %v10037_v36 = vsel %vm5288_vm0, 1.0, %v10714_v28  ;;  %v10040_v3 = vsel %vm5289_vm1, 1.0, %v10714_v28  ;;  %v10043_v61 = vsel %vm5290_vm2, 1.0, %v10714_v28 }
 0x354   :  { %v10046_v39 = vsel %vm5291_vm3, 1.0, %v10714_v28  ;;  %v5384_v55 = vsub.f32 %v5256_v32, %v10037_v36  ;;  %v5385_v43 = vsub.f32 %v5257_v40, %v10040_v3  ;;  %v5386_v46 = vsub.f32 %v5258_v53, %v10043_v61 }
 0x355   :  { %v5387_v45 = vsub.f32 %v5259_v57, %v10046_v39  ;;  %vm5292_vm4 = vcmp.gt.f32.partialorder %v5260_v2, 0.0  ;;  %vm5293_vm5 = vcmp.gt.f32.partialorder %v5261_v6, 0.0  ;;  %vm5294_vm6 = vcmp.gt.f32.partialorder %v5262_v52, 0.0 }
 0x356   :  { %vm5295_vm7 = vcmp.gt.f32.partialorder %v5263_v10, 0.0 }
 0x357   :  { %6849 = shalt.err (!%p6846_p10)
}
 0x358   :  { %s6850_s3 = scalar_lea.hbm %s10699_s9, 4096 }
 0x359   :  { %p6851_p11 = scmp.ne.s32.totalorder %s10699_s9, %s6850_s3  ;;  %p6854_p12 = scmp.lt.u32.totalorder %s6850_s3, %s10699_s9 }
 0x35b   :  { %p6856_p13 = pnand %p6854_p12, %p6851_p11 }
 0x35d   :  { %6859 = shalt.err (!%p6856_p13)
}
 0x35e   :  { %6064 = dma.vmem_to_hbm [thread:$0]  %s6059_s14, 4096, %s10699_s9, [#allocation18], %s6988_s29, %s6988_s29, %s6989_s30   ;;  %5416 = vst [vmem:[#allocation16] sm:$0xff] %v5384_v55  ;;  %5417 = vst [vmem:[#allocation16 + $0x8] sm:$0xff] %v5385_v43  ;;  %v10069_v24 = vsel %vm5292_vm4, 1.0, %v10714_v28  ;;  %v10073_v62 = vsel %vm5293_vm5, 1.0, %v10714_v28  ;;  %v5104_v51 = vunpack.c.1.s8 %v9960_v16  ;;  %v5105_v35 = vunpack.c.1.s8 %v9962_v56 }
 0x35f   :  { %5418 = vst [vmem:[#allocation16 + $0x10] sm:$0xff] %v5386_v46  ;;  %5419 = vst [vmem:[#allocation16 + $0x18] sm:$0xff] %v5387_v45  ;;  %v10077_v50 = vsel %vm5294_vm6, 1.0, %v10714_v28  ;;  %v10081_v48 = vsel %vm5295_vm7, 1.0, %v10714_v28  ;;  %v5388_v9 = vsub.f32 %v5260_v2, %v10069_v24  ;;  %v5389_v63 = vsub.f32 %v5261_v6, %v10073_v62  ;;  %v5168_v19 = vld [vmem:[#allocation16 + $0x40] sm:$0xff]  ;;  %v5169_v7 = vld [vmem:[#allocation16 + $0x48] sm:$0xff] }
 0x360   :  { %v5390_v54 = vsub.f32 %v5262_v52, %v10077_v50  ;;  %v5391_v21 = vsub.f32 %v5263_v10, %v10081_v48  ;;  %v5106_v30 = vunpack.c.1.s8 %v9980_v15  ;;  %v5107_v42 = vunpack.c.1.s8 %v9982_v59  ;;  %v5170_v1 = vld [vmem:[#allocation16 + $0x50] sm:$0xff]  ;;  %v5171_v27 = vld [vmem:[#allocation16 + $0x58] sm:$0xff]  ;;  %v5172_v41 = vld [vmem:[#allocation16 + $0x60] sm:$0xff]  ;;  %s6996_s9 = smov [#allocation19]  }
 0x361   :  { %5420 = vst [vmem:[#allocation16 + $0x20] sm:$0xff] %v5388_v9  ;;  %5421 = vst [vmem:[#allocation16 + $0x28] sm:$0xff] %v5389_v63  ;;  %v5108_v26 = vunpack.c.1.s8 %v9984_v49  ;;  %v5109_v22 = vunpack.c.1.s8 %v10002_v47  ;;  %v5110_v29 = vunpack.c.1.s8 %v10004_v4  ;;  %v5111_v0 = vunpack.c.1.s8 %v10006_v17  ;;  %v5173_v40 = vld [vmem:[#allocation16 + $0x68] sm:$0xff]  ;;  %v5174_v53 = vld [vmem:[#allocation16 + $0x70] sm:$0xff]  ;;  %s10297_s23 = sshll.u32 %s6996_s9, 4  ;;  %s10324_s23 = int_to_ptr.vmem [resolvable:$true] %s10297_s23 }
 0x362   :  { %5422 = vst [vmem:[#allocation16 + $0x30] sm:$0xff] %v5390_v54  ;;  %5423 = vst [vmem:[#allocation16 + $0x38] sm:$0xff] %v5391_v21  ;;  %v5136_v33 = vcvt.s32.f32 %v5104_v51  ;;  %v5137_v34 = vcvt.s32.f32 %v5105_v35  ;;  %v5138_v13 = vcvt.s32.f32 %v5106_v30  ;;  %v5139_v32 = vcvt.s32.f32 %v5107_v42  ;;  %v5175_v57 = vld [vmem:[#allocation16 + $0x78] sm:$0xff]  ;;  %s6860_s1 = scalar_lea.vmem %s10324_s23, 4096  ;;  %p6865_p1 = scmp.lt.s32.totalorder %s10324_s23, %s10324_s23 }
 0x363   :  { %v5140_v2 = vcvt.s32.f32 %v5108_v26  ;;  %v5141_v6 = vcvt.s32.f32 %v5109_v22  ;;  %v5142_v52 = vcvt.s32.f32 %v5110_v29  ;;  %v5143_v10 = vcvt.s32.f32 %v5111_v0  ;;  %p6861_p0 = scmp.ne.s32.totalorder %s10324_s23, %s6860_s1  ;;  %p6866_p2 = scmp.lt.s32.totalorder %s6860_s1, %s6860_s1 }
 0x364   :  { %v5200_v55 = vadd.f32 %v5168_v19, %v5136_v33  ;;  %v5201_v43 = vadd.f32 %v5169_v7, %v5137_v34  ;;  %v5202_v46 = vadd.f32 %v5170_v1, %v5138_v13  ;;  %v5203_v45 = vadd.f32 %v5171_v27, %v5139_v32 }
 0x365   :  { %v5204_v9 = vadd.f32 %v5172_v41, %v5140_v2  ;;  %v5205_v63 = vadd.f32 %v5173_v40, %v5141_v6  ;;  %v5206_v54 = vadd.f32 %v5174_v53, %v5142_v52  ;;  %v5207_v21 = vadd.f32 %v5175_v57, %v5143_v10  ;;  %v5176_v40 = vld [vmem:[#allocation16 + $0x80] sm:$0xff]  ;;  %v5177_v57 = vld [vmem:[#allocation16 + $0x88] sm:$0xff]  ;;  %v5178_v52 = vld [vmem:[#allocation16 + $0x90] sm:$0xff]  ;;  %p6867_p3 = por %p6866_p2, %p6865_p1 }
 0x366   :  { %v5264_v51 = vadd.f32 %v5200_v55, %v9912_v8  ;;  %v5265_v35 = vadd.f32 %v5201_v43, %v9916_v18  ;;  %v5266_v30 = vadd.f32 %v5202_v46, %v9920_v25  ;;  %v5267_v42 = vadd.f32 %v5203_v45, %v9924_v38  ;;  %v5179_v10 = vld [vmem:[#allocation16 + $0x98] sm:$0xff]  ;;  %v5180_v43 = vld [vmem:[#allocation16 + $0xa0] sm:$0xff] }
 0x367   :  { %v5268_v26 = vadd.f32 %v5204_v9, %v9930_v20  ;;  %v5269_v22 = vadd.f32 %v5205_v63, %v9934_v31  ;;  %v5270_v19 = vadd.f32 %v5206_v54, %v9938_v12  ;;  %v5271_v7 = vadd.f32 %v5207_v21, %v9942_v60  ;;  %p6868_p4 = pnand %p6867_p3, %p6861_p0 }
 0x368   :  { %vm5296_vm8 = vcmp.gt.f32.partialorder %v5264_v51, 0.0  ;;  %vm5297_vm9 = vcmp.gt.f32.partialorder %v5265_v35, 0.0  ;;  %vm5298_vm10 = vcmp.gt.f32.partialorder %v5266_v30, 0.0  ;;  %vm5299_vm11 = vcmp.gt.f32.partialorder %v5267_v42, 0.0 }
 0x369   :  { %v10104_v8 = vsel %vm5296_vm8, 1.0, %v10714_v28  ;;  %v10107_v18 = vsel %vm5297_vm9, 1.0, %v10714_v28  ;;  %v10110_v25 = vsel %vm5298_vm10, 1.0, %v10714_v28  ;;  %v10113_v38 = vsel %vm5299_vm11, 1.0, %v10714_v28 }
 0x36a   :  { %v5392_v20 = vsub.f32 %v5264_v51, %v10104_v8  ;;  %v5393_v31 = vsub.f32 %v5265_v35, %v10107_v18  ;;  %v5394_v12 = vsub.f32 %v5266_v30, %v10110_v25  ;;  %v5395_v60 = vsub.f32 %v5267_v42, %v10113_v38  ;;  %v5181_v35 = vld [vmem:[#allocation16 + $0xa8] sm:$0xff]  ;;  %v5182_v30 = vld [vmem:[#allocation16 + $0xb0] sm:$0xff]  ;;  %v5183_v42 = vld [vmem:[#allocation16 + $0xb8] sm:$0xff] }
 0x36b   :  { %vm5300_vm12 = vcmp.gt.f32.partialorder %v5268_v26, 0.0  ;;  %vm5301_vm13 = vcmp.gt.f32.partialorder %v5269_v22, 0.0  ;;  %vm5302_vm14 = vcmp.gt.f32.partialorder %v5270_v19, 0.0  ;;  %vm5303_vm15 = vcmp.gt.f32.partialorder %v5271_v7, 0.0 }
 0x36c   :  { %5424 = vst [vmem:[#allocation16 + $0x40] sm:$0xff] %v5392_v20  ;;  %5425 = vst [vmem:[#allocation16 + $0x48] sm:$0xff] %v5393_v31  ;;  %v10120_v1 = vsel %vm5300_vm12, 1.0, %v10714_v28  ;;  %v10123_v27 = vsel %vm5301_vm13, 1.0, %v10714_v28  ;;  %v10126_v41 = vsel %vm5302_vm14, 1.0, %v10714_v28  ;;  %v10129_v29 = vsel %vm5303_vm15, 1.0, %v10714_v28 }
 0x36d   :  { %5426 = vst [vmem:[#allocation16 + $0x50] sm:$0xff] %v5394_v12  ;;  %5427 = vst [vmem:[#allocation16 + $0x58] sm:$0xff] %v5395_v60  ;;  %v5396_v0 = vsub.f32 %v5268_v26, %v10120_v1  ;;  %v5397_v33 = vsub.f32 %v5269_v22, %v10123_v27  ;;  %v5398_v34 = vsub.f32 %v5270_v19, %v10126_v41  ;;  %v5112_v32 = vunpack.c.2.s8 %v9960_v16 }
 0x36e   :  { %v5399_v13 = vsub.f32 %v5271_v7, %v10129_v29  ;;  %v5113_v53 = vunpack.c.2.s8 %v9962_v56  ;;  %v5114_v2 = vunpack.c.2.s8 %v9980_v15  ;;  %v5115_v6 = vunpack.c.2.s8 %v9982_v59 }
 0x36f   :  { %5428 = vst [vmem:[#allocation16 + $0x60] sm:$0xff] %v5396_v0  ;;  %5429 = vst [vmem:[#allocation16 + $0x68] sm:$0xff] %v5397_v33  ;;  %v5116_v55 = vunpack.c.2.s8 %v9984_v49  ;;  %v5117_v46 = vunpack.c.2.s8 %v10002_v47  ;;  %v5118_v45 = vunpack.c.2.s8 %v10004_v4  ;;  %v5119_v9 = vunpack.c.2.s8 %v10006_v17 }
 0x370   :  { %5430 = vst [vmem:[#allocation16 + $0x70] sm:$0xff] %v5398_v34  ;;  %5431 = vst [vmem:[#allocation16 + $0x78] sm:$0xff] %v5399_v13  ;;  %v5144_v63 = vcvt.s32.f32 %v5112_v32  ;;  %v5145_v54 = vcvt.s32.f32 %v5113_v53  ;;  %v5146_v21 = vcvt.s32.f32 %v5114_v2  ;;  %v5147_v51 = vcvt.s32.f32 %v5115_v6 }
 0x371   :  { %v5148_v26 = vcvt.s32.f32 %v5116_v55  ;;  %v5149_v22 = vcvt.s32.f32 %v5117_v46  ;;  %v5150_v19 = vcvt.s32.f32 %v5118_v45  ;;  %v5151_v7 = vcvt.s32.f32 %v5119_v9 }
 0x372   :  { %v5208_v20 = vadd.f32 %v5176_v40, %v5144_v63  ;;  %v5209_v31 = vadd.f32 %v5177_v57, %v5145_v54  ;;  %v5210_v12 = vadd.f32 %v5178_v52, %v5146_v21  ;;  %v5211_v60 = vadd.f32 %v5179_v10, %v5147_v51  ;;  %v10926_v57 = vld [vmem:[#allocation48_spill] sm:$0xff] }
 0x373   :  { %v5212_v0 = vadd.f32 %v5180_v43, %v5148_v26  ;;  %v5213_v33 = vadd.f32 %v5181_v35, %v5149_v22  ;;  %v5214_v34 = vadd.f32 %v5182_v30, %v5150_v19  ;;  %v5215_v13 = vadd.f32 %v5183_v42, %v5151_v7  ;;  %v5184_v42 = vld [vmem:[#allocation16 + $0xc0] sm:$0xff]  ;;  %v5185_v22 = vld [vmem:[#allocation16 + $0xc8] sm:$0xff] }
 0x374   :  { %v5272_v32 = vadd.f32 %v5208_v20, %v9946_v44  ;;  %v5273_v53 = vadd.f32 %v5209_v31, %v9950_v37  ;;  %v5274_v2 = vadd.f32 %v5210_v12, %v9954_v23  ;;  %v5275_v6 = vadd.f32 %v5211_v60, %v9958_v11  ;;  %v5186_v20 = vld [vmem:[#allocation16 + $0xd0] sm:$0xff]  ;;  %v5187_v31 = vld [vmem:[#allocation16 + $0xd8] sm:$0xff]  ;;  %v5188_v60 = vld [vmem:[#allocation16 + $0xe0] sm:$0xff] }
 0x375   :  { %v5276_v55 = vadd.f32 %v5212_v0, %v9966_v5  ;;  %v5277_v46 = vadd.f32 %v5213_v33, %v9970_v14  ;;  %v5278_v40 = vadd.f32 %v5214_v34, %v9974_v58  ;;  %v5279_v52 = vadd.f32 %v5215_v13, %v10926_v57 }
 0x376   :  { %vm5304_vm0 = vcmp.gt.f32.partialorder %v5272_v32, 0.0  ;;  %vm5305_vm1 = vcmp.gt.f32.partialorder %v5273_v53, 0.0  ;;  %vm5306_vm2 = vcmp.gt.f32.partialorder %v5274_v2, 0.0  ;;  %vm5307_vm3 = vcmp.gt.f32.partialorder %v5275_v6, 0.0 }
 0x377   :  { %v10152_v44 = vsel %vm5304_vm0, 1.0, %v10714_v28  ;;  %v10155_v37 = vsel %vm5305_vm1, 1.0, %v10714_v28  ;;  %v10158_v23 = vsel %vm5306_vm2, 1.0, %v10714_v28  ;;  %v10161_v11 = vsel %vm5307_vm3, 1.0, %v10714_v28 }
 0x378   :  { %v5400_v5 = vsub.f32 %v5272_v32, %v10152_v44  ;;  %v5401_v14 = vsub.f32 %v5273_v53, %v10155_v37  ;;  %v5402_v58 = vsub.f32 %v5274_v2, %v10158_v23  ;;  %v5403_v10 = vsub.f32 %v5275_v6, %v10161_v11  ;;  %v5190_v32 = vld [vmem:[#allocation16 + $0xf0] sm:$0xff]  ;;  %v5191_v53 = vld [vmem:[#allocation16 + $0xf8] sm:$0xff] }
 0x379   :  { %vm5308_vm4 = vcmp.gt.f32.partialorder %v5276_v55, 0.0  ;;  %vm5309_vm5 = vcmp.gt.f32.partialorder %v5277_v46, 0.0  ;;  %vm5310_vm6 = vcmp.gt.f32.partialorder %v5278_v40, 0.0  ;;  %vm5311_vm7 = vcmp.gt.f32.partialorder %v5279_v52, 0.0 }
 0x37a   :  { %5432 = vst [vmem:[#allocation16 + $0x80] sm:$0xff] %v5400_v5  ;;  %5433 = vst [vmem:[#allocation16 + $0x88] sm:$0xff] %v5401_v14  ;;  %v10168_v43 = vsel %vm5308_vm4, 1.0, %v10714_v28  ;;  %v10171_v45 = vsel %vm5309_vm5, 1.0, %v10714_v28  ;;  %v10174_v9 = vsel %vm5310_vm6, 1.0, %v10714_v28  ;;  %v10177_v63 = vsel %vm5311_vm7, 1.0, %v10714_v28 }
 0x37b   :  { %5434 = vst [vmem:[#allocation16 + $0x90] sm:$0xff] %v5402_v58  ;;  %5435 = vst [vmem:[#allocation16 + $0x98] sm:$0xff] %v5403_v10  ;;  %v5404_v54 = vsub.f32 %v5276_v55, %v10168_v43  ;;  %v5405_v21 = vsub.f32 %v5277_v46, %v10171_v45  ;;  %v5406_v51 = vsub.f32 %v5278_v40, %v10174_v9  ;;  %v5120_v30 = vunpack.c.3.s8 %v9960_v16  ;;  %v10928_v10 = vld [vmem:[#allocation50_spill] sm:$0xff] }
 0x37c   :  { %v5407_v35 = vsub.f32 %v5279_v52, %v10177_v63  ;;  %v5121_v26 = vunpack.c.3.s8 %v9962_v56  ;;  %v5122_v19 = vunpack.c.3.s8 %v9980_v15  ;;  %v5123_v7 = vunpack.c.3.s8 %v9982_v59  ;;  %v5189_v59 = vld [vmem:[#allocation16 + $0xe8] sm:$0xff] }
 0x37d   :  { %5436 = vst [vmem:[#allocation16 + $0xa0] sm:$0xff] %v5404_v54  ;;  %5437 = vst [vmem:[#allocation16 + $0xa8] sm:$0xff] %v5405_v21  ;;  %v5124_v12 = vunpack.c.3.s8 %v9984_v49  ;;  %v5125_v0 = vunpack.c.3.s8 %v10002_v47  ;;  %v5126_v16 = vunpack.c.3.s8 %v10004_v4  ;;  %v5127_v56 = vunpack.c.3.s8 %v10006_v17  ;;  %v10927_v17 = vld [vmem:[#allocation49_spill] sm:$0xff]  ;;  %v10929_v21 = vld [vmem:[#allocation51_spill] sm:$0xff] }
 0x37e   :  { %5438 = vst [vmem:[#allocation16 + $0xb0] sm:$0xff] %v5406_v51  ;;  %5439 = vst [vmem:[#allocation16 + $0xb8] sm:$0xff] %v5407_v35  ;;  %v5152_v33 = vcvt.s32.f32 %v5120_v30  ;;  %v5153_v34 = vcvt.s32.f32 %v5121_v26  ;;  %v5154_v15 = vcvt.s32.f32 %v5122_v19  ;;  %v5155_v13 = vcvt.s32.f32 %v5123_v7  ;;  %v10930_v35 = vld [vmem:[#allocation52_spill] sm:$0xff]  ;;  %v10931_v26 = vld [vmem:[#allocation30_spill] sm:$0xff] }
 0x37f   :  { %v5156_v2 = vcvt.s32.f32 %v5124_v12  ;;  %v5157_v6 = vcvt.s32.f32 %v5125_v0  ;;  %v5158_v55 = vcvt.s32.f32 %v5126_v16  ;;  %v5159_v46 = vcvt.s32.f32 %v5127_v56  ;;  %v10932_v7 = vld [vmem:[#allocation31_spill] sm:$0xff] }
 0x380   :  { %v5216_v40 = vadd.f32 %v5184_v42, %v5152_v33  ;;  %v5217_v49 = vadd.f32 %v5185_v22, %v5153_v34  ;;  %v5218_v57 = vadd.f32 %v5186_v20, %v5154_v15  ;;  %v5219_v52 = vadd.f32 %v5187_v31, %v5155_v13  ;;  %v10933_v42 = vld [vmem:[#allocation32_spill] sm:$0xff]  ;;  %v10934_v20 = vld [vmem:[#allocation33_spill] sm:$0xff] }
 0x381   :  { %v5220_v47 = vadd.f32 %v5188_v60, %v5156_v2  ;;  %v5221_v5 = vadd.f32 %v5189_v59, %v5157_v6  ;;  %v5222_v4 = vadd.f32 %v5190_v32, %v5158_v55  ;;  %v5223_v14 = vadd.f32 %v5191_v53, %v5159_v46 }
 0x382   :  { %v5280_v58 = vadd.f32 %v5216_v40, %v10927_v17  ;;  %v5281_v54 = vadd.f32 %v5217_v49, %v10928_v10  ;;  %v5282_v51 = vadd.f32 %v5218_v57, %v10929_v21  ;;  %v5283_v30 = vadd.f32 %v5219_v52, %v10930_v35  ;;  %v10231_v49 = vld [vmem:[#allocation19] sm:$0xff]  ;;  %v10233_v57 = vld [vmem:[#allocation19 + $0x8] sm:$0xff]  ;;  %v10235_v52 = vld [vmem:[#allocation19 + $0x10] sm:$0xff] }
 0x383   :  { %v5284_v19 = vadd.f32 %v5220_v47, %v10931_v26  ;;  %v5285_v12 = vadd.f32 %v5221_v5, %v10932_v7  ;;  %v5286_v22 = vadd.f32 %v5222_v4, %v10933_v42  ;;  %v5287_v31 = vadd.f32 %v5223_v14, %v10934_v20  ;;  %v10237_v47 = vld [vmem:[#allocation19 + $0x18] sm:$0xff]  ;;  %v10245_v10 = vld [vmem:[#allocation19 + $0x28] sm:$0xff] }
 0x384   :  { %vm5312_vm8 = vcmp.gt.f32.partialorder %v5280_v58, 0.0  ;;  %vm5313_vm9 = vcmp.gt.f32.partialorder %v5281_v54, 0.0  ;;  %vm5314_vm10 = vcmp.gt.f32.partialorder %v5282_v51, 0.0  ;;  %vm5315_vm11 = vcmp.gt.f32.partialorder %v5283_v30, 0.0  ;;  %v10249_v21 = vld [vmem:[#allocation19 + $0x38] sm:$0xff]  ;;  %v10257_v7 = vld [vmem:[#allocation19 + $0x48] sm:$0xff] }
 0x385   :  { %v10200_v60 = vsel %vm5312_vm8, 1.0, %v10714_v28  ;;  %v10203_v0 = vsel %vm5313_vm9, 1.0, %v10714_v28  ;;  %v10206_v16 = vsel %vm5314_vm10, 1.0, %v10714_v28  ;;  %v10209_v56 = vsel %vm5315_vm11, 1.0, %v10714_v28  ;;  %10935 = vst [vmem:[#allocation34_spill] sm:$0xff] %v10257_v7  ;;  %v10261_v42 = vld [vmem:[#allocation19 + $0x58] sm:$0xff] }
 0x386   :  { %v5408_v33 = vsub.f32 %v5280_v58, %v10200_v60  ;;  %v5409_v34 = vsub.f32 %v5281_v54, %v10203_v0  ;;  %v5410_v15 = vsub.f32 %v5282_v51, %v10206_v16  ;;  %v5411_v13 = vsub.f32 %v5283_v30, %v10209_v56  ;;  %v10243_v58 = vld [vmem:[#allocation19 + $0x20] sm:$0xff]  ;;  %v10247_v54 = vld [vmem:[#allocation19 + $0x30] sm:$0xff]  ;;  %10937 = vst [vmem:[#allocation36_spill] sm:$0xff] %v10261_v42 }
 0x387   :  { %vm5316_vm12 = vcmp.gt.f32.partialorder %v5284_v19, 0.0  ;;  %vm5317_vm13 = vcmp.gt.f32.partialorder %v5285_v12, 0.0  ;;  %vm5318_vm14 = vcmp.gt.f32.partialorder %v5286_v22, 0.0  ;;  %vm5319_vm15 = vcmp.gt.f32.partialorder %v5287_v31, 0.0 }
 0x388   :  { %5440 = vst [vmem:[#allocation16 + $0xc0] sm:$0xff] %v5408_v33  ;;  %5441 = vst [vmem:[#allocation16 + $0xc8] sm:$0xff] %v5409_v34  ;;  %v10216_v59 = vsel %vm5316_vm12, 1.0, %v10714_v28  ;;  %v10219_v32 = vsel %vm5317_vm13, 1.0, %v10714_v28  ;;  %v10222_v53 = vsel %vm5318_vm14, 1.0, %v10714_v28  ;;  %v10225_v2 = vsel %vm5319_vm15, 1.0, %v10714_v28 }
 0x389   :  { %5442 = vst [vmem:[#allocation16 + $0xd0] sm:$0xff] %v5410_v15  ;;  %5443 = vst [vmem:[#allocation16 + $0xd8] sm:$0xff] %v5411_v13  ;;  %v5412_v6 = vsub.f32 %v5284_v19, %v10216_v59  ;;  %v5413_v55 = vsub.f32 %v5285_v12, %v10219_v32  ;;  %v5414_v46 = vsub.f32 %v5286_v22, %v10222_v53  ;;  %v5448_v5 = vsub.f32 1.0, %v10037_v36  ;;  %v10255_v19 = vld [vmem:[#allocation19 + $0x40] sm:$0xff]  ;;  %v10259_v12 = vld [vmem:[#allocation19 + $0x50] sm:$0xff] }
 0x38a   :  { %v5415_v40 = vsub.f32 %v5287_v31, %v10225_v2  ;;  %v5449_v4 = vsub.f32 1.0, %v10040_v3  ;;  %v5450_v14 = vsub.f32 1.0, %v10043_v61  ;;  %v5451_v17 = vsub.f32 1.0, %v10046_v39  ;;  %10936 = vst [vmem:[#allocation35_spill] sm:$0xff] %v10259_v12  ;;  %v10267_v34 = vld [vmem:[#allocation19 + $0x60] sm:$0xff]  ;;  %v10269_v15 = vld [vmem:[#allocation19 + $0x68] sm:$0xff] }
 0x38b   :  { %5444 = vst [vmem:[#allocation16 + $0xe0] sm:$0xff] %v5412_v6  ;;  %5445 = vst [vmem:[#allocation16 + $0xe8] sm:$0xff] %v5413_v55  ;;  %v5452_v51 = vsub.f32 1.0, %v10069_v24  ;;  %v5453_v35 = vsub.f32 1.0, %v10073_v62  ;;  %v5454_v30 = vsub.f32 1.0, %v10077_v50  ;;  %v5455_v26 = vsub.f32 1.0, %v10081_v48 }
 0x38c   :  { %5446 = vst [vmem:[#allocation16 + $0xf0] sm:$0xff] %v5414_v46  ;;  %5447 = vst [vmem:[#allocation16 + $0xf8] sm:$0xff] %v5415_v40  ;;  %v5456_v22 = vsub.f32 1.0, %v10104_v8  ;;  %v5457_v20 = vsub.f32 1.0, %v10107_v18  ;;  %v5458_v31 = vsub.f32 1.0, %v10110_v25  ;;  %v5459_v33 = vsub.f32 1.0, %v10113_v38 }
 0x38d   :  { %5512 = vst [vmem:[#allocation19] sm:$0xff] %v5448_v5  ;;  %5513 = vst [vmem:[#allocation19 + $0x8] sm:$0xff] %v5449_v4  ;;  %v10271_v13 = vld [vmem:[#allocation19 + $0x70] sm:$0xff]  ;;  %v10273_v6 = vld [vmem:[#allocation19 + $0x78] sm:$0xff]  ;;  %v5460_v55 = vsub.f32 1.0, %v10120_v1  ;;  %v5461_v46 = vsub.f32 1.0, %v10123_v27 }
 0x38e   :  { %5514 = vst [vmem:[#allocation19 + $0x10] sm:$0xff] %v5450_v14  ;;  %5515 = vst [vmem:[#allocation19 + $0x18] sm:$0xff] %v5451_v17  ;;  %v5462_v40 = vsub.f32 1.0, %v10126_v41  ;;  %v5463_v5 = vsub.f32 1.0, %v10129_v29  ;;  %v10279_v4 = vld [vmem:[#allocation19 + $0x80] sm:$0xff]  ;;  %v10281_v14 = vld [vmem:[#allocation19 + $0x88] sm:$0xff] }
 0x38f   :  { %10938 = vst [vmem:[#allocation37_spill] sm:$0xff] %v10267_v34  ;;  %10939 = vst [vmem:[#allocation38_spill] sm:$0xff] %v10269_v15  ;;  %v10283_v17 = vld [vmem:[#allocation19 + $0x90] sm:$0xff] }
 0x390   :  { %10940 = vst [vmem:[#allocation39_spill] sm:$0xff] %v10271_v13  ;;  %10941 = vst [vmem:[#allocation40_spill] sm:$0xff] %v10273_v6  ;;  %v10285_v13 = vld [vmem:[#allocation19 + $0x98] sm:$0xff]  ;;  %v10291_v6 = vld [vmem:[#allocation19 + $0xa0] sm:$0xff] }
 0x391   :  { %5516 = vst [vmem:[#allocation19 + $0x20] sm:$0xff] %v5452_v51  ;;  %5517 = vst [vmem:[#allocation19 + $0x28] sm:$0xff] %v5453_v35  ;;  %v5464_v51 = vsub.f32 1.0, %v10152_v44  ;;  %v5465_v35 = vsub.f32 1.0, %v10155_v37 }
 0x392   :  { %5518 = vst [vmem:[#allocation19 + $0x30] sm:$0xff] %v5454_v30  ;;  %5519 = vst [vmem:[#allocation19 + $0x38] sm:$0xff] %v5455_v26  ;;  %v5466_v30 = vsub.f32 1.0, %v10158_v23  ;;  %v5467_v26 = vsub.f32 1.0, %v10161_v11 }
 0x393   :  { %10942 = vst [vmem:[#allocation41_spill] sm:$0xff] %v10279_v4  ;;  %10943 = vst [vmem:[#allocation42_spill] sm:$0xff] %v10281_v14  ;;  %v10293_v4 = vld [vmem:[#allocation19 + $0xa8] sm:$0xff]  ;;  %v10295_v14 = vld [vmem:[#allocation19 + $0xb0] sm:$0xff] }
 0x394   :  { %10944 = vst [vmem:[#allocation43_spill] sm:$0xff] %v10283_v17  ;;  %10945 = vst [vmem:[#allocation44_spill] sm:$0xff] %v10285_v13  ;;  %v5475_v13 = vsub.f32 1.0, %v10209_v56 }
 0x395   :  { %5520 = vst [vmem:[#allocation19 + $0x40] sm:$0xff] %v5456_v22  ;;  %5521 = vst [vmem:[#allocation19 + $0x48] sm:$0xff] %v5457_v20  ;;  %v5468_v22 = vsub.f32 1.0, %v10168_v43  ;;  %v5469_v20 = vsub.f32 1.0, %v10171_v45 }
 0x396   :  { %5522 = vst [vmem:[#allocation19 + $0x50] sm:$0xff] %v5458_v31  ;;  %5523 = vst [vmem:[#allocation19 + $0x58] sm:$0xff] %v5459_v33  ;;  %v5470_v31 = vsub.f32 1.0, %v10174_v9  ;;  %v5471_v33 = vsub.f32 1.0, %v10177_v63 }
 0x397   :  { %10946 = vst [vmem:[#allocation45_spill] sm:$0xff] %v10291_v6  ;;  %10947 = vst [vmem:[#allocation46_spill] sm:$0xff] %v10293_v4  ;;  %v10303_v6 = vld [vmem:[#allocation19 + $0xb8] sm:$0xff]  ;;  %v10305_v4 = vld [vmem:[#allocation19 + $0xc0] sm:$0xff] }
 0x398   :  { %10948 = vst [vmem:[#allocation47_spill] sm:$0xff] %v10295_v14  ;;  %5524 = vst [vmem:[#allocation19 + $0x60] sm:$0xff] %v5460_v55  ;;  %v5472_v55 = vsub.f32 1.0, %v10200_v60  ;;  %v10312_v14 = vld [vmem:[#allocation19 + $0xd0] sm:$0xff] }
 0x399   :  { %5525 = vst [vmem:[#allocation19 + $0x68] sm:$0xff] %v5461_v46  ;;  %5526 = vst [vmem:[#allocation19 + $0x70] sm:$0xff] %v5462_v40  ;;  %v5473_v46 = vsub.f32 1.0, %v10203_v0  ;;  %v10309_v40 = vld [vmem:[#allocation19 + $0xc8] sm:$0xff] }
 0x39a   :  { %5527 = vst [vmem:[#allocation19 + $0x78] sm:$0xff] %v5463_v5  ;;  %10949 = vst [vmem:[#allocation48_spill] sm:$0xff] %v10303_v6  ;;  %v5474_v5 = vsub.f32 1.0, %v10206_v16  ;;  %v5906_v6 = vtrunc.f32 %v10110_v25 }
 0x39b   :  { %10950 = vst [vmem:[#allocation49_spill] sm:$0xff] %v10305_v4  ;;  %5528 = vst [vmem:[#allocation19 + $0x80] sm:$0xff] %v5464_v51  ;;  %v10315_v51 = vld [vmem:[#allocation19 + $0xd8] sm:$0xff]  ;;  %v5479_v4 = vsub.f32 1.0, %v10225_v2 }
 0x39c   :  { %5529 = vst [vmem:[#allocation19 + $0x88] sm:$0xff] %v5465_v35  ;;  %5530 = vst [vmem:[#allocation19 + $0x90] sm:$0xff] %v5466_v30  ;;  %v5476_v35 = vsub.f32 1.0, %v10216_v59  ;;  %v10318_v30 = vld [vmem:[#allocation19 + $0xe0] sm:$0xff] }
 0x39d   :  { %5531 = vst [vmem:[#allocation19 + $0x98] sm:$0xff] %v5467_v26  ;;  %10951 = vst [vmem:[#allocation50_spill] sm:$0xff] %v10309_v40  ;;  %v5477_v26 = vsub.f32 1.0, %v10219_v32  ;;  %v5478_v40 = vsub.f32 1.0, %v10222_v53 }
 0x39e   :  { %10952 = vst [vmem:[#allocation51_spill] sm:$0xff] %v10312_v14  ;;  %5532 = vst [vmem:[#allocation19 + $0xa0] sm:$0xff] %v5468_v22  ;;  %v10326_v22 = vld [vmem:[#allocation19 + $0xe8] sm:$0xff]  ;;  %v5898_v14 = vtrunc.f32 %v10043_v61 }
 0x39f   :  { %5533 = vst [vmem:[#allocation19 + $0xa8] sm:$0xff] %v5469_v20  ;;  %5534 = vst [vmem:[#allocation19 + $0xb0] sm:$0xff] %v5470_v31  ;;  %v10328_v20 = vld [vmem:[#allocation19 + $0xf0] sm:$0xff]  ;;  %v10330_v31 = vld [vmem:[#allocation19 + $0xf8] sm:$0xff] }
 0x3a0   :  { %5535 = vst [vmem:[#allocation19 + $0xb8] sm:$0xff] %v5471_v33  ;;  %10953 = vst [vmem:[#allocation52_spill] sm:$0xff] %v10315_v51  ;;  %v5896_v33 = vtrunc.f32 %v10037_v36  ;;  %v5912_v51 = vtrunc.f32 %v10152_v44 }
 0x3a1   :  { %10954 = vst [vmem:[#allocation30_spill] sm:$0xff] %v10318_v30  ;;  %5536 = vst [vmem:[#allocation19 + $0xc0] sm:$0xff] %v5472_v55  ;;  %v5904_v30 = vtrunc.f32 %v10104_v8  ;;  %v5920_v55 = vtrunc.f32 %v10200_v60 }
 0x3a2   :  { %5537 = vst [vmem:[#allocation19 + $0xc8] sm:$0xff] %v5473_v46  ;;  %5538 = vst [vmem:[#allocation19 + $0xd0] sm:$0xff] %v5474_v5  ;;  %v5905_v46 = vtrunc.f32 %v10107_v18  ;;  %v5913_v5 = vtrunc.f32 %v10155_v37 }
 0x3a3   :  { %5539 = vst [vmem:[#allocation19 + $0xd8] sm:$0xff] %v5475_v13  ;;  %10955 = vst [vmem:[#allocation31_spill] sm:$0xff] %v10326_v22  ;;  %v5897_v13 = vtrunc.f32 %v10040_v3  ;;  %v5932_v22 = vpack.c.f32.eXmY %v5912_v51, %v5920_v55, 312 }
 0x3a4   :  { %10956 = vst [vmem:[#allocation32_spill] sm:$0xff] %v10328_v20  ;;  %10957 = vst [vmem:[#allocation33_spill] sm:$0xff] %v10330_v31  ;;  %v5921_v31 = vtrunc.f32 %v10203_v0  ;;  %v5928_v20 = vpack.c.f32.eXmY %v5896_v33, %v5904_v30, 312 }
 0x3a5   :  { %5540 = vst [vmem:[#allocation19 + $0xe0] sm:$0xff] %v5476_v35  ;;  %5541 = vst [vmem:[#allocation19 + $0xe8] sm:$0xff] %v5477_v26 }
 0x3a6   :  { %5542 = vst [vmem:[#allocation19 + $0xf0] sm:$0xff] %v5478_v40  ;;  %5543 = vst [vmem:[#allocation19 + $0xf8] sm:$0xff] %v5479_v4 }
 0x3a7   :  { %6871 = shalt.err (!%p6868_p4)
}
 0x3a8   :  { %s6872_s26 = scalar_lea.hbm %s10700_s10, 4096 }
 0x3a9   :  { %p6873_p5 = scmp.ne.s32.totalorder %s10700_s10, %s6872_s26  ;;  %p6876_p6 = scmp.lt.u32.totalorder %s6872_s26, %s10700_s10 }
 0x3ab   :  { %p6878_p7 = pnand %p6876_p6, %p6873_p5 }
 0x3ad   :  { %6881 = shalt.err (!%p6878_p7)
}
 0x3ae   :  { %6076 = dma.vmem_to_hbm [thread:$0]  %s10324_s23, 4096, %s10700_s10, [#allocation18], %s6988_s29, %s6988_s29, %s6989_s30   ;;  %v5938_v4 = vpack.c.f32.eXmY %v5897_v13, %v5905_v46, 312  ;;  %v5942_v40 = vpack.c.f32.eXmY %v5913_v5, %v5921_v31, 312  ;;  %v5914_v51 = vtrunc.f32 %v10158_v23  ;;  %v5922_v35 = vtrunc.f32 %v10206_v16 }
 0x3af   :  { %v5936_v30 = vpack.c.b8 %v5932_v22, %v5928_v20  ;;  %v5948_v26 = vpack.c.f32.eXmY %v5898_v14, %v5906_v6, 312  ;;  %v5899_v33 = vtrunc.f32 %v10046_v39  ;;  %v5907_v55 = vtrunc.f32 %v10113_v38  ;;  %s6997_s10 = smov [#allocation13]  }
 0x3b0   :  { %v5946_v17 = vpack.c.b8 %v5942_v40, %v5938_v4  ;;  %v5952_v15 = vpack.c.f32.eXmY %v5914_v51, %v5922_v35, 312  ;;  %v5915_v34 = vtrunc.f32 %v10161_v11  ;;  %v5923_v42 = vtrunc.f32 %v10209_v56  ;;  %s6022_s5 = sshll.u32 %s6997_s10, 4  ;;  %s10391_s5 = int_to_ptr.vmem [resolvable:$true] %s6022_s5 }
 0x3b1   :  { %6009 = vst [vmem:[#allocation13 + $0x140] sm:$0xff] %v5936_v30  ;;  %v5958_v12 = vpack.c.f32.eXmY %v5899_v33, %v5907_v55, 312  ;;  %v5900_v31 = vtrunc.f32 %v10069_v24  ;;  %v5908_v13 = vtrunc.f32 %v10120_v1  ;;  %v5916_v46 = vtrunc.f32 %v10168_v43  ;;  %s6882_s14 = scalar_lea.vmem %s10391_s5, 6144  ;;  %p6887_p9 = scmp.lt.s32.totalorder %s10391_s5, %s10391_s5 }
 0x3b2   :  { %6010 = vst [vmem:[#allocation13 + $0x148] sm:$0xff] %v5946_v17  ;;  %v5956_v6 = vpack.c.b8 %v5952_v15, %v5948_v26  ;;  %v5962_v14 = vpack.c.f32.eXmY %v5915_v34, %v5923_v42, 312  ;;  %v5924_v22 = vtrunc.f32 %v10216_v59  ;;  %v5901_v20 = vtrunc.f32 %v10073_v62  ;;  %p6883_p8 = scmp.ne.s32.totalorder %s10391_s5, %s6882_s14  ;;  %p6888_p10 = scmp.lt.s32.totalorder %s6882_s14, %s6882_s14 }
 0x3b3   :  { %v5968_v5 = vpack.c.f32.eXmY %v5900_v31, %v5908_v13, 312  ;;  %v5909_v4 = vtrunc.f32 %v10123_v27  ;;  %v5917_v40 = vtrunc.f32 %v10171_v45  ;;  %v5925_v51 = vtrunc.f32 %v10219_v32 }
 0x3b4   :  { %6011 = vst [vmem:[#allocation13 + $0x150] sm:$0xff] %v5956_v6  ;;  %v5966_v35 = vpack.c.b8 %v5962_v14, %v5958_v12  ;;  %v5972_v30 = vpack.c.f32.eXmY %v5916_v46, %v5924_v22, 312  ;;  %v5902_v33 = vtrunc.f32 %v10077_v50  ;;  %v5910_v17 = vtrunc.f32 %v10126_v41  ;;  %p6889_p11 = por %p6888_p10, %p6887_p9 }
 0x3b5   :  { %v5978_v15 = vpack.c.f32.eXmY %v5901_v20, %v5909_v4, 312  ;;  %v5982_v42 = vpack.c.f32.eXmY %v5917_v40, %v5925_v51, 312  ;;  %v5918_v34 = vtrunc.f32 %v10174_v9  ;;  %v5926_v26 = vtrunc.f32 %v10222_v53 }
 0x3b6   :  { %6012 = vst [vmem:[#allocation13 + $0x158] sm:$0xff] %v5966_v35  ;;  %v5976_v55 = vpack.c.b8 %v5972_v30, %v5968_v5  ;;  %v5988_v31 = vpack.c.f32.eXmY %v5902_v33, %v5910_v17, 312  ;;  %v5903_v13 = vtrunc.f32 %v10081_v48  ;;  %v5911_v7 = vtrunc.f32 %v10129_v29  ;;  %p6890_p12 = pnand %p6889_p11, %p6883_p8 }
 0x3b7   :  { %v5986_v6 = vpack.c.b8 %v5982_v42, %v5978_v15  ;;  %v5992_v12 = vpack.c.f32.eXmY %v5918_v34, %v5926_v26, 312  ;;  %v5919_v46 = vtrunc.f32 %v10177_v63  ;;  %v5927_v14 = vtrunc.f32 %v10225_v2  ;;  %v5544_v42 = vld [vmem:[#allocation20] sm:$0xff]  ;;  %v5546_v34 = vld [vmem:[#allocation20 + $0x10] sm:$0xff] }
 0x3b8   :  { %6013 = vst [vmem:[#allocation13 + $0x160] sm:$0xff] %v5976_v55  ;;  %v5998_v22 = vpack.c.f32.eXmY %v5903_v13, %v5911_v7, 312  ;;  %v5576_v20 = vmul.f32 2.0, %v10037_v36  ;;  %v5577_v4 = vmul.f32 2.0, %v10040_v3  ;;  %v5578_v40 = vmul.f32 2.0, %v10043_v61  ;;  %v5545_v3 = vld [vmem:[#allocation20 + $0x8] sm:$0xff] }
 0x3b9   :  { %6014 = vst [vmem:[#allocation13 + $0x168] sm:$0xff] %v5986_v6  ;;  %v5996_v5 = vpack.c.b8 %v5992_v12, %v5988_v31  ;;  %v6002_v51 = vpack.c.f32.eXmY %v5919_v46, %v5927_v14, 312  ;;  %v5579_v35 = vmul.f32 2.0, %v10046_v39  ;;  %v5580_v30 = vmul.f32 2.0, %v10069_v24  ;;  %v5547_v13 = vld [vmem:[#allocation20 + $0x18] sm:$0xff]  ;;  %v5548_v6 = vld [vmem:[#allocation20 + $0x20] sm:$0xff] }
 0x3ba   :  { %v6627_v33 = vadd.f32 -1.0, %v5576_v20  ;;  %v6628_v17 = vadd.f32 -1.0, %v5577_v4  ;;  %v6629_v15 = vadd.f32 -1.0, %v5578_v40  ;;  %v5581_v7 = vmul.f32 2.0, %v10073_v62  ;;  %v5549_v14 = vld [vmem:[#allocation20 + $0x28] sm:$0xff] }
 0x3bb   :  { %6015 = vst [vmem:[#allocation13 + $0x170] sm:$0xff] %v5996_v5  ;;  %v6006_v36 = vpack.c.b8 %v6002_v51, %v5998_v22  ;;  %v6630_v61 = vadd.f32 -1.0, %v5579_v35  ;;  %v6631_v26 = vadd.f32 -1.0, %v5580_v30  ;;  %v5582_v55 = vmul.f32 2.0, %v10077_v50 }
 0x3bc   :  { %v5640_v31 = vadd.f32 %v6627_v33, %v5544_v42  ;;  %v5641_v39 = vadd.f32 %v6628_v17, %v5545_v3  ;;  %v5642_v24 = vadd.f32 %v6629_v15, %v5546_v34  ;;  %v6632_v62 = vadd.f32 -1.0, %v5581_v7 }
 0x3bd   :  { %6016 = vst [vmem:[#allocation13 + $0x178] sm:$0xff] %v6006_v36  ;;  %v5643_v12 = vadd.f32 %v6630_v61, %v5547_v13  ;;  %v5644_v46 = vadd.f32 %v6631_v26, %v5548_v6  ;;  %v6633_v22 = vadd.f32 -1.0, %v5582_v55  ;;  %v5583_v20 = vmul.f32 2.0, %v10081_v48 }
 0x3be   :  { %vm5672_vm0 = vcmp.gt.f32.partialorder %v5640_v31, 0.0  ;;  %vm5673_vm1 = vcmp.gt.f32.partialorder %v5641_v39, 0.0  ;;  %vm5674_vm2 = vcmp.gt.f32.partialorder %v5642_v24, 0.0  ;;  %v5645_v50 = vadd.f32 %v6632_v62, %v5549_v14 }
 0x3bf   :  { %6893 = shalt.err (!%p6890_p12)
}
 0x3c0   :  { %s6894_s17 = scalar_lea.hbm %s10696_s6, 6144 }
 0x3c1   :  { %p6895_p13 = scmp.ne.s32.totalorder %s10696_s6, %s6894_s17  ;;  %p6898_p0 = scmp.lt.u32.totalorder %s6894_s17, %s10696_s6 }
 0x3c3   :  { %p6900_p1 = pnand %p6898_p0, %p6895_p13 }
 0x3c5   :  { %6903 = shalt.err (!%p6900_p1)
}
 0x3c6   :  { %6028 = dma.vmem_to_hbm [thread:$0]  %s10391_s5, 6144, %s10696_s6, [#allocation4], %s6988_s29, %s6988_s29, %s6989_s30   ;;  %v10416_v48 = vsel %vm5672_vm0, 1.0, %v10714_v28  ;;  %v10420_v4 = vsel %vm5673_vm1, 1.0, %v10714_v28  ;;  %v10424_v40 = vsel %vm5674_vm2, 1.0, %v10714_v28  ;;  %vm5675_vm3 = vcmp.gt.f32.partialorder %v5643_v12, 0.0 }
 0x3c7   :  { %v5768_v5 = vsub.f32 %v5640_v31, %v10416_v48  ;;  %v5769_v51 = vsub.f32 %v5641_v39, %v10420_v4  ;;  %v5770_v35 = vsub.f32 %v5642_v24, %v10424_v40  ;;  %v10430_v30 = vsel %vm5675_vm3, 1.0, %v10714_v28  ;;  %v5550_v33 = vld [vmem:[#allocation20 + $0x30] sm:$0xff]  ;;  %v5551_v26 = vld [vmem:[#allocation20 + $0x38] sm:$0xff]  ;;  %v5552_v6 = vld [vmem:[#allocation20 + $0x40] sm:$0xff]  ;;  %s6998_s6 = smov [#allocation20]   ;;  %s6999_s9 = smov [#allocation14]  }
 0x3c8   :  { %v5771_v17 = vsub.f32 %v5643_v12, %v10430_v30  ;;  %vm5676_vm4 = vcmp.gt.f32.partialorder %v5644_v46, 0.0  ;;  %vm5677_vm5 = vcmp.gt.f32.partialorder %v5645_v50, 0.0  ;;  %v5646_v15 = vadd.f32 %v6633_v22, %v5550_v33  ;;  %s6082_s27 = sshll.u32 %s6998_s6, 4  ;;  %s10605_s23 = sshll.u32 %s6999_s9, 4  ;;  %s10595_s27 = int_to_ptr.vmem [resolvable:$true] %s6082_s27  ;;  %s6035_s23 = int_to_ptr.vmem [resolvable:$true] %s10605_s23 }
 0x3c9   :  { %5800 = vst [vmem:[#allocation20] sm:$0xff] %v5768_v5  ;;  %5801 = vst [vmem:[#allocation20 + $0x8] sm:$0xff] %v5769_v51  ;;  %v10434_v7 = vsel %vm5676_vm4, 1.0, %v10714_v28  ;;  %v10437_v36 = vsel %vm5677_vm5, 1.0, %v10714_v28  ;;  %v6634_v42 = vadd.f32 -1.0, %v5583_v20  ;;  %v5584_v3 = vmul.f32 2.0, %v10104_v8  ;;  %p6909_p3 = scmp.lt.s32.totalorder %s10595_s27, %s10595_s27 }
 0x3ca   :  { %5802 = vst [vmem:[#allocation20 + $0x10] sm:$0xff] %v5770_v35  ;;  %5803 = vst [vmem:[#allocation20 + $0x18] sm:$0xff] %v5771_v17  ;;  %v5772_v34 = vsub.f32 %v5644_v46, %v10434_v7  ;;  %v5773_v61 = vsub.f32 %v5645_v50, %v10437_v36  ;;  %vm5678_vm6 = vcmp.gt.f32.partialorder %v5646_v15, 0.0  ;;  %v5585_v55 = vmul.f32 2.0, %v10107_v18  ;;  %v5553_v18 = vld [vmem:[#allocation20 + $0x48] sm:$0xff]  ;;  %v5554_v5 = vld [vmem:[#allocation20 + $0x50] sm:$0xff] }
 0x3cb   :  { %v10444_v31 = vsel %vm5678_vm6, 1.0, %v10714_v28  ;;  %v5647_v39 = vadd.f32 %v6634_v42, %v5551_v26  ;;  %v6635_v24 = vadd.f32 -1.0, %v5584_v3  ;;  %v5586_v13 = vmul.f32 2.0, %v10110_v25  ;;  %v5555_v17 = vld [vmem:[#allocation20 + $0x58] sm:$0xff]  ;;  %s7000_s1 = smov [#allocation16]   ;;  %s6904_s24 = scalar_lea.vmem %s10595_s27, 4096 }
 0x3cc   :  { %5804 = vst [vmem:[#allocation20 + $0x20] sm:$0xff] %v5772_v34  ;;  %5805 = vst [vmem:[#allocation20 + $0x28] sm:$0xff] %v5773_v61  ;;  %v5774_v8 = vsub.f32 %v5646_v15, %v10444_v31  ;;  %v6636_v62 = vadd.f32 -1.0, %v5585_v55  ;;  %v5587_v12 = vmul.f32 2.0, %v10113_v38  ;;  %v5588_v46 = vmul.f32 2.0, %v10120_v1  ;;  %v5556_v1 = vld [vmem:[#allocation20 + $0x60] sm:$0xff]  ;;  %p6905_p2 = scmp.ne.s32.totalorder %s10595_s27, %s6904_s24  ;;  %p6910_p4 = scmp.lt.s32.totalorder %s6904_s24, %s6904_s24 }
 0x3cd   :  { %vm5679_vm7 = vcmp.gt.f32.partialorder %v5647_v39, 0.0  ;;  %v5648_v14 = vadd.f32 %v6635_v24, %v5552_v6  ;;  %v6637_v22 = vadd.f32 -1.0, %v5586_v13  ;;  %v5589_v20 = vmul.f32 2.0, %v10123_v27  ;;  %v5557_v34 = vld [vmem:[#allocation20 + $0x68] sm:$0xff]  ;;  %s10615_s18 = sshll.u32 %s7000_s1, 4  ;;  %s10653_s18 = int_to_ptr.vmem [resolvable:$true] %s10615_s18 }
 0x3ce   :  { %5806 = vst [vmem:[#allocation20 + $0x30] sm:$0xff] %v5774_v8  ;;  %v10452_v50 = vsel %vm5679_vm7, 1.0, %v10714_v28  ;;  %v5649_v25 = vadd.f32 %v6636_v62, %v5553_v18  ;;  %v6638_v51 = vadd.f32 -1.0, %v5587_v12  ;;  %v6639_v35 = vadd.f32 -1.0, %v5588_v46  ;;  %p6911_p5 = por %p6910_p4, %p6909_p3 }
 0x3cf   :  { %v5775_v33 = vsub.f32 %v5647_v39, %v10452_v50  ;;  %vm5680_vm8 = vcmp.gt.f32.partialorder %v5648_v14, 0.0  ;;  %v5650_v38 = vadd.f32 %v6637_v22, %v5554_v5  ;;  %v6640_v15 = vadd.f32 -1.0, %v5589_v20 }
 0x3d0   :  { %v10456_v42 = vsel %vm5680_vm8, 1.0, %v10714_v28  ;;  %vm5681_vm9 = vcmp.gt.f32.partialorder %v5649_v25, 0.0  ;;  %v5651_v27 = vadd.f32 %v6638_v51, %v5555_v17  ;;  %v5652_v3 = vadd.f32 %v6639_v35, %v5556_v1  ;;  %p6912_p6 = pnand %p6911_p5, %p6905_p2 }
 0x3d1   :  { %5807 = vst [vmem:[#allocation20 + $0x38] sm:$0xff] %v5775_v33  ;;  %v5776_v61 = vsub.f32 %v5648_v14, %v10456_v42  ;;  %v10460_v26 = vsel %vm5681_vm9, 1.0, %v10714_v28  ;;  %vm5682_vm10 = vcmp.gt.f32.partialorder %v5650_v38, 0.0  ;;  %v5653_v55 = vadd.f32 %v6640_v15, %v5557_v34 }
 0x3d2   :  { %v5777_v39 = vsub.f32 %v5649_v25, %v10460_v26  ;;  %v10464_v24 = vsel %vm5682_vm10, 1.0, %v10714_v28  ;;  %vm5683_vm11 = vcmp.gt.f32.partialorder %v5651_v27, 0.0  ;;  %vm5684_vm12 = vcmp.gt.f32.partialorder %v5652_v3, 0.0 }
 0x3d3   :  { %5808 = vst [vmem:[#allocation20 + $0x40] sm:$0xff] %v5776_v61  ;;  %v5778_v13 = vsub.f32 %v5650_v38, %v10464_v24  ;;  %v10468_v8 = vsel %vm5683_vm11, 1.0, %v10714_v28  ;;  %v10471_v6 = vsel %vm5684_vm12, 1.0, %v10714_v28  ;;  %vm5685_vm13 = vcmp.gt.f32.partialorder %v5653_v55, 0.0 }
 0x3d4   :  { %5809 = vst [vmem:[#allocation20 + $0x48] sm:$0xff] %v5777_v39  ;;  %v5779_v62 = vsub.f32 %v5651_v27, %v10468_v8  ;;  %v5780_v12 = vsub.f32 %v5652_v3, %v10471_v6  ;;  %v10476_v46 = vsel %vm5685_vm13, 1.0, %v10714_v28  ;;  %v5590_v14 = vmul.f32 2.0, %v10126_v41  ;;  %v5558_v41 = vld [vmem:[#allocation20 + $0x70] sm:$0xff]  ;;  %v5560_v27 = vld [vmem:[#allocation20 + $0x80] sm:$0xff] }
 0x3d5   :  { %5810 = vst [vmem:[#allocation20 + $0x50] sm:$0xff] %v5778_v13  ;;  %v5781_v18 = vsub.f32 %v5653_v55, %v10476_v46  ;;  %v5591_v22 = vmul.f32 2.0, %v10129_v29  ;;  %v5592_v20 = vmul.f32 2.0, %v10152_v44  ;;  %v5593_v25 = vmul.f32 2.0, %v10155_v37  ;;  %v5559_v44 = vld [vmem:[#allocation20 + $0x78] sm:$0xff]  ;;  %v5561_v37 = vld [vmem:[#allocation20 + $0x88] sm:$0xff] }
 0x3d6   :  { %5811 = vst [vmem:[#allocation20 + $0x58] sm:$0xff] %v5779_v62  ;;  %5812 = vst [vmem:[#allocation20 + $0x60] sm:$0xff] %v5780_v12  ;;  %v6641_v5 = vadd.f32 -1.0, %v5590_v14  ;;  %v5594_v51 = vmul.f32 2.0, %v10158_v23  ;;  %v5595_v35 = vmul.f32 2.0, %v10161_v11  ;;  %v5596_v33 = vmul.f32 2.0, %v10168_v43 }
 0x3d7   :  { %5813 = vst [vmem:[#allocation20 + $0x68] sm:$0xff] %v5781_v18  ;;  %v6642_v38 = vadd.f32 -1.0, %v5591_v22  ;;  %v6643_v17 = vadd.f32 -1.0, %v5592_v20  ;;  %v6644_v1 = vadd.f32 -1.0, %v5593_v25  ;;  %v5597_v29 = vmul.f32 2.0, %v10171_v45  ;;  %v5562_v11 = vld [vmem:[#allocation20 + $0x90] sm:$0xff] }
 0x3d8   :  { %v5654_v15 = vadd.f32 %v6641_v5, %v5558_v41  ;;  %v6645_v3 = vadd.f32 -1.0, %v5594_v51  ;;  %v6646_v34 = vadd.f32 -1.0, %v5595_v35  ;;  %v6647_v61 = vadd.f32 -1.0, %v5596_v33  ;;  %v5563_v13 = vld [vmem:[#allocation20 + $0x98] sm:$0xff]  ;;  %v5564_v43 = vld [vmem:[#allocation20 + $0xa0] sm:$0xff]  ;;  %v5565_v41 = vld [vmem:[#allocation20 + $0xa8] sm:$0xff] }
 0x3d9   :  { %v5655_v55 = vadd.f32 %v6642_v38, %v5559_v44  ;;  %v5656_v23 = vadd.f32 %v6643_v17, %v5560_v27  ;;  %v5657_v39 = vadd.f32 %v6644_v1, %v5561_v37  ;;  %v6648_v62 = vadd.f32 -1.0, %v5597_v29 }
 0x3da   :  { %vm5686_vm14 = vcmp.gt.f32.partialorder %v5654_v15, 0.0  ;;  %v5658_v12 = vadd.f32 %v6645_v3, %v5562_v11  ;;  %v5659_v14 = vadd.f32 %v6646_v34, %v5563_v13  ;;  %v5660_v18 = vadd.f32 %v6647_v61, %v5564_v43 }
 0x3db   :  { %v10488_v45 = vsel %vm5686_vm14, 1.0, %v10714_v28  ;;  %vm5687_vm15 = vcmp.gt.f32.partialorder %v5655_v55, 0.0  ;;  %vm5688_vm0 = vcmp.gt.f32.partialorder %v5656_v23, 0.0  ;;  %vm5689_vm1 = vcmp.gt.f32.partialorder %v5657_v39, 0.0 }
 0x3dc   :  { %v5782_v22 = vsub.f32 %v5654_v15, %v10488_v45  ;;  %v10492_v20 = vsel %vm5687_vm15, 1.0, %v10714_v28  ;;  %v10495_v25 = vsel %vm5688_vm0, 1.0, %v10714_v28  ;;  %v10498_v5 = vsel %vm5689_vm1, 1.0, %v10714_v28 }
 0x3dd   :  { %v5783_v51 = vsub.f32 %v5655_v55, %v10492_v20  ;;  %v5784_v35 = vsub.f32 %v5656_v23, %v10495_v25  ;;  %v5785_v33 = vsub.f32 %v5657_v39, %v10498_v5  ;;  %vm5690_vm2 = vcmp.gt.f32.partialorder %v5658_v12, 0.0  ;;  %v5566_v39 = vld [vmem:[#allocation20 + $0xb0] sm:$0xff] }
 0x3de   :  { %5814 = vst [vmem:[#allocation20 + $0x70] sm:$0xff] %v5782_v22  ;;  %v10504_v38 = vsel %vm5690_vm2, 1.0, %v10714_v28  ;;  %vm5691_vm3 = vcmp.gt.f32.partialorder %v5659_v14, 0.0  ;;  %vm5692_vm4 = vcmp.gt.f32.partialorder %v5660_v18, 0.0  ;;  %v5661_v17 = vadd.f32 %v6648_v62, %v5565_v41  ;;  %v5567_v62 = vld [vmem:[#allocation20 + $0xb8] sm:$0xff]  ;;  %v5568_v22 = vld [vmem:[#allocation20 + $0xc0] sm:$0xff] }
 0x3df   :  { %5815 = vst [vmem:[#allocation20 + $0x78] sm:$0xff] %v5783_v51  ;;  %5816 = vst [vmem:[#allocation20 + $0x80] sm:$0xff] %v5784_v35  ;;  %v5786_v1 = vsub.f32 %v5658_v12, %v10504_v38  ;;  %v10508_v29 = vsel %vm5691_vm3, 1.0, %v10714_v28  ;;  %v10511_v15 = vsel %vm5692_vm4, 1.0, %v10714_v28  ;;  %v5598_v44 = vmul.f32 2.0, %v10174_v9 }
 0x3e0   :  { %5817 = vst [vmem:[#allocation20 + $0x88] sm:$0xff] %v5785_v33  ;;  %v5787_v27 = vsub.f32 %v5659_v14, %v10508_v29  ;;  %v5788_v37 = vsub.f32 %v5660_v18, %v10511_v15  ;;  %vm5693_vm5 = vcmp.gt.f32.partialorder %v5661_v17, 0.0  ;;  %v5599_v3 = vmul.f32 2.0, %v10177_v63 }
 0x3e1   :  { %5818 = vst [vmem:[#allocation20 + $0x90] sm:$0xff] %v5786_v1  ;;  %v10518_v34 = vsel %vm5693_vm5, 1.0, %v10714_v28  ;;  %v6649_v61 = vadd.f32 -1.0, %v5598_v44  ;;  %v5600_v55 = vmul.f32 2.0, %v10200_v60  ;;  %v5601_v23 = vmul.f32 2.0, %v10203_v0  ;;  %v5569_v0 = vld [vmem:[#allocation20 + $0xc8] sm:$0xff] }
 0x3e2   :  { %5819 = vst [vmem:[#allocation20 + $0x98] sm:$0xff] %v5787_v27  ;;  %5820 = vst [vmem:[#allocation20 + $0xa0] sm:$0xff] %v5788_v37  ;;  %v5789_v9 = vsub.f32 %v5661_v17, %v10518_v34  ;;  %v6650_v11 = vadd.f32 -1.0, %v5599_v3  ;;  %v5602_v13 = vmul.f32 2.0, %v10206_v16  ;;  %v5603_v43 = vmul.f32 2.0, %v10209_v56  ;;  %v5570_v16 = vld [vmem:[#allocation20 + $0xd0] sm:$0xff] }
 0x3e3   :  { %v5662_v63 = vadd.f32 %v6649_v61, %v5566_v39  ;;  %v6651_v12 = vadd.f32 -1.0, %v5600_v55  ;;  %v6652_v14 = vadd.f32 -1.0, %v5601_v23  ;;  %v5604_v18 = vmul.f32 2.0, %v10216_v59  ;;  %v5571_v1 = vld [vmem:[#allocation20 + $0xd8] sm:$0xff] }
 0x3e4   :  { %5821 = vst [vmem:[#allocation20 + $0xa8] sm:$0xff] %v5789_v9  ;;  %v5663_v60 = vadd.f32 %v6650_v11, %v5567_v62  ;;  %v6653_v51 = vadd.f32 -1.0, %v5602_v13  ;;  %v6654_v35 = vadd.f32 -1.0, %v5603_v43  ;;  %v5605_v33 = vmul.f32 2.0, %v10219_v32  ;;  %v5572_v11 = vld [vmem:[#allocation20 + $0xe0] sm:$0xff] }
 0x3e5   :  { %vm5694_vm6 = vcmp.gt.f32.partialorder %v5662_v63, 0.0  ;;  %v5664_v41 = vadd.f32 %v6651_v12, %v5568_v22  ;;  %v5665_v17 = vadd.f32 %v6652_v14, %v5569_v0  ;;  %v6655_v56 = vadd.f32 -1.0, %v5604_v18  ;;  %v5573_v14 = vld [vmem:[#allocation20 + $0xe8] sm:$0xff] }
 0x3e6   :  { %v10528_v44 = vsel %vm5694_vm6, 1.0, %v10714_v28  ;;  %vm5695_vm7 = vcmp.gt.f32.partialorder %v5663_v60, 0.0  ;;  %v5666_v27 = vadd.f32 %v6653_v51, %v5570_v16  ;;  %v5667_v59 = vadd.f32 %v6654_v35, %v5571_v1  ;;  %v10960_v1 = vld [vmem:[#allocation36_spill] sm:$0xff] }
 0x3e7   :  { %v5790_v37 = vsub.f32 %v5662_v63, %v10528_v44  ;;  %v10532_v3 = vsel %vm5695_vm7, 1.0, %v10714_v28  ;;  %vm5696_vm8 = vcmp.gt.f32.partialorder %v5664_v41, 0.0  ;;  %vm5697_vm9 = vcmp.gt.f32.partialorder %v5665_v17, 0.0 }
 0x3e8   :  { %v5791_v32 = vsub.f32 %v5663_v60, %v10532_v3  ;;  %v10536_v61 = vsel %vm5696_vm8, 1.0, %v10714_v28  ;;  %v10539_v55 = vsel %vm5697_vm9, 1.0, %v10714_v28  ;;  %vm5698_vm10 = vcmp.gt.f32.partialorder %v5666_v27, 0.0 }
 0x3e9   :  { %5822 = vst [vmem:[#allocation20 + $0xb0] sm:$0xff] %v5790_v37  ;;  %v5792_v23 = vsub.f32 %v5664_v41, %v10536_v61  ;;  %v5793_v9 = vsub.f32 %v5665_v17, %v10539_v55  ;;  %v10544_v39 = vsel %vm5698_vm10, 1.0, %v10714_v28  ;;  %vm5699_vm11 = vcmp.gt.f32.partialorder %v5667_v59, 0.0  ;;  %v5575_v17 = vld [vmem:[#allocation20 + $0xf8] sm:$0xff] }
 0x3ea   :  { %5823 = vst [vmem:[#allocation20 + $0xb8] sm:$0xff] %v5791_v32  ;;  %v5794_v13 = vsub.f32 %v5666_v27, %v10544_v39  ;;  %v10548_v43 = vsel %vm5699_vm11, 1.0, %v10714_v28  ;;  %v5668_v63 = vadd.f32 %v6655_v56, %v5572_v11  ;;  %v6656_v62 = vadd.f32 -1.0, %v5605_v33  ;;  %v10964_v32 = vld [vmem:[#allocation40_spill] sm:$0xff]  ;;  %v10967_v11 = vld [vmem:[#allocation43_spill] sm:$0xff] }
 0x3eb   :  { %5824 = vst [vmem:[#allocation20 + $0xc0] sm:$0xff] %v5792_v23  ;;  %5825 = vst [vmem:[#allocation20 + $0xc8] sm:$0xff] %v5793_v9  ;;  %v5795_v12 = vsub.f32 %v5667_v59, %v10548_v43  ;;  %v5606_v18 = vmul.f32 2.0, %v10222_v53  ;;  %v5607_v60 = vmul.f32 2.0, %v10225_v2  ;;  %v5832_v22 = vmul.f32 %v10416_v48, %v10231_v49  ;;  %v5574_v48 = vld [vmem:[#allocation20 + $0xf0] sm:$0xff]  ;;  %v10966_v9 = vld [vmem:[#allocation42_spill] sm:$0xff] }
 0x3ec   :  { %5826 = vst [vmem:[#allocation20 + $0xd0] sm:$0xff] %v5794_v13  ;;  %vm5700_vm12 = vcmp.gt.f32.partialorder %v5668_v63, 0.0  ;;  %v5669_v0 = vadd.f32 %v6656_v62, %v5573_v14  ;;  %v5833_v51 = vmul.f32 %v10420_v4, %v10233_v57  ;;  %v5834_v35 = vmul.f32 %v10424_v40, %v10235_v52 }
 0x3ed   :  { %5827 = vst [vmem:[#allocation20 + $0xd8] sm:$0xff] %v5795_v12  ;;  %v10560_v33 = vsel %vm5700_vm12, 1.0, %v10714_v28  ;;  %v6657_v41 = vadd.f32 -1.0, %v5606_v18  ;;  %v6658_v53 = vadd.f32 -1.0, %v5607_v60  ;;  %5864 = vst [vmem:[#allocation14] sm:$0xff] %v5832_v22  ;;  %v5835_v2 = vmul.f32 %v10430_v30, %v10237_v47  ;;  %v10973_v18 = vld [vmem:[#allocation49_spill] sm:$0xff] }
 0x3ee   :  { %v5796_v49 = vsub.f32 %v5668_v63, %v10560_v33  ;;  %vm5701_vm13 = vcmp.gt.f32.partialorder %v5669_v0, 0.0  ;;  %5865 = vst [vmem:[#allocation14 + $0x8] sm:$0xff] %v5833_v51  ;;  %5866 = vst [vmem:[#allocation14 + $0x10] sm:$0xff] %v5834_v35  ;;  %v5836_v57 = vmul.f32 %v10434_v7, %v10243_v58  ;;  %v5837_v52 = vmul.f32 %v10437_v36, %v10245_v10  ;;  %v10958_v7 = vld [vmem:[#allocation34_spill] sm:$0xff]  ;;  %v10968_v63 = vld [vmem:[#allocation44_spill] sm:$0xff] }
 0x3ef   :  { %v10570_v4 = vsel %vm5701_vm13, 1.0, %v10714_v28  ;;  %v5670_v40 = vadd.f32 %v6657_v41, %v5574_v48  ;;  %v5671_v16 = vadd.f32 %v6658_v53, %v5575_v17  ;;  %5867 = vst [vmem:[#allocation14 + $0x18] sm:$0xff] %v5835_v2  ;;  %v5838_v47 = vmul.f32 %v10444_v31, %v10247_v54  ;;  %v10959_v54 = vld [vmem:[#allocation35_spill] sm:$0xff]  ;;  %v10974_v60 = vld [vmem:[#allocation50_spill] sm:$0xff] }
 0x3f0   :  { %5828 = vst [vmem:[#allocation20 + $0xe0] sm:$0xff] %v5796_v49  ;;  %v5797_v30 = vsub.f32 %v5669_v0, %v10570_v4  ;;  %5868 = vst [vmem:[#allocation14 + $0x20] sm:$0xff] %v5836_v57  ;;  %v5839_v58 = vmul.f32 %v10452_v50, %v10249_v21  ;;  %v5840_v10 = vmul.f32 %v10456_v42, %v10255_v19  ;;  %v10961_v19 = vld [vmem:[#allocation37_spill] sm:$0xff] }
 0x3f1   :  { %5869 = vst [vmem:[#allocation14 + $0x28] sm:$0xff] %v5837_v52  ;;  %v5841_v36 = vmul.f32 %v10460_v26, %v10958_v7  ;;  %vm5702_vm14 = vcmp.gt.f32.partialorder %v5670_v40, 0.0  ;;  %vm5703_vm15 = vcmp.gt.f32.partialorder %v5671_v16, 0.0  ;;  %5870 = vst [vmem:[#allocation14 + $0x30] sm:$0xff] %v5838_v47  ;;  %v5842_v31 = vmul.f32 %v10464_v24, %v10959_v54  ;;  %v10962_v26 = vld [vmem:[#allocation38_spill] sm:$0xff]  ;;  %v10963_v24 = vld [vmem:[#allocation39_spill] sm:$0xff] }
 0x3f2   :  { %v5843_v56 = vmul.f32 %v10468_v8, %v10960_v1  ;;  %5829 = vst [vmem:[#allocation20 + $0xe8] sm:$0xff] %v5797_v30  ;;  %v6689_v21 = vsel %vm5702_vm14, 1.0, %v10714_v28  ;;  %v6690_v50 = vsel %vm5703_vm15, 1.0, %v10714_v28  ;;  %5871 = vst [vmem:[#allocation14 + $0x38] sm:$0xff] %v5839_v58  ;;  %v5844_v42 = vmul.f32 %v10471_v6, %v10961_v19  ;;  %v10965_v28 = vld [vmem:[#allocation41_spill] sm:$0xff] }
 0x3f3   :  { %5872 = vst [vmem:[#allocation14 + $0x40] sm:$0xff] %v5840_v10  ;;  %5873 = vst [vmem:[#allocation14 + $0x48] sm:$0xff] %v5841_v36  ;;  %v5845_v27 = vmul.f32 %v10476_v46, %v10962_v26  ;;  %v5798_v59 = vsub.f32 %v5670_v40, %v6689_v21  ;;  %v5799_v37 = vsub.f32 %v5671_v16, %v6690_v50 }
 0x3f4   :  { %5874 = vst [vmem:[#allocation14 + $0x50] sm:$0xff] %v5842_v31  ;;  %5875 = vst [vmem:[#allocation14 + $0x58] sm:$0xff] %v5843_v56  ;;  %v5846_v8 = vmul.f32 %v10488_v45, %v10963_v24  ;;  %v5847_v23 = vmul.f32 %v10492_v20, %v10964_v32  ;;  %v5848_v6 = vmul.f32 %v10495_v25, %v10965_v28  ;;  %v10969_v45 = vld [vmem:[#allocation45_spill] sm:$0xff]  ;;  %v10970_v25 = vld [vmem:[#allocation46_spill] sm:$0xff] }
 0x3f5   :  { %5876 = vst [vmem:[#allocation14 + $0x60] sm:$0xff] %v5844_v42  ;;  %5877 = vst [vmem:[#allocation14 + $0x68] sm:$0xff] %v5845_v27  ;;  %v5849_v46 = vmul.f32 %v10498_v5, %v10966_v9  ;;  %v5850_v13 = vmul.f32 %v10504_v38, %v10967_v11  ;;  %v5851_v62 = vmul.f32 %v10508_v29, %v10968_v63  ;;  %v10971_v38 = vld [vmem:[#allocation47_spill] sm:$0xff]  ;;  %v10972_v29 = vld [vmem:[#allocation48_spill] sm:$0xff] }
 0x3f6   :  { %5830 = vst [vmem:[#allocation20 + $0xf0] sm:$0xff] %v5798_v59  ;;  %5831 = vst [vmem:[#allocation20 + $0xf8] sm:$0xff] %v5799_v37  ;;  %v5852_v20 = vmul.f32 %v10511_v15, %v10969_v45  ;;  %v5853_v5 = vmul.f32 %v10518_v34, %v10970_v25  ;;  %v5854_v12 = vmul.f32 %v10528_v44, %v10971_v38  ;;  %v10975_v34 = vld [vmem:[#allocation51_spill] sm:$0xff]  ;;  %v10976_v44 = vld [vmem:[#allocation52_spill] sm:$0xff] }
 0x3f7   :  { %5878 = vst [vmem:[#allocation14 + $0x70] sm:$0xff] %v5846_v8  ;;  %5879 = vst [vmem:[#allocation14 + $0x78] sm:$0xff] %v5847_v23  ;;  %v5855_v14 = vmul.f32 %v10532_v3, %v10972_v29  ;;  %v5856_v15 = vmul.f32 %v10536_v61, %v10973_v18  ;;  %v5857_v22 = vmul.f32 %v10539_v55, %v10974_v60 }
 0x3f8   :  { %5880 = vst [vmem:[#allocation14 + $0x80] sm:$0xff] %v5848_v6  ;;  %5881 = vst [vmem:[#allocation14 + $0x88] sm:$0xff] %v5849_v46  ;;  %v5858_v0 = vmul.f32 %v10544_v39, %v10975_v34  ;;  %v5859_v51 = vmul.f32 %v10548_v43, %v10976_v44 }
 0x3f9   :  { %5882 = vst [vmem:[#allocation14 + $0x90] sm:$0xff] %v5850_v13  ;;  %5883 = vst [vmem:[#allocation14 + $0x98] sm:$0xff] %v5851_v62 }
 0x3fa   :  { %6915 = shalt.err (!%p6912_p6)
}
 0x3fb   :  { %s6916_s0 = scalar_lea.hbm %s10701_s11, 4096 }
 0x3fc   :  { %p6917_p7 = scmp.ne.s32.totalorder %s10701_s11, %s6916_s0  ;;  %p6920_p8 = scmp.lt.u32.totalorder %s6916_s0, %s10701_s11 }
 0x3fe   :  { %p6922_p9 = pnand %p6920_p8, %p6917_p7 }
 0x400   :  { %6925 = shalt.err (!%p6922_p9)
}
 0x401   :  { %6088 = dma.vmem_to_hbm [thread:$0]  %s10595_s27, 4096, %s10701_s11, [#allocation21], %s6988_s29, %s6988_s29, %s6989_s30   ;;  %5884 = vst [vmem:[#allocation14 + $0xa0] sm:$0xff] %v5852_v20  ;;  %5885 = vst [vmem:[#allocation14 + $0xa8] sm:$0xff] %v5853_v5  ;;  %v10977_v3 = vld [vmem:[#allocation30_spill] sm:$0xff]  ;;  %v10978_v55 = vld [vmem:[#allocation31_spill] sm:$0xff] }
 0x402   :  { %5886 = vst [vmem:[#allocation14 + $0xb0] sm:$0xff] %v5854_v12  ;;  %5887 = vst [vmem:[#allocation14 + $0xb8] sm:$0xff] %v5855_v14  ;;  %v5860_v61 = vmul.f32 %v10560_v33, %v10977_v3  ;;  %v5861_v39 = vmul.f32 %v10570_v4, %v10978_v55  ;;  %v10979_v43 = vld [vmem:[#allocation32_spill] sm:$0xff]  ;;  %v10980_v41 = vld [vmem:[#allocation33_spill] sm:$0xff]  ;;  %s6926_s11 = scalar_lea.vmem %s6035_s23, 4096  ;;  %p6931_p11 = scmp.lt.s32.totalorder %s6035_s23, %s6035_s23 }
 0x403   :  { %v5862_v35 = vmul.f32 %v6689_v21, %v10979_v43  ;;  %v5863_v53 = vmul.f32 %v6690_v50, %v10980_v41  ;;  %5888 = vst [vmem:[#allocation14 + $0xc0] sm:$0xff] %v5856_v15  ;;  %5889 = vst [vmem:[#allocation14 + $0xc8] sm:$0xff] %v5857_v22  ;;  %p6927_p10 = scmp.ne.s32.totalorder %s6035_s23, %s6926_s11  ;;  %p6932_p12 = scmp.lt.s32.totalorder %s6926_s11, %s6926_s11 }
 0x404   :  { %5890 = vst [vmem:[#allocation14 + $0xd0] sm:$0xff] %v5858_v0  ;;  %5891 = vst [vmem:[#allocation14 + $0xd8] sm:$0xff] %v5859_v51 }
 0x405   :  { %5892 = vst [vmem:[#allocation14 + $0xe0] sm:$0xff] %v5860_v61  ;;  %5893 = vst [vmem:[#allocation14 + $0xe8] sm:$0xff] %v5861_v39  ;;  %p6933_p13 = por %p6932_p12, %p6931_p11 }
 0x406   :  { %5894 = vst [vmem:[#allocation14 + $0xf0] sm:$0xff] %v5862_v35  ;;  %5895 = vst [vmem:[#allocation14 + $0xf8] sm:$0xff] %v5863_v53 }
 0x407   :  { %p6934_p0 = pnand %p6933_p13, %p6927_p10 }
 0x409   :  { %6937 = shalt.err (!%p6934_p0)
}
 0x40a   :  { %s6938_s16 = scalar_lea.hbm %s10697_s7, 4096 }
 0x40b   :  { %p6939_p1 = scmp.ne.s32.totalorder %s10697_s7, %s6938_s16  ;;  %p6942_p2 = scmp.lt.u32.totalorder %s6938_s16, %s10697_s7 }
 0x40d   :  { %p6944_p3 = pnand %p6942_p2, %p6939_p1 }
 0x40f   :  { %6947 = shalt.err (!%p6944_p3)
}
 0x410   :  { %6040 = dma.vmem_to_hbm [thread:$0]  %s6035_s23, 4096, %s10697_s7, [#allocation15], %s6988_s29, %s6988_s29, %s6989_s30  }
 0x411   :  { %s6948_s2 = scalar_lea.vmem %s10653_s18, 4096  ;;  %p6953_p5 = scmp.lt.s32.totalorder %s10653_s18, %s10653_s18 }
 0x412   :  { %p6949_p4 = scmp.ne.s32.totalorder %s10653_s18, %s6948_s2  ;;  %p6954_p6 = scmp.lt.s32.totalorder %s6948_s2, %s6948_s2 }
 0x414   :  { %p6955_p7 = por %p6954_p6, %p6953_p5 }
 0x416   :  { %p6956_p8 = pnand %p6955_p7, %p6949_p4 }
 0x418   :  { %6959 = shalt.err (!%p6956_p8)
}
 0x419   :  { %s6960_s9 = scalar_lea.hbm %s10698_s8, 4096 }
 0x41a   :  { %p6961_p9 = scmp.ne.s32.totalorder %s10698_s8, %s6960_s9  ;;  %p6964_p10 = scmp.lt.u32.totalorder %s6960_s9, %s10698_s8 }
 0x41c   :  { %p6966_p11 = pnand %p6964_p10, %p6961_p9 }
 0x41e   :  { %6969 = shalt.err (!%p6966_p11)
}
 0x41f   :  { %6052 = dma.vmem_to_hbm [thread:$0]  %s10653_s18, 4096, %s10698_s8, [#allocation15], %s6988_s29, %s6988_s29, %s6989_s30  }
 0x420   :  { %6978 = dma.done.wait [#allocation4], 6144  }
 0x421   :  { %6979 = vsyncadd [#allocation4], 4294961152 }
 0x422   :  { %6980 = dma.done.wait [#allocation15], 8192  }
 0x423   :  { %6981 = vsyncadd [#allocation15], 4294959104 }
 0x424   :  { %6982 = dma.done.wait [#allocation18], 8192  }
 0x425   :  { %6983 = vsyncadd [#allocation18], 4294959104 }
 0x426   :  { %6984 = dma.done.wait [#allocation21], 4096  }
 0x427   :  { %6985 = vsyncadd [#allocation21], 4294963200 }
 0x428   :  { %6107 = vsyncpa [#allocation3], 1 }
 0x429   :  { %6108 = vsyncpa [#allocation6], 1 }
 0x42a   :  { %6109 = vsyncpa [#allocation9], 1 }
 0x42b   :  { %6110 = vsyncpa [#allocation12], 1 }
 0x42c   :  { %6111 = vsyncpa [#allocation4], 1 }
 0x42d   :  { %6112 = vsyncpa [#allocation15], 1 }
 0x42e   :  { %6113 = vsyncpa [#allocation18], 1 }
 0x42f   :  { %6114 = vsyncpa [#allocation21], 1 }

</bundles_post_ra>
